<compile_context>
chip_gen: v6e
topology: v6e:2x2x1
jax: 0.10.0
libtpu: 0.0.40
codegen_flags: <defaults>
</compile_context>

<pallas_src>
import jax
import jax.numpy as jnp
import numpy as np
from jax import lax
from jax.experimental import pallas as pl
from jax.experimental.pallas import tpu as pltpu

# ---------------- configuration (small, forward-consistent shapes) ----------------
N       = 256                 # number of query == support points
H       = 16                  # max neighbors per query point
C_IN    = 32                  # in_dim
OUT_DIM = 64                  # out_dim (SimpleBlock)
C_OUT   = OUT_DIM // 2        # KPConv out channels = out_dim // 2
K       = 8                   # num_kernel_points
P_DIM   = 3                   # in_points_dim
RADIUS  = 1.0
CFG_KP_EXTENT   = 1.2
CFG_CONV_RADIUS = 2.5
KP_EXTENT     = RADIUS * CFG_KP_EXTENT / CFG_CONV_RADIUS   # current_extent = 0.48
INV_KP_EXTENT = 1.0 / KP_EXTENT
BN_EPS  = 1e-5                # nn.InstanceNorm1d default eps
LEAKY_SLOPE = 0.1


# ---------------- fused KPConv + InstanceNorm + LeakyReLU kernel (single step) ----------------
def simple_block_kernel(nb_ref, kp_ref, nx_ref, w_ref, seg_ref, invn_ref, o_ref):
    nb   = nb_ref[...]     # (3, N*H)        f32  neighbor offsets (support - query), lane-dense
    kp   = kp_ref[...]     # (K, 3)          f32  kernel points
    nx   = nx_ref[...]     # (C_IN, N*H)     bf16 gathered neighbor features, lane-dense
    w    = w_ref[...]      # (K*C_OUT, C_IN) bf16 reshaped conv weights
    seg  = seg_ref[...]    # (N*H, N)        bf16 0/1 neighbor->query segment matrix (hoisted)
    invn = invn_ref[...]   # (1, N)          f32  1 / neighbor_num per query point

    # --- squared distances, direct per-coordinate form: sum_c (n_c - kp_c)^2 ---
    d0 = nb[0:1, :] - kp[:, 0:1]                                              # (K, N*H)
    d1 = nb[1:2, :] - kp[:, 1:2]
    d2 = nb[2:3, :] - kp[:, 2:3]
    sq_d = d0 * d0 + d1 * d1 + d2 * d2                                        # (K, N*H) f32

    # linear KP influence, aggregation_mode='sum'
    all_w = jnp.maximum(1.0 - jnp.sqrt(sq_d) * INV_KP_EXTENT, 0.0)            # (K, N*H) f32

    # --- per-kernel-point feature transform on the MXU (bf16 in, f32 accumulate) ---
    # g[(k, co), nh] = sum_ci W[k, ci, co] * x[idx[nh], ci]
    g = jnp.dot(w, nx, preferred_element_type=jnp.float32)                    # (K*C_OUT, N*H)

    # --- weight by kernel-point influence and sum over kernel points (VPU, f32) ---
    z = all_w[0:1, :] * g[0:C_OUT, :]
    for k in range(1, K):                                                     # K = 8, static
        z = z + all_w[k:k + 1, :] * g[k * C_OUT:(k + 1) * C_OUT, :]           # (C_OUT, N*H)

    # --- sum over the H neighbors of each query point via a bf16 0/1 MXU matmul ---
    # (keeps everything lane-dense; seg is an exact 0/1 bf16 constant, f32 accumulation)
    out = jnp.dot(z.astype(jnp.bfloat16), seg,
                  preferred_element_type=jnp.float32)                         # (C_OUT, N)

    # normalize by number of valid neighbors (reciprocal precomputed in the wrapper)
    out = out * invn

    # --- fused BatchNormBlock (InstanceNorm over points) + LeakyReLU ---
    # TODO(synk): at real point-cloud sizes, emit per-tile partial sums / sums-of-squares and
    # finalize the stats in a tiny second pass so the point axis can be "parallel" on v7x.
    mean = jnp.mean(out, axis=1, keepdims=True)
    cen = out - mean
    var = jnp.mean(cen * cen, axis=1, keepdims=True)
    yn = cen * lax.rsqrt(var + BN_EPS)
    o_ref[...] = jnp.where(yn >= 0.0, yn, LEAKY_SLOPE * yn)


# ---------------- SimpleBlock.forward wrapper ----------------
@jax.jit
def simple_block_forward(x, q_pts, s_pts, neighb_inds, kernel_points, weights):
    nq, h = neighb_inds.shape
    c_in = x.shape[1]

    # shadow support point at +1e6 and shadow zero feature row (torch.cat in KPConv.forward)
    s_pts_pad = jnp.concatenate(
        [s_pts, jnp.full((1, P_DIM), 1.0e6, s_pts.dtype)], axis=0)
    x_pad = jnp.concatenate([x, jnp.zeros((1, c_in), x.dtype)], axis=0)

    idx_flat = neighb_inds.reshape(-1)                                        # (N*H,)

    # TODO(synk): the data-dependent neighbor gather stays in XLA; at KPConv-scale inputs
    # (N~1e5, H~40) switch to PrefetchScalarGridSpec(num_scalar_prefetch=1) + in-kernel
    # chunked make_async_copy gathers from HBM instead of materializing this slab.
    nx_t = jnp.take(x_pad.T.astype(jnp.bfloat16), idx_flat, axis=1)           # (C_IN, N*H)

    # neighbor offsets (support - query), channel-major (3, N*H): lane-dense
    neighbors = (jnp.take(s_pts_pad, idx_flat, axis=0).reshape(nq, h, P_DIM)
                 - q_pts[:, None, :])
    nb_t = neighbors.reshape(nq * h, P_DIM).T                                 # (3, N*H)

    # valid-neighbor count, same semantics as torch: sum(gathered features) > 0, min 1
    row_sum = jnp.sum(x_pad, axis=1)                                          # (N+1,)
    nf_sum = jnp.take(row_sum, neighb_inds, axis=0)                           # (N, H)
    n_num = jnp.maximum(jnp.sum((nf_sum > 0.0).astype(jnp.float32), axis=1), 1.0)
    inv_nnum = (1.0 / n_num).reshape(1, nq)                                   # (1, N)

    # weights reshaped so g rows are (k, co) blocks: W_t[k*C_OUT + co, ci] = W[k, ci, co]
    w_t = jnp.transpose(weights, (0, 2, 1)).reshape(K * C_OUT, C_IN).astype(jnp.bfloat16)

    # hoisted 0/1 segment matrix: seg[nh, n] = 1 iff neighbor slot nh belongs to query n.
    # Constant under jit (shape-only), delivered to the kernel as a one-time bf16 DMA.
    seg = (jnp.arange(nq * h, dtype=jnp.int32)[:, None] // h
           == jnp.arange(nq, dtype=jnp.int32)[None, :]).astype(jnp.bfloat16)  # (N*H, N)

    out_t = pl.pallas_call(
        simple_block_kernel,
        out_shape=jax.ShapeDtypeStruct((C_OUT, nq), jnp.float32),
        grid=(1,),                                                            # single step
        in_specs=[
            pl.BlockSpec((P_DIM, nq * h),   lambda i: (0, 0)),
            pl.BlockSpec((K, P_DIM),        lambda i: (0, 0)),
            pl.BlockSpec((C_IN, nq * h),    lambda i: (0, 0)),
            pl.BlockSpec((K * C_OUT, C_IN), lambda i: (0, 0)),
            pl.BlockSpec((nq * h, nq),      lambda i: (0, 0)),
            pl.BlockSpec((1, nq),           lambda i: (0, 0)),
        ],
        out_specs=pl.BlockSpec((C_OUT, nq), lambda i: (0, 0)),                # lane-dense out
        compiler_params=pltpu.CompilerParams(
            dimension_semantics=("arbitrary",),
            vmem_limit_bytes=32 * 1024 * 1024),
    )(nb_t, kernel_points, nx_t, w_t, seg, inv_nnum)

    return out_t.T                                                            # (N, C_OUT)


# ---------------- pure-JAX references ----------------
def ref_forward_f32(x, q_pts, s_pts, neighb_inds, kernel_points, weights):
    """Mirrors the torch code order in pure f32 (loose check)."""
    s_pts_pad = jnp.concatenate([s_pts, jnp.full((1, P_DIM), 1.0e6, s_pts.dtype)], 0)
    x_pad = jnp.concatenate([x, jnp.zeros((1, x.shape[1]), x.dtype)], 0)
    neighbors = s_pts_pad[neighb_inds] - q_pts[:, None, :]
    diffs = neighbors[:, :, None, :] - kernel_points[None, None, :, :]
    sq_d = jnp.sum(diffs ** 2, axis=3)                                        # (N, H, K)
    all_w = jnp.maximum(1.0 - jnp.sqrt(sq_d) / KP_EXTENT, 0.0)
    all_w = jnp.transpose(all_w, (0, 2, 1))                                   # (N, K, H)
    neighb_x = x_pad[neighb_inds]                                             # (N, H, C_IN)
    nf_sum = jnp.sum(neighb_x, axis=-1)
    n_num = jnp.maximum(jnp.sum((nf_sum > 0.0).astype(jnp.float32), axis=-1), 1.0)
    wf = jnp.matmul(all_w, neighb_x)                                          # (N, K, C_IN)
    wf = jnp.transpose(wf, (1, 0, 2))                                         # (K, N, C_IN)
    ko = jnp.matmul(wf, weights)                                              # (K, N, C_OUT)
    out = jnp.sum(ko, axis=0) / n_num[:, None]
    mean = jnp.mean(out, axis=0, keepdims=True)
    var = jnp.mean((out - mean) ** 2, axis=0, keepdims=True)
    y = (out - mean) / jnp.sqrt(var + BN_EPS)
    return jnp.where(y >= 0.0, y, LEAKY_SLOPE * y)


def ref_forward_bf16_mirror(x, q_pts, s_pts, neighb_inds, kernel_points, weights):
    """Mirrors the kernel's compute order and bf16 rounding points (tight check)."""
    nq, h = neighb_inds.shape
    s_pts_pad = jnp.concatenate([s_pts, jnp.full((1, P_DIM), 1.0e6, s_pts.dtype)], 0)
    x_pad = jnp.concatenate([x, jnp.zeros((1, x.shape[1]), x.dtype)], 0)
    idx = neighb_inds.reshape(-1)
    nbr = (jnp.take(s_pts_pad, idx, axis=0).reshape(nq, h, P_DIM)
           - q_pts[:, None, :]).reshape(nq * h, P_DIM)                        # (NH, 3)
    sq_d = jnp.sum((nbr[:, None, :] - kernel_points[None, :, :]) ** 2, -1)    # (NH, K)
    all_w = jnp.maximum(1.0 - jnp.sqrt(sq_d) * INV_KP_EXTENT, 0.0)            # (NH, K)
    nx = jnp.take(x_pad, idx, axis=0).astype(jnp.bfloat16).astype(jnp.float32)  # (NH, C_IN)
    wt = weights.astype(jnp.bfloat16).astype(jnp.float32)                     # (K, C_IN, C_OUT)
    g = jnp.einsum('nc,kco->kno', nx, wt)                                     # (K, NH, C_OUT)
    z = jnp.sum(jnp.transpose(all_w)[:, :, None] * g, axis=0)                 # (NH, C_OUT)
    z = z.astype(jnp.bfloat16).astype(jnp.float32)                            # bf16 seg matmul
    out = jnp.sum(z.reshape(nq, h, C_OUT), axis=1)                            # (N, C_OUT)
    nf_sum = jnp.sum(jnp.take(x_pad, neighb_inds, axis=0), axis=-1)
    n_num = jnp.maximum(jnp.sum((nf_sum > 0.0).astype(jnp.float32), -1), 1.0)
    out = out / n_num[:, None]
    mean = jnp.mean(out, axis=0, keepdims=True)
    var = jnp.mean((out - mean) ** 2, axis=0, keepdims=True)
    y = (out - mean) / jnp.sqrt(var + BN_EPS)
    return jnp.where(y >= 0.0, y, LEAKY_SLOPE * y)


# ---------------- deterministic parameter / input construction ----------------
def make_params(key):
    k_w, k_kp = jax.random.split(key)
    # kaiming_uniform_(a=sqrt(5)) on (K, C_IN, C_OUT): bound = 1/sqrt(fan_in), fan_in=C_IN*C_OUT
    bound = 1.0 / np.sqrt(C_IN * C_OUT)
    weights = jax.random.uniform(k_w, (K, C_IN, C_OUT), jnp.float32, -bound, bound)
    # TODO(synk): load_kernels() sphere-disposition solver not ported; deterministic synthetic
    # kernel points (center fixed at origin -> fixed_kernel_points='center').
    kp = jax.random.uniform(k_kp, (K, P_DIM), jnp.float32, -0.7 * RADIUS, 0.7 * RADIUS)
    kp = kp.at[0].set(0.0)
    return weights, kp


if __name__ == "__main__":
    key = jax.random.PRNGKey(0)
    k_pts, k_idx, k_x, k_par = jax.random.split(key, 4)

    s_pts = jax.random.uniform(k_pts, (N, P_DIM), jnp.float32, 0.0, 2.0)
    q_pts = s_pts                                                 # non-strided block: q == s
    # neighbor indices in [0, N]; index == N hits the shadow (padding) point / zero feature
    neighb_inds = jax.random.randint(k_idx, (N, H), 0, N + 1, dtype=jnp.int32)
    x = jax.random.normal(k_x, (N, C_IN), jnp.float32)

    weights, kernel_points = make_params(k_par)

    out = simple_block_forward(x, q_pts, s_pts, neighb_inds, kernel_points, weights)
    out = jax.block_until_ready(out)

    # tight check: reference mirrors the kernel's bf16 rounding points and compute order
    ref_bf16 = ref_forward_bf16_mirror(x, q_pts, s_pts, neighb_inds, kernel_points, weights)
    np.testing.assert_allclose(np.asarray(out), np.asarray(ref_bf16), rtol=2e-3, atol=2e-3)

    # looser check against the pure-f32 torch-mirroring reference (bf16 MXU inputs and the
    # bf16 neighbor-sum matmul are the only intended numerical deviations)
    ref_f32 = ref_forward_f32(x, q_pts, s_pts, neighb_inds, kernel_points, weights)
    np.testing.assert_allclose(np.asarray(out), np.asarray(ref_f32), rtol=3e-2, atol=3e-2)

    print("KERNEL_OK")
</pallas_src>

<mosaic_0001>
module attributes {stable_mosaic.version = 11 : i64} {
  func.func @simple_block_kernel(%arg0: i32, %arg1: memref<3x4096xf32, #tpu.memory_space<vmem>>, %arg2: memref<8x3xf32, #tpu.memory_space<vmem>>, %arg3: memref<32x4096xbf16, #tpu.memory_space<vmem>>, %arg4: memref<256x32xbf16, #tpu.memory_space<vmem>>, %arg5: memref<4096x256xbf16, #tpu.memory_space<vmem>>, %arg6: memref<1x256xf32, #tpu.memory_space<vmem>>, %arg7: memref<32x256xf32, #tpu.memory_space<vmem>>) attributes {dimension_semantics = [#tpu.dimension_semantics<arbitrary>], iteration_bounds = array<i64: 1>, scalar_prefetch = 0 : i64, scratch_operands = 0 : i64, tpu.core_type = #tpu.core_type<tc>, window_params = [{pipeline_mode = #tpu.pipeline_mode<synchronous>, transform_indices = @transform_0, window_bounds = array<i64: 3, 4096>}, {pipeline_mode = #tpu.pipeline_mode<synchronous>, transform_indices = @transform_1, window_bounds = array<i64: 8, 3>}, {pipeline_mode = #tpu.pipeline_mode<synchronous>, transform_indices = @transform_2, window_bounds = array<i64: 32, 4096>}, {pipeline_mode = #tpu.pipeline_mode<synchronous>, transform_indices = @transform_3, window_bounds = array<i64: 256, 32>}, {pipeline_mode = #tpu.pipeline_mode<synchronous>, transform_indices = @transform_4, window_bounds = array<i64: 4096, 256>}, {pipeline_mode = #tpu.pipeline_mode<synchronous>, transform_indices = @transform_5, window_bounds = array<i64: 1, 256>}, {pipeline_mode = #tpu.pipeline_mode<synchronous>, transform_indices = @transform_6, window_bounds = array<i64: 32, 256>}]} {
    %c0 = arith.constant 0 : index
    %c0_0 = arith.constant 0 : index
    %0 = vector.load %arg1[%c0, %c0_0] : memref<3x4096xf32, #tpu.memory_space<vmem>>, vector<3x4096xf32>
    %c0_1 = arith.constant 0 : index
    %c0_2 = arith.constant 0 : index
    %1 = vector.load %arg2[%c0_1, %c0_2] : memref<8x3xf32, #tpu.memory_space<vmem>>, vector<8x3xf32>
    %c0_3 = arith.constant 0 : index
    %c0_4 = arith.constant 0 : index
    %2 = vector.load %arg3[%c0_3, %c0_4] : memref<32x4096xbf16, #tpu.memory_space<vmem>>, vector<32x4096xbf16>
    %c0_5 = arith.constant 0 : index
    %c0_6 = arith.constant 0 : index
    %3 = vector.load %arg4[%c0_5, %c0_6] : memref<256x32xbf16, #tpu.memory_space<vmem>>, vector<256x32xbf16>
    %c0_7 = arith.constant 0 : index
    %c0_8 = arith.constant 0 : index
    %4 = vector.load %arg5[%c0_7, %c0_8] : memref<4096x256xbf16, #tpu.memory_space<vmem>>, vector<4096x256xbf16>
    %c0_9 = arith.constant 0 : index
    %c0_10 = arith.constant 0 : index
    %5 = vector.load %arg6[%c0_9, %c0_10] : memref<1x256xf32, #tpu.memory_space<vmem>>, vector<1x256xf32>
    %6 = vector.extract_strided_slice %0 {offsets = [0, 0], sizes = [1, 4096], strides = [1, 1]} : vector<3x4096xf32> to vector<1x4096xf32>
    %7 = vector.extract_strided_slice %1 {offsets = [0, 0], sizes = [8, 1], strides = [1, 1]} : vector<8x3xf32> to vector<8x1xf32>
    %8 = vector.broadcast %6 : vector<1x4096xf32> to vector<8x4096xf32>
    %9 = vector.broadcast %7 : vector<8x1xf32> to vector<8x4096xf32>
    %10 = arith.subf %8, %9 : vector<8x4096xf32>
    %11 = vector.extract_strided_slice %0 {offsets = [1, 0], sizes = [1, 4096], strides = [1, 1]} : vector<3x4096xf32> to vector<1x4096xf32>
    %12 = vector.extract_strided_slice %1 {offsets = [0, 1], sizes = [8, 1], strides = [1, 1]} : vector<8x3xf32> to vector<8x1xf32>
    %13 = vector.broadcast %11 : vector<1x4096xf32> to vector<8x4096xf32>
    %14 = vector.broadcast %12 : vector<8x1xf32> to vector<8x4096xf32>
    %15 = arith.subf %13, %14 : vector<8x4096xf32>
    %16 = vector.extract_strided_slice %0 {offsets = [2, 0], sizes = [1, 4096], strides = [1, 1]} : vector<3x4096xf32> to vector<1x4096xf32>
    %17 = vector.extract_strided_slice %1 {offsets = [0, 2], sizes = [8, 1], strides = [1, 1]} : vector<8x3xf32> to vector<8x1xf32>
    %18 = vector.broadcast %16 : vector<1x4096xf32> to vector<8x4096xf32>
    %19 = vector.broadcast %17 : vector<8x1xf32> to vector<8x4096xf32>
    %20 = arith.subf %18, %19 : vector<8x4096xf32>
    %21 = arith.mulf %10, %10 : vector<8x4096xf32>
    %22 = arith.mulf %15, %15 : vector<8x4096xf32>
    %23 = arith.addf %21, %22 : vector<8x4096xf32>
    %24 = arith.mulf %20, %20 : vector<8x4096xf32>
    %25 = arith.addf %23, %24 : vector<8x4096xf32>
    %26 = math.sqrt %25 : vector<8x4096xf32>
    %cst = arith.constant 2.08333325 : f32
    %27 = vector.broadcast %cst : f32 to vector<8x4096xf32>
    %28 = arith.mulf %26, %27 : vector<8x4096xf32>
    %cst_11 = arith.constant 1.000000e+00 : f32
    %29 = vector.broadcast %cst_11 : f32 to vector<8x4096xf32>
    %30 = arith.subf %29, %28 : vector<8x4096xf32>
    %cst_12 = arith.constant 0.000000e+00 : f32
    %31 = vector.broadcast %cst_12 : f32 to vector<8x4096xf32>
    %32 = arith.maximumf %30, %31 : vector<8x4096xf32>
    %cst_13 = arith.constant dense<0.000000e+00> : vector<256x4096xf32>
    %33 = tpu.matmul %3, %2, %cst_13 {dimension_numbers = #tpu.dot_dimension_numbers<[1], [0], [0], [1], [0, 0, 1, 1], [], []>} : vector<256x32xbf16>, vector<32x4096xbf16>, vector<256x4096xf32> -> vector<256x4096xf32>
    %34 = vector.extract_strided_slice %32 {offsets = [0, 0], sizes = [1, 4096], strides = [1, 1]} : vector<8x4096xf32> to vector<1x4096xf32>
    %35 = vector.extract_strided_slice %33 {offsets = [0, 0], sizes = [32, 4096], strides = [1, 1]} : vector<256x4096xf32> to vector<32x4096xf32>
    %36 = vector.broadcast %34 : vector<1x4096xf32> to vector<32x4096xf32>
    %37 = arith.mulf %36, %35 : vector<32x4096xf32>
    %38 = vector.extract_strided_slice %32 {offsets = [1, 0], sizes = [1, 4096], strides = [1, 1]} : vector<8x4096xf32> to vector<1x4096xf32>
    %39 = vector.extract_strided_slice %33 {offsets = [32, 0], sizes = [32, 4096], strides = [1, 1]} : vector<256x4096xf32> to vector<32x4096xf32>
    %40 = vector.broadcast %38 : vector<1x4096xf32> to vector<32x4096xf32>
    %41 = arith.mulf %40, %39 : vector<32x4096xf32>
    %42 = arith.addf %37, %41 : vector<32x4096xf32>
    %43 = vector.extract_strided_slice %32 {offsets = [2, 0], sizes = [1, 4096], strides = [1, 1]} : vector<8x4096xf32> to vector<1x4096xf32>
    %44 = vector.extract_strided_slice %33 {offsets = [64, 0], sizes = [32, 4096], strides = [1, 1]} : vector<256x4096xf32> to vector<32x4096xf32>
    %45 = vector.broadcast %43 : vector<1x4096xf32> to vector<32x4096xf32>
    %46 = arith.mulf %45, %44 : vector<32x4096xf32>
    %47 = arith.addf %42, %46 : vector<32x4096xf32>
    %48 = vector.extract_strided_slice %32 {offsets = [3, 0], sizes = [1, 4096], strides = [1, 1]} : vector<8x4096xf32> to vector<1x4096xf32>
    %49 = vector.extract_strided_slice %33 {offsets = [96, 0], sizes = [32, 4096], strides = [1, 1]} : vector<256x4096xf32> to vector<32x4096xf32>
    %50 = vector.broadcast %48 : vector<1x4096xf32> to vector<32x4096xf32>
    %51 = arith.mulf %50, %49 : vector<32x4096xf32>
    %52 = arith.addf %47, %51 : vector<32x4096xf32>
    %53 = vector.extract_strided_slice %32 {offsets = [4, 0], sizes = [1, 4096], strides = [1, 1]} : vector<8x4096xf32> to vector<1x4096xf32>
    %54 = vector.extract_strided_slice %33 {offsets = [128, 0], sizes = [32, 4096], strides = [1, 1]} : vector<256x4096xf32> to vector<32x4096xf32>
    %55 = vector.broadcast %53 : vector<1x4096xf32> to vector<32x4096xf32>
    %56 = arith.mulf %55, %54 : vector<32x4096xf32>
    %57 = arith.addf %52, %56 : vector<32x4096xf32>
    %58 = vector.extract_strided_slice %32 {offsets = [5, 0], sizes = [1, 4096], strides = [1, 1]} : vector<8x4096xf32> to vector<1x4096xf32>
    %59 = vector.extract_strided_slice %33 {offsets = [160, 0], sizes = [32, 4096], strides = [1, 1]} : vector<256x4096xf32> to vector<32x4096xf32>
    %60 = vector.broadcast %58 : vector<1x4096xf32> to vector<32x4096xf32>
    %61 = arith.mulf %60, %59 : vector<32x4096xf32>
    %62 = arith.addf %57, %61 : vector<32x4096xf32>
    %63 = vector.extract_strided_slice %32 {offsets = [6, 0], sizes = [1, 4096], strides = [1, 1]} : vector<8x4096xf32> to vector<1x4096xf32>
    %64 = vector.extract_strided_slice %33 {offsets = [192, 0], sizes = [32, 4096], strides = [1, 1]} : vector<256x4096xf32> to vector<32x4096xf32>
    %65 = vector.broadcast %63 : vector<1x4096xf32> to vector<32x4096xf32>
    %66 = arith.mulf %65, %64 : vector<32x4096xf32>
    %67 = arith.addf %62, %66 : vector<32x4096xf32>
    %68 = vector.extract_strided_slice %32 {offsets = [7, 0], sizes = [1, 4096], strides = [1, 1]} : vector<8x4096xf32> to vector<1x4096xf32>
    %69 = vector.extract_strided_slice %33 {offsets = [224, 0], sizes = [32, 4096], strides = [1, 1]} : vector<256x4096xf32> to vector<32x4096xf32>
    %70 = vector.broadcast %68 : vector<1x4096xf32> to vector<32x4096xf32>
    %71 = arith.mulf %70, %69 : vector<32x4096xf32>
    %72 = arith.addf %67, %71 : vector<32x4096xf32>
    %73 = arith.truncf %72 : vector<32x4096xf32> to vector<32x4096xbf16>
    %cst_14 = arith.constant dense<0.000000e+00> : vector<32x256xf32>
    %74 = tpu.matmul %73, %4, %cst_14 {dimension_numbers = #tpu.dot_dimension_numbers<[1], [0], [0], [1], [0, 0, 1, 1], [], []>} : vector<32x4096xbf16>, vector<4096x256xbf16>, vector<32x256xf32> -> vector<32x256xf32>
    %75 = vector.broadcast %5 : vector<1x256xf32> to vector<32x256xf32>
    %76 = arith.mulf %74, %75 : vector<32x256xf32>
    %cst_15 = arith.constant dense<0.000000e+00> : vector<32xf32>
    %77 = vector.multi_reduction <add>, %76, %cst_15 [1] : vector<32x256xf32> to vector<32xf32>
    %78 = vector.shape_cast %77 : vector<32xf32> to vector<32x1xf32>
    %cst_16 = arith.constant 2.560000e+02 : f32
    %79 = vector.broadcast %cst_16 : f32 to vector<32x1xf32>
    %80 = arith.divf %78, %79 : vector<32x1xf32>
    %81 = vector.broadcast %80 : vector<32x1xf32> to vector<32x256xf32>
    %82 = arith.subf %76, %81 : vector<32x256xf32>
    %83 = arith.mulf %82, %82 : vector<32x256xf32>
    %cst_17 = arith.constant dense<0.000000e+00> : vector<32xf32>
    %84 = vector.multi_reduction <add>, %83, %cst_17 [1] : vector<32x256xf32> to vector<32xf32>
    %85 = vector.shape_cast %84 : vector<32xf32> to vector<32x1xf32>
    %cst_18 = arith.constant 2.560000e+02 : f32
    %86 = vector.broadcast %cst_18 : f32 to vector<32x1xf32>
    %87 = arith.divf %85, %86 : vector<32x1xf32>
    %cst_19 = arith.constant 9.99999974E-6 : f32
    %88 = vector.broadcast %cst_19 : f32 to vector<32x1xf32>
    %89 = arith.addf %87, %88 : vector<32x1xf32>
    %90 = math.rsqrt %89 : vector<32x1xf32>
    %91 = vector.broadcast %90 : vector<32x1xf32> to vector<32x256xf32>
    %92 = arith.mulf %82, %91 : vector<32x256xf32>
    %cst_20 = arith.constant 0.000000e+00 : f32
    %93 = vector.broadcast %cst_20 : f32 to vector<32x256xf32>
    %94 = arith.cmpf oge, %92, %93 : vector<32x256xf32>
    %cst_21 = arith.constant 1.000000e-01 : f32
    %95 = vector.broadcast %cst_21 : f32 to vector<32x256xf32>
    %96 = arith.mulf %95, %92 : vector<32x256xf32>
    %97 = arith.select %94, %92, %96 : vector<32x256xi1>, vector<32x256xf32>
    %c0_22 = arith.constant 0 : index
    %c0_23 = arith.constant 0 : index
    %98 = vector.load %arg7[%c0_22, %c0_23] : memref<32x256xf32, #tpu.memory_space<vmem>>, vector<32x256xf32>
    tpu.vector_store %arg7[%c0_22, %c0_23], %97 {strides = array<i32>} : memref<32x256xf32, #tpu.memory_space<vmem>>, vector<32x256xf32>,
    return
  }
  func.func @transform_0(%arg0: i32) -> (i32, i32) {
    %c0_i32 = arith.constant 0 : i32
    %c0_i32_0 = arith.constant 0 : i32
    %c0_i32_1 = arith.constant 0 : i32
    return %c0_i32, %c0_i32_0 : i32, i32
  }
  func.func @transform_1(%arg0: i32) -> (i32, i32) {
    %c0_i32 = arith.constant 0 : i32
    %c0_i32_0 = arith.constant 0 : i32
    %c0_i32_1 = arith.constant 0 : i32
    return %c0_i32, %c0_i32_0 : i32, i32
  }
  func.func @transform_2(%arg0: i32) -> (i32, i32) {
    %c0_i32 = arith.constant 0 : i32
    %c0_i32_0 = arith.constant 0 : i32
    %c0_i32_1 = arith.constant 0 : i32
    return %c0_i32, %c0_i32_0 : i32, i32
  }
  func.func @transform_3(%arg0: i32) -> (i32, i32) {
    %c0_i32 = arith.constant 0 : i32
    %c0_i32_0 = arith.constant 0 : i32
    %c0_i32_1 = arith.constant 0 : i32
    return %c0_i32, %c0_i32_0 : i32, i32
  }
  func.func @transform_4(%arg0: i32) -> (i32, i32) {
    %c0_i32 = arith.constant 0 : i32
    %c0_i32_0 = arith.constant 0 : i32
    %c0_i32_1 = arith.constant 0 : i32
    return %c0_i32, %c0_i32_0 : i32, i32
  }
  func.func @transform_5(%arg0: i32) -> (i32, i32) {
    %c0_i32 = arith.constant 0 : i32
    %c0_i32_0 = arith.constant 0 : i32
    %c0_i32_1 = arith.constant 0 : i32
    return %c0_i32, %c0_i32_0 : i32, i32
  }
  func.func @transform_6(%arg0: i32) -> (i32, i32) {
    %c0_i32 = arith.constant 0 : i32
    %c0_i32_0 = arith.constant 0 : i32
    %c0_i32_1 = arith.constant 0 : i32
    return %c0_i32, %c0_i32_0 : i32, i32
  }
}

</mosaic_0001>

<bundles_post_ra>
// kernel: simple_block_forward.1
= control target key start
LH: loop header
LB: loop body
LE: loop exit
PB: predicated region body
PF: predicated region fallthrough
CT: control target
= control target key end

     0   :  { %v22945_v8 = vmov 0   ;;  %v14052_v16 = vmov 2   ;;  %vm2520_vm0 = vcmask 261120   ;;  %v14053_v30 = vmov 1   ;;  %s22938_s0 = inlined_call_operand.vmem [shape: f32[3,4096], index: 0, kind: input, shape index: {}]   ;;  %s22939_s1 = inlined_call_operand.vmem [shape: f32[8,3], index: 1, kind: input, shape index: {}]   ;;  %s22940_s2 = inlined_call_operand.vmem [shape: bf16[32,4096], index: 2, kind: input, shape index: {}]   ;;  %s22941_s3 = inlined_call_operand.vmem [shape: bf16[256,32], index: 3, kind: input, shape index: {}]   ;;  %s22942_s4 = inlined_call_operand.vmem [shape: bf16[4096,256], index: 4, kind: input, shape index: {}]   ;;  %s22943_s5 = inlined_call_operand.vmem [shape: f32[1,256], index: 5, kind: input, shape index: {}]   ;;  %s22944_s6 = inlined_call_operand.hbm [shape: f32[32,256], index: 6, kind: output, shape index: {}]  }
   0x1   :  { %v74_v0 = vld [vmem:[%s22940_s2 + $0x100] sm:$0xff]  ;;  %v75_v2 = vld [vmem:[%s22940_s2 + $0x108] sm:$0xff]  ;;  %2601 = vmatprep.mubr.bf16.mxu0 %v22945_v8  ;;  %2794 = vmatprep.mubr.bf16.mxu1 %v22945_v8  ;;  %v76_v15 = vld [vmem:[%s22940_s2 + $0x110] sm:$0xff] }
   0x2   :  { %v90_v1 = vld [vmem:[%s22940_s2 + $0x180] sm:$0xff]  ;;  %v91_v4 = vld [vmem:[%s22940_s2 + $0x188] sm:$0xff]  ;;  %13059 = vset.pattern.permute.xlu0 %v22945_v8  ;;  %13061 = vset.pattern.permute.xlu1 %v14052_v16  ;;  %v92_v18 = vld [vmem:[%s22940_s2 + $0x190] sm:$0xff] }
   0x3   :  { %v12254_v3 = vcombine.high %v74_v0, %v90_v1  ;;  %v12253_v5 = vcombine.low %v74_v0, %v90_v1  ;;  %v42_v6 = vld [vmem:[%s22940_s2] sm:$0xff]  ;;  %v12256_v9 = vcombine.high %v75_v2, %v91_v4  ;;  %v12255_v10 = vcombine.low %v75_v2, %v91_v4  ;;  %v43_v12 = vld [vmem:[%s22940_s2 + $0x8] sm:$0xff]  ;;  %v77_v19 = vld [vmem:[%s22940_s2 + $0x118] sm:$0xff] }
   0x4   :  { %v58_v7 = vld [vmem:[%s22940_s2 + $0x80] sm:$0xff]  ;;  %v59_v13 = vld [vmem:[%s22940_s2 + $0x88] sm:$0xff]  ;;  %v93_v20 = vld [vmem:[%s22940_s2 + $0x198] sm:$0xff]  ;;  %v12258_v22 = vcombine.high %v76_v15, %v92_v18  ;;  %v12257_v25 = vcombine.low %v76_v15, %v92_v18  ;;  %v667_v4 = vlaneseq }
   0x5   :  { %v12222_v11 = vcombine.high %v42_v6, %v58_v7  ;;  %2581 = vmatprep.subr.bf16.mxu0 %v12254_v3  ;;  %v12224_v14 = vcombine.high %v43_v12, %v59_v13  ;;  %2774 = vmatprep.subr.bf16.mxu1 %v12256_v9  ;;  %v12221_v17 = vcombine.low %v42_v6, %v58_v7  ;;  %v14134_v24 = vld [vmem:[%s22941_s3] sm:$0xff]   ;;  %v44_v28 = vld [vmem:[%s22940_s2 + $0x10] sm:$0xff]  ;;  %v45_v33 = vld [vmem:[%s22940_s2 + $0x18] sm:$0xff] }
   0x6   :  { %2582 = vmatpush1.bf16.msra.mxu0 %v12253_v5  ;;  %2775 = vmatpush1.bf16.msra.mxu1 %v12255_v10  ;;  %v12223_v21 = vcombine.low %v43_v12, %v59_v13  ;;  %v12260_v23 = vcombine.high %v77_v19, %v93_v20  ;;  %v41_v26 = vld [vmem:[%s22939_s1] sm:$0xff]  ;;  %v12259_v27 = vcombine.low %v77_v19, %v93_v20  ;;  %v60_v29 = vld [vmem:[%s22940_s2 + $0x90] sm:$0xff]  ;;  %v61_v34 = vld [vmem:[%s22940_s2 + $0x98] sm:$0xff]  ;;  %v14346_v12 = vshrl.u32 %v667_v4, 7 }
   0x7   :  { %2583 = vmatprep.subr.bf16.mxu0 %v12222_v11  ;;  %2776 = vmatprep.subr.bf16.mxu1 %v12224_v14  ;;  %v12225_v31 = vcombine.low %v44_v28, %v60_v29  ;;  %v12226_v32 = vcombine.high %v44_v28, %v60_v29  ;;  %v14160_v35 = vld [vmem:[%s22941_s3 + $0x8] sm:$0xff]   ;;  %v12227_v36 = vcombine.low %v45_v33, %v61_v34  ;;  %v14171_v38 = vld [vmem:[%s22941_s3 + $0x10] sm:$0xff]   ;;  %v14176_v39 = vld [vmem:[%s22940_s2 + $0x120] sm:$0xff] }
   0x8   :  { %957 = vperm.xlu0 %13059, %v41_v26   ;;  %1605 = vperm.xlu1 %13061, %v41_v26   ;;  %v12228_v37 = vcombine.high %v45_v33, %v61_v34  ;;  %v14181_v40 = vld [vmem:[%s22940_s2 + $0x1a0] sm:$0xff]  ;;  %v14186_v41 = vld [vmem:[%s22940_s2 + $0x128] sm:$0xff]  ;;  %v13066_v47 = vld [vmem:[%s22941_s3 + $0x18] sm:$0xff]   ;;  %v14371_v19 = vsub.s32 4, %v14346_v12  ;;  %v14374_v20 = vsub.s32 5, %v14346_v12 }
   0x9   :  { %v14191_v42 = vld [vmem:[%s22940_s2 + $0x1a8] sm:$0xff]  ;;  %v12261_v43 = vcombine.low %v14176_v39, %v14181_v40  ;;  %v12262_v44 = vcombine.high %v14176_v39, %v14181_v40  ;;  %v13067_v48 = vld [vmem:[%s22941_s3 + $0x20] sm:$0xff]   ;;  %v13069_v50 = vld [vmem:[%s22941_s3 + $0x30] sm:$0xff]  }
   0xa   :  { %2584 = vmatpush1.bf16.msra.mxu0 %v12221_v17  ;;  %2777 = vmatpush1.bf16.msra.mxu1 %v12223_v21  ;;  %v12263_v45 = vcombine.low %v14186_v41, %v14191_v42  ;;  %v12264_v46 = vcombine.high %v14186_v41, %v14191_v42  ;;  %v13068_v49 = vld [vmem:[%s22941_s3 + $0x28] sm:$0xff]   ;;  %v13070_v51 = vld [vmem:[%s22941_s3 + $0x38] sm:$0xff]   ;;  %v13071_v52 = vld [vmem:[%s22941_s3 + $0x40] sm:$0xff]   ;;  %v14365_v17 = vsub.s32 1, %v14346_v12  ;;  %23108 = vst [vmem:[#allocation7_spill] sm:$0xff] %v14371_v19 }
   0xb   :  { %2967 = vmatprep.subr.bf16.mxu0 %v12258_v22  ;;  %3160 = vmatprep.subr.bf16.mxu1 %v12260_v23  ;;  %v13072_v53 = vld [vmem:[%s22941_s3 + $0x48] sm:$0xff]   ;;  %v13073_v54 = vld [vmem:[%s22941_s3 + $0x50] sm:$0xff]   ;;  %v13074_v55 = vld [vmem:[%s22941_s3 + $0x58] sm:$0xff]   ;;  %23109 = vst [vmem:[#allocation8_spill] sm:$0xff] %v14374_v20 }
   0xc   :  { %13060 = vset.pattern.permute.xlu0 %v14053_v30  ;;  %v13075_v56 = vld [vmem:[%s22941_s3 + $0x60] sm:$0xff]   ;;  %v13076_v57 = vld [vmem:[%s22941_s3 + $0x68] sm:$0xff]   ;;  %v13077_v58 = vld [vmem:[%s22941_s3 + $0x70] sm:$0xff]   ;;  %23107 = vst [vmem:[#allocation6_spill] sm:$0xff] %v14365_v17  ;;  %v14395_v30 = vsub.s32 6, %v14346_v12 }
   0xd   :  { %12285 = vmatmul.mubr.msk.bf16.vlgmr.msra.gmra.mxu0 %vm2520_vm0, %v14134_v24  ;;  %12301 = vmatmul.mubr.msk.bf16.vlgmr.msra.gmra.mxu1 %vm2520_vm0, %v14134_v24  ;;  %v13078_v59 = vld [vmem:[%s22941_s3 + $0x78] sm:$0xff]   ;;  %v46_v60 = vld [vmem:[%s22940_s2 + $0x20] sm:$0xff]  ;;  %v47_v62 = vld [vmem:[%s22940_s2 + $0x28] sm:$0xff] }
   0xe   :  { %2968 = vmatpush1.bf16.msra.mxu0 %v12257_v25  ;;  %3161 = vmatpush1.bf16.msra.mxu1 %v12259_v27  ;;  %v62_v61 = vld [vmem:[%s22940_s2 + $0xa0] sm:$0xff]  ;;  %v63_v63 = vld [vmem:[%s22940_s2 + $0xa8] sm:$0xff]  ;;  %v14325_v5 = vld [vmem:[%s22940_s2 + $0x130] sm:$0xff]  ;;  %23112 = vst [vmem:[#allocation11_spill] sm:$0xff] %v14395_v30 }
   0xf   :  { %2611 = vmatprep.mubr.bf16.mxu0 %v22945_v8  ;;  %2804 = vmatprep.mubr.bf16.mxu1 %v22945_v8  ;;  %v12230_v0 = vcombine.high %v46_v60, %v62_v61  ;;  %v12232_v1 = vcombine.high %v47_v62, %v63_v63  ;;  %v12229_v2 = vcombine.low %v46_v60, %v62_v61  ;;  %v14330_v6 = vld [vmem:[%s22940_s2 + $0x1b0] sm:$0xff]  ;;  %v14339_v10 = vld [vmem:[%s22940_s2 + $0x138] sm:$0xff]  ;;  %v25_v15 = vld [vmem:[%s22938_s0] sm:$0x77] }
  0x10   :  { %1281 = vperm.xlu0 %13060, %v41_v26   ;;  %2969 = vmatprep.subr.bf16.mxu0 %v12226_v32  ;;  %v12231_v3 = vcombine.low %v47_v62, %v63_v63  ;;  %v12265_v7 = vcombine.low %v14325_v5, %v14330_v6  ;;  %v12266_v9 = vcombine.high %v14325_v5, %v14330_v6  ;;  %v14344_v11 = vld [vmem:[%s22940_s2 + $0x1b8] sm:$0xff]  ;;  %v26_v18 = vld [vmem:[%s22938_s0 + $0x8] sm:$0x77]  ;;  %v13919_v27 = vld [vmem:[%s22941_s3 + $0x10] sm:$0xff]  }
  0x11   :  { %3162 = vmatprep.subr.bf16.mxu1 %v12228_v37  ;;  %v12267_v13 = vcombine.low %v14339_v10, %v14344_v11  ;;  %v12268_v14 = vcombine.high %v14339_v10, %v14344_v11  ;;  %v995_v23 = vrot.slane %v25_v15, %v14365_v17  ;;  %v1003_v26 = vrot.slane %v26_v18, %v14365_v17 }
  0x12   :  { %2970 = vmatpush1.bf16.msra.mxu0 %v12225_v31  ;;  %3163 = vmatpush1.bf16.msra.mxu1 %v12227_v36  ;;  %v674_v28 = vrot.slane %v25_v15, %v14371_v19  ;;  %v999_v29 = vrot.slane %v25_v15, %v14374_v20  ;;  %v682_v31 = vrot.slane %v26_v18, %v14371_v19 }
  0x13   :  { %3353 = vmatprep.subr.bf16.mxu0 %v12262_v44  ;;  %3546 = vmatprep.subr.bf16.mxu1 %v12264_v46  ;;  %v1007_v32 = vrot.slane %v26_v18, %v14374_v20  ;;  %v1155_v34 = vrot.slane %v995_v23, %v14365_v17  ;;  %v1323_v42 = vrot.slane %v25_v15, %v14395_v30  ;;  %v13921_v23 = vld [vmem:[%s22941_s3 + $0x20] sm:$0xff]  }
  0x14   :  { %13062 = vset.pattern.permute.xlu0 %v14052_v16  ;;  %v14362_v16 = vsub.s32 0, %v14346_v12  ;;  %v1159_v41 = vrot.slane %v999_v29, %v14365_v17 }
  0x15   :  { %12286 = vmatmul.mubr.msk.bf16.gmra.mxu0 %vm2520_vm0, %v14160_v35  ;;  %12302 = vmatmul.mubr.msk.bf16.gmra.mxu1 %vm2520_vm0, %v14160_v35  ;;  %v1167_v44 = vrot.slane %v1007_v32, %v14365_v17 }
  0x16   :  { %2621 = vmatprep.mubr.bf16.mxu0 %v22945_v8  ;;  %2814 = vmatprep.mubr.bf16.mxu1 %v22945_v8  ;;  %23106 = vst [vmem:[#allocation5_spill] sm:$0xff] %v14362_v16  ;;  %v670_v22 = vrot.slane %v25_v15, %v14362_v16  ;;  %v678_v25 = vrot.slane %v26_v18, %v14362_v16 }
  0x17   :  { %v834_v40 = vrot.slane %v674_v28, %v14362_v16 }
  0x18   :  { %v830_v33 = vrot.slane %v670_v22, %v14362_v16  ;;  %v838_v37 = vrot.slane %v678_v25, %v14362_v16 }
  0x1d   :  { %12287 = vmatmul.mubr.msk.bf16.gmra.mxu0 %vm2520_vm0, %v14171_v38  ;;  %12303 = vmatmul.mubr.msk.bf16.gmra.mxu1 %vm2520_vm0, %v14171_v38 }
  0x1e   :  { %2631 = vmatprep.mubr.bf16.mxu0 %v22945_v8  ;;  %2824 = vmatprep.mubr.bf16.mxu1 %v22945_v8 }
  0x25   :  { %12288 = vmatmul.mubr.msk.bf16.gmra.mxu0 %vm2520_vm0, %v13066_v47  ;;  %12304 = vmatmul.mubr.msk.bf16.gmra.mxu1 %vm2520_vm0, %v13066_v47 }
  0x26   :  { %2641 = vmatprep.mubr.bf16.mxu0 %v22945_v8  ;;  %2834 = vmatprep.mubr.bf16.mxu1 %v22945_v8 }
  0x2d   :  { %12289 = vmatmul.mubr.msk.bf16.gmra.mxu0 %vm2520_vm0, %v13067_v48  ;;  %12305 = vmatmul.mubr.msk.bf16.gmra.mxu1 %vm2520_vm0, %v13067_v48 }
  0x2e   :  { %2651 = vmatprep.mubr.bf16.mxu0 %v22945_v8  ;;  %2844 = vmatprep.mubr.bf16.mxu1 %v22945_v8 }
  0x35   :  { %12290 = vmatmul.mubr.msk.bf16.gmra.mxu0 %vm2520_vm0, %v13068_v49  ;;  %12306 = vmatmul.mubr.msk.bf16.gmra.mxu1 %vm2520_vm0, %v13068_v49  ;;  %v13920_v49 = vld [vmem:[%s22941_s3 + $0x18] sm:$0xff]  }
  0x36   :  { %2661 = vmatprep.mubr.bf16.mxu0 %v22945_v8  ;;  %2854 = vmatprep.mubr.bf16.mxu1 %v22945_v8 }
  0x3d   :  { %12291 = vmatmul.mubr.msk.bf16.gmra.mxu0 %vm2520_vm0, %v13069_v50  ;;  %12307 = vmatmul.mubr.msk.bf16.gmra.mxu1 %vm2520_vm0, %v13069_v50 }
  0x3e   :  { %2671 = vmatprep.mubr.bf16.mxu0 %v22945_v8  ;;  %2864 = vmatprep.mubr.bf16.mxu1 %v22945_v8 }
  0x45   :  { %12292 = vmatmul.mubr.msk.bf16.gmra.mxu0 %vm2520_vm0, %v13070_v51  ;;  %12308 = vmatmul.mubr.msk.bf16.gmra.mxu1 %vm2520_vm0, %v13070_v51 }
  0x46   :  { %2681 = vmatprep.mubr.bf16.mxu0 %v22945_v8  ;;  %2874 = vmatprep.mubr.bf16.mxu1 %v22945_v8 }
  0x4d   :  { %12293 = vmatmul.mubr.msk.bf16.gmra.mxu0 %vm2520_vm0, %v13071_v52  ;;  %12309 = vmatmul.mubr.msk.bf16.gmra.mxu1 %vm2520_vm0, %v13071_v52 }
  0x4e   :  { %2691 = vmatprep.mubr.bf16.mxu0 %v22945_v8  ;;  %2884 = vmatprep.mubr.bf16.mxu1 %v22945_v8 }
  0x55   :  { %12294 = vmatmul.mubr.msk.bf16.gmra.mxu0 %vm2520_vm0, %v13072_v53  ;;  %12310 = vmatmul.mubr.msk.bf16.gmra.mxu1 %vm2520_vm0, %v13072_v53 }
  0x56   :  { %2701 = vmatprep.mubr.bf16.mxu0 %v22945_v8  ;;  %2894 = vmatprep.mubr.bf16.mxu1 %v22945_v8 }
  0x5d   :  { %12295 = vmatmul.mubr.msk.bf16.gmra.mxu0 %vm2520_vm0, %v13073_v54  ;;  %12311 = vmatmul.mubr.msk.bf16.gmra.mxu1 %vm2520_vm0, %v13073_v54 }
  0x5e   :  { %2711 = vmatprep.mubr.bf16.mxu0 %v22945_v8  ;;  %2904 = vmatprep.mubr.bf16.mxu1 %v22945_v8 }
  0x65   :  { %12296 = vmatmul.mubr.msk.bf16.gmra.mxu0 %vm2520_vm0, %v13074_v55  ;;  %12312 = vmatmul.mubr.msk.bf16.gmra.mxu1 %vm2520_vm0, %v13074_v55 }
  0x66   :  { %2721 = vmatprep.mubr.bf16.mxu0 %v22945_v8  ;;  %2914 = vmatprep.mubr.bf16.mxu1 %v22945_v8 }
  0x6d   :  { %12297 = vmatmul.mubr.msk.bf16.gmra.mxu0 %vm2520_vm0, %v13075_v56  ;;  %12313 = vmatmul.mubr.msk.bf16.gmra.mxu1 %vm2520_vm0, %v13075_v56 }
  0x6e   :  { %2731 = vmatprep.mubr.bf16.mxu0 %v22945_v8  ;;  %2924 = vmatprep.mubr.bf16.mxu1 %v22945_v8 }
  0x75   :  { %12298 = vmatmul.mubr.msk.bf16.gmra.mxu0 %vm2520_vm0, %v13076_v57  ;;  %12314 = vmatmul.mubr.msk.bf16.gmra.mxu1 %vm2520_vm0, %v13076_v57 }
  0x76   :  { %2741 = vmatprep.mubr.bf16.mxu0 %v22945_v8  ;;  %2934 = vmatprep.mubr.bf16.mxu1 %v22945_v8 }
  0x7d   :  { %12299 = vmatmul.mubr.msk.bf16.gmra.mxu0 %vm2520_vm0, %v13077_v58  ;;  %12315 = vmatmul.mubr.msk.bf16.gmra.mxu1 %vm2520_vm0, %v13077_v58 }
  0x7e   :  { %2751 = vmatprep.mubr.bf16.mxu0 %v22945_v8  ;;  %2944 = vmatprep.mubr.bf16.mxu1 %v22945_v8 }
  0x83   :  { %v14376_v21 = vpop.permute.xlu0 %957  ;;  %v14421_v50 = vpop.permute.xlu1 %1605 }
  0x84   :  { %23110 = vst [vmem:[#allocation9_spill] sm:$0xff] %v14376_v21  ;;  %v960_v46 = vsub.f32 %v830_v33, %v14376_v21  ;;  %v962_v51 = vsub.f32 %v838_v37, %v14376_v21  ;;  %v961_v54 = vsub.f32 %v834_v40, %v14376_v21  ;;  %v13922_v37 = vld [vmem:[%s22941_s3 + $0x28] sm:$0xff]  }
  0x85   :  { %12300 = vmatmul.mubr.msk.bf16.gmra.mxu0 %vm2520_vm0, %v13078_v59  ;;  %12316 = vmatmul.mubr.msk.bf16.gmra.mxu1 %vm2520_vm0, %v13078_v59 }
  0x86   :  { %2987 = vmatprep.mubr.bf16.mxu0 %v22945_v8  ;;  %3180 = vmatprep.mubr.bf16.mxu1 %v22945_v8  ;;  %v1640_v61 = vmul.f32 %v960_v46, %v960_v46 }
  0x8b   :  { %v14403_v36 = vpop.permute.xlu0 %1281 }
  0x8c   :  { %v1284_v47 = vsub.f32 %v1155_v34, %v14403_v36  ;;  %v1285_v55 = vsub.f32 %v1159_v41, %v14403_v36  ;;  %v1287_v58 = vsub.f32 %v1167_v44, %v14403_v36  ;;  %v13924_v44 = vld [vmem:[%s22941_s3 + $0x38] sm:$0xff]  }
  0x8d   :  { %12317 = vmatmul.mubr.msk.bf16.vlgmr.msra.gmra.mxu0 %vm2520_vm0, %v14134_v24  ;;  %12333 = vmatmul.mubr.msk.bf16.vlgmr.msra.gmra.mxu1 %vm2520_vm0, %v14134_v24  ;;  %v14381_v24 = vsub.s32 2, %v14346_v12 }
  0x8e   :  { %3354 = vmatpush1.bf16.msra.mxu0 %v12261_v43  ;;  %3547 = vmatpush1.bf16.msra.mxu1 %v12263_v45  ;;  %v842_v43 = vrot.slane %v682_v31, %v14362_v16  ;;  %v1331_v45 = vrot.slane %v26_v18, %v14395_v30  ;;  %v1672_v62 = vmul.f32 %v1284_v47, %v1284_v47 }
  0x8f   :  { %2997 = vmatprep.mubr.bf16.mxu0 %v22945_v8  ;;  %3190 = vmatprep.mubr.bf16.mxu1 %v22945_v8  ;;  %23111 = vst [vmem:[#allocation10_spill] sm:$0xff] %v14381_v24  ;;  %v1327_v39 = vrot.slane %v26_v18, %v14381_v24  ;;  %v1483_v56 = vrot.slane %v1323_v42, %v14381_v24 }
  0x90   :  { %3355 = vmatprep.subr.bf16.mxu0 %v12230_v0  ;;  %3548 = vmatprep.subr.bf16.mxu1 %v12232_v1  ;;  %v963_v57 = vsub.f32 %v842_v43, %v14376_v21  ;;  %v1491_v59 = vrot.slane %v1331_v45, %v14381_v24  ;;  %v1642_v0 = vmul.f32 %v962_v51, %v962_v51 }
  0x91   :  { %v1487_v53 = vrot.slane %v1327_v39, %v14381_v24  ;;  %v1673_v4 = vmul.f32 %v1285_v55, %v1285_v55  ;;  %v1704_v18 = vadd.f32 %v1672_v62, %v1640_v61 }
  0x92   :  { %3356 = vmatpush1.bf16.msra.mxu0 %v12229_v2  ;;  %3549 = vmatpush1.bf16.msra.mxu1 %v12231_v3  ;;  %v1609_v2 = vsub.f32 %v1483_v56, %v14421_v50  ;;  %v1641_v3 = vmul.f32 %v961_v54, %v961_v54 }
  0x93   :  { %3739 = vmatprep.subr.bf16.mxu0 %v12266_v9  ;;  %3932 = vmatprep.subr.bf16.mxu1 %v12268_v14  ;;  %v1610_v63 = vsub.f32 %v1487_v53, %v14421_v50  ;;  %v1611_v9 = vsub.f32 %v1491_v59, %v14421_v50  ;;  %v1643_v14 = vmul.f32 %v963_v57, %v963_v57 }
  0x94   :  { %v1737_v28 = vmul.f32 %v1609_v2, %v1609_v2 }
  0x95   :  { %12318 = vmatmul.mubr.msk.bf16.gmra.mxu0 %vm2520_vm0, %v14160_v35  ;;  %12334 = vmatmul.mubr.msk.bf16.gmra.mxu1 %vm2520_vm0, %v14160_v35  ;;  %v1319_v35 = vrot.slane %v25_v15, %v14381_v24  ;;  %v1675_v15 = vmul.f32 %v1287_v58, %v1287_v58  ;;  %v1739_v31 = vmul.f32 %v1611_v9, %v1611_v9 }
  0x96   :  { %3007 = vmatprep.mubr.bf16.mxu0 %v22945_v8  ;;  %3200 = vmatprep.mubr.bf16.mxu1 %v22945_v8 }
  0x97   :  { %v1479_v48 = vrot.slane %v1319_v35, %v14381_v24  ;;  %v1707_v29 = vadd.f32 %v1675_v15, %v1643_v14 }
  0x99   :  { %v1608_v60 = vsub.f32 %v1479_v48, %v14421_v50  ;;  %v1771_v35 = vadd.f32 %v1739_v31, %v1707_v29 }
  0x9b   :  { %v1736_v22 = vmul.f32 %v1608_v60, %v1608_v60  ;;  %vm1823_vm5 = vcmp.eq.f32.partialorder %v1771_v35, inf }
  0x9d   :  { %12319 = vmatmul.mubr.msk.bf16.gmra.mxu0 %vm2520_vm0, %v14171_v38  ;;  %12335 = vmatmul.mubr.msk.bf16.gmra.mxu1 %vm2520_vm0, %v13919_v27  ;;  %v1163_v38 = vrot.slane %v1003_v26, %v14365_v17  ;;  %v1738_v26 = vmul.f32 %v1610_v63, %v1610_v63  ;;  %v1705_v27 = vadd.f32 %v1673_v4, %v1641_v3 }
  0x9e   :  { %3017 = vmatprep.mubr.bf16.mxu0 %v22945_v8  ;;  %3210 = vmatprep.mubr.bf16.mxu1 %v22945_v8  ;;  %v1768_v32 = vadd.f32 %v1736_v22, %v1704_v18 }
  0x9f   :  { %v1286_v52 = vsub.f32 %v1163_v38, %v14403_v36  ;;  %v1769_v34 = vadd.f32 %v1737_v28, %v1705_v27  ;;  %v13923_v38 = vld [vmem:[%s22941_s3 + $0x30] sm:$0xff]  }
  0xa0   :  { %13847 = vrsqrt.f32 %v1768_v32  ;;  %vm1802_vm1 = vcmp.eq.f32.partialorder %v1768_v32, inf  ;;  %v1805_v47 = vand.u32 2147483648, %v1768_v32  ;;  %vm1804_vm4 = vcmp.eq.f32.partialorder %v1768_v32, 0.0 }
  0xa1   :  { %v1674_v1 = vmul.f32 %v1286_v52, %v1286_v52  ;;  %vm1809_vm3 = vcmp.eq.f32.partialorder %v1769_v34, inf }
  0xa3   :  { %v1706_v25 = vadd.f32 %v1674_v1, %v1642_v0 }
  0xa5   :  { %12320 = vmatmul.mubr.msk.bf16.gmra.mxu0 %vm2520_vm0, %v13920_v49  ;;  %12336 = vmatmul.mubr.msk.bf16.gmra.mxu1 %vm2520_vm0, %v13920_v49  ;;  %v1770_v33 = vadd.f32 %v1738_v26, %v1706_v25 }
  0xa6   :  { %3027 = vmatprep.mubr.bf16.mxu0 %v22945_v8  ;;  %3220 = vmatprep.mubr.bf16.mxu1 %v22945_v8 }
  0xa7   :  { %13849 = vrsqrt.f32 %v1770_v33  ;;  %vm1816_vm2 = vcmp.eq.f32.partialorder %v1770_v33, inf  ;;  %v1819_v51 = vand.u32 2147483648, %v1770_v33 }
  0xa8   :  { %13851 = vrsqrt.f32 %v1769_v34 }
  0xa9   :  { %13853 = vrsqrt.f32 %v1771_v35 }
  0xad   :  { %12321 = vmatmul.mubr.msk.bf16.gmra.mxu0 %vm2520_vm0, %v13921_v23  ;;  %12337 = vmatmul.mubr.msk.bf16.gmra.mxu1 %vm2520_vm0, %v13921_v23  ;;  %v13848_v39 = vpop.eup %13847 }
  0xae   :  { %3037 = vmatprep.mubr.bf16.mxu0 %v22945_v8  ;;  %3230 = vmatprep.mubr.bf16.mxu1 %v22945_v8  ;;  %v1801_v43 = vmul.f32 %v13848_v39, %v1768_v32 }
  0xb0   :  { %v1803_v49 = vsel %vm1802_vm1, %v1768_v32, %v1801_v43 }
  0xb4   :  { %v13850_v40 = vpop.eup %13849 }
  0xb5   :  { %12322 = vmatmul.mubr.msk.bf16.gmra.mxu0 %vm2520_vm0, %v13922_v37  ;;  %12338 = vmatmul.mubr.msk.bf16.gmra.mxu1 %vm2520_vm0, %v13922_v37  ;;  %v13852_v41 = vpop.eup %13851  ;;  %v1815_v45 = vmul.f32 %v13850_v40, %v1770_v33 }
  0xb6   :  { %3047 = vmatprep.mubr.bf16.mxu0 %v22945_v8  ;;  %3240 = vmatprep.mubr.bf16.mxu1 %v22945_v8  ;;  %v13854_v42 = vpop.eup %13853  ;;  %v1808_v46 = vmul.f32 %v13852_v41, %v1769_v34 }
  0xb7   :  { %v1822_v48 = vmul.f32 %v13854_v42, %v1771_v35 }
  0xbd   :  { %12323 = vmatmul.mubr.msk.bf16.gmra.mxu0 %vm2520_vm0, %v13923_v38  ;;  %12339 = vmatmul.mubr.msk.bf16.gmra.mxu1 %vm2520_vm0, %v13923_v38 }
  0xbe   :  { %3057 = vmatprep.mubr.bf16.mxu0 %v22945_v8  ;;  %3250 = vmatprep.mubr.bf16.mxu1 %v22945_v8 }
  0xc5   :  { %12324 = vmatmul.mubr.msk.bf16.gmra.mxu0 %vm2520_vm0, %v13924_v44  ;;  %12340 = vmatmul.mubr.msk.bf16.gmra.mxu1 %vm2520_vm0, %v13924_v44 }
  0xc6   :  { %3067 = vmatprep.mubr.bf16.mxu0 %v22945_v8  ;;  %3260 = vmatprep.mubr.bf16.mxu1 %v22945_v8 }
  0xc7   :  { %11 = vsyncpa [#allocation3], 0  ;;  %v1817_v52 = vsel %vm1816_vm2, %v1770_v33, %v1815_v45  ;;  %vm1818_vm6 = vcmp.eq.f32.partialorder %v1770_v33, 0.0  ;;  %v1812_v53 = vand.u32 2147483648, %v1769_v34  ;;  %v1810_v54 = vsel %vm1809_vm3, %v1769_v34, %v1808_v46  ;;  %v13925_v60 = vld [vmem:[%s22941_s3 + $0x40] sm:$0xff]   ;;  %v13926_v29 = vld [vmem:[%s22941_s3 + $0x48] sm:$0xff]  }
  0xc8   :  { %vm1811_vm7 = vcmp.eq.f32.partialorder %v1769_v34, 0.0  ;;  %v1826_v55 = vand.u32 2147483648, %v1771_v35  ;;  %v1806_v56 = vsel %vm1804_vm4, %v1805_v47, %v1803_v49  ;;  %v1824_v57 = vsel %vm1823_vm5, %v1771_v35, %v1822_v48 }
  0xc9   :  { %vm1825_vm8 = vcmp.eq.f32.partialorder %v1771_v35, 0.0  ;;  %v1820_v58 = vsel %vm1818_vm6, %v1819_v51, %v1817_v52  ;;  %v1813_v61 = vsel %vm1811_vm7, %v1812_v53, %v1810_v54  ;;  %v2024_v62 = vmul.f32 2.0833333, %v1806_v56  ;;  %v13927_v52 = vld [vmem:[%s22941_s3 + $0x50] sm:$0xff]  }
  0xca   :  { %v1827_v0 = vsel %vm1825_vm8, %v1826_v55, %v1824_v57  ;;  %v2026_v1 = vmul.f32 2.0833333, %v1820_v58  ;;  %v2025_v3 = vmul.f32 2.0833333, %v1813_v61 }
  0xcb   :  { %v2027_v9 = vmul.f32 2.0833333, %v1827_v0  ;;  %v2056_v15 = vsub.f32 1.0, %v2024_v62 }
  0xcc   :  { %v2058_v22 = vsub.f32 1.0, %v2026_v1  ;;  %v2057_v25 = vsub.f32 1.0, %v2025_v3 }
  0xcd   :  { %v2603_v59 = vpop.f32.mrf.mxu0  ;;  %12325 = vmatmul.mubr.msk.bf16.gmra.mxu0 %vm2520_vm0, %v13925_v60  ;;  %v2796_v63 = vpop.f32.mrf.mxu1  ;;  %12341 = vmatmul.mubr.msk.bf16.gmra.mxu1 %vm2520_vm0, %v13925_v60  ;;  %v2059_v27 = vsub.f32 1.0, %v2027_v9  ;;  %v14480_v31 = vmax.f32 %v2056_v15, 0.0 }
  0xce   :  { %3077 = vmatprep.mubr.bf16.mxu0 %v22945_v8  ;;  %3270 = vmatprep.mubr.bf16.mxu1 %v22945_v8  ;;  %v14486_v33 = vmax.f32 %v2058_v22, 0.0  ;;  %v14491_v35 = vmax.f32 %v2057_v25, 0.0 }
  0xcf   :  { %v2605_v2 = vpop.f32.mrf.mxu0  ;;  %v2798_v4 = vpop.f32.mrf.mxu1  ;;  %v14495_v38 = vmax.f32 %v2059_v27, 0.0  ;;  %v14501_v40 = vrot.slane %v14480_v31, %v14362_v16  ;;  %v14507_v42 = vrot.slane %v14480_v31, %v14365_v17 }
  0xd0   :  { %v14511_v43 = vrot.slane %v14486_v33, %v14362_v16  ;;  %v14517_v45 = vrot.slane %v14486_v33, %v14365_v17  ;;  %v14521_v46 = vrot.slane %v14491_v35, %v14362_v16  ;;  %v14527_v48 = vrot.slane %v14491_v35, %v14365_v17 }
  0xd1   :  { %v2607_v14 = vpop.f32.mrf.mxu0  ;;  %v2800_v18 = vpop.f32.mrf.mxu1  ;;  %v14531_v49 = vrot.slane %v14495_v38, %v14362_v16  ;;  %v14539_v53 = vrot.slane %v14495_v38, %v14365_v17  ;;  %v5785_v54 = vmul.f32 %v14501_v40, %v2603_v59 }
  0xd2   :  { %v5787_v57 = vmul.f32 %v14511_v43, %v2796_v63  ;;  %v5786_v61 = vmul.f32 %v14521_v46, %v2605_v2  ;;  %v5817_v63 = vmul.f32 %v14501_v40, %v2607_v14  ;;  %v5819_v2 = vmul.f32 %v14511_v43, %v2800_v18  ;;  %v13928_v18 = vld [vmem:[%s22941_s3 + $0x58] sm:$0xff]  }
  0xd3   :  { %v2609_v23 = vpop.f32.mrf.mxu0  ;;  %v2802_v26 = vpop.f32.mrf.mxu1  ;;  %v5788_v1 = vmul.f32 %v14531_v49, %v2798_v4 }
  0xd4   :  { %v5818_v4 = vmul.f32 %v14521_v46, %v2609_v23  ;;  %v5820_v14 = vmul.f32 %v14531_v49, %v2802_v26 }
  0xd5   :  { %v14474_v28 = vpop.f32.mrf.mxu0  ;;  %12326 = vmatmul.mubr.msk.bf16.gmra.mxu0 %vm2520_vm0, %v13926_v29  ;;  %v14482_v32 = vpop.f32.mrf.mxu1  ;;  %12342 = vmatmul.mubr.msk.bf16.gmra.mxu1 %vm2520_vm0, %v13926_v29 }
  0xd6   :  { %3087 = vmatprep.mubr.bf16.mxu0 %v22945_v8  ;;  %3280 = vmatprep.mubr.bf16.mxu1 %v22945_v8  ;;  %v5849_v23 = vmul.f32 %v14501_v40, %v14474_v28  ;;  %v5851_v26 = vmul.f32 %v14511_v43, %v14482_v32 }
  0xd7   :  { %v14488_v34 = vpop.f32.mrf.mxu0  ;;  %v14493_v37 = vpop.f32.mrf.mxu1 }
  0xd8   :  { %v5850_v28 = vmul.f32 %v14521_v46, %v14488_v34 }
  0xd9   :  { %v14497_v39 = vpop.f32.mrf.mxu0  ;;  %v14503_v41 = vpop.f32.mrf.mxu1 }
  0xdb   :  { %v14513_v44 = vpop.f32.mrf.mxu0  ;;  %v14523_v47 = vpop.f32.mrf.mxu1 }
  0xdd   :  { %v2623_v51 = vpop.f32.mrf.mxu0  ;;  %12327 = vmatmul.mubr.msk.bf16.gmra.mxu0 %vm2520_vm0, %v13927_v52  ;;  %v2816_v56 = vpop.f32.mrf.mxu1  ;;  %12343 = vmatmul.mubr.msk.bf16.gmra.mxu1 %vm2520_vm0, %v13927_v52 }
  0xde   :  { %v6041_v55 = vmul.f32 %v14507_v42, %v2623_v51  ;;  %3097 = vmatprep.mubr.bf16.mxu0 %v22945_v8  ;;  %v6043_v58 = vmul.f32 %v14517_v45, %v2816_v56  ;;  %3290 = vmatprep.mubr.bf16.mxu1 %v22945_v8 }
  0xdf   :  { %v2625_v60 = vpop.f32.mrf.mxu0  ;;  %v2818_v0 = vpop.f32.mrf.mxu1 }
  0xe0   :  { %v14549_v62 = vadd.f32 %v6041_v55, %v5785_v54  ;;  %v6042_v59 = vmul.f32 %v14527_v48, %v2625_v60  ;;  %v14553_v3 = vadd.f32 %v6043_v58, %v5787_v57  ;;  %v6044_v9 = vmul.f32 %v14539_v53, %v2818_v0 }
  0xe1   :  { %v2627_v15 = vpop.f32.mrf.mxu0  ;;  %v2820_v27 = vpop.f32.mrf.mxu1 }
  0xe2   :  { %v14557_v22 = vadd.f32 %v6042_v59, %v5786_v61  ;;  %v6073_v25 = vmul.f32 %v14507_v42, %v2627_v15  ;;  %v14561_v29 = vadd.f32 %v6044_v9, %v5788_v1  ;;  %v6075_v51 = vmul.f32 %v14517_v45, %v2820_v27 }
  0xe3   :  { %v2629_v52 = vpop.f32.mrf.mxu0  ;;  %v2822_v56 = vpop.f32.mrf.mxu1 }
  0xe4   :  { %v14565_v54 = vadd.f32 %v6073_v25, %v5817_v63  ;;  %v6074_v55 = vmul.f32 %v14527_v48, %v2629_v52  ;;  %v14569_v57 = vadd.f32 %v6075_v51, %v5819_v2  ;;  %v6076_v58 = vmul.f32 %v14539_v53, %v2822_v56 }
  0xe5   :  { %v2633_v60 = vpop.f32.mrf.mxu0  ;;  %12328 = vmatmul.mubr.msk.bf16.gmra.mxu0 %vm2520_vm0, %v13928_v18  ;;  %v2826_v0 = vpop.f32.mrf.mxu1  ;;  %12344 = vmatmul.mubr.msk.bf16.gmra.mxu1 %vm2520_vm0, %v13928_v18  ;;  %v5852_v2 = vmul.f32 %v14531_v49, %v14493_v37  ;;  %v5883_v37 = vmul.f32 %v14511_v43, %v14503_v41  ;;  %v6304_v41 = vrot.slane %v14491_v35, %v14381_v24 }
  0xe6   :  { %v14578_v61 = vadd.f32 %v6074_v55, %v5818_v4  ;;  %v6105_v59 = vmul.f32 %v14507_v42, %v2633_v60  ;;  %3107 = vmatprep.mubr.bf16.mxu0 %v22945_v8  ;;  %v14585_v1 = vadd.f32 %v6076_v58, %v5820_v14  ;;  %v6107_v9 = vmul.f32 %v14517_v45, %v2826_v0 }
  0xe7   :  { %v2635_v15 = vpop.f32.mrf.mxu0  ;;  %3300 = vmatprep.mubr.bf16.mxu1 %v22945_v8  ;;  %v2828_v27 = vpop.f32.mrf.mxu1  ;;  %v5881_v4 = vmul.f32 %v14501_v40, %v14497_v39  ;;  %v14606_v14 = vrot.slane %v14480_v31, %v14381_v24  ;;  %v14615_v39 = vrot.slane %v14486_v33, %v14381_v24  ;;  %v5882_v40 = vmul.f32 %v14521_v46, %v14513_v44  ;;  %v13929_v44 = vld [vmem:[%s22941_s3 + $0x60] sm:$0xff]  }
  0xe8   :  { %v14591_v63 = vadd.f32 %v6105_v59, %v5849_v23  ;;  %v6106_v25 = vmul.f32 %v14527_v48, %v2635_v15  ;;  %v14596_v51 = vadd.f32 %v6107_v9, %v5851_v26  ;;  %v6108_v32 = vmul.f32 %v14539_v53, %v2828_v27 }
  0xe9   :  { %v2637_v52 = vpop.f32.mrf.mxu0  ;;  %v2830_v56 = vpop.f32.mrf.mxu1  ;;  %v5884_v43 = vmul.f32 %v14531_v49, %v14523_v47  ;;  %v6312_v46 = vrot.slane %v14495_v38, %v14381_v24 }
  0xea   :  { %v14601_v55 = vadd.f32 %v6106_v25, %v5850_v28  ;;  %v6137_v34 = vmul.f32 %v14507_v42, %v2637_v52  ;;  %v14610_v58 = vadd.f32 %v6108_v32, %v5852_v2  ;;  %v6139_v60 = vmul.f32 %v14517_v45, %v2830_v56 }
  0xeb   :  { %v2639_v18 = vpop.f32.mrf.mxu0  ;;  %v2832_v59 = vpop.f32.mrf.mxu1 }
  0xec   :  { %v14619_v42 = vadd.f32 %v6137_v34, %v5881_v4  ;;  %v6138_v23 = vmul.f32 %v14527_v48, %v2639_v18  ;;  %v14626_v45 = vadd.f32 %v6139_v60, %v5883_v37  ;;  %v6140_v0 = vmul.f32 %v14539_v53, %v2832_v59 }
  0xed   :  { %v2643_v26 = vpop.f32.mrf.mxu0  ;;  %12329 = vmatmul.mubr.msk.bf16.gmra.mxu0 %vm2520_vm0, %v13929_v44  ;;  %v2836_v15 = vpop.f32.mrf.mxu1  ;;  %12345 = vmatmul.mubr.msk.bf16.gmra.mxu1 %vm2520_vm0, %v13929_v44 }
  0xee   :  { %v14635_v48 = vadd.f32 %v6138_v23, %v5882_v40  ;;  %v6425_v9 = vmul.f32 %v14606_v14, %v2643_v26  ;;  %3117 = vmatprep.mubr.bf16.mxu0 %v22945_v8  ;;  %v14640_v47 = vadd.f32 %v6140_v0, %v5884_v43  ;;  %v6427_v49 = vmul.f32 %v14615_v39, %v2836_v15  ;;  %v13930_v43 = vld [vmem:[%s22941_s3 + $0x68] sm:$0xff]  }
  0xef   :  { %v2645_v53 = vpop.f32.mrf.mxu0  ;;  %3310 = vmatprep.mubr.bf16.mxu1 %v22945_v8  ;;  %v2838_v27 = vpop.f32.mrf.mxu1 }
  0xf0   :  { %v14645_v28 = vadd.f32 %v6425_v9, %v14549_v62  ;;  %v6426_v25 = vmul.f32 %v6304_v41, %v2645_v53  ;;  %v14648_v2 = vadd.f32 %v6427_v49, %v14553_v3  ;;  %v6428_v32 = vmul.f32 %v6312_v46, %v2838_v27 }
  0xf1   :  { %v2647_v52 = vpop.f32.mrf.mxu0  ;;  %v2840_v56 = vpop.f32.mrf.mxu1 }
  0xf2   :  { %v14651_v4 = vadd.f32 %v6426_v25, %v14557_v22  ;;  %v6457_v34 = vmul.f32 %v14606_v14, %v2647_v52  ;;  %v14655_v37 = vadd.f32 %v6428_v32, %v14561_v29  ;;  %v6459_v60 = vmul.f32 %v14615_v39, %v2840_v56 }
  0xf3   :  { %v2649_v62 = vpop.f32.mrf.mxu0  ;;  %v2842_v3 = vpop.f32.mrf.mxu1 }
  0xf4   :  { %v14659_v18 = vadd.f32 %v6457_v34, %v14565_v54  ;;  %v6458_v40 = vmul.f32 %v6304_v41, %v2649_v62  ;;  %v14662_v23 = vadd.f32 %v6459_v60, %v14569_v57  ;;  %v6460_v59 = vmul.f32 %v6312_v46, %v2842_v3 }
  0xf5   :  { %v2653_v22 = vpop.f32.mrf.mxu0  ;;  %12330 = vmatmul.mubr.msk.bf16.gmra.mxu0 %vm2520_vm0, %v13930_v43  ;;  %v2846_v54 = vpop.f32.mrf.mxu1  ;;  %12346 = vmatmul.mubr.msk.bf16.gmra.mxu1 %vm2520_vm0, %v13930_v43  ;;  %v14675_v57 = vsub.s32 3, %v14346_v12 }
  0xf6   :  { %v14669_v29 = vadd.f32 %v6458_v40, %v14578_v61  ;;  %v6489_v0 = vmul.f32 %v14606_v14, %v2653_v22  ;;  %3127 = vmatprep.mubr.bf16.mxu0 %v22945_v8  ;;  %v14678_v26 = vadd.f32 %v6460_v59, %v14585_v1  ;;  %v6491_v44 = vmul.f32 %v14615_v39, %v2846_v54 }
  0xf7   :  { %23113 = vst [vmem:[#allocation12_spill] sm:$0xff] %v14675_v57  ;;  %v2655_v9 = vpop.f32.mrf.mxu0  ;;  %3320 = vmatprep.mubr.bf16.mxu1 %v22945_v8  ;;  %v2848_v49 = vpop.f32.mrf.mxu1  ;;  %v14694_v34 = vrot.slane %v14480_v31, %v14675_v57  ;;  %v14709_v40 = vrot.slane %v14491_v35, %v14675_v57 }
  0xf8   :  { %v14683_v61 = vadd.f32 %v6489_v0, %v14591_v63  ;;  %v6490_v15 = vmul.f32 %v6304_v41, %v2655_v9  ;;  %v14686_v53 = vadd.f32 %v6491_v44, %v14596_v51  ;;  %v6492_v25 = vmul.f32 %v6312_v46, %v2848_v49 }
  0xf9   :  { %v2657_v27 = vpop.f32.mrf.mxu0  ;;  %v2850_v52 = vpop.f32.mrf.mxu1  ;;  %v14702_v51 = vrot.slane %v14486_v33, %v14675_v57 }
  0xfa   :  { %v14689_v32 = vadd.f32 %v6490_v15, %v14601_v55  ;;  %v6521_v1 = vmul.f32 %v14606_v14, %v2657_v27  ;;  %v14697_v63 = vadd.f32 %v6492_v25, %v14610_v58  ;;  %v6523_v56 = vmul.f32 %v14615_v39, %v2850_v52  ;;  %v13931_v39 = vld [vmem:[%s22941_s3 + $0x70] sm:$0xff]  }
  0xfb   :  { %v2659_v60 = vpop.f32.mrf.mxu0  ;;  %v2852_v14 = vpop.f32.mrf.mxu1 }
  0xfc   :  { %v14705_v55 = vadd.f32 %v6521_v1, %v14619_v42  ;;  %v6522_v62 = vmul.f32 %v6304_v41, %v2659_v60  ;;  %v14712_v3 = vadd.f32 %v6523_v56, %v14626_v45  ;;  %v6524_v58 = vmul.f32 %v6312_v46, %v2852_v14 }
  0xfd   :  { %v2663_v59 = vpop.f32.mrf.mxu0  ;;  %12331 = vmatmul.mubr.msk.bf16.gmra.mxu0 %vm2520_vm0, %v13931_v39  ;;  %v14720_v42 = vrot.slane %v14495_v38, %v14675_v57  ;;  %v2856_v43 = vpop.f32.mrf.mxu1  ;;  %12347 = vmatmul.mubr.msk.bf16.gmra.mxu1 %vm2520_vm0, %v13931_v39 }
  0xfe   :  { %v14723_v41 = vadd.f32 %v6522_v62, %v14635_v48  ;;  %v6809_v22 = vmul.f32 %v14694_v34, %v2663_v59  ;;  %3137 = vmatprep.mubr.bf16.mxu0 %v22945_v8  ;;  %v14729_v45 = vadd.f32 %v6524_v58, %v14640_v47  ;;  %v6811_v46 = vmul.f32 %v14702_v51, %v2856_v43  ;;  %v14744_v47 = vld [vmem:[%s22938_s0 + $0x10] sm:$0x77] }
  0xff   :  { %v2665_v0 = vpop.f32.mrf.mxu0  ;;  %3330 = vmatprep.mubr.bf16.mxu1 %v22945_v8  ;;  %v2858_v44 = vpop.f32.mrf.mxu1  ;;  %v686_v14 = vrot.slane %v14744_v47, %v14362_v16 }
 0x100   :  { %v14734_v54 = vadd.f32 %v6809_v22, %v14645_v28  ;;  %v6810_v48 = vmul.f32 %v14709_v40, %v2665_v0  ;;  %v14738_v9 = vadd.f32 %v6811_v46, %v14648_v2  ;;  %v6812_v15 = vmul.f32 %v14720_v42, %v2858_v44 }
 0x101   :  { %v2667_v49 = vpop.f32.mrf.mxu0  ;;  %v2860_v27 = vpop.f32.mrf.mxu1 }
 0x102   :  { %v14747_v25 = vadd.f32 %v6810_v48, %v14651_v4  ;;  %v6841_v28 = vmul.f32 %v14694_v34, %v2667_v49  ;;  %v14751_v1 = vadd.f32 %v6812_v15, %v14655_v37  ;;  %v6843_v2 = vmul.f32 %v14702_v51, %v2860_v27  ;;  %v13932_v37 = vld [vmem:[%s22941_s3 + $0x78] sm:$0xff]  }
 0x103   :  { %v2669_v52 = vpop.f32.mrf.mxu0  ;;  %v2862_v62 = vpop.f32.mrf.mxu1  ;;  %v14791_v49 = vrot.slane %v686_v14, %v14362_v16 }
 0x104   :  { %v14755_v56 = vadd.f32 %v6841_v28, %v14659_v18  ;;  %v6842_v60 = vmul.f32 %v14709_v40, %v2669_v52  ;;  %v14761_v4 = vadd.f32 %v6843_v2, %v14662_v23  ;;  %v6844_v58 = vmul.f32 %v14720_v42, %v2862_v62 }
 0x105   :  { %v2673_v59 = vpop.f32.mrf.mxu0  ;;  %12332 = vmatmul.mubr.msk.bf16.gmra.mxu0 %vm2520_vm0, %v13932_v37  ;;  %v1011_v18 = vrot.slane %v14744_v47, %v14365_v17  ;;  %v2866_v43 = vpop.f32.mrf.mxu1  ;;  %12348 = vmatmul.mubr.msk.bf16.gmra.mxu1 %vm2520_vm0, %v13932_v37  ;;  %v49_v37 = vld [vmem:[%s22940_s2 + $0x38] sm:$0xff] }
 0x106   :  { %v14771_v39 = vadd.f32 %v6842_v60, %v14669_v29  ;;  %v6873_v22 = vmul.f32 %v14694_v34, %v2673_v59  ;;  %3373 = vmatprep.mubr.bf16.mxu0 %v22945_v8  ;;  %v14777_v23 = vadd.f32 %v6844_v58, %v14678_v26  ;;  %v6875_v46 = vmul.f32 %v14702_v51, %v2866_v43  ;;  %v14784_v29 = vld [vmem:[%s22938_s0 + $0x18] sm:$0x77]  ;;  %v64_v60 = vld [vmem:[%s22940_s2 + $0xb0] sm:$0xff]  ;;  %v13933_v59 = vld [vmem:[%s22941_s3] sm:$0xff]  }
 0x107   :  { %v2675_v0 = vpop.f32.mrf.mxu0  ;;  %3566 = vmatprep.mubr.bf16.mxu1 %v22945_v8  ;;  %v2868_v15 = vpop.f32.mrf.mxu1  ;;  %v14798_v2 = vrot.slane %v1011_v18, %v14365_v17  ;;  %v14814_v58 = vrot.slane %v14480_v31, %v14371_v19  ;;  %v65_v18 = vld [vmem:[%s22940_s2 + $0xb8] sm:$0xff]  ;;  %v14830_v43 = vrot.slane %v14486_v33, %v14371_v19 }
 0x108   :  { %v14787_v48 = vadd.f32 %v6873_v22, %v14683_v61  ;;  %v6874_v44 = vmul.f32 %v14709_v40, %v2675_v0  ;;  %v14794_v26 = vadd.f32 %v6875_v46, %v14686_v53  ;;  %v6876_v28 = vmul.f32 %v14720_v42, %v2868_v15  ;;  %v48_v61 = vld [vmem:[%s22940_s2 + $0x30] sm:$0xff] }
 0x109   :  { %v2677_v27 = vpop.f32.mrf.mxu0  ;;  %v2870_v14 = vpop.f32.mrf.mxu1  ;;  %v14834_v46 = vrot.slane %v14491_v35, %v14371_v19 }
 0x10a   :  { %v14809_v53 = vadd.f32 %v6874_v44, %v14689_v32  ;;  %v6905_v62 = vmul.f32 %v14694_v34, %v2677_v27  ;;  %v14825_v32 = vadd.f32 %v6876_v28, %v14697_v63  ;;  %v6907_v34 = vmul.f32 %v14702_v51, %v2870_v14 }
 0x10b   :  { %v2679_v22 = vpop.f32.mrf.mxu0  ;;  %v2872_v15 = vpop.f32.mrf.mxu1  ;;  %v14842_v63 = vrot.slane %v14495_v38, %v14371_v19  ;;  %v12234_v51 = vcombine.high %v48_v61, %v64_v60 }
 0x10c   :  { %v14837_v0 = vadd.f32 %v6905_v62, %v14705_v55  ;;  %v6906_v44 = vmul.f32 %v14709_v40, %v2679_v22  ;;  %v14845_v28 = vadd.f32 %v6907_v34, %v14712_v3  ;;  %v6908_v27 = vmul.f32 %v14720_v42, %v2872_v15 }
 0x10d   :  { %v2683_v14 = vpop.f32.mrf.mxu0  ;;  %12349 = vmatmul.mubr.msk.bf16.vlgmr.msra.gmra.mxu0 %vm2520_vm0, %v13933_v59  ;;  %v14854_v55 = vrot.slane %v14480_v31, %v14374_v20  ;;  %v12236_v40 = vcombine.high %v49_v37, %v65_v18  ;;  %v2876_v34 = vpop.f32.mrf.mxu1  ;;  %12365 = vmatmul.mubr.msk.bf16.vlgmr.msra.gmra.mxu1 %vm2520_vm0, %v13933_v59  ;;  %v12233_v42 = vcombine.low %v48_v61, %v64_v60 }
 0x10e   :  { %v14857_v62 = vadd.f32 %v6906_v44, %v14723_v41  ;;  %v7193_v3 = vmul.f32 %v14814_v58, %v2683_v14  ;;  %3740 = vmatpush1.bf16.msra.mxu0 %v12265_v7  ;;  %v14865_v22 = vadd.f32 %v6908_v27, %v14729_v45  ;;  %v7195_v15 = vmul.f32 %v14830_v43, %v2876_v34 }
 0x10f   :  { %v2685_v52 = vpop.f32.mrf.mxu0  ;;  %3933 = vmatpush1.bf16.msra.mxu1 %v12267_v13  ;;  %3383 = vmatprep.mubr.bf16.mxu0 %v22945_v8  ;;  %v12235_v41 = vcombine.low %v49_v37, %v65_v18  ;;  %v2878_v6 = vpop.f32.mrf.mxu1  ;;  %v14879_v7 = vrot.slane %v14486_v33, %v14374_v20  ;;  %v14887_v13 = vrot.slane %v14491_v35, %v14374_v20 }
 0x110   :  { %v14873_v59 = vadd.f32 %v7193_v3, %v14734_v54  ;;  %v7194_v5 = vmul.f32 %v14834_v46, %v2685_v52  ;;  %3576 = vmatprep.mubr.bf16.mxu1 %v22945_v8  ;;  %3741 = vmatprep.subr.bf16.mxu0 %v12234_v51  ;;  %v14882_v45 = vadd.f32 %v7195_v15, %v14738_v9  ;;  %v14896_v52 = vld [vmem:[%s22940_s2 + $0x140] sm:$0xff]  ;;  %v14926_v3 = vld [vmem:[%s22940_s2 + $0x148] sm:$0xff] }
 0x111   :  { %v7196_v10 = vmul.f32 %v14842_v63, %v2878_v6  ;;  %v2687_v11 = vpop.f32.mrf.mxu0  ;;  %v14891_v54 = vrot.slane %v14495_v38, %v14374_v20  ;;  %3934 = vmatprep.subr.bf16.mxu1 %v12236_v40  ;;  %23114 = vst [vmem:[#allocation13_spill] sm:$0xff] %v14896_v52  ;;  %v14901_v9 = vld [vmem:[%s22940_s2 + $0x1c0] sm:$0xff]  ;;  %v2880_v37 = vpop.f32.mrf.mxu1  ;;  %v14921_v40 = vrot.slane %v14486_v33, %v14395_v30  ;;  %23116 = vst [vmem:[#allocation15_spill] sm:$0xff] %v14926_v3 }
 0x112   :  { %23115 = vst [vmem:[#allocation14_spill] sm:$0xff] %v14901_v9  ;;  %v14904_v61 = vadd.f32 %v7194_v5, %v14747_v25  ;;  %v7225_v60 = vmul.f32 %v14814_v58, %v2687_v11  ;;  %3742 = vmatpush1.bf16.msra.mxu0 %v12233_v42  ;;  %v12270_v44 = vcombine.high %v14896_v52, %v14901_v9 }
 0x113   :  { %v14912_v51 = vadd.f32 %v7196_v10, %v14751_v1  ;;  %v7227_v27 = vmul.f32 %v14830_v43, %v2880_v37  ;;  %v2689_v14 = vpop.f32.mrf.mxu0  ;;  %v14917_v25 = vrot.slane %v14480_v31, %v14395_v30  ;;  %3935 = vmatpush1.bf16.msra.mxu1 %v12235_v41  ;;  %v14931_v1 = vld [vmem:[%s22940_s2 + $0x1c8] sm:$0xff]  ;;  %v2882_v15 = vpop.f32.mrf.mxu1  ;;  %v964_v37 = vsub.f32 %v14791_v49, %v14376_v21 }
 0x114   :  { %23117 = vst [vmem:[#allocation16_spill] sm:$0xff] %v14931_v1  ;;  %v14934_v34 = vadd.f32 %v7225_v60, %v14755_v56  ;;  %v7226_v42 = vmul.f32 %v14834_v46, %v2689_v14  ;;  %4125 = vmatprep.subr.bf16.mxu0 %v12270_v44  ;;  %v12272_v5 = vcombine.high %v14926_v3, %v14931_v1  ;;  %v13934_v56 = vld [vmem:[%s22941_s3 + $0x8] sm:$0xff]  }
 0x115   :  { %v14942_v6 = vadd.f32 %v7227_v27, %v14761_v4  ;;  %v7228_v10 = vmul.f32 %v14842_v63, %v2882_v15  ;;  %v2693_v11 = vpop.f32.mrf.mxu0  ;;  %12350 = vmatmul.mubr.msk.bf16.gmra.mxu0 %vm2520_vm0, %v13934_v56  ;;  %v14951_v60 = vrot.slane %v14491_v35, %v14395_v30  ;;  %v2886_v27 = vpop.f32.mrf.mxu1  ;;  %12366 = vmatmul.mubr.msk.bf16.gmra.mxu1 %vm2520_vm0, %v13934_v56 }
 0x116   :  { %v14956_v44 = vadd.f32 %v7226_v42, %v14771_v39  ;;  %v7257_v4 = vmul.f32 %v14814_v58, %v2693_v11  ;;  %3393 = vmatprep.mubr.bf16.mxu0 %v22945_v8  ;;  %v1288_v14 = vsub.f32 %v14798_v2, %v14403_v36  ;;  %v7259_v41 = vmul.f32 %v14830_v43, %v2886_v27 }
 0x117   :  { %v14964_v15 = vadd.f32 %v7228_v10, %v14777_v23  ;;  %v2695_v18 = vpop.f32.mrf.mxu0  ;;  %3586 = vmatprep.mubr.bf16.mxu1 %v22945_v8  ;;  %v23118_v39 = vrot.slane %v14744_v47, %v14381_v24  ;;  %4318 = vmatprep.subr.bf16.mxu1 %v12272_v5  ;;  %v2888_v2 = vpop.f32.mrf.mxu1  ;;  %v23119_v23 = vrot.slane %v14784_v29, %v14362_v16 }
 0x118   :  { %v14973_v42 = vadd.f32 %v7257_v4, %v14787_v48  ;;  %v7258_v11 = vmul.f32 %v14834_v46, %v2695_v18  ;;  %v1019_v56 = vrot.slane %v14784_v29, %v14365_v17  ;;  %v14983_v27 = vadd.f32 %v7259_v41, %v14794_v26 }
 0x119   :  { %v1495_v49 = vrot.slane %v23118_v39, %v14381_v24  ;;  %v854_v10 = vrot.slane %v23119_v23, %v14362_v16  ;;  %v7260_v39 = vmul.f32 %v14842_v63, %v2888_v2  ;;  %v2697_v5 = vpop.f32.mrf.mxu0  ;;  %v14988_v48 = vrot.slane %v14495_v38, %v14395_v30  ;;  %v2890_v8 = vpop.f32.mrf.mxu1 }
 0x11a   :  { %v1343_v18 = vrot.slane %v14784_v29, %v14381_v24  ;;  %v14993_v4 = vadd.f32 %v7258_v11, %v14809_v53  ;;  %v7289_v23 = vmul.f32 %v14814_v58, %v2697_v5  ;;  %v1644_v1 = vmul.f32 %v964_v37, %v964_v37 }
 0x11b   :  { %v1676_v3 = vmul.f32 %v1288_v14, %v1288_v14  ;;  %v14997_v26 = vadd.f32 %v7260_v39, %v14825_v32  ;;  %v7291_v41 = vmul.f32 %v14830_v43, %v2890_v8  ;;  %v2699_v2 = vpop.f32.mrf.mxu0  ;;  %v15001_v9 = vsub.f32 %v1495_v49, %v14421_v50  ;;  %v2892_v11 = vpop.f32.mrf.mxu1  ;;  %v13935_v49 = vld [vmem:[%s22941_s3 + $0x10] sm:$0xff]  }
 0x11c   :  { %v690_v52 = vrot.slane %v14744_v47, %v14371_v19  ;;  %v15006_v53 = vadd.f32 %v7289_v23, %v14837_v0  ;;  %v7290_v58 = vmul.f32 %v14834_v46, %v2699_v2  ;;  %v966_v37 = vsub.f32 %v854_v10, %v14376_v21 }
 0x11d   :  { %v1179_v32 = vrot.slane %v1019_v56, %v14365_v17  ;;  %v15012_v14 = vadd.f32 %v7291_v41, %v14845_v28  ;;  %v7292_v8 = vmul.f32 %v14842_v63, %v2892_v11  ;;  %v2703_v43 = vpop.f32.mrf.mxu0  ;;  %12351 = vmatmul.mubr.msk.bf16.gmra.mxu0 %vm2520_vm0, %v13935_v49  ;;  %v1503_v0 = vrot.slane %v1343_v18, %v14381_v24  ;;  %v2896_v56 = vpop.f32.mrf.mxu1 }
 0x11e   :  { %v1015_v46 = vrot.slane %v14744_v47, %v14374_v20  ;;  %v15023_v10 = vadd.f32 %v7290_v58, %v14857_v62  ;;  %v7577_v28 = vmul.f32 %v14854_v55, %v2703_v43  ;;  %12367 = vmatmul.mubr.msk.bf16.gmra.mxu1 %vm2520_vm0, %v13935_v49  ;;  %v23120_v63 = vmov 0  }
 0x11f   :  { %3403 = vmatprep.mubr.bf16.mxu0 %v23120_v63  ;;  %v698_v39 = vrot.slane %v14784_v29, %v14371_v19  ;;  %v15031_v5 = vadd.f32 %v7292_v8, %v14865_v22  ;;  %v7579_v18 = vmul.f32 %v14879_v7, %v2896_v56  ;;  %v2705_v23 = vpop.f32.mrf.mxu0  ;;  %3596 = vmatprep.mubr.bf16.mxu1 %v23120_v63  ;;  %v2898_v11 = vpop.f32.mrf.mxu1 }
 0x120   :  { %v15035_v62 = vadd.f32 %v1676_v3, %v1644_v1  ;;  %v1023_v41 = vrot.slane %v14784_v29, %v14374_v20  ;;  %v15040_v2 = vadd.f32 %v7577_v28, %v14873_v59  ;;  %v7578_v58 = vmul.f32 %v14887_v13, %v2705_v23 }
 0x121   :  { %v850_v43 = vrot.slane %v690_v52, %v14362_v16  ;;  %v1339_v22 = vrot.slane %v14744_v47, %v14395_v30  ;;  %v15047_v8 = vadd.f32 %v7579_v18, %v14882_v45  ;;  %v7580_v3 = vmul.f32 %v14891_v54, %v2898_v11  ;;  %v2707_v1 = vpop.f32.mrf.mxu0  ;;  %v2900_v23 = vpop.f32.mrf.mxu1 }
 0x122   :  { %v1290_v49 = vsub.f32 %v1179_v32, %v14403_v36  ;;  %v1175_v56 = vrot.slane %v1015_v46, %v14365_v17  ;;  %v15053_v59 = vadd.f32 %v7578_v58, %v14904_v61  ;;  %v7609_v28 = vmul.f32 %v14854_v55, %v2707_v1 }
 0x123   :  { %v1614_v52 = vsub.f32 %v1503_v0, %v14421_v50  ;;  %v858_v47 = vrot.slane %v698_v39, %v14362_v16  ;;  %v15059_v45 = vadd.f32 %v7580_v3, %v14912_v51  ;;  %v7611_v18 = vmul.f32 %v14879_v7, %v2900_v23  ;;  %v2709_v11 = vpop.f32.mrf.mxu0  ;;  %v2902_v1 = vpop.f32.mrf.mxu1 }
 0x124   :  { %v1183_v32 = vrot.slane %v1023_v41, %v14365_v17  ;;  %v1347_v46 = vrot.slane %v14784_v29, %v14395_v30  ;;  %v15066_v61 = vadd.f32 %v7609_v28, %v14934_v34  ;;  %v7610_v58 = vmul.f32 %v14887_v13, %v2709_v11  ;;  %v13936_v41 = vld [vmem:[%s22941_s3 + $0x18] sm:$0xff]  }
 0x125   :  { %v1646_v0 = vmul.f32 %v966_v37, %v966_v37  ;;  %v1499_v39 = vrot.slane %v1339_v22, %v14381_v24  ;;  %v15071_v51 = vadd.f32 %v7611_v18, %v14942_v6  ;;  %v7612_v3 = vmul.f32 %v14891_v54, %v2902_v1  ;;  %v2713_v23 = vpop.f32.mrf.mxu0  ;;  %12352 = vmatmul.mubr.msk.bf16.gmra.mxu0 %vm2520_vm0, %v13936_v41  ;;  %v2906_v6 = vpop.f32.mrf.mxu1 }
 0x126   :  { %v965_v29 = vsub.f32 %v850_v43, %v14376_v21  ;;  %v1289_v34 = vsub.f32 %v1175_v56, %v14403_v36  ;;  %v15081_v37 = vadd.f32 %v7610_v58, %v14956_v44  ;;  %v7641_v22 = vmul.f32 %v14854_v55, %v2713_v23  ;;  %12368 = vmatmul.mubr.msk.bf16.gmra.mxu1 %vm2520_vm0, %v13936_v41 }
 0x127   :  { %3413 = vmatprep.mubr.bf16.mxu0 %v23120_v63  ;;  %v967_v28 = vsub.f32 %v858_v47, %v14376_v21  ;;  %v15088_v18 = vadd.f32 %v7612_v3, %v14964_v15  ;;  %v7643_v11 = vmul.f32 %v14879_v7, %v2906_v6  ;;  %v2715_v43 = vpop.f32.mrf.mxu0  ;;  %3606 = vmatprep.mubr.bf16.mxu1 %v23120_v63  ;;  %v2908_v23 = vpop.f32.mrf.mxu1 }
 0x128   :  { %v1291_v44 = vsub.f32 %v1183_v32, %v14403_v36  ;;  %v1507_v56 = vrot.slane %v1347_v46, %v14381_v24  ;;  %v15095_v58 = vadd.f32 %v7641_v22, %v14973_v42  ;;  %v7642_v1 = vmul.f32 %v14887_v13, %v2715_v43 }
 0x129   :  { %v1678_v41 = vmul.f32 %v1290_v49, %v1290_v49  ;;  %v1613_v47 = vsub.f32 %v1499_v39, %v14421_v50  ;;  %v15100_v15 = vadd.f32 %v7643_v11, %v14983_v27  ;;  %v7644_v3 = vmul.f32 %v14891_v54, %v2908_v23  ;;  %v2717_v6 = vpop.f32.mrf.mxu0  ;;  %v2910_v46 = vpop.f32.mrf.mxu1 }
 0x12a   :  { %v1645_v30 = vmul.f32 %v965_v29, %v965_v29  ;;  %v1677_v21 = vmul.f32 %v1289_v34, %v1289_v34  ;;  %v15104_v32 = vadd.f32 %v7642_v1, %v14993_v4  ;;  %v7673_v42 = vmul.f32 %v14854_v55, %v2717_v6 }
 0x12b   :  { %v1740_v22 = vmul.f32 %v15001_v9, %v15001_v9  ;;  %v1647_v49 = vmul.f32 %v967_v28, %v967_v28  ;;  %v15110_v39 = vadd.f32 %v7644_v3, %v14997_v26  ;;  %v7675_v27 = vmul.f32 %v14879_v7, %v2910_v46  ;;  %v2719_v11 = vpop.f32.mrf.mxu0  ;;  %v2912_v55 = vpop.f32.mrf.mxu1  ;;  %v13937_v7 = vld [vmem:[%s22941_s3 + $0x20] sm:$0xff]  }
 0x12c   :  { %v1615_v43 = vsub.f32 %v1507_v56, %v14421_v50  ;;  %v1679_v29 = vmul.f32 %v1291_v44, %v1291_v44  ;;  %v15115_v34 = vadd.f32 %v7673_v42, %v15006_v53  ;;  %v7674_v4 = vmul.f32 %v14887_v13, %v2719_v11 }
 0x12d   :  { %v1710_v1 = vadd.f32 %v1678_v41, %v1646_v0  ;;  %v1742_v23 = vmul.f32 %v1614_v52, %v1614_v52  ;;  %v15119_v9 = vadd.f32 %v7675_v27, %v15012_v14  ;;  %v7676_v26 = vmul.f32 %v14891_v54, %v2912_v55  ;;  %v2723_v28 = vpop.f32.mrf.mxu0  ;;  %12353 = vmatmul.mubr.msk.bf16.gmra.mxu0 %vm2520_vm0, %v13937_v7  ;;  %v2916_v52 = vpop.f32.mrf.mxu1 }
 0x12e   :  { %v1709_v44 = vadd.f32 %v1677_v21, %v1645_v30  ;;  %v1741_v53 = vmul.f32 %v1613_v47, %v1613_v47  ;;  %v15127_v56 = vadd.f32 %v7674_v4, %v15023_v10  ;;  %v7961_v13 = vmul.f32 %v14917_v25, %v2723_v28  ;;  %12369 = vmatmul.mubr.msk.bf16.gmra.mxu1 %vm2520_vm0, %v13937_v7 }
 0x12f   :  { %3423 = vmatprep.mubr.bf16.mxu0 %v23120_v63  ;;  %v15133_v54 = vadd.f32 %v1740_v22, %v15035_v62  ;;  %v15136_v14 = vadd.f32 %v7676_v26, %v15031_v5  ;;  %v7963_v0 = vmul.f32 %v14921_v40, %v2916_v52  ;;  %v2725_v21 = vpop.f32.mrf.mxu0  ;;  %3616 = vmatprep.mubr.bf16.mxu1 %v23120_v63  ;;  %v2918_v3 = vpop.f32.mrf.mxu1 }
 0x130   :  { %v1711_v30 = vadd.f32 %v1679_v29, %v1647_v49  ;;  %v1743_v10 = vmul.f32 %v1615_v43, %v1615_v43  ;;  %v15141_v41 = vadd.f32 %v7961_v13, %v15040_v2  ;;  %v7962_v47 = vmul.f32 %v14951_v60, %v2725_v21 }
 0x131   :  { %v15144_v6 = vadd.f32 %v1742_v23, %v1710_v1  ;;  %v15147_v62 = vadd.f32 %v7963_v0, %v15047_v8  ;;  %v7964_v5 = vmul.f32 %v14988_v48, %v2918_v3  ;;  %v2727_v42 = vpop.f32.mrf.mxu0  ;;  %v15150_v46 = vadd.f32 %v1741_v53, %v1709_v44  ;;  %v2920_v2 = vpop.f32.mrf.mxu1  ;;  %v13938_v23 = vld [vmem:[%s22941_s3 + $0x28] sm:$0xff]  }
 0x132   :  { %v15153_v22 = vadd.f32 %v7962_v47, %v15053_v59  ;;  %v7993_v49 = vmul.f32 %v14917_v25, %v2727_v42  ;;  %v7995_v11 = vmul.f32 %v14921_v40, %v2920_v2  ;;  %13855 = vrsqrt.f32 %v15133_v54 }
 0x133   :  { %v15157_v27 = vadd.f32 %v7964_v5, %v15059_v45  ;;  %v2729_v43 = vpop.f32.mrf.mxu0  ;;  %v15161_v8 = vadd.f32 %v1743_v10, %v1711_v30  ;;  %v2922_v59 = vpop.f32.mrf.mxu1  ;;  %13857 = vrsqrt.f32 %v15144_v6  ;;  %vm1830_vm9 = vcmp.eq.f32.partialorder %v15133_v54, inf }
 0x134   :  { %v15164_v29 = vadd.f32 %v7993_v49, %v15066_v61  ;;  %v7994_v4 = vmul.f32 %v14951_v60, %v2729_v43  ;;  %v15169_v55 = vadd.f32 %v7995_v11, %v15071_v51  ;;  %v7996_v45 = vmul.f32 %v14988_v48, %v2922_v59 }
 0x135   :  { %v2733_v1 = vpop.f32.mrf.mxu0  ;;  %12354 = vmatmul.mubr.msk.bf16.gmra.mxu0 %vm2520_vm0, %v13938_v23  ;;  %13859 = vrsqrt.f32 %v15150_v46  ;;  %v2926_v28 = vpop.f32.mrf.mxu1  ;;  %v15184_v51 = vsub.s32 7, %v14346_v12  ;;  %vm1832_vm10 = vcmp.eq.f32.partialorder %v15133_v54, 0.0  ;;  %vm1844_vm11 = vcmp.eq.f32.partialorder %v15144_v6, inf }
 0x136   :  { %v15178_v61 = vadd.f32 %v7994_v4, %v15081_v37  ;;  %v8025_v26 = vmul.f32 %v14917_v25, %v2733_v1  ;;  %12370 = vmatmul.mubr.msk.bf16.gmra.mxu1 %vm2520_vm0, %v13938_v23  ;;  %3433 = vmatprep.mubr.bf16.mxu0 %v23120_v63  ;;  %v15187_v7 = vadd.f32 %v7996_v45, %v15088_v18  ;;  %13861 = vrsqrt.f32 %v15161_v8 }
 0x137   :  { %23121 = vst [vmem:[#allocation17_spill] sm:$0xff] %v15184_v51  ;;  %v8027_v44 = vmul.f32 %v14921_v40, %v2926_v28  ;;  %v2735_v53 = vpop.f32.mrf.mxu0  ;;  %3626 = vmatprep.mubr.bf16.mxu1 %v23120_v63  ;;  %v2928_v52 = vpop.f32.mrf.mxu1  ;;  %v15206_v47 = vrot.slane %v14480_v31, %v15184_v51  ;;  %v15214_v5 = vrot.slane %v14486_v33, %v15184_v51  ;;  %v13939_v33 = vld [vmem:[%s22941_s3 + $0x30] sm:$0xff]   ;;  %v1833_v23 = vand.u32 2147483648, %v15133_v54 }
 0x138   :  { %v15193_v37 = vadd.f32 %v8025_v26, %v15095_v58  ;;  %v8026_v13 = vmul.f32 %v14951_v60, %v2735_v53  ;;  %v8028_v12 = vmul.f32 %v14988_v48, %v2928_v52  ;;  %v15222_v31 = vrot.slane %v14491_v35, %v15184_v51 }
 0x139   :  { %v15197_v0 = vadd.f32 %v8027_v44, %v15100_v15  ;;  %v2737_v18 = vpop.f32.mrf.mxu0  ;;  %v2930_v10 = vpop.f32.mrf.mxu1  ;;  %v1847_v53 = vand.u32 2147483648, %v15144_v6  ;;  %vm1837_vm12 = vcmp.eq.f32.partialorder %v15150_v46, inf  ;;  %vm1846_vm13 = vcmp.eq.f32.partialorder %v15144_v6, 0.0 }
 0x13a   :  { %v15201_v21 = vadd.f32 %v8026_v13, %v15104_v32  ;;  %v8057_v30 = vmul.f32 %v14917_v25, %v2737_v18  ;;  %v15209_v58 = vadd.f32 %v8028_v12, %v15110_v39  ;;  %v8059_v3 = vmul.f32 %v14921_v40, %v2930_v10 }
 0x13b   :  { %v2739_v15 = vpop.f32.mrf.mxu0  ;;  %v2932_v42 = vpop.f32.mrf.mxu1  ;;  %v1840_v12 = vand.u32 2147483648, %v15150_v46  ;;  %vm1839_vm14 = vcmp.eq.f32.partialorder %v15150_v46, 0.0  ;;  %vm1851_vm15 = vcmp.eq.f32.partialorder %v15161_v8, inf  ;;  %vm1853_vm1 = vcmp.eq.f32.partialorder %v15161_v8, 0.0 }
 0x13c   :  { %v15217_v32 = vadd.f32 %v8057_v30, %v15115_v34  ;;  %v8058_v25 = vmul.f32 %v14951_v60, %v2739_v15  ;;  %v15225_v39 = vadd.f32 %v8059_v3, %v15119_v9  ;;  %v8060_v40 = vmul.f32 %v14988_v48, %v2932_v42  ;;  %v13940_v42 = vld [vmem:[%s22941_s3 + $0x38] sm:$0xff]  }
 0x13d   :  { %v2743_v49 = vpop.f32.mrf.mxu0  ;;  %12355 = vmatmul.mubr.msk.bf16.gmra.mxu0 %vm2520_vm0, %v13939_v33  ;;  %v15234_v60 = vrot.slane %v14495_v38, %v15184_v51  ;;  %v2936_v9 = vpop.f32.mrf.mxu1 }
 0x13e   :  { %v15237_v34 = vadd.f32 %v8058_v25, %v15127_v56  ;;  %v8345_v35 = vmul.f32 %v15206_v47, %v2743_v49  ;;  %12371 = vmatmul.mubr.msk.bf16.gmra.mxu1 %vm2520_vm0, %v13939_v33  ;;  %3443 = vmatprep.mubr.bf16.mxu0 %v23120_v63  ;;  %v15243_v48 = vadd.f32 %v8060_v40, %v15136_v14 }
 0x13f   :  { %v8347_v2 = vmul.f32 %v15214_v5, %v2936_v9  ;;  %v2745_v11 = vpop.f32.mrf.mxu0  ;;  %3636 = vmatprep.mubr.bf16.mxu1 %v23120_v63  ;;  %v13856_v38 = vpop.eup %13855 }
 0x140   :  { %v15248_v43 = vadd.f32 %v8345_v35, %v15141_v41  ;;  %v8346_v56 = vmul.f32 %v15222_v31, %v2745_v11  ;;  %v2938_v4 = vpop.f32.mrf.mxu1  ;;  %v13858_v59 = vpop.eup %13857  ;;  %v1829_v3 = vmul.f32 %v13856_v38, %v15133_v54 }
 0x141   :  { %v15253_v45 = vadd.f32 %v8347_v2, %v15147_v62  ;;  %v8348_v14 = vmul.f32 %v15234_v60, %v2938_v4  ;;  %v2747_v1 = vpop.f32.mrf.mxu0 }
 0x142   :  { %23122 = vst [vmem:[#allocation18_spill] sm:$0xff] %v15248_v43  ;;  %v13860_v26 = vpop.eup %13859  ;;  %v15259_v41 = vadd.f32 %v8346_v56, %v15153_v22  ;;  %v8377_v28 = vmul.f32 %v15206_v47, %v2747_v1  ;;  %v2940_v44 = vpop.f32.mrf.mxu1  ;;  %v23140_v43 = vld [vmem:[#allocation14_spill] sm:$0xff] }
 0x143   :  { %23123 = vst [vmem:[#allocation19_spill] sm:$0xff] %v15253_v45  ;;  %v15265_v62 = vadd.f32 %v8348_v14, %v15157_v27  ;;  %v8379_v13 = vmul.f32 %v15214_v5, %v2940_v44  ;;  %v2749_v52 = vpop.f32.mrf.mxu0  ;;  %v13862_v18 = vpop.eup %13861  ;;  %v1836_v40 = vmul.f32 %v13860_v26, %v15150_v46  ;;  %v1831_v14 = vsel %vm1830_vm9, %v15133_v54, %v1829_v3  ;;  %v13941_v54 = vld [vmem:[%s22941_s3 + $0x40] sm:$0xff]  }
 0x144   :  { %23124 = vst [vmem:[#allocation20_spill] sm:$0xff] %v15259_v41  ;;  %v15271_v22 = vadd.f32 %v8377_v28, %v15164_v29  ;;  %v8378_v30 = vmul.f32 %v15222_v31, %v2749_v52  ;;  %v2942_v10 = vpop.f32.mrf.mxu1  ;;  %v1843_v29 = vmul.f32 %v13858_v59, %v15144_v6  ;;  %v1854_v52 = vand.u32 2147483648, %v15161_v8 }
 0x145   :  { %23125 = vst [vmem:[#allocation21_spill] sm:$0xff] %v15265_v62  ;;  %v15277_v27 = vadd.f32 %v8379_v13, %v15169_v55  ;;  %v8380_v15 = vmul.f32 %v15234_v60, %v2942_v10  ;;  %v2753_v25 = vpop.f32.mrf.mxu0  ;;  %12356 = vmatmul.mubr.msk.bf16.gmra.mxu0 %vm2520_vm0, %v13940_v42  ;;  %v1834_v3 = vsel %vm1832_vm10, %v1833_v23, %v1831_v14 }
 0x146   :  { %23126 = vst [vmem:[#allocation22_spill] sm:$0xff] %v15271_v22  ;;  %v15289_v33 = vadd.f32 %v8378_v30, %v15178_v61  ;;  %v8409_v55 = vmul.f32 %v15206_v47, %v2753_v25  ;;  %v2946_v35 = vpop.f32.mrf.mxu1  ;;  %12372 = vmatmul.mubr.msk.bf16.gmra.mxu1 %vm2520_vm0, %v13940_v42  ;;  %3453 = vmatprep.mubr.bf16.mxu0 %v23120_v63 }
 0x147   :  { %23127 = vst [vmem:[#allocation23_spill] sm:$0xff] %v15277_v27  ;;  %v15298_v2 = vadd.f32 %v8380_v15, %v15187_v7  ;;  %v8411_v11 = vmul.f32 %v15214_v5, %v2946_v35  ;;  %v2755_v38 = vpop.f32.mrf.mxu0  ;;  %3646 = vmatprep.mubr.bf16.mxu1 %v23120_v63  ;;  %v1850_v61 = vmul.f32 %v13862_v18, %v15161_v8 }
 0x148   :  { %23128 = vst [vmem:[#allocation24_spill] sm:$0xff] %v15289_v33  ;;  %v15304_v56 = vadd.f32 %v8409_v55, %v15193_v37  ;;  %v8410_v4 = vmul.f32 %v15222_v31, %v2755_v38  ;;  %v2948_v59 = vpop.f32.mrf.mxu1  ;;  %v1845_v37 = vsel %vm1844_vm11, %v15144_v6, %v1843_v29  ;;  %v23142_v33 = vld [vmem:[#allocation15_spill] sm:$0xff] }
 0x149   :  { %23129 = vst [vmem:[#allocation25_spill] sm:$0xff] %v15298_v2  ;;  %v15312_v7 = vadd.f32 %v8411_v11, %v15197_v0  ;;  %v8412_v1 = vmul.f32 %v15234_v60, %v2948_v59  ;;  %v2757_v26 = vpop.f32.mrf.mxu0  ;;  %v1838_v0 = vsel %vm1837_vm12, %v15150_v46, %v1836_v40  ;;  %v1848_v42 = vsel %vm1846_vm13, %v1847_v53, %v1845_v37 }
 0x14a   :  { %23130 = vst [vmem:[#allocation26_spill] sm:$0xff] %v15304_v56  ;;  %v15320_v28 = vadd.f32 %v8410_v4, %v15201_v21  ;;  %v8441_v44 = vmul.f32 %v15206_v47, %v2757_v26  ;;  %v2950_v13 = vpop.f32.mrf.mxu1  ;;  %v1852_v21 = vsel %vm1851_vm15, %v15161_v8, %v1850_v61 }
 0x14b   :  { %23131 = vst [vmem:[#allocation27_spill] sm:$0xff] %v15312_v7  ;;  %v15328_v18 = vadd.f32 %v8412_v1, %v15209_v58  ;;  %v8443_v30 = vmul.f32 %v15214_v5, %v2950_v13  ;;  %v2759_v10 = vpop.f32.mrf.mxu0 }
 0x14c   :  { %23132 = vst [vmem:[#allocation28_spill] sm:$0xff] %v15320_v28  ;;  %v15335_v47 = vadd.f32 %v8441_v44, %v15217_v32  ;;  %v8442_v15 = vmul.f32 %v15222_v31, %v2759_v10  ;;  %v2952_v25 = vpop.f32.mrf.mxu1  ;;  %v1841_v32 = vsel %vm1839_vm14, %v1840_v12, %v1838_v0  ;;  %v2030_v12 = vmul.f32 2.0833333, %v1848_v42 }
 0x14d   :  { %23133 = vst [vmem:[#allocation29_spill] sm:$0xff] %v15328_v18  ;;  %v15341_v58 = vadd.f32 %v8443_v30, %v15225_v39  ;;  %v8444_v5 = vmul.f32 %v15234_v60, %v2952_v25  ;;  %v2989_v29 = vpop.f32.mrf.mxu0  ;;  %12357 = vmatmul.mubr.msk.bf16.gmra.mxu0 %vm2520_vm0, %v13941_v54  ;;  %v2028_v39 = vmul.f32 2.0833333, %v1834_v3  ;;  %v1855_v60 = vsel %vm1853_vm1, %v1854_v52, %v1852_v21 }
 0x14e   :  { %23134 = vst [vmem:[#allocation30_spill] sm:$0xff] %v15335_v47  ;;  %v15353_v6 = vadd.f32 %v8442_v15, %v15237_v34  ;;  %v3182_v23 = vpop.f32.mrf.mxu1  ;;  %12373 = vmatmul.mubr.msk.bf16.gmra.mxu1 %vm2520_vm0, %v13941_v54  ;;  %3463 = vmatprep.mubr.bf16.mxu0 %v23120_v63  ;;  %v2029_v34 = vmul.f32 2.0833333, %v1841_v32  ;;  %v2031_v35 = vmul.f32 2.0833333, %v1855_v60  ;;  %v2062_v8 = vsub.f32 1.0, %v2030_v12 }
 0x14f   :  { %23135 = vst [vmem:[#allocation31_spill] sm:$0xff] %v15341_v58  ;;  %v15362_v46 = vadd.f32 %v8444_v5, %v15243_v48  ;;  %v2991_v40 = vpop.f32.mrf.mxu0  ;;  %3656 = vmatprep.mubr.bf16.mxu1 %v23120_v63  ;;  %v2060_v38 = vsub.f32 1.0, %v2028_v39  ;;  %v13942_v48 = vld [vmem:[%s22941_s3 + $0x48] sm:$0xff]  }
 0x150   :  { %23136 = vst [vmem:[#allocation32_spill] sm:$0xff] %v15353_v6  ;;  %v3184_v55 = vpop.f32.mrf.mxu1  ;;  %v2061_v59 = vsub.f32 1.0, %v2029_v34  ;;  %v2063_v1 = vsub.f32 1.0, %v2031_v35  ;;  %v15383_v52 = vmax.f32 %v2062_v8, 0.0 }
 0x151   :  { %23137 = vst [vmem:[#allocation33_spill] sm:$0xff] %v15362_v46  ;;  %v2993_v11 = vpop.f32.mrf.mxu0  ;;  %v15375_v44 = vmax.f32 %v2060_v38, 0.0 }
 0x152   :  { %v3186_v61 = vpop.f32.mrf.mxu1  ;;  %v15392_v21 = vmax.f32 %v2061_v59, 0.0  ;;  %v15396_v25 = vmax.f32 %v2063_v1, 0.0  ;;  %v15412_v39 = vrot.slane %v15383_v52, %v14362_v16  ;;  %v15418_v12 = vrot.slane %v15383_v52, %v14365_v17  ;;  %v13943_v1 = vld [vmem:[%s22941_s3 + $0x50] sm:$0xff]  }
 0x153   :  { %v2995_v4 = vpop.f32.mrf.mxu0  ;;  %v15402_v5 = vrot.slane %v15375_v44, %v14362_v16  ;;  %v15408_v32 = vrot.slane %v15375_v44, %v14365_v17 }
 0x154   :  { %v15365_v14 = vpop.f32.mrf.mxu1  ;;  %v15422_v34 = vrot.slane %v15392_v21, %v14362_v16  ;;  %v15428_v38 = vrot.slane %v15392_v21, %v14365_v17  ;;  %v15432_v8 = vrot.slane %v15396_v25, %v14362_v16  ;;  %v5791_v10 = vmul.f32 %v15412_v39, %v3182_v23 }
 0x155   :  { %v15367_v26 = vpop.f32.mrf.mxu0  ;;  %12358 = vmatmul.mubr.msk.bf16.gmra.mxu0 %vm2520_vm0, %v13942_v48  ;;  %v5789_v53 = vmul.f32 %v15402_v5, %v2989_v29  ;;  %v5821_v23 = vmul.f32 %v15402_v5, %v2993_v11 }
 0x156   :  { %v15377_v13 = vpop.f32.mrf.mxu1  ;;  %12374 = vmatmul.mubr.msk.bf16.gmra.mxu1 %vm2520_vm0, %v13942_v48  ;;  %3473 = vmatprep.mubr.bf16.mxu0 %v23120_v63  ;;  %v15440_v48 = vrot.slane %v15396_v25, %v14365_v17  ;;  %v5790_v0 = vmul.f32 %v15422_v34, %v2991_v40  ;;  %v5824_v11 = vmul.f32 %v15432_v8, %v15365_v14 }
 0x157   :  { %v15385_v30 = vpop.f32.mrf.mxu0  ;;  %3666 = vmatprep.mubr.bf16.mxu1 %v23120_v63  ;;  %v5855_v14 = vmul.f32 %v15412_v39, %v15377_v13 }
 0x158   :  { %v15394_v15 = vpop.f32.mrf.mxu1 }
 0x159   :  { %v15398_v42 = vpop.f32.mrf.mxu0 }
 0x15a   :  { %v15404_v54 = vpop.f32.mrf.mxu1 }
 0x15b   :  { %v15414_v60 = vpop.f32.mrf.mxu0 }
 0x15c   :  { %v15424_v35 = vpop.f32.mrf.mxu1 }
 0x15d   :  { %v3009_v59 = vpop.f32.mrf.mxu0  ;;  %12359 = vmatmul.mubr.msk.bf16.gmra.mxu0 %vm2520_vm0, %v13943_v1 }
 0x15e   :  { %v6045_v31 = vmul.f32 %v15408_v32, %v3009_v59  ;;  %v3202_v3 = vpop.f32.mrf.mxu1  ;;  %12375 = vmatmul.mubr.msk.bf16.gmra.mxu1 %vm2520_vm0, %v13943_v1  ;;  %3483 = vmatprep.mubr.bf16.mxu0 %v23120_v63  ;;  %v5792_v59 = vmul.f32 %v15432_v8, %v3184_v55 }
 0x15f   :  { %v6047_v9 = vmul.f32 %v15418_v12, %v3202_v3  ;;  %v3011_v49 = vpop.f32.mrf.mxu0  ;;  %3676 = vmatprep.mubr.bf16.mxu1 %v23120_v63 }
 0x160   :  { %v15450_v37 = vadd.f32 %v6045_v31, %v5789_v53  ;;  %v6046_v29 = vmul.f32 %v15428_v38, %v3011_v49  ;;  %v3204_v7 = vpop.f32.mrf.mxu1  ;;  %v5823_v31 = vmul.f32 %v15412_v39, %v3186_v61 }
 0x161   :  { %v15454_v58 = vadd.f32 %v6047_v9, %v5791_v10  ;;  %v6048_v1 = vmul.f32 %v15440_v48, %v3204_v7  ;;  %v3013_v56 = vpop.f32.mrf.mxu0  ;;  %v5822_v9 = vmul.f32 %v15422_v34, %v2995_v4 }
 0x162   :  { %v15458_v3 = vadd.f32 %v6046_v29, %v5790_v0  ;;  %v6077_v47 = vmul.f32 %v15408_v32, %v3013_v56  ;;  %v3206_v18 = vpop.f32.mrf.mxu1 }
 0x163   :  { %v15462_v53 = vadd.f32 %v6048_v1, %v5792_v59  ;;  %v6079_v49 = vmul.f32 %v15418_v12, %v3206_v18  ;;  %v3015_v40 = vpop.f32.mrf.mxu0  ;;  %v13944_v18 = vld [vmem:[%s22941_s3 + $0x58] sm:$0xff]  }
 0x164   :  { %v15466_v55 = vadd.f32 %v6077_v47, %v5821_v23  ;;  %v6078_v7 = vmul.f32 %v15428_v38, %v3015_v40  ;;  %v3208_v10 = vpop.f32.mrf.mxu1  ;;  %v5853_v47 = vmul.f32 %v15402_v5, %v15367_v26  ;;  %v5854_v26 = vmul.f32 %v15422_v34, %v15385_v30 }
 0x165   :  { %v15471_v0 = vadd.f32 %v6079_v49, %v5823_v31  ;;  %v6080_v56 = vmul.f32 %v15440_v48, %v3208_v10  ;;  %v3019_v61 = vpop.f32.mrf.mxu0  ;;  %12360 = vmatmul.mubr.msk.bf16.gmra.mxu0 %vm2520_vm0, %v13944_v18 }
 0x166   :  { %v15480_v4 = vadd.f32 %v6078_v7, %v5822_v9  ;;  %v6109_v29 = vmul.f32 %v15408_v32, %v3019_v61  ;;  %v3212_v59 = vpop.f32.mrf.mxu1  ;;  %12376 = vmatmul.mubr.msk.bf16.gmra.mxu1 %vm2520_vm0, %v13944_v18  ;;  %3493 = vmatprep.mubr.bf16.mxu0 %v23120_v63  ;;  %v5856_v7 = vmul.f32 %v15432_v8, %v15394_v15 }
 0x167   :  { %v15487_v1 = vadd.f32 %v6080_v56, %v5824_v11  ;;  %v6111_v23 = vmul.f32 %v15418_v12, %v3212_v59  ;;  %v3021_v31 = vpop.f32.mrf.mxu0  ;;  %3686 = vmatprep.mubr.bf16.mxu1 %v23120_v63  ;;  %v5885_v56 = vmul.f32 %v15402_v5, %v15398_v42  ;;  %v5887_v15 = vmul.f32 %v15412_v39, %v15404_v54 }
 0x168   :  { %v15493_v49 = vadd.f32 %v6109_v29, %v5853_v47  ;;  %v6110_v40 = vmul.f32 %v15428_v38, %v3021_v31  ;;  %v3214_v9 = vpop.f32.mrf.mxu1  ;;  %v15508_v47 = vrot.slane %v15375_v44, %v14381_v24  ;;  %v6324_v42 = vrot.slane %v15383_v52, %v14381_v24 }
 0x169   :  { %v15498_v10 = vadd.f32 %v6111_v23, %v5855_v14  ;;  %v6112_v13 = vmul.f32 %v15440_v48, %v3214_v9  ;;  %v3023_v11 = vpop.f32.mrf.mxu0  ;;  %v5886_v5 = vmul.f32 %v15422_v34, %v15414_v60  ;;  %v5888_v54 = vmul.f32 %v15432_v8, %v15424_v35  ;;  %v13945_v9 = vld [vmem:[%s22941_s3 + $0x60] sm:$0xff]  }
 0x16a   :  { %v15503_v61 = vadd.f32 %v6110_v40, %v5854_v26  ;;  %v6141_v30 = vmul.f32 %v15408_v32, %v3023_v11  ;;  %v3216_v18 = vpop.f32.mrf.mxu1  ;;  %v6320_v26 = vrot.slane %v15392_v21, %v14381_v24  ;;  %v6328_v60 = vrot.slane %v15396_v25, %v14381_v24 }
 0x16b   :  { %v15512_v29 = vadd.f32 %v6112_v13, %v5856_v7  ;;  %v6143_v59 = vmul.f32 %v15418_v12, %v3216_v18  ;;  %v3025_v14 = vpop.f32.mrf.mxu0 }
 0x16c   :  { %v15519_v32 = vadd.f32 %v6141_v30, %v5885_v56  ;;  %v6142_v23 = vmul.f32 %v15428_v38, %v3025_v14  ;;  %v3218_v31 = vpop.f32.mrf.mxu1 }
 0x16d   :  { %v6271_v39 = vadd.f32 %v6143_v59, %v5887_v15  ;;  %v6144_v12 = vmul.f32 %v15440_v48, %v3218_v31  ;;  %v3029_v40 = vpop.f32.mrf.mxu0  ;;  %12361 = vmatmul.mubr.msk.bf16.gmra.mxu0 %vm2520_vm0, %v13945_v9 }
 0x16e   :  { %v6270_v34 = vadd.f32 %v6142_v23, %v5886_v5  ;;  %v6429_v38 = vmul.f32 %v15508_v47, %v3029_v40  ;;  %v3222_v7 = vpop.f32.mrf.mxu1  ;;  %12377 = vmatmul.mubr.msk.bf16.gmra.mxu1 %vm2520_vm0, %v13945_v9  ;;  %3503 = vmatprep.mubr.bf16.mxu0 %v23120_v63 }
 0x16f   :  { %v6272_v35 = vadd.f32 %v6144_v12, %v5888_v54  ;;  %v6431_v8 = vmul.f32 %v6324_v42, %v3222_v7  ;;  %v3031_v48 = vpop.f32.mrf.mxu0  ;;  %3696 = vmatprep.mubr.bf16.mxu1 %v23120_v63 }
 0x170   :  { %v6557_v13 = vadd.f32 %v6429_v38, %v15450_v37  ;;  %v6430_v11 = vmul.f32 %v6320_v26, %v3031_v48  ;;  %v3224_v56 = vpop.f32.mrf.mxu1 }
 0x171   :  { %v6559_v30 = vadd.f32 %v6431_v8, %v15454_v58  ;;  %v6432_v18 = vmul.f32 %v6328_v60, %v3224_v56  ;;  %v3033_v15 = vpop.f32.mrf.mxu0 }
 0x172   :  { %v6558_v59 = vadd.f32 %v6430_v11, %v15458_v3  ;;  %v6461_v14 = vmul.f32 %v15508_v47, %v3033_v15  ;;  %v3226_v5 = vpop.f32.mrf.mxu1  ;;  %v13946_v3 = vld [vmem:[%s22941_s3 + $0x68] sm:$0xff]  }
 0x173   :  { %v15542_v23 = vadd.f32 %v6432_v18, %v15462_v53  ;;  %v6463_v31 = vmul.f32 %v6324_v42, %v3226_v5  ;;  %v3035_v54 = vpop.f32.mrf.mxu0 }
 0x174   :  { %v15545_v12 = vadd.f32 %v6461_v14, %v15466_v55  ;;  %v6462_v37 = vmul.f32 %v6320_v26, %v3035_v54  ;;  %v3228_v40 = vpop.f32.mrf.mxu1  ;;  %v15576_v54 = vrot.slane %v15375_v44, %v14675_v57 }
 0x175   :  { %v15548_v9 = vadd.f32 %v6463_v31, %v15471_v0  ;;  %v6464_v58 = vmul.f32 %v6328_v60, %v3228_v40  ;;  %v3039_v38 = vpop.f32.mrf.mxu0  ;;  %12362 = vmatmul.mubr.msk.bf16.gmra.mxu0 %vm2520_vm0, %v13946_v3 }
 0x176   :  { %v15555_v53 = vadd.f32 %v6462_v37, %v15480_v4  ;;  %v6493_v7 = vmul.f32 %v15508_v47, %v3039_v38  ;;  %v3232_v55 = vpop.f32.mrf.mxu1  ;;  %12378 = vmatmul.mubr.msk.bf16.gmra.mxu1 %vm2520_vm0, %v13946_v3  ;;  %3513 = vmatprep.mubr.bf16.mxu0 %v23120_v63 }
 0x177   :  { %v15561_v0 = vadd.f32 %v6464_v58, %v15487_v1  ;;  %v6495_v8 = vmul.f32 %v6324_v42, %v3232_v55  ;;  %v3041_v48 = vpop.f32.mrf.mxu0  ;;  %3706 = vmatprep.mubr.bf16.mxu1 %v23120_v63 }
 0x178   :  { %v15565_v11 = vadd.f32 %v6493_v7, %v15493_v49  ;;  %v6494_v56 = vmul.f32 %v6320_v26, %v3041_v48  ;;  %v3234_v4 = vpop.f32.mrf.mxu1 }
 0x179   :  { %v15568_v18 = vadd.f32 %v6495_v8, %v15498_v10  ;;  %v6496_v15 = vmul.f32 %v6328_v60, %v3234_v4  ;;  %v3043_v14 = vpop.f32.mrf.mxu0  ;;  %v15583_v10 = vrot.slane %v15383_v52, %v14675_v57 }
 0x17a   :  { %v15571_v5 = vadd.f32 %v6494_v56, %v15503_v61  ;;  %v6525_v1 = vmul.f32 %v15508_v47, %v3043_v14  ;;  %v3236_v31 = vpop.f32.mrf.mxu1  ;;  %v15590_v47 = vrot.slane %v15392_v21, %v14675_v57 }
 0x17b   :  { %v15579_v49 = vadd.f32 %v6496_v15, %v15512_v29  ;;  %v6527_v37 = vmul.f32 %v6324_v42, %v3236_v31  ;;  %v3045_v40 = vpop.f32.mrf.mxu0  ;;  %v13947_v42 = vld [vmem:[%s22941_s3 + $0x70] sm:$0xff]  }
 0x17c   :  { %v15586_v58 = vadd.f32 %v6525_v1, %v15519_v32  ;;  %v6526_v61 = vmul.f32 %v6320_v26, %v3045_v40  ;;  %v3238_v38 = vpop.f32.mrf.mxu1  ;;  %v15600_v32 = vrot.slane %v15396_v25, %v14675_v57  ;;  %v15623_v40 = vld [vmem:[%s22938_s0 + $0x20] sm:$0x77]  ;;  %v23143_v57 = vld [vmem:[#allocation16_spill] sm:$0xff] }
 0x17d   :  { %v15592_v3 = vadd.f32 %v6527_v37, %v6271_v39  ;;  %v6528_v7 = vmul.f32 %v6328_v60, %v3238_v38  ;;  %v3049_v29 = vpop.f32.mrf.mxu0  ;;  %12363 = vmatmul.mubr.msk.bf16.gmra.mxu0 %vm2520_vm0, %v13947_v42  ;;  %v1351_v27 = vrot.slane %v15623_v40, %v14381_v24 }
 0x17e   :  { %v15602_v26 = vadd.f32 %v6526_v61, %v6270_v34  ;;  %v6813_v55 = vmul.f32 %v15576_v54, %v3049_v29  ;;  %v3242_v8 = vpop.f32.mrf.mxu1  ;;  %12379 = vmatmul.mubr.msk.bf16.gmra.mxu1 %vm2520_vm0, %v13947_v42  ;;  %3523 = vmatprep.mubr.bf16.mxu0 %v23120_v63 }
 0x17f   :  { %v15607_v39 = vadd.f32 %v6528_v7, %v6272_v35  ;;  %v6815_v60 = vmul.f32 %v15583_v10, %v3242_v8  ;;  %v3051_v48 = vpop.f32.mrf.mxu0  ;;  %3716 = vmatprep.mubr.bf16.mxu1 %v23120_v63  ;;  %v702_v8 = vrot.slane %v15623_v40, %v14362_v16 }
 0x180   :  { %v15611_v56 = vadd.f32 %v6813_v55, %v6557_v13  ;;  %v6814_v4 = vmul.f32 %v15590_v47, %v3051_v48  ;;  %v3244_v34 = vpop.f32.mrf.mxu1 }
 0x181   :  { %v15614_v15 = vadd.f32 %v6815_v60, %v6559_v30  ;;  %v6816_v14 = vmul.f32 %v15600_v32, %v3244_v34  ;;  %v3053_v1 = vpop.f32.mrf.mxu0 }
 0x182   :  { %v15617_v31 = vadd.f32 %v6814_v4, %v6558_v59  ;;  %v6845_v35 = vmul.f32 %v15576_v54, %v3053_v1  ;;  %v3246_v37 = vpop.f32.mrf.mxu1 }
 0x183   :  { %v15626_v13 = vadd.f32 %v6816_v14, %v15542_v23  ;;  %v6847_v61 = vmul.f32 %v15583_v10, %v3246_v37  ;;  %v3055_v30 = vpop.f32.mrf.mxu0  ;;  %v13948_v23 = vld [vmem:[%s22941_s3 + $0x78] sm:$0xff]   ;;  %v15656_v14 = vrot.slane %v15375_v44, %v14371_v19 }
 0x184   :  { %v15630_v38 = vadd.f32 %v6845_v35, %v15545_v12  ;;  %v6846_v59 = vmul.f32 %v15590_v47, %v3055_v30  ;;  %v3248_v7 = vpop.f32.mrf.mxu1 }
 0x185   :  { %v15634_v29 = vadd.f32 %v6847_v61, %v15548_v9  ;;  %v6848_v42 = vmul.f32 %v15600_v32, %v3248_v7  ;;  %v3059_v55 = vpop.f32.mrf.mxu0  ;;  %12364 = vmatmul.mubr.msk.bf16.gmra.mxu0 %vm2520_vm0, %v13948_v23  ;;  %v15670_v61 = vrot.slane %v15392_v21, %v14371_v19 }
 0x186   :  { %v15644_v12 = vadd.f32 %v6846_v59, %v15555_v53  ;;  %v6877_v60 = vmul.f32 %v15576_v54, %v3059_v55  ;;  %v3252_v48 = vpop.f32.mrf.mxu1  ;;  %12380 = vmatmul.mubr.msk.bf16.gmra.mxu1 %vm2520_vm0, %v13948_v23  ;;  %3759 = vmatprep.mubr.bf16.mxu0 %v23120_v63  ;;  %v1027_v53 = vrot.slane %v15623_v40, %v14365_v17  ;;  %v50_v55 = vld [vmem:[%s22940_s2 + $0x40] sm:$0xff] }
 0x187   :  { %v15650_v9 = vadd.f32 %v6848_v42, %v15561_v0  ;;  %v6879_v4 = vmul.f32 %v15583_v10, %v3252_v48  ;;  %v3061_v34 = vpop.f32.mrf.mxu0  ;;  %3952 = vmatprep.mubr.bf16.mxu1 %v23120_v63  ;;  %v15666_v0 = vrot.slane %v15383_v52, %v14371_v19  ;;  %v862_v42 = vrot.slane %v702_v8, %v14362_v16  ;;  %v66_v23 = vld [vmem:[%s22940_s2 + $0xc0] sm:$0xff] }
 0x188   :  { %v15661_v1 = vadd.f32 %v6877_v60, %v15565_v11  ;;  %v6878_v35 = vmul.f32 %v15590_v47, %v3061_v34  ;;  %v3254_v37 = vpop.f32.mrf.mxu1  ;;  %v15678_v11 = vrot.slane %v15396_v25, %v14371_v19  ;;  %v15697_v8 = vrot.slane %v15383_v52, %v14374_v20  ;;  %v51_v34 = vld [vmem:[%s22940_s2 + $0x48] sm:$0xff] }
 0x189   :  { %v15673_v30 = vadd.f32 %v6879_v4, %v15568_v18  ;;  %v6880_v59 = vmul.f32 %v15600_v32, %v3254_v37  ;;  %v3063_v7 = vpop.f32.mrf.mxu0  ;;  %v15693_v4 = vrot.slane %v15375_v44, %v14374_v20  ;;  %v1187_v46 = vrot.slane %v1027_v53, %v14365_v17  ;;  %v13949_v53 = vld [vmem:[%s22941_s3] sm:$0xff]  }
 0x18a   :  { %v15688_v18 = vadd.f32 %v6878_v35, %v15571_v5  ;;  %v6909_v60 = vmul.f32 %v15576_v54, %v3063_v7  ;;  %v3256_v48 = vpop.f32.mrf.mxu1  ;;  %v67_v5 = vld [vmem:[%s22940_s2 + $0xc8] sm:$0xff]  ;;  %v15711_v7 = vrot.slane %v15392_v21, %v14374_v20  ;;  %v12237_v62 = vcombine.low %v50_v55, %v66_v23 }
 0x18b   :  { %v15706_v35 = vadd.f32 %v6880_v59, %v15579_v49  ;;  %v6911_v54 = vmul.f32 %v15583_v10, %v3256_v48  ;;  %v3065_v37 = vpop.f32.mrf.mxu0  ;;  %v12238_v49 = vcombine.high %v50_v55, %v66_v23  ;;  %v1292_v23 = vsub.f32 %v1187_v46, %v14403_v36 }
 0x18c   :  { %v15715_v28 = vadd.f32 %v6909_v60, %v15586_v58  ;;  %v6910_v6 = vmul.f32 %v15590_v47, %v3065_v37  ;;  %v3258_v45 = vpop.f32.mrf.mxu1  ;;  %v23138_v58 = vld [vmem:[#allocation9_spill] sm:$0xff]  ;;  %v15732_v47 = vld [vmem:[%s22938_s0 + $0x28] sm:$0x77]  ;;  %v12240_v37 = vcombine.high %v51_v34, %v67_v5 }
 0x18d   :  { %v15721_v59 = vadd.f32 %v6911_v54, %v15592_v3  ;;  %v6912_v10 = vmul.f32 %v15600_v32, %v3258_v45  ;;  %v3069_v48 = vpop.f32.mrf.mxu0  ;;  %12381 = vmatmul.mubr.msk.bf16.vlgmr.msra.gmra.mxu0 %vm2520_vm0, %v13949_v53  ;;  %v968_v60 = vsub.f32 %v862_v42, %v23138_v58  ;;  %v23139_v54 = vld [vmem:[#allocation13_spill] sm:$0xff] }
 0x18e   :  { %v15735_v3 = vadd.f32 %v6910_v6, %v15602_v26  ;;  %v7197_v45 = vmul.f32 %v15656_v14, %v3069_v48  ;;  %v3262_v32 = vpop.f32.mrf.mxu1  ;;  %12397 = vmatmul.mubr.msk.bf16.vlgmr.msra.gmra.mxu1 %vm2520_vm0, %v13949_v53  ;;  %v23141_v22 = vcombine.low %v23139_v54, %v23140_v43  ;;  %v23144_v6 = vcombine.low %v23142_v33, %v23143_v57 }
 0x18f   :  { %v15743_v42 = vadd.f32 %v6912_v10, %v15607_v39  ;;  %v7199_v2 = vmul.f32 %v15666_v0, %v3262_v32  ;;  %v3071_v41 = vpop.f32.mrf.mxu0  ;;  %3769 = vmatprep.mubr.bf16.mxu0 %v23120_v63  ;;  %v12239_v26 = vcombine.low %v51_v34, %v67_v5  ;;  %3962 = vmatprep.mubr.bf16.mxu1 %v23120_v63  ;;  %v15771_v34 = vld [vmem:[%s22940_s2 + $0x1d0] sm:$0xff] }
 0x190   :  { %4126 = vmatpush1.bf16.msra.mxu0 %v23141_v22  ;;  %4319 = vmatpush1.bf16.msra.mxu1 %v23144_v6  ;;  %v15751_v48 = vadd.f32 %v7197_v45, %v15611_v56  ;;  %v7198_v43 = vmul.f32 %v15670_v61, %v3071_v41  ;;  %v3264_v22 = vpop.f32.mrf.mxu1  ;;  %v710_v39 = vrot.slane %v15732_v47, %v14362_v16  ;;  %v15766_v41 = vld [vmem:[%s22940_s2 + $0x150] sm:$0xff]  ;;  %v15797_v45 = vld [vmem:[%s22940_s2 + $0x1d8] sm:$0xff] }
 0x191   :  { %4127 = vmatprep.subr.bf16.mxu0 %v12238_v49  ;;  %v15758_v55 = vadd.f32 %v7199_v2, %v15614_v15  ;;  %v7200_v57 = vmul.f32 %v15678_v11, %v3264_v22  ;;  %v3073_v33 = vpop.f32.mrf.mxu0  ;;  %v1511_v56 = vrot.slane %v1351_v27, %v14381_v24  ;;  %4320 = vmatprep.subr.bf16.mxu1 %v12240_v37 }
 0x192   :  { %23145 = vst [vmem:[#allocation9_spill] sm:$0xff] %v15771_v34  ;;  %v15774_v2 = vadd.f32 %v7198_v43, %v15617_v31  ;;  %v7229_v15 = vmul.f32 %v15656_v14, %v3073_v33  ;;  %v3266_v5 = vpop.f32.mrf.mxu1  ;;  %v12274_v46 = vcombine.high %v15766_v41, %v15771_v34  ;;  %v15787_v31 = vrot.slane %v15396_v25, %v14374_v20 }
 0x193   :  { %v15782_v49 = vadd.f32 %v7200_v57, %v15626_v13  ;;  %v7231_v10 = vmul.f32 %v15666_v0, %v3266_v5  ;;  %v3075_v53 = vpop.f32.mrf.mxu0  ;;  %v1648_v37 = vmul.f32 %v968_v60, %v968_v60  ;;  %23147 = vst [vmem:[#allocation14_spill] sm:$0xff] %v15797_v45  ;;  %v1616_v57 = vsub.f32 %v1511_v56, %v14421_v50 }
 0x194   :  { %4128 = vmatpush1.bf16.msra.mxu0 %v12237_v62  ;;  %4321 = vmatpush1.bf16.msra.mxu1 %v12239_v26  ;;  %v15792_v62 = vld [vmem:[%s22940_s2 + $0x158] sm:$0xff]  ;;  %v15800_v13 = vadd.f32 %v7229_v15, %v15630_v38  ;;  %v7230_v32 = vmul.f32 %v15670_v61, %v3075_v53  ;;  %v3268_v54 = vpop.f32.mrf.mxu1  ;;  %v13950_v38 = vld [vmem:[%s22941_s3 + $0x8] sm:$0xff]   ;;  %v1680_v33 = vmul.f32 %v1292_v23, %v1292_v23 }
 0x195   :  { %23146 = vst [vmem:[#allocation13_spill] sm:$0xff] %v15792_v62  ;;  %4511 = vmatprep.subr.bf16.mxu0 %v12274_v46  ;;  %v12276_v6 = vcombine.high %v15792_v62, %v15797_v45  ;;  %v15808_v26 = vadd.f32 %v7231_v10, %v15634_v29  ;;  %v7232_v43 = vmul.f32 %v15678_v11, %v3268_v54  ;;  %v3079_v22 = vpop.f32.mrf.mxu0 }
 0x196   :  { %12382 = vmatmul.mubr.msk.bf16.gmra.mxu0 %vm2520_vm0, %v13950_v38  ;;  %v15817_v15 = vadd.f32 %v7230_v32, %v15644_v12  ;;  %v7261_v5 = vmul.f32 %v15656_v14, %v3079_v22  ;;  %v3272_v46 = vpop.f32.mrf.mxu1  ;;  %12398 = vmatmul.mubr.msk.bf16.gmra.mxu1 %vm2520_vm0, %v13950_v38  ;;  %v870_v29 = vrot.slane %v710_v39, %v14362_v16  ;;  %v23148_v22 = vld [vmem:[#allocation11_spill] sm:$0xff] }
 0x197   :  { %3779 = vmatprep.mubr.bf16.mxu0 %v23120_v63  ;;  %v15824_v10 = vadd.f32 %v7232_v43, %v15650_v9  ;;  %v7263_v53 = vmul.f32 %v15666_v0, %v3272_v46  ;;  %v3081_v54 = vpop.f32.mrf.mxu0  ;;  %3972 = vmatprep.mubr.bf16.mxu1 %v23120_v63  ;;  %v1035_v12 = vrot.slane %v15732_v47, %v14365_v17 }
 0x198   :  { %4704 = vmatprep.subr.bf16.mxu1 %v12276_v6  ;;  %v15831_v23 = vadd.f32 %v7261_v5, %v15661_v1  ;;  %v7262_v56 = vmul.f32 %v15670_v61, %v3081_v54  ;;  %v3274_v32 = vpop.f32.mrf.mxu1  ;;  %v15836_v39 = vrot.slane %v15375_v44, %v23148_v22  ;;  %v15840_v9 = vrot.slane %v15383_v52, %v23148_v22 }
 0x199   :  { %v15843_v43 = vadd.f32 %v7263_v53, %v15673_v30  ;;  %v7264_v38 = vmul.f32 %v15678_v11, %v3274_v32  ;;  %v3083_v6 = vpop.f32.mrf.mxu0  ;;  %v1712_v46 = vadd.f32 %v1680_v33, %v1648_v37  ;;  %v1744_v1 = vmul.f32 %v1616_v57, %v1616_v57 }
 0x19a   :  { %v15847_v5 = vadd.f32 %v7262_v56, %v15688_v18  ;;  %v7293_v54 = vmul.f32 %v15656_v14, %v3083_v6  ;;  %v3276_v60 = vpop.f32.mrf.mxu1  ;;  %v15852_v27 = vrot.slane %v15392_v21, %v23148_v22  ;;  %v15856_v45 = vrot.slane %v15396_v25, %v23148_v22 }
 0x19b   :  { %v15859_v30 = vadd.f32 %v7264_v38, %v15706_v35  ;;  %v7295_v37 = vmul.f32 %v15666_v0, %v3276_v60  ;;  %v3085_v57 = vpop.f32.mrf.mxu0  ;;  %v970_v18 = vsub.f32 %v870_v29, %v23138_v58  ;;  %v1195_v33 = vrot.slane %v1035_v12, %v14365_v17 }
 0x19c   :  { %v15865_v14 = vadd.f32 %v7293_v54, %v15715_v28  ;;  %v7294_v53 = vmul.f32 %v15670_v61, %v3085_v57  ;;  %v3278_v56 = vpop.f32.mrf.mxu1  ;;  %v1359_v32 = vrot.slane %v15732_v47, %v14381_v24  ;;  %v706_v35 = vrot.slane %v15623_v40, %v14371_v19  ;;  %v13951_v28 = vld [vmem:[%s22941_s3 + $0x10] sm:$0xff]  }
 0x19d   :  { %v15873_v38 = vadd.f32 %v7295_v37, %v15721_v59  ;;  %v7296_v0 = vmul.f32 %v15678_v11, %v3278_v56  ;;  %v3089_v60 = vpop.f32.mrf.mxu0  ;;  %v15880_v61 = vadd.f32 %v1744_v1, %v1712_v46  ;;  %v1031_v29 = vrot.slane %v15623_v40, %v14374_v20 }
 0x19e   :  { %12383 = vmatmul.mubr.msk.bf16.gmra.mxu0 %vm2520_vm0, %v13951_v28  ;;  %v15885_v12 = vadd.f32 %v7294_v53, %v15735_v3  ;;  %v7581_v59 = vmul.f32 %v15693_v4, %v3089_v60  ;;  %v3282_v6 = vpop.f32.mrf.mxu1  ;;  %12399 = vmatmul.mubr.msk.bf16.gmra.mxu1 %vm2520_vm0, %v13951_v28  ;;  %v714_v11 = vrot.slane %v15732_v47, %v14371_v19 }
 0x19f   :  { %3789 = vmatprep.mubr.bf16.mxu0 %v23120_v63  ;;  %v15893_v54 = vadd.f32 %v7296_v0, %v15743_v42  ;;  %v7583_v46 = vmul.f32 %v15697_v8, %v3282_v6  ;;  %v3091_v1 = vpop.f32.mrf.mxu0  ;;  %3982 = vmatprep.mubr.bf16.mxu1 %v23120_v63  ;;  %v1294_v3 = vsub.f32 %v1195_v33, %v14403_v36  ;;  %13863 = vrsqrt.f32 %v15880_v61 }
 0x1a0   :  { %v1039_v37 = vrot.slane %v15732_v47, %v14374_v20  ;;  %v15901_v57 = vadd.f32 %v7581_v59, %v15751_v48  ;;  %v7582_v53 = vmul.f32 %v15711_v7, %v3091_v1  ;;  %v3284_v56 = vpop.f32.mrf.mxu1  ;;  %v1519_v60 = vrot.slane %v1359_v32, %v14381_v24 }
 0x1a1   :  { %v866_v42 = vrot.slane %v706_v35, %v14362_v16  ;;  %v15907_v0 = vadd.f32 %v7583_v46, %v15758_v55  ;;  %v7584_v28 = vmul.f32 %v15787_v31, %v3284_v56  ;;  %v3093_v6 = vpop.f32.mrf.mxu0  ;;  %v1191_v33 = vrot.slane %v1031_v29, %v14365_v17 }
 0x1a2   :  { %v1355_v62 = vrot.slane %v15623_v40, %v23148_v22  ;;  %v15914_v48 = vadd.f32 %v7582_v53, %v15774_v2  ;;  %v7613_v59 = vmul.f32 %v15693_v4, %v3093_v6  ;;  %v3286_v1 = vpop.f32.mrf.mxu1  ;;  %v1650_v32 = vmul.f32 %v970_v18, %v970_v18 }
 0x1a3   :  { %v874_v35 = vrot.slane %v714_v11, %v14362_v16  ;;  %v15919_v55 = vadd.f32 %v7584_v28, %v15782_v49  ;;  %v7615_v46 = vmul.f32 %v15697_v8, %v3286_v1  ;;  %v3095_v56 = vpop.f32.mrf.mxu0  ;;  %v1199_v29 = vrot.slane %v1039_v37, %v14365_v17 }
 0x1a4   :  { %v1363_v40 = vrot.slane %v15732_v47, %v23148_v22  ;;  %v15926_v2 = vadd.f32 %v7613_v59, %v15800_v13  ;;  %v7614_v53 = vmul.f32 %v15711_v7, %v3095_v56  ;;  %v3288_v6 = vpop.f32.mrf.mxu1  ;;  %v1618_v18 = vsub.f32 %v1519_v60, %v14421_v50  ;;  %v13952_v47 = vld [vmem:[%s22941_s3 + $0x18] sm:$0xff]  }
 0x1a5   :  { %v969_v11 = vsub.f32 %v866_v42, %v23138_v58  ;;  %v15932_v49 = vadd.f32 %v7615_v46, %v15808_v26  ;;  %v7616_v28 = vmul.f32 %v15787_v31, %v3288_v6  ;;  %v3099_v1 = vpop.f32.mrf.mxu0  ;;  %v1293_v13 = vsub.f32 %v1191_v33, %v14403_v36 }
 0x1a6   :  { %12384 = vmatmul.mubr.msk.bf16.gmra.mxu0 %vm2520_vm0, %v13952_v47  ;;  %v1515_v37 = vrot.slane %v1355_v62, %v14381_v24  ;;  %v15942_v60 = vadd.f32 %v7614_v53, %v15817_v15  ;;  %v7645_v42 = vmul.f32 %v15693_v4, %v3099_v1  ;;  %v3292_v26 = vpop.f32.mrf.mxu1  ;;  %12400 = vmatmul.mubr.msk.bf16.gmra.mxu1 %vm2520_vm0, %v13952_v47  ;;  %vm1858_vm2 = vcmp.eq.f32.partialorder %v15880_v61, inf }
 0x1a7   :  { %3799 = vmatprep.mubr.bf16.mxu0 %v23120_v63  ;;  %v971_v59 = vsub.f32 %v874_v35, %v23138_v58  ;;  %v15949_v46 = vadd.f32 %v7616_v28, %v15824_v10  ;;  %v7647_v56 = vmul.f32 %v15697_v8, %v3292_v26  ;;  %v3101_v33 = vpop.f32.mrf.mxu0  ;;  %3992 = vmatprep.mubr.bf16.mxu1 %v23120_v63  ;;  %vm1860_vm3 = vcmp.eq.f32.partialorder %v15880_v61, 0.0 }
 0x1a8   :  { %v1295_v62 = vsub.f32 %v1199_v29, %v14403_v36  ;;  %v1523_v15 = vrot.slane %v1363_v40, %v14381_v24  ;;  %v15956_v53 = vadd.f32 %v7645_v42, %v15831_v23  ;;  %v7646_v6 = vmul.f32 %v15711_v7, %v3101_v33  ;;  %v3294_v1 = vpop.f32.mrf.mxu1 }
 0x1a9   :  { %v1682_v47 = vmul.f32 %v1294_v3, %v1294_v3  ;;  %v1649_v35 = vmul.f32 %v969_v11, %v969_v11  ;;  %v15960_v10 = vadd.f32 %v7647_v56, %v15843_v43  ;;  %v7648_v28 = vmul.f32 %v15787_v31, %v3294_v1  ;;  %v3103_v26 = vpop.f32.mrf.mxu0 }
 0x1aa   :  { %v1617_v22 = vsub.f32 %v1515_v37, %v14421_v50  ;;  %v1681_v34 = vmul.f32 %v1293_v13, %v1293_v13  ;;  %v15965_v29 = vadd.f32 %v7646_v6, %v15847_v5  ;;  %v7677_v23 = vmul.f32 %v15693_v4, %v3103_v26  ;;  %v3296_v40 = vpop.f32.mrf.mxu1 }
 0x1ab   :  { %v1651_v42 = vmul.f32 %v971_v59, %v971_v59  ;;  %v15970_v3 = vadd.f32 %v7648_v28, %v15859_v30  ;;  %v7679_v43 = vmul.f32 %v15697_v8, %v3296_v40  ;;  %v3105_v11 = vpop.f32.mrf.mxu0  ;;  %v1619_v56 = vsub.f32 %v1523_v15, %v14421_v50  ;;  %v13953_v8 = vld [vmem:[%s22941_s3 + $0x20] sm:$0xff]  }
 0x1ac   :  { %v1683_v33 = vmul.f32 %v1295_v62, %v1295_v62  ;;  %v15975_v13 = vadd.f32 %v7677_v23, %v15865_v14  ;;  %v7678_v5 = vmul.f32 %v15711_v7, %v3105_v11  ;;  %v3298_v37 = vpop.f32.mrf.mxu1  ;;  %v1714_v4 = vadd.f32 %v1682_v47, %v1650_v32 }
 0x1ad   :  { %v1746_v6 = vmul.f32 %v1618_v18, %v1618_v18  ;;  %v15979_v1 = vadd.f32 %v7679_v43, %v15873_v38  ;;  %v7680_v30 = vmul.f32 %v15787_v31, %v3298_v37  ;;  %v3109_v59 = vpop.f32.mrf.mxu0  ;;  %v1713_v62 = vadd.f32 %v1681_v34, %v1649_v35 }
 0x1ae   :  { %12385 = vmatmul.mubr.msk.bf16.gmra.mxu0 %vm2520_vm0, %v13953_v8  ;;  %v1745_v14 = vmul.f32 %v1617_v22, %v1617_v22  ;;  %v15987_v15 = vadd.f32 %v7678_v5, %v15885_v12  ;;  %v7965_v7 = vmul.f32 %v15836_v39, %v3109_v59  ;;  %v3302_v32 = vpop.f32.mrf.mxu1  ;;  %12401 = vmatmul.mubr.msk.bf16.gmra.mxu1 %vm2520_vm0, %v13953_v8 }
 0x1af   :  { %3809 = vmatprep.mubr.bf16.mxu0 %v23120_v63  ;;  %v15993_v31 = vadd.f32 %v7680_v30, %v15893_v54  ;;  %v7967_v38 = vmul.f32 %v15840_v9, %v3302_v32  ;;  %v3111_v18 = vpop.f32.mrf.mxu0  ;;  %4002 = vmatprep.mubr.bf16.mxu1 %v23120_v63  ;;  %v1715_v34 = vadd.f32 %v1683_v33, %v1651_v42  ;;  %v13954_v30 = vld [vmem:[%s22941_s3 + $0x28] sm:$0xff]  }
 0x1b0   :  { %v1747_v22 = vmul.f32 %v1619_v56, %v1619_v56  ;;  %v15998_v12 = vadd.f32 %v7965_v7, %v15901_v57  ;;  %v7966_v47 = vmul.f32 %v15852_v27, %v3111_v18  ;;  %v3304_v35 = vpop.f32.mrf.mxu1  ;;  %v16001_v28 = vadd.f32 %v1746_v6, %v1714_v4 }
 0x1b1   :  { %v16004_v26 = vadd.f32 %v7967_v38, %v15907_v0  ;;  %v7968_v54 = vmul.f32 %v15856_v45, %v3304_v35  ;;  %v3113_v23 = vpop.f32.mrf.mxu0  ;;  %v16007_v40 = vadd.f32 %v1745_v14, %v1713_v62 }
 0x1b2   :  { %v16010_v43 = vadd.f32 %v7966_v47, %v15914_v48  ;;  %v7997_v42 = vmul.f32 %v15836_v39, %v3113_v23  ;;  %v3306_v57 = vpop.f32.mrf.mxu1  ;;  %v16017_v5 = vadd.f32 %v1747_v22, %v1715_v34  ;;  %13865 = vrsqrt.f32 %v16001_v28 }
 0x1b3   :  { %v16014_v11 = vadd.f32 %v7968_v54, %v15919_v55  ;;  %v7999_v56 = vmul.f32 %v15840_v9, %v3306_v57  ;;  %v3115_v33 = vpop.f32.mrf.mxu0  ;;  %13867 = vrsqrt.f32 %v16007_v40  ;;  %v16059_v54 = vrot.slane %v15375_v44, %v15184_v51 }
 0x1b4   :  { %v16020_v0 = vadd.f32 %v7997_v42, %v15926_v2  ;;  %v7998_v37 = vmul.f32 %v15852_v27, %v3115_v33  ;;  %v3308_v4 = vpop.f32.mrf.mxu1  ;;  %13869 = vrsqrt.f32 %v16017_v5  ;;  %v16067_v42 = vrot.slane %v15383_v52, %v15184_v51  ;;  %v13955_v52 = vld [vmem:[%s22941_s3 + $0x30] sm:$0xff]  }
 0x1b5   :  { %v16025_v48 = vadd.f32 %v7999_v56, %v15932_v49  ;;  %v8000_v6 = vmul.f32 %v15856_v45, %v3308_v4  ;;  %v3119_v55 = vpop.f32.mrf.mxu0  ;;  %v13864_v49 = vpop.eup %13863  ;;  %v16075_v44 = vrot.slane %v15392_v21, %v15184_v51  ;;  %vm1872_vm4 = vcmp.eq.f32.partialorder %v16001_v28, inf }
 0x1b6   :  { %12386 = vmatmul.mubr.msk.bf16.gmra.mxu0 %vm2520_vm0, %v13954_v30  ;;  %v16034_v2 = vadd.f32 %v7998_v37, %v15942_v60  ;;  %v8029_v59 = vmul.f32 %v15836_v39, %v3119_v55  ;;  %v3312_v8 = vpop.f32.mrf.mxu1  ;;  %12402 = vmatmul.mubr.msk.bf16.gmra.mxu1 %vm2520_vm0, %v13954_v30  ;;  %v1861_v55 = vand.u32 2147483648, %v15880_v61  ;;  %vm1874_vm5 = vcmp.eq.f32.partialorder %v16001_v28, 0.0 }
 0x1b7   :  { %3819 = vmatprep.mubr.bf16.mxu0 %v23120_v63  ;;  %v16040_v62 = vadd.f32 %v8000_v6, %v15949_v46  ;;  %v8031_v14 = vmul.f32 %v15840_v9, %v3312_v8  ;;  %v3121_v7 = vpop.f32.mrf.mxu0  ;;  %4012 = vmatprep.mubr.bf16.mxu1 %v23120_v63  ;;  %vm1865_vm6 = vcmp.eq.f32.partialorder %v16007_v40, inf  ;;  %vm1867_vm7 = vcmp.eq.f32.partialorder %v16007_v40, 0.0 }
 0x1b8   :  { %v16046_v60 = vadd.f32 %v8029_v59, %v15956_v53  ;;  %v8030_v32 = vmul.f32 %v15852_v27, %v3121_v7  ;;  %v3314_v38 = vpop.f32.mrf.mxu1  ;;  %vm1879_vm8 = vcmp.eq.f32.partialorder %v16017_v5, inf  ;;  %vm1881_vm9 = vcmp.eq.f32.partialorder %v16017_v5, 0.0 }
 0x1b9   :  { %v16050_v18 = vadd.f32 %v8031_v14, %v15960_v10  ;;  %v8032_v34 = vmul.f32 %v15856_v45, %v3314_v38  ;;  %v3123_v46 = vpop.f32.mrf.mxu0 }
 0x1ba   :  { %v16054_v22 = vadd.f32 %v8030_v32, %v15965_v29  ;;  %v8061_v47 = vmul.f32 %v15836_v39, %v3123_v46  ;;  %v3316_v35 = vpop.f32.mrf.mxu1 }
 0x1bb   :  { %v16062_v53 = vadd.f32 %v8032_v34, %v15970_v3  ;;  %v8063_v23 = vmul.f32 %v15840_v9, %v3316_v35  ;;  %v3125_v10 = vpop.f32.mrf.mxu0 }
 0x1bc   :  { %v16070_v29 = vadd.f32 %v8061_v47, %v15975_v13  ;;  %v8062_v39 = vmul.f32 %v15852_v27, %v3125_v10  ;;  %v3318_v57 = vpop.f32.mrf.mxu1  ;;  %v16087_v27 = vrot.slane %v15396_v25, %v15184_v51  ;;  %v1857_v13 = vmul.f32 %v13864_v49, %v15880_v61 }
 0x1bd   :  { %v16078_v3 = vadd.f32 %v8063_v23, %v15979_v1  ;;  %v8064_v9 = vmul.f32 %v15856_v45, %v3318_v57  ;;  %v3129_v56 = vpop.f32.mrf.mxu0  ;;  %v1875_v23 = vand.u32 2147483648, %v16001_v28  ;;  %v13956_v57 = vld [vmem:[%s22941_s3 + $0x38] sm:$0xff]  }
 0x1be   :  { %12387 = vmatmul.mubr.msk.bf16.gmra.mxu0 %vm2520_vm0, %v13955_v52  ;;  %v16091_v21 = vadd.f32 %v8062_v39, %v15987_v15  ;;  %v8349_v1 = vmul.f32 %v16059_v54, %v3129_v56  ;;  %v3322_v33 = vpop.f32.mrf.mxu1  ;;  %12403 = vmatmul.mubr.msk.bf16.gmra.mxu1 %vm2520_vm0, %v13955_v52  ;;  %v1859_v49 = vsel %vm1858_vm2, %v15880_v61, %v1857_v13 }
 0x1bf   :  { %3829 = vmatprep.mubr.bf16.mxu0 %v23120_v63  ;;  %v16098_v45 = vadd.f32 %v8064_v9, %v15993_v31  ;;  %v8351_v25 = vmul.f32 %v16067_v42, %v3322_v33  ;;  %v3131_v37 = vpop.f32.mrf.mxu0  ;;  %4022 = vmatprep.mubr.bf16.mxu1 %v23120_v63  ;;  %v13866_v30 = vpop.eup %13865  ;;  %v1862_v35 = vsel %vm1860_vm3, %v1861_v55, %v1859_v49 }
 0x1c0   :  { %v16103_v15 = vadd.f32 %v8349_v1, %v15998_v12  ;;  %v8350_v4 = vmul.f32 %v16075_v44, %v3131_v37  ;;  %v3324_v6 = vpop.f32.mrf.mxu1  ;;  %v13868_v14 = vpop.eup %13867 }
 0x1c1   :  { %v16108_v59 = vadd.f32 %v8351_v25, %v16004_v26  ;;  %v8352_v31 = vmul.f32 %v16087_v27, %v3324_v6  ;;  %v3133_v8 = vpop.f32.mrf.mxu0  ;;  %v13870_v46 = vpop.eup %13869  ;;  %v1864_v9 = vmul.f32 %v13868_v14, %v16007_v40 }
 0x1c2   :  { %23149 = vst [vmem:[#allocation15_spill] sm:$0xff] %v16103_v15  ;;  %v16114_v12 = vadd.f32 %v8350_v4, %v16010_v43  ;;  %v8381_v7 = vmul.f32 %v16059_v54, %v3133_v8  ;;  %v3326_v32 = vpop.f32.mrf.mxu1 }
 0x1c3   :  { %23150 = vst [vmem:[#allocation16_spill] sm:$0xff] %v16108_v59  ;;  %v16118_v38 = vadd.f32 %v8352_v31, %v16014_v11  ;;  %v8383_v26 = vmul.f32 %v16067_v42, %v3326_v32  ;;  %v3135_v34 = vpop.f32.mrf.mxu0  ;;  %v1882_v32 = vand.u32 2147483648, %v16017_v5 }
 0x1c4   :  { %23151 = vst [vmem:[#allocation34_spill] sm:$0xff] %v16114_v12  ;;  %v16124_v61 = vadd.f32 %v8381_v7, %v16020_v0  ;;  %v8382_v43 = vmul.f32 %v16075_v44, %v3135_v34  ;;  %v3328_v47 = vpop.f32.mrf.mxu1  ;;  %v1871_v0 = vmul.f32 %v13866_v30, %v16001_v28 }
 0x1c5   :  { %23152 = vst [vmem:[#allocation35_spill] sm:$0xff] %v16118_v38  ;;  %v16129_v11 = vadd.f32 %v8383_v26, %v16025_v48  ;;  %v8384_v10 = vmul.f32 %v16087_v27, %v3328_v47  ;;  %v3139_v39 = vpop.f32.mrf.mxu0 }
 0x1c6   :  { %23153 = vst [vmem:[#allocation36_spill] sm:$0xff] %v16124_v61  ;;  %12388 = vmatmul.mubr.msk.bf16.gmra.mxu0 %vm2520_vm0, %v13956_v57  ;;  %v16141_v52 = vadd.f32 %v8382_v43, %v16034_v2  ;;  %v8413_v48 = vmul.f32 %v16059_v54, %v3139_v39  ;;  %v3332_v13 = vpop.f32.mrf.mxu1  ;;  %12404 = vmatmul.mubr.msk.bf16.gmra.mxu1 %vm2520_vm0, %v13956_v57  ;;  %v13957_v57 = vld [vmem:[%s22941_s3 + $0x40] sm:$0xff]  }
 0x1c7   :  { %23154 = vst [vmem:[#allocation37_spill] sm:$0xff] %v16129_v11  ;;  %3839 = vmatprep.mubr.bf16.mxu0 %v23120_v63  ;;  %v16150_v33 = vadd.f32 %v8384_v10, %v16040_v62  ;;  %v8415_v25 = vmul.f32 %v16067_v42, %v3332_v13  ;;  %v3141_v37 = vpop.f32.mrf.mxu0  ;;  %4032 = vmatprep.mubr.bf16.mxu1 %v23120_v63 }
 0x1c8   :  { %23155 = vst [vmem:[#allocation38_spill] sm:$0xff] %v16141_v52  ;;  %v1878_v2 = vmul.f32 %v13870_v46, %v16017_v5  ;;  %v16156_v4 = vadd.f32 %v8413_v48, %v16046_v60  ;;  %v8414_v6 = vmul.f32 %v16075_v44, %v3141_v37  ;;  %v3334_v55 = vpop.f32.mrf.mxu1  ;;  %v1873_v8 = vsel %vm1872_vm4, %v16001_v28, %v1871_v0  ;;  %v23168_v52 = vld [vmem:[#allocation13_spill] sm:$0xff] }
 0x1c9   :  { %23156 = vst [vmem:[#allocation39_spill] sm:$0xff] %v16150_v33  ;;  %v16162_v62 = vadd.f32 %v8415_v25, %v16050_v18  ;;  %v8416_v30 = vmul.f32 %v16087_v27, %v3334_v55  ;;  %v3143_v31 = vpop.f32.mrf.mxu0  ;;  %v1868_v60 = vand.u32 2147483648, %v16007_v40  ;;  %v1866_v18 = vsel %vm1865_vm6, %v16007_v40, %v1864_v9 }
 0x1ca   :  { %23157 = vst [vmem:[#allocation40_spill] sm:$0xff] %v16156_v4  ;;  %v16170_v49 = vadd.f32 %v8414_v6, %v16054_v22  ;;  %v8445_v14 = vmul.f32 %v16059_v54, %v3143_v31  ;;  %v3336_v7 = vpop.f32.mrf.mxu1  ;;  %v1880_v43 = vsel %vm1879_vm8, %v16017_v5, %v1878_v2  ;;  %v1876_v10 = vsel %vm1874_vm5, %v1875_v23, %v1873_v8 }
 0x1cb   :  { %23158 = vst [vmem:[#allocation41_spill] sm:$0xff] %v16162_v62  ;;  %v16178_v26 = vadd.f32 %v8416_v30, %v16062_v53  ;;  %v8447_v34 = vmul.f32 %v16067_v42, %v3336_v7  ;;  %v3145_v46 = vpop.f32.mrf.mxu0  ;;  %v2034_v9 = vmul.f32 2.0833333, %v1876_v10 }
 0x1cc   :  { %23159 = vst [vmem:[#allocation42_spill] sm:$0xff] %v16170_v49  ;;  %v16184_v22 = vadd.f32 %v8445_v14, %v16070_v29  ;;  %v8446_v54 = vmul.f32 %v16075_v44, %v3145_v46  ;;  %v3338_v47 = vpop.f32.mrf.mxu1  ;;  %v1869_v29 = vsel %vm1867_vm7, %v1868_v60, %v1866_v18 }
 0x1cd   :  { %23160 = vst [vmem:[#allocation43_spill] sm:$0xff] %v16178_v26  ;;  %v16190_v39 = vadd.f32 %v8447_v34, %v16078_v3  ;;  %v8448_v53 = vmul.f32 %v16087_v27, %v3338_v47  ;;  %v3375_v42 = vpop.f32.mrf.mxu0  ;;  %v2032_v3 = vmul.f32 2.0833333, %v1862_v35  ;;  %v1883_v27 = vsel %vm1881_vm9, %v1882_v32, %v1880_v43 }
 0x1ce   :  { %23161 = vst [vmem:[#allocation44_spill] sm:$0xff] %v16184_v22  ;;  %12389 = vmatmul.mubr.msk.bf16.gmra.mxu0 %vm2520_vm0, %v13957_v57  ;;  %v16202_v28 = vadd.f32 %v8446_v54, %v16091_v21  ;;  %v3568_v23 = vpop.f32.mrf.mxu1  ;;  %12405 = vmatmul.mubr.msk.bf16.gmra.mxu1 %vm2520_vm0, %v13957_v57  ;;  %v2033_v21 = vmul.f32 2.0833333, %v1869_v29  ;;  %v2035_v13 = vmul.f32 2.0833333, %v1883_v27  ;;  %v2066_v5 = vsub.f32 1.0, %v2034_v9 }
 0x1cf   :  { %23162 = vst [vmem:[#allocation45_spill] sm:$0xff] %v16190_v39  ;;  %3849 = vmatprep.mubr.bf16.mxu0 %v23120_v63  ;;  %v16211_v40 = vadd.f32 %v8448_v53, %v16098_v45  ;;  %v3377_v48 = vpop.f32.mrf.mxu0  ;;  %4042 = vmatprep.mubr.bf16.mxu1 %v23120_v63  ;;  %v2064_v37 = vsub.f32 1.0, %v2032_v3  ;;  %v13958_v45 = vld [vmem:[%s22941_s3 + $0x48] sm:$0xff]  }
 0x1d0   :  { %23163 = vst [vmem:[#allocation46_spill] sm:$0xff] %v16202_v28  ;;  %v3570_v35 = vpop.f32.mrf.mxu1  ;;  %v2065_v55 = vsub.f32 1.0, %v2033_v21  ;;  %v2067_v31 = vsub.f32 1.0, %v2035_v13  ;;  %v16232_v32 = vmax.f32 %v2066_v5, 0.0 }
 0x1d1   :  { %23164 = vst [vmem:[#allocation47_spill] sm:$0xff] %v16211_v40  ;;  %v3379_v25 = vpop.f32.mrf.mxu0  ;;  %v16224_v14 = vmax.f32 %v2064_v37, 0.0 }
 0x1d2   :  { %v3572_v2 = vpop.f32.mrf.mxu1  ;;  %v16241_v54 = vmax.f32 %v2065_v55, 0.0  ;;  %v16245_v10 = vmax.f32 %v2067_v31, 0.0  ;;  %v16261_v27 = vrot.slane %v16232_v32, %v14362_v16  ;;  %v16267_v21 = vrot.slane %v16232_v32, %v14365_v17 }
 0x1d3   :  { %v3381_v6 = vpop.f32.mrf.mxu0  ;;  %v16251_v57 = vrot.slane %v16224_v14, %v14362_v16  ;;  %v16257_v3 = vrot.slane %v16224_v14, %v14365_v17 }
 0x1d4   :  { %v16214_v30 = vpop.f32.mrf.mxu1  ;;  %v16271_v13 = vrot.slane %v16241_v54, %v14362_v16  ;;  %v16277_v5 = vrot.slane %v16241_v54, %v14365_v17  ;;  %v16281_v55 = vrot.slane %v16245_v10, %v14362_v16  ;;  %v16289_v0 = vrot.slane %v16245_v10, %v14365_v17 }
 0x1d5   :  { %v16216_v8 = vpop.f32.mrf.mxu0  ;;  %v5793_v44 = vmul.f32 %v16251_v57, %v3375_v42  ;;  %v5795_v1 = vmul.f32 %v16261_v27, %v3568_v23  ;;  %v5825_v23 = vmul.f32 %v16251_v57, %v3379_v25  ;;  %v16560_v49 = vrot.slane %v16241_v54, %v14374_v20 }
 0x1d6   :  { %12390 = vmatmul.mubr.msk.bf16.gmra.mxu0 %vm2520_vm0, %v13958_v45  ;;  %v16226_v7 = vpop.f32.mrf.mxu1  ;;  %12406 = vmatmul.mubr.msk.bf16.gmra.mxu1 %vm2520_vm0, %v13958_v45  ;;  %v13959_v45 = vld [vmem:[%s22941_s3 + $0x50] sm:$0xff]   ;;  %v5794_v60 = vmul.f32 %v16271_v13, %v3377_v48  ;;  %v5828_v25 = vmul.f32 %v16281_v55, %v16214_v30 }
 0x1d7   :  { %3859 = vmatprep.mubr.bf16.mxu0 %v23120_v63  ;;  %v16234_v34 = vpop.f32.mrf.mxu0  ;;  %4052 = vmatprep.mubr.bf16.mxu1 %v23120_v63  ;;  %v5859_v30 = vmul.f32 %v16261_v27, %v16226_v7 }
 0x1d8   :  { %v16243_v47 = vpop.f32.mrf.mxu1 }
 0x1d9   :  { %v16247_v53 = vpop.f32.mrf.mxu0 }
 0x1da   :  { %v16253_v29 = vpop.f32.mrf.mxu1 }
 0x1db   :  { %v16263_v9 = vpop.f32.mrf.mxu0 }
 0x1dc   :  { %v16273_v37 = vpop.f32.mrf.mxu1 }
 0x1dd   :  { %v3395_v31 = vpop.f32.mrf.mxu0 }
 0x1de   :  { %12391 = vmatmul.mubr.msk.bf16.gmra.mxu0 %vm2520_vm0, %v13959_v45  ;;  %v6049_v43 = vmul.f32 %v16257_v3, %v3395_v31  ;;  %v3588_v46 = vpop.f32.mrf.mxu1  ;;  %12407 = vmatmul.mubr.msk.bf16.gmra.mxu1 %vm2520_vm0, %v13959_v45  ;;  %v5796_v31 = vmul.f32 %v16281_v55, %v3570_v35 }
 0x1df   :  { %3869 = vmatprep.mubr.bf16.mxu0 %v23120_v63  ;;  %v6051_v56 = vmul.f32 %v16267_v21, %v3588_v46  ;;  %v3397_v18 = vpop.f32.mrf.mxu0  ;;  %4062 = vmatprep.mubr.bf16.mxu1 %v23120_v63 }
 0x1e0   :  { %v16299_v62 = vadd.f32 %v6049_v43, %v5793_v44  ;;  %v6050_v42 = vmul.f32 %v16277_v5, %v3397_v18  ;;  %v3590_v39 = vpop.f32.mrf.mxu1  ;;  %v5827_v44 = vmul.f32 %v16261_v27, %v3572_v2 }
 0x1e1   :  { %v16303_v4 = vadd.f32 %v6051_v56, %v5795_v1  ;;  %v6052_v45 = vmul.f32 %v16289_v0, %v3590_v39  ;;  %v3399_v22 = vpop.f32.mrf.mxu0  ;;  %v5826_v56 = vmul.f32 %v16271_v13, %v3381_v6 }
 0x1e2   :  { %v16307_v46 = vadd.f32 %v6050_v42, %v5794_v60  ;;  %v6081_v26 = vmul.f32 %v16257_v3, %v3399_v22  ;;  %v3592_v40 = vpop.f32.mrf.mxu1 }
 0x1e3   :  { %v16311_v48 = vadd.f32 %v6052_v45, %v5796_v31  ;;  %v6083_v18 = vmul.f32 %v16267_v21, %v3592_v40  ;;  %v3401_v43 = vpop.f32.mrf.mxu0  ;;  %v13960_v40 = vld [vmem:[%s22941_s3 + $0x58] sm:$0xff]  }
 0x1e4   :  { %v16315_v1 = vadd.f32 %v6081_v26, %v5825_v23  ;;  %v6082_v39 = vmul.f32 %v16277_v5, %v3401_v43  ;;  %v3594_v35 = vpop.f32.mrf.mxu1  ;;  %v5857_v26 = vmul.f32 %v16251_v57, %v16216_v8  ;;  %v5858_v8 = vmul.f32 %v16271_v13, %v16234_v34 }
 0x1e5   :  { %v16320_v60 = vadd.f32 %v6083_v18, %v5827_v44  ;;  %v6084_v22 = vmul.f32 %v16289_v0, %v3594_v35  ;;  %v3405_v2 = vpop.f32.mrf.mxu0 }
 0x1e6   :  { %12392 = vmatmul.mubr.msk.bf16.gmra.mxu0 %vm2520_vm0, %v13960_v40  ;;  %v16329_v6 = vadd.f32 %v6082_v39, %v5826_v56  ;;  %v6113_v42 = vmul.f32 %v16257_v3, %v3405_v2  ;;  %v3598_v31 = vpop.f32.mrf.mxu1  ;;  %12408 = vmatmul.mubr.msk.bf16.gmra.mxu1 %vm2520_vm0, %v13960_v40  ;;  %v5860_v39 = vmul.f32 %v16281_v55, %v16243_v47 }
 0x1e7   :  { %3879 = vmatprep.mubr.bf16.mxu0 %v23120_v63  ;;  %v16336_v45 = vadd.f32 %v6084_v22, %v5828_v25  ;;  %v6115_v23 = vmul.f32 %v16267_v21, %v3598_v31  ;;  %v3407_v44 = vpop.f32.mrf.mxu0  ;;  %4072 = vmatprep.mubr.bf16.mxu1 %v23120_v63  ;;  %v5889_v22 = vmul.f32 %v16251_v57, %v16247_v53 }
 0x1e8   :  { %v16342_v18 = vadd.f32 %v6113_v42, %v5857_v26  ;;  %v6114_v43 = vmul.f32 %v16277_v5, %v3407_v44  ;;  %v3600_v56 = vpop.f32.mrf.mxu1  ;;  %v16357_v26 = vrot.slane %v16224_v14, %v14381_v24  ;;  %v5891_v47 = vmul.f32 %v16261_v27, %v16253_v29 }
 0x1e9   :  { %v16347_v35 = vadd.f32 %v6115_v23, %v5859_v30  ;;  %v6116_v7 = vmul.f32 %v16289_v0, %v3600_v56  ;;  %v3409_v25 = vpop.f32.mrf.mxu0  ;;  %v6340_v53 = vrot.slane %v16232_v32, %v14381_v24  ;;  %v5890_v57 = vmul.f32 %v16271_v13, %v16263_v9  ;;  %v13961_v56 = vld [vmem:[%s22941_s3 + $0x60] sm:$0xff]  }
 0x1ea   :  { %v16352_v2 = vadd.f32 %v6114_v43, %v5858_v8  ;;  %v6145_v34 = vmul.f32 %v16257_v3, %v3409_v25  ;;  %v3602_v40 = vpop.f32.mrf.mxu1  ;;  %v6336_v8 = vrot.slane %v16241_v54, %v14381_v24  ;;  %v5892_v29 = vmul.f32 %v16281_v55, %v16273_v37 }
 0x1eb   :  { %v16361_v42 = vadd.f32 %v6116_v7, %v5860_v39  ;;  %v6147_v31 = vmul.f32 %v16267_v21, %v3602_v40  ;;  %v3411_v30 = vpop.f32.mrf.mxu0  ;;  %v6344_v9 = vrot.slane %v16245_v10, %v14381_v24 }
 0x1ec   :  { %v16368_v3 = vadd.f32 %v6145_v34, %v5889_v22  ;;  %v6146_v23 = vmul.f32 %v16277_v5, %v3411_v30  ;;  %v3604_v44 = vpop.f32.mrf.mxu1 }
 0x1ed   :  { %v6275_v27 = vadd.f32 %v6147_v31, %v5891_v47  ;;  %v6148_v21 = vmul.f32 %v16289_v0, %v3604_v44  ;;  %v3415_v43 = vpop.f32.mrf.mxu0 }
 0x1ee   :  { %12393 = vmatmul.mubr.msk.bf16.gmra.mxu0 %vm2520_vm0, %v13961_v56  ;;  %v6274_v13 = vadd.f32 %v6146_v23, %v5890_v57  ;;  %v6433_v5 = vmul.f32 %v16357_v26, %v3415_v43  ;;  %v3608_v39 = vpop.f32.mrf.mxu1  ;;  %12409 = vmatmul.mubr.msk.bf16.gmra.mxu1 %vm2520_vm0, %v13961_v56 }
 0x1ef   :  { %3889 = vmatprep.mubr.bf16.mxu0 %v23120_v63  ;;  %v6276_v37 = vadd.f32 %v6148_v21, %v5892_v29  ;;  %v6435_v0 = vmul.f32 %v6340_v53, %v3608_v39  ;;  %v3417_v55 = vpop.f32.mrf.mxu0  ;;  %4082 = vmatprep.mubr.bf16.mxu1 %v23120_v63 }
 0x1f0   :  { %v6561_v7 = vadd.f32 %v6433_v5, %v16299_v62  ;;  %v6434_v25 = vmul.f32 %v6336_v8, %v3417_v55  ;;  %v3610_v22 = vpop.f32.mrf.mxu1 }
 0x1f1   :  { %v6563_v34 = vadd.f32 %v6435_v0, %v16303_v4  ;;  %v6436_v40 = vmul.f32 %v6344_v9, %v3610_v22  ;;  %v3419_v47 = vpop.f32.mrf.mxu0 }
 0x1f2   :  { %v6562_v31 = vadd.f32 %v6434_v25, %v16307_v46  ;;  %v6465_v30 = vmul.f32 %v16357_v26, %v3419_v47  ;;  %v3612_v57 = vpop.f32.mrf.mxu1  ;;  %v13962_v46 = vld [vmem:[%s22941_s3 + $0x68] sm:$0xff]  }
 0x1f3   :  { %v16391_v23 = vadd.f32 %v6436_v40, %v16311_v48  ;;  %v6467_v44 = vmul.f32 %v6340_v53, %v3612_v57  ;;  %v3421_v29 = vpop.f32.mrf.mxu0 }
 0x1f4   :  { %v16394_v21 = vadd.f32 %v6465_v30, %v16315_v1  ;;  %v6466_v62 = vmul.f32 %v6336_v8, %v3421_v29  ;;  %v3614_v43 = vpop.f32.mrf.mxu1  ;;  %v23165_v29 = vld [vmem:[#allocation12_spill] sm:$0xff] }
 0x1f5   :  { %v16397_v56 = vadd.f32 %v6467_v44, %v16320_v60  ;;  %v6468_v4 = vmul.f32 %v6344_v9, %v3614_v43  ;;  %v3425_v5 = vpop.f32.mrf.mxu0 }
 0x1f6   :  { %12394 = vmatmul.mubr.msk.bf16.gmra.mxu0 %vm2520_vm0, %v13962_v46  ;;  %v16404_v48 = vadd.f32 %v6466_v62, %v16329_v6  ;;  %v6497_v39 = vmul.f32 %v16357_v26, %v3425_v5  ;;  %v3618_v1 = vpop.f32.mrf.mxu1  ;;  %12410 = vmatmul.mubr.msk.bf16.gmra.mxu1 %vm2520_vm0, %v13962_v46  ;;  %v16425_v62 = vrot.slane %v16224_v14, %v23165_v29 }
 0x1f7   :  { %3899 = vmatprep.mubr.bf16.mxu0 %v23120_v63  ;;  %v16410_v60 = vadd.f32 %v6468_v4, %v16336_v45  ;;  %v6499_v0 = vmul.f32 %v6340_v53, %v3618_v1  ;;  %v3427_v55 = vpop.f32.mrf.mxu0  ;;  %4092 = vmatprep.mubr.bf16.mxu1 %v23120_v63 }
 0x1f8   :  { %v16414_v25 = vadd.f32 %v6497_v39, %v16342_v18  ;;  %v6498_v22 = vmul.f32 %v6336_v8, %v3427_v55  ;;  %v3620_v6 = vpop.f32.mrf.mxu1 }
 0x1f9   :  { %v16417_v40 = vadd.f32 %v6499_v0, %v16347_v35  ;;  %v6500_v47 = vmul.f32 %v6344_v9, %v3620_v6  ;;  %v3429_v30 = vpop.f32.mrf.mxu0  ;;  %v16432_v35 = vrot.slane %v16232_v32, %v23165_v29 }
 0x1fa   :  { %v16420_v57 = vadd.f32 %v6498_v22, %v16352_v2  ;;  %v6529_v45 = vmul.f32 %v16357_v26, %v3429_v30  ;;  %v3622_v44 = vpop.f32.mrf.mxu1  ;;  %v16439_v26 = vrot.slane %v16241_v54, %v23165_v29 }
 0x1fb   :  { %v16428_v18 = vadd.f32 %v6500_v47, %v16361_v42  ;;  %v6531_v43 = vmul.f32 %v6340_v53, %v3622_v44  ;;  %v3431_v4 = vpop.f32.mrf.mxu0  ;;  %v13963_v53 = vld [vmem:[%s22941_s3 + $0x70] sm:$0xff]  }
 0x1fc   :  { %v16435_v5 = vadd.f32 %v6529_v45, %v16368_v3  ;;  %v6530_v2 = vmul.f32 %v6336_v8, %v3431_v4  ;;  %v3624_v46 = vpop.f32.mrf.mxu1  ;;  %v16449_v3 = vrot.slane %v16245_v10, %v23165_v29  ;;  %v23169_v29 = vld [vmem:[#allocation14_spill] sm:$0xff] }
 0x1fd   :  { %v16441_v39 = vadd.f32 %v6531_v43, %v6275_v27  ;;  %v6532_v1 = vmul.f32 %v6344_v9, %v3624_v46  ;;  %v3435_v42 = vpop.f32.mrf.mxu0 }
 0x1fe   :  { %12395 = vmatmul.mubr.msk.bf16.gmra.mxu0 %vm2520_vm0, %v13963_v53  ;;  %v16451_v8 = vadd.f32 %v6530_v2, %v6274_v13  ;;  %v6817_v0 = vmul.f32 %v16425_v62, %v3435_v42  ;;  %v3628_v55 = vpop.f32.mrf.mxu1  ;;  %12411 = vmatmul.mubr.msk.bf16.gmra.mxu1 %vm2520_vm0, %v13963_v53  ;;  %v16472_v2 = vld [vmem:[%s22938_s0 + $0x30] sm:$0x77] }
 0x1ff   :  { %3909 = vmatprep.mubr.bf16.mxu0 %v23120_v63  ;;  %v16456_v27 = vadd.f32 %v6532_v1, %v6276_v37  ;;  %v6819_v9 = vmul.f32 %v16432_v35, %v3628_v55  ;;  %v3437_v22 = vpop.f32.mrf.mxu0  ;;  %4102 = vmatprep.mubr.bf16.mxu1 %v23120_v63  ;;  %v1367_v61 = vrot.slane %v16472_v2, %v14381_v24 }
 0x200   :  { %v16460_v6 = vadd.f32 %v6817_v0, %v6561_v7  ;;  %v6818_v47 = vmul.f32 %v16439_v26, %v3437_v22  ;;  %v3630_v13 = vpop.f32.mrf.mxu1 }
 0x201   :  { %v16463_v30 = vadd.f32 %v6819_v9, %v6563_v34  ;;  %v6820_v45 = vmul.f32 %v16449_v3, %v3630_v13  ;;  %v3439_v44 = vpop.f32.mrf.mxu0  ;;  %v718_v9 = vrot.slane %v16472_v2, %v14362_v16 }
 0x202   :  { %v16466_v43 = vadd.f32 %v6818_v47, %v6562_v31  ;;  %v6849_v37 = vmul.f32 %v16425_v62, %v3439_v44  ;;  %v3632_v4 = vpop.f32.mrf.mxu1  ;;  %v16505_v44 = vrot.slane %v16224_v14, %v14371_v19 }
 0x203   :  { %v16475_v7 = vadd.f32 %v6820_v45, %v16391_v23  ;;  %v6851_v46 = vmul.f32 %v16432_v35, %v3632_v4  ;;  %v3441_v34 = vpop.f32.mrf.mxu0  ;;  %v13964_v23 = vld [vmem:[%s22941_s3 + $0x78] sm:$0xff]  }
 0x204   :  { %v16479_v1 = vadd.f32 %v6849_v37, %v16394_v21  ;;  %v6850_v31 = vmul.f32 %v16439_v26, %v3441_v34  ;;  %v3634_v42 = vpop.f32.mrf.mxu1  ;;  %v16519_v34 = vrot.slane %v16241_v54, %v14371_v19 }
 0x205   :  { %v16483_v53 = vadd.f32 %v6851_v46, %v16397_v56  ;;  %v6852_v0 = vmul.f32 %v16449_v3, %v3634_v42  ;;  %v3445_v55 = vpop.f32.mrf.mxu0 }
 0x206   :  { %12396 = vmatmul.mubr.msk.bf16.gmra.mxu0 %vm2520_vm0, %v13964_v23  ;;  %v16493_v21 = vadd.f32 %v6850_v31, %v16404_v48  ;;  %v6881_v22 = vmul.f32 %v16425_v62, %v3445_v55  ;;  %v3638_v47 = vpop.f32.mrf.mxu1  ;;  %12412 = vmatmul.mubr.msk.bf16.gmra.mxu1 %vm2520_vm0, %v13964_v23  ;;  %v1043_v48 = vrot.slane %v16472_v2, %v14365_v17  ;;  %v52_v23 = vld [vmem:[%s22940_s2 + $0x50] sm:$0xff] }
 0x207   :  { %4145 = vmatprep.mubr.bf16.mxu0 %v23120_v63  ;;  %v16499_v56 = vadd.f32 %v6852_v0, %v16410_v60  ;;  %v6883_v13 = vmul.f32 %v16432_v35, %v3638_v47  ;;  %v3447_v45 = vpop.f32.mrf.mxu0  ;;  %4338 = vmatprep.mubr.bf16.mxu1 %v23120_v63  ;;  %v16515_v60 = vrot.slane %v16232_v32, %v14371_v19 }
 0x208   :  { %v16510_v37 = vadd.f32 %v6881_v22, %v16414_v25  ;;  %v6882_v4 = vmul.f32 %v16439_v26, %v3447_v45  ;;  %v3640_v46 = vpop.f32.mrf.mxu1  ;;  %v16527_v25 = vrot.slane %v16245_v10, %v14371_v19  ;;  %v878_v55 = vrot.slane %v718_v9, %v14362_v16  ;;  %v68_v22 = vld [vmem:[%s22940_s2 + $0xd0] sm:$0xff] }
 0x209   :  { %v16522_v31 = vadd.f32 %v6883_v13, %v16417_v40  ;;  %v6884_v42 = vmul.f32 %v16449_v3, %v3640_v46  ;;  %v3449_v0 = vpop.f32.mrf.mxu0  ;;  %v16542_v45 = vrot.slane %v16224_v14, %v14374_v20  ;;  %v16546_v9 = vrot.slane %v16232_v32, %v14374_v20  ;;  %v53_v46 = vld [vmem:[%s22940_s2 + $0x58] sm:$0xff] }
 0x20a   :  { %v16537_v40 = vadd.f32 %v6882_v4, %v16420_v57  ;;  %v6913_v47 = vmul.f32 %v16425_v62, %v3449_v0  ;;  %v3642_v13 = vpop.f32.mrf.mxu1  ;;  %v69_v57 = vld [vmem:[%s22940_s2 + $0xd8] sm:$0xff]  ;;  %v1203_v28 = vrot.slane %v1043_v48, %v14365_v17  ;;  %v13965_v48 = vld [vmem:[%s22941_s3] sm:$0xff]   ;;  %v12241_v38 = vcombine.low %v52_v23, %v68_v22 }
 0x20b   :  { %v16555_v4 = vadd.f32 %v6884_v42, %v16428_v18  ;;  %v6915_v62 = vmul.f32 %v16432_v35, %v3642_v13  ;;  %v3451_v0 = vpop.f32.mrf.mxu0  ;;  %v12242_v18 = vcombine.high %v52_v23, %v68_v22 }
 0x20c   :  { %v16564_v59 = vadd.f32 %v6913_v47, %v16435_v5  ;;  %v6914_v11 = vmul.f32 %v16439_v26, %v3451_v0  ;;  %v3644_v15 = vpop.f32.mrf.mxu1  ;;  %v972_v5 = vsub.f32 %v878_v55, %v23138_v58  ;;  %v16581_v26 = vld [vmem:[%s22938_s0 + $0x38] sm:$0x77]  ;;  %v12244_v47 = vcombine.high %v53_v46, %v69_v57 }
 0x20d   :  { %v16570_v42 = vadd.f32 %v6915_v62, %v16441_v39  ;;  %v6916_v35 = vmul.f32 %v16449_v3, %v3644_v15  ;;  %v3455_v13 = vpop.f32.mrf.mxu0  ;;  %v23166_v62 = vld [vmem:[#allocation9_spill] sm:$0xff]  ;;  %v1296_v22 = vsub.f32 %v1203_v28, %v14403_v36 }
 0x20e   :  { %12413 = vmatmul.mubr.msk.bf16.vlgmr.msra.gmra.mxu0 %vm2520_vm0, %v13965_v48  ;;  %v16584_v39 = vadd.f32 %v6914_v11, %v16451_v8  ;;  %v7201_v15 = vmul.f32 %v16505_v44, %v3455_v13  ;;  %v3648_v3 = vpop.f32.mrf.mxu1  ;;  %12429 = vmatmul.mubr.msk.bf16.vlgmr.msra.gmra.mxu1 %vm2520_vm0, %v13965_v48  ;;  %v23167_v0 = vcombine.low %v15766_v41, %v23166_v62 }
 0x20f   :  { %v16592_v55 = vadd.f32 %v6916_v35, %v16456_v27  ;;  %v7203_v33 = vmul.f32 %v16515_v60, %v3648_v3  ;;  %v3457_v12 = vpop.f32.mrf.mxu0  ;;  %v23170_v11 = vcombine.low %v23168_v52, %v23169_v29  ;;  %4155 = vmatprep.mubr.bf16.mxu0 %v23120_v63  ;;  %v12243_v8 = vcombine.low %v53_v46, %v69_v57  ;;  %v16620_v46 = vld [vmem:[%s22940_s2 + $0x1e0] sm:$0xff]  ;;  %v16646_v3 = vld [vmem:[%s22940_s2 + $0x1e8] sm:$0xff] }
 0x210   :  { %4512 = vmatpush1.bf16.msra.mxu0 %v23167_v0  ;;  %v16600_v13 = vadd.f32 %v7201_v15, %v16460_v6  ;;  %v7202_v41 = vmul.f32 %v16519_v34, %v3457_v12  ;;  %v3650_v48 = vpop.f32.mrf.mxu1  ;;  %4348 = vmatprep.mubr.bf16.mxu1 %v23120_v63  ;;  %v726_v27 = vrot.slane %v16581_v26, %v14362_v16  ;;  %v16615_v12 = vld [vmem:[%s22940_s2 + $0x160] sm:$0xff] }
 0x211   :  { %4705 = vmatpush1.bf16.msra.mxu1 %v23170_v11  ;;  %4513 = vmatprep.subr.bf16.mxu0 %v12242_v18  ;;  %v16607_v23 = vadd.f32 %v7203_v33, %v16463_v30  ;;  %v7204_v52 = vmul.f32 %v16527_v25, %v3650_v48  ;;  %v3459_v29 = vpop.f32.mrf.mxu0  ;;  %v1527_v6 = vrot.slane %v1367_v61, %v14381_v24 }
 0x212   :  { %4706 = vmatprep.subr.bf16.mxu1 %v12244_v47  ;;  %23171 = vst [vmem:[#allocation9_spill] sm:$0xff] %v16620_v46  ;;  %v16623_v33 = vadd.f32 %v7202_v41, %v16466_v43  ;;  %v7233_v30 = vmul.f32 %v16505_v44, %v3459_v29  ;;  %v3652_v57 = vpop.f32.mrf.mxu1  ;;  %v12278_v28 = vcombine.high %v16615_v12, %v16620_v46  ;;  %23173 = vst [vmem:[#allocation14_spill] sm:$0xff] %v16646_v3 }
 0x213   :  { %v16631_v18 = vadd.f32 %v7204_v52, %v16475_v7  ;;  %v7235_v35 = vmul.f32 %v16515_v60, %v3652_v57  ;;  %v3461_v47 = vpop.f32.mrf.mxu0  ;;  %v16636_v43 = vrot.slane %v16245_v10, %v14374_v20  ;;  %v1652_v15 = vmul.f32 %v972_v5, %v972_v5 }
 0x214   :  { %4514 = vmatpush1.bf16.msra.mxu0 %v12241_v38  ;;  %v16641_v38 = vld [vmem:[%s22940_s2 + $0x168] sm:$0xff]  ;;  %v16649_v7 = vadd.f32 %v7233_v30, %v16479_v1  ;;  %v7234_v62 = vmul.f32 %v16519_v34, %v3461_v47  ;;  %v3654_v0 = vpop.f32.mrf.mxu1  ;;  %v1620_v52 = vsub.f32 %v1527_v6, %v14421_v50  ;;  %v1684_v29 = vmul.f32 %v1296_v22, %v1296_v22 }
 0x215   :  { %4707 = vmatpush1.bf16.msra.mxu1 %v12243_v8  ;;  %23172 = vst [vmem:[#allocation13_spill] sm:$0xff] %v16641_v38  ;;  %4897 = vmatprep.subr.bf16.mxu0 %v12278_v28  ;;  %v12280_v11 = vcombine.high %v16641_v38, %v16646_v3  ;;  %v16657_v8 = vadd.f32 %v7235_v35, %v16483_v53  ;;  %v3465_v48 = vpop.f32.mrf.mxu0  ;;  %v13966_v1 = vld [vmem:[%s22941_s3 + $0x8] sm:$0xff]  }
 0x216   :  { %v7236_v41 = vmul.f32 %v16527_v25, %v3654_v0  ;;  %12414 = vmatmul.mubr.msk.bf16.gmra.mxu0 %vm2520_vm0, %v13966_v1  ;;  %v16666_v30 = vadd.f32 %v7234_v62, %v16493_v21  ;;  %v7265_v57 = vmul.f32 %v16505_v44, %v3465_v48  ;;  %v3658_v28 = vpop.f32.mrf.mxu1  ;;  %12430 = vmatmul.mubr.msk.bf16.gmra.mxu1 %vm2520_vm0, %v13966_v1  ;;  %v23174_v48 = vld [vmem:[#allocation11_spill] sm:$0xff] }
 0x217   :  { %4165 = vmatprep.mubr.bf16.mxu0 %v23120_v63  ;;  %v886_v53 = vrot.slane %v726_v27, %v14362_v16  ;;  %v7267_v47 = vmul.f32 %v16515_v60, %v3658_v28  ;;  %v3467_v0 = vpop.f32.mrf.mxu0  ;;  %4358 = vmatprep.mubr.bf16.mxu1 %v23120_v63  ;;  %v1051_v21 = vrot.slane %v16581_v26, %v14365_v17 }
 0x218   :  { %v16673_v35 = vadd.f32 %v7236_v41, %v16499_v56  ;;  %5090 = vmatprep.subr.bf16.mxu1 %v12280_v11  ;;  %v16680_v22 = vadd.f32 %v7265_v57, %v16510_v37  ;;  %v7266_v6 = vmul.f32 %v16519_v34, %v3467_v0  ;;  %v3660_v62 = vpop.f32.mrf.mxu1  ;;  %v16685_v27 = vrot.slane %v16224_v14, %v23174_v48 }
 0x219   :  { %v16689_v56 = vrot.slane %v16232_v32, %v23174_v48  ;;  %v16692_v41 = vadd.f32 %v7267_v47, %v16522_v31  ;;  %v7268_v1 = vmul.f32 %v16527_v25, %v3660_v62  ;;  %v3469_v11 = vpop.f32.mrf.mxu0  ;;  %v1716_v28 = vadd.f32 %v1684_v29, %v1652_v15 }
 0x21a   :  { %v1748_v37 = vmul.f32 %v1620_v52, %v1620_v52  ;;  %v16696_v57 = vadd.f32 %v7266_v6, %v16537_v40  ;;  %v7297_v0 = vmul.f32 %v16505_v44, %v3469_v11  ;;  %v3662_v5 = vpop.f32.mrf.mxu1  ;;  %v16701_v61 = vrot.slane %v16241_v54, %v23174_v48 }
 0x21b   :  { %v16705_v3 = vrot.slane %v16245_v10, %v23174_v48  ;;  %v16708_v31 = vadd.f32 %v7268_v1, %v16555_v4  ;;  %v7299_v15 = vmul.f32 %v16515_v60, %v3662_v5  ;;  %v3471_v52 = vpop.f32.mrf.mxu0  ;;  %v974_v40 = vsub.f32 %v886_v53, %v23138_v58 }
 0x21c   :  { %v1211_v29 = vrot.slane %v1051_v21, %v14365_v17  ;;  %v16714_v44 = vadd.f32 %v7297_v0, %v16564_v59  ;;  %v7298_v47 = vmul.f32 %v16519_v34, %v3471_v52  ;;  %v3664_v6 = vpop.f32.mrf.mxu1  ;;  %v1375_v62 = vrot.slane %v16581_v26, %v14381_v24  ;;  %v13967_v59 = vld [vmem:[%s22941_s3 + $0x10] sm:$0xff]  }
 0x21d   :  { %v722_v4 = vrot.slane %v16472_v2, %v14371_v19  ;;  %v16722_v1 = vadd.f32 %v7299_v15, %v16570_v42  ;;  %v7300_v60 = vmul.f32 %v16527_v25, %v3664_v6  ;;  %v3475_v5 = vpop.f32.mrf.mxu0  ;;  %v16729_v34 = vadd.f32 %v1748_v37, %v1716_v28 }
 0x21e   :  { %12415 = vmatmul.mubr.msk.bf16.gmra.mxu0 %vm2520_vm0, %v13967_v59  ;;  %v1047_v53 = vrot.slane %v16472_v2, %v14374_v20  ;;  %v16734_v21 = vadd.f32 %v7298_v47, %v16584_v39  ;;  %v7585_v42 = vmul.f32 %v16542_v45, %v3475_v5  ;;  %v3668_v11 = vpop.f32.mrf.mxu1  ;;  %12431 = vmatmul.mubr.msk.bf16.gmra.mxu1 %vm2520_vm0, %v13967_v59 }
 0x21f   :  { %4175 = vmatprep.mubr.bf16.mxu0 %v23120_v63  ;;  %v730_v25 = vrot.slane %v16581_v26, %v14371_v19  ;;  %v16742_v0 = vadd.f32 %v7300_v60, %v16592_v55  ;;  %v7587_v28 = vmul.f32 %v16546_v9, %v3668_v11  ;;  %v3477_v37 = vpop.f32.mrf.mxu0  ;;  %4368 = vmatprep.mubr.bf16.mxu1 %v23120_v63  ;;  %13871 = vrsqrt.f32 %v16729_v34 }
 0x220   :  { %v1298_v39 = vsub.f32 %v1211_v29, %v14403_v36  ;;  %v1055_v15 = vrot.slane %v16581_v26, %v14374_v20  ;;  %v16750_v52 = vadd.f32 %v7585_v42, %v16600_v13  ;;  %v7586_v47 = vmul.f32 %v16560_v49, %v3477_v37  ;;  %v3670_v6 = vpop.f32.mrf.mxu1 }
 0x221   :  { %v1535_v5 = vrot.slane %v1375_v62, %v14381_v24  ;;  %v882_v55 = vrot.slane %v722_v4, %v14362_v16  ;;  %v16756_v60 = vadd.f32 %v7587_v28, %v16607_v23  ;;  %v7588_v59 = vmul.f32 %v16636_v43, %v3670_v6  ;;  %v3479_v11 = vpop.f32.mrf.mxu0 }
 0x222   :  { %v1207_v29 = vrot.slane %v1047_v53, %v14365_v17  ;;  %v1371_v38 = vrot.slane %v16472_v2, %v23174_v48  ;;  %v16763_v13 = vadd.f32 %v7586_v47, %v16623_v33  ;;  %v7617_v42 = vmul.f32 %v16542_v45, %v3479_v11  ;;  %v3672_v37 = vpop.f32.mrf.mxu1 }
 0x223   :  { %v1654_v62 = vmul.f32 %v974_v40, %v974_v40  ;;  %v890_v4 = vrot.slane %v730_v25, %v14362_v16  ;;  %v16768_v23 = vadd.f32 %v7588_v59, %v16631_v18  ;;  %v7619_v28 = vmul.f32 %v16546_v9, %v3672_v37  ;;  %v3481_v6 = vpop.f32.mrf.mxu0 }
 0x224   :  { %v1215_v53 = vrot.slane %v1055_v15, %v14365_v17  ;;  %v1379_v2 = vrot.slane %v16581_v26, %v23174_v48  ;;  %v16775_v33 = vadd.f32 %v7617_v42, %v16649_v7  ;;  %v7618_v47 = vmul.f32 %v16560_v49, %v3481_v6  ;;  %v3674_v11 = vpop.f32.mrf.mxu1  ;;  %v13968_v26 = vld [vmem:[%s22941_s3 + $0x18] sm:$0xff]  }
 0x225   :  { %v1622_v40 = vsub.f32 %v1535_v5, %v14421_v50  ;;  %v973_v25 = vsub.f32 %v882_v55, %v23138_v58  ;;  %v16781_v18 = vadd.f32 %v7619_v28, %v16657_v8  ;;  %v7620_v59 = vmul.f32 %v16636_v43, %v3674_v11  ;;  %v3485_v37 = vpop.f32.mrf.mxu0 }
 0x226   :  { %12416 = vmatmul.mubr.msk.bf16.gmra.mxu0 %vm2520_vm0, %v13968_v26  ;;  %v1297_v7 = vsub.f32 %v1207_v29, %v14403_v36  ;;  %v1531_v15 = vrot.slane %v1371_v38, %v14381_v24  ;;  %v16791_v5 = vadd.f32 %v7618_v47, %v16666_v30  ;;  %v7649_v55 = vmul.f32 %v16542_v45, %v3485_v37  ;;  %v3678_v8 = vpop.f32.mrf.mxu1 }
 0x227   :  { %12432 = vmatmul.mubr.msk.bf16.gmra.mxu1 %vm2520_vm0, %v13968_v26  ;;  %4185 = vmatprep.mubr.bf16.mxu0 %v23120_v63  ;;  %v975_v42 = vsub.f32 %v890_v4, %v23138_v58  ;;  %v16798_v28 = vadd.f32 %v7620_v59, %v16673_v35  ;;  %v7651_v6 = vmul.f32 %v16546_v9, %v3678_v8  ;;  %v3487_v29 = vpop.f32.mrf.mxu0  ;;  %vm1886_vm10 = vcmp.eq.f32.partialorder %v16729_v34, inf }
 0x228   :  { %4378 = vmatprep.mubr.bf16.mxu1 %v23120_v63  ;;  %v1299_v38 = vsub.f32 %v1215_v53, %v14403_v36  ;;  %v1539_v30 = vrot.slane %v1379_v2, %v14381_v24  ;;  %v16805_v47 = vadd.f32 %v7649_v55, %v16680_v22  ;;  %v7650_v11 = vmul.f32 %v16560_v49, %v3487_v29  ;;  %v3680_v37 = vpop.f32.mrf.mxu1 }
 0x229   :  { %v1686_v26 = vmul.f32 %v1298_v39, %v1298_v39  ;;  %v1653_v4 = vmul.f32 %v973_v25, %v973_v25  ;;  %v16809_v35 = vadd.f32 %v7651_v6, %v16692_v41  ;;  %v7652_v59 = vmul.f32 %v16636_v43, %v3680_v37  ;;  %v3489_v8 = vpop.f32.mrf.mxu0 }
 0x22a   :  { %v1621_v48 = vsub.f32 %v1531_v15, %v14421_v50  ;;  %v1685_v46 = vmul.f32 %v1297_v7, %v1297_v7  ;;  %v16814_v53 = vadd.f32 %v7650_v11, %v16696_v57  ;;  %v7681_v22 = vmul.f32 %v16542_v45, %v3489_v8  ;;  %v3682_v2 = vpop.f32.mrf.mxu1 }
 0x22b   :  { %v1655_v55 = vmul.f32 %v975_v42, %v975_v42  ;;  %v16819_v39 = vadd.f32 %v7652_v59, %v16708_v31  ;;  %v7683_v41 = vmul.f32 %v16546_v9, %v3682_v2  ;;  %v3491_v25 = vpop.f32.mrf.mxu0  ;;  %v1623_v6 = vsub.f32 %v1539_v30, %v14421_v50  ;;  %v13969_v9 = vld [vmem:[%s22941_s3 + $0x20] sm:$0xff]  }
 0x22c   :  { %v1687_v29 = vmul.f32 %v1299_v38, %v1299_v38  ;;  %v16824_v7 = vadd.f32 %v7681_v22, %v16714_v44  ;;  %v7682_v57 = vmul.f32 %v16560_v49, %v3491_v25  ;;  %v3684_v15 = vpop.f32.mrf.mxu1  ;;  %v1718_v45 = vadd.f32 %v1686_v26, %v1654_v62 }
 0x22d   :  { %v1750_v11 = vmul.f32 %v1622_v40, %v1622_v40  ;;  %v16828_v37 = vadd.f32 %v7683_v41, %v16722_v1  ;;  %v7684_v31 = vmul.f32 %v16636_v43, %v3684_v15  ;;  %v3495_v42 = vpop.f32.mrf.mxu0  ;;  %v1717_v38 = vadd.f32 %v1685_v46, %v1653_v4 }
 0x22e   :  { %12417 = vmatmul.mubr.msk.bf16.gmra.mxu0 %vm2520_vm0, %v13969_v9  ;;  %v1749_v44 = vmul.f32 %v1621_v48, %v1621_v48  ;;  %v16836_v30 = vadd.f32 %v7682_v57, %v16734_v21  ;;  %v7969_v49 = vmul.f32 %v16685_v27, %v3495_v42  ;;  %v3688_v62 = vpop.f32.mrf.mxu1  ;;  %v1719_v46 = vadd.f32 %v1687_v29, %v1655_v55 }
 0x22f   :  { %12433 = vmatmul.mubr.msk.bf16.gmra.mxu1 %vm2520_vm0, %v13969_v9  ;;  %4195 = vmatprep.mubr.bf16.mxu0 %v23120_v63  ;;  %v16842_v43 = vadd.f32 %v7684_v31, %v16742_v0  ;;  %v7971_v1 = vmul.f32 %v16689_v56, %v3688_v62  ;;  %v3497_v40 = vpop.f32.mrf.mxu0  ;;  %v1751_v48 = vmul.f32 %v1623_v6, %v1623_v6  ;;  %v13970_v31 = vld [vmem:[%s22941_s3 + $0x28] sm:$0xff]   ;;  %vm1888_vm11 = vcmp.eq.f32.partialorder %v16729_v34, 0.0 }
 0x230   :  { %4388 = vmatprep.mubr.bf16.mxu1 %v23120_v63  ;;  %v16847_v21 = vadd.f32 %v7969_v49, %v16750_v52  ;;  %v7970_v26 = vmul.f32 %v16701_v61, %v3497_v40  ;;  %v3690_v4 = vpop.f32.mrf.mxu1  ;;  %v16850_v59 = vadd.f32 %v1750_v11, %v1718_v45  ;;  %v16856_v2 = vadd.f32 %v1749_v44, %v1717_v38 }
 0x231   :  { %v16853_v8 = vadd.f32 %v7971_v1, %v16756_v60  ;;  %v7972_v0 = vmul.f32 %v16705_v3, %v3690_v4  ;;  %v3499_v22 = vpop.f32.mrf.mxu0  ;;  %v16866_v57 = vadd.f32 %v1751_v48, %v1719_v46 }
 0x232   :  { %v16859_v41 = vadd.f32 %v7970_v26, %v16763_v13  ;;  %v8001_v55 = vmul.f32 %v16685_v27, %v3499_v22  ;;  %v3692_v52 = vpop.f32.mrf.mxu1  ;;  %13873 = vrsqrt.f32 %v16850_v59  ;;  %vm1900_vm12 = vcmp.eq.f32.partialorder %v16850_v59, inf }
 0x233   :  { %v16863_v25 = vadd.f32 %v7972_v0, %v16768_v23  ;;  %v8003_v6 = vmul.f32 %v16689_v56, %v3692_v52  ;;  %v3501_v29 = vpop.f32.mrf.mxu0  ;;  %13875 = vrsqrt.f32 %v16856_v2  ;;  %v16908_v0 = vrot.slane %v16224_v14, %v15184_v51 }
 0x234   :  { %v16869_v60 = vadd.f32 %v8001_v55, %v16775_v33  ;;  %v8002_v15 = vmul.f32 %v16701_v61, %v3501_v29  ;;  %v3694_v45 = vpop.f32.mrf.mxu1  ;;  %13877 = vrsqrt.f32 %v16866_v57  ;;  %v16916_v55 = vrot.slane %v16232_v32, %v15184_v51  ;;  %v13971_v32 = vld [vmem:[%s22941_s3 + $0x30] sm:$0xff]  }
 0x235   :  { %v16874_v13 = vadd.f32 %v8003_v6, %v16781_v18  ;;  %v8004_v11 = vmul.f32 %v16705_v3, %v3694_v45  ;;  %v3505_v23 = vpop.f32.mrf.mxu0  ;;  %v13872_v18 = vpop.eup %13871  ;;  %v16924_v14 = vrot.slane %v16241_v54, %v15184_v51  ;;  %vm1902_vm13 = vcmp.eq.f32.partialorder %v16850_v59, 0.0 }
 0x236   :  { %12418 = vmatmul.mubr.msk.bf16.gmra.mxu0 %vm2520_vm0, %v13970_v31  ;;  %v16883_v33 = vadd.f32 %v8002_v15, %v16791_v5  ;;  %v8033_v42 = vmul.f32 %v16685_v27, %v3505_v23  ;;  %v3698_v9 = vpop.f32.mrf.mxu1  ;;  %v1889_v23 = vand.u32 2147483648, %v16729_v34  ;;  %vm1893_vm14 = vcmp.eq.f32.partialorder %v16856_v2, inf }
 0x237   :  { %12434 = vmatmul.mubr.msk.bf16.gmra.mxu1 %vm2520_vm0, %v13970_v31  ;;  %4205 = vmatprep.mubr.bf16.mxu0 %v23120_v63  ;;  %v16889_v38 = vadd.f32 %v8004_v11, %v16798_v28  ;;  %v8035_v44 = vmul.f32 %v16689_v56, %v3698_v9  ;;  %v3507_v49 = vpop.f32.mrf.mxu0  ;;  %vm1895_vm15 = vcmp.eq.f32.partialorder %v16856_v2, 0.0  ;;  %vm1907_vm1 = vcmp.eq.f32.partialorder %v16866_v57, inf }
 0x238   :  { %4398 = vmatprep.mubr.bf16.mxu1 %v23120_v63  ;;  %v16895_v5 = vadd.f32 %v8033_v42, %v16805_v47  ;;  %v8034_v62 = vmul.f32 %v16701_v61, %v3507_v49  ;;  %v3700_v1 = vpop.f32.mrf.mxu1  ;;  %vm1909_vm2 = vcmp.eq.f32.partialorder %v16866_v57, 0.0 }
 0x239   :  { %v16899_v40 = vadd.f32 %v8035_v44, %v16809_v35  ;;  %v8036_v46 = vmul.f32 %v16705_v3, %v3700_v1  ;;  %v3509_v28 = vpop.f32.mrf.mxu0 }
 0x23a   :  { %v16903_v48 = vadd.f32 %v8034_v62, %v16814_v53  ;;  %v8065_v26 = vmul.f32 %v16685_v27, %v3509_v28  ;;  %v3702_v4 = vpop.f32.mrf.mxu1 }
 0x23b   :  { %v16911_v47 = vadd.f32 %v8036_v46, %v16819_v39  ;;  %v8067_v22 = vmul.f32 %v16689_v56, %v3702_v4  ;;  %v3511_v35 = vpop.f32.mrf.mxu0 }
 0x23c   :  { %v16919_v53 = vadd.f32 %v8065_v26, %v16824_v7  ;;  %v8066_v27 = vmul.f32 %v16701_v61, %v3511_v35  ;;  %v3704_v52 = vpop.f32.mrf.mxu1  ;;  %v16936_v61 = vrot.slane %v16245_v10, %v15184_v51  ;;  %v1885_v7 = vmul.f32 %v13872_v18, %v16729_v34 }
 0x23d   :  { %v16927_v39 = vadd.f32 %v8067_v22, %v16828_v37  ;;  %v8068_v56 = vmul.f32 %v16705_v3, %v3704_v52  ;;  %v3515_v6 = vpop.f32.mrf.mxu0  ;;  %v1903_v22 = vand.u32 2147483648, %v16850_v59  ;;  %v13972_v52 = vld [vmem:[%s22941_s3 + $0x38] sm:$0xff]  }
 0x23e   :  { %12419 = vmatmul.mubr.msk.bf16.gmra.mxu0 %vm2520_vm0, %v13971_v32  ;;  %v16940_v54 = vadd.f32 %v8066_v27, %v16836_v30  ;;  %v8353_v37 = vmul.f32 %v16908_v0, %v3515_v6  ;;  %v3708_v29 = vpop.f32.mrf.mxu1  ;;  %v1887_v18 = vsel %vm1886_vm10, %v16729_v34, %v1885_v7 }
 0x23f   :  { %12435 = vmatmul.mubr.msk.bf16.gmra.mxu1 %vm2520_vm0, %v13971_v32  ;;  %4215 = vmatprep.mubr.bf16.mxu0 %v23120_v63  ;;  %v16947_v3 = vadd.f32 %v8068_v56, %v16842_v43  ;;  %v8355_v10 = vmul.f32 %v16916_v55, %v3708_v29  ;;  %v3517_v15 = vpop.f32.mrf.mxu0  ;;  %v13874_v31 = vpop.eup %13873  ;;  %v1890_v4 = vsel %vm1888_vm11, %v1889_v23, %v1887_v18 }
 0x240   :  { %4408 = vmatprep.mubr.bf16.mxu1 %v23120_v63  ;;  %v16952_v30 = vadd.f32 %v8353_v37, %v16847_v21  ;;  %v8354_v45 = vmul.f32 %v16924_v14, %v3517_v15  ;;  %v3710_v11 = vpop.f32.mrf.mxu1  ;;  %v13876_v44 = vpop.eup %13875 }
 0x241   :  { %v16957_v42 = vadd.f32 %v8355_v10, %v16853_v8  ;;  %v8356_v43 = vmul.f32 %v16936_v61, %v3710_v11  ;;  %v3519_v9 = vpop.f32.mrf.mxu0  ;;  %v13878_v28 = vpop.eup %13877  ;;  %v1892_v56 = vmul.f32 %v13876_v44, %v16856_v2 }
 0x242   :  { %23175 = vst [vmem:[#allocation48_spill] sm:$0xff] %v16952_v30  ;;  %v16963_v21 = vadd.f32 %v8354_v45, %v16859_v41  ;;  %v8385_v49 = vmul.f32 %v16908_v0, %v3519_v9  ;;  %v3712_v62 = vpop.f32.mrf.mxu1 }
 0x243   :  { %23176 = vst [vmem:[#allocation49_spill] sm:$0xff] %v16957_v42  ;;  %v16967_v1 = vadd.f32 %v8356_v43, %v16863_v25  ;;  %v8387_v8 = vmul.f32 %v16916_v55, %v3712_v62  ;;  %v3521_v46 = vpop.f32.mrf.mxu0  ;;  %v1910_v62 = vand.u32 2147483648, %v16866_v57 }
 0x244   :  { %23177 = vst [vmem:[#allocation50_spill] sm:$0xff] %v16963_v21  ;;  %v16973_v34 = vadd.f32 %v8385_v49, %v16869_v60  ;;  %v8386_v41 = vmul.f32 %v16924_v14, %v3521_v46  ;;  %v3714_v26 = vpop.f32.mrf.mxu1  ;;  %v1899_v60 = vmul.f32 %v13874_v31, %v16850_v59 }
 0x245   :  { %23178 = vst [vmem:[#allocation51_spill] sm:$0xff] %v16967_v1  ;;  %v16978_v25 = vadd.f32 %v8387_v8, %v16874_v13  ;;  %v8388_v35 = vmul.f32 %v16936_v61, %v3714_v26  ;;  %v3525_v27 = vpop.f32.mrf.mxu0 }
 0x246   :  { %23179 = vst [vmem:[#allocation52_spill] sm:$0xff] %v16973_v34  ;;  %12420 = vmatmul.mubr.msk.bf16.gmra.mxu0 %vm2520_vm0, %v13972_v52  ;;  %v16990_v32 = vadd.f32 %v8386_v41, %v16883_v33  ;;  %v8417_v13 = vmul.f32 %v16908_v0, %v3525_v27  ;;  %v3718_v7 = vpop.f32.mrf.mxu1  ;;  %v1906_v33 = vmul.f32 %v13878_v28, %v16866_v57 }
 0x247   :  { %23180 = vst [vmem:[#allocation53_spill] sm:$0xff] %v16978_v25  ;;  %12436 = vmatmul.mubr.msk.bf16.gmra.mxu1 %vm2520_vm0, %v13972_v52  ;;  %4225 = vmatprep.mubr.bf16.mxu0 %v23120_v63  ;;  %v16999_v29 = vadd.f32 %v8388_v35, %v16889_v38  ;;  %v8419_v10 = vmul.f32 %v16916_v55, %v3718_v7  ;;  %v3527_v15 = vpop.f32.mrf.mxu0  ;;  %v13973_v52 = vld [vmem:[%s22941_s3 + $0x40] sm:$0xff]  }
 0x248   :  { %23181 = vst [vmem:[#allocation54_spill] sm:$0xff] %v16990_v32  ;;  %4418 = vmatprep.mubr.bf16.mxu1 %v23120_v63  ;;  %v17005_v45 = vadd.f32 %v8417_v13, %v16895_v5  ;;  %v8418_v11 = vmul.f32 %v16924_v14, %v3527_v15  ;;  %v3720_v23 = vpop.f32.mrf.mxu1  ;;  %v1901_v9 = vsel %vm1900_vm12, %v16850_v59, %v1899_v60  ;;  %v1896_v5 = vand.u32 2147483648, %v16856_v2  ;;  %v23194_v32 = vld [vmem:[#allocation13_spill] sm:$0xff] }
 0x249   :  { %23182 = vst [vmem:[#allocation55_spill] sm:$0xff] %v16999_v29  ;;  %v17011_v38 = vadd.f32 %v8419_v10, %v16899_v40  ;;  %v8420_v31 = vmul.f32 %v16936_v61, %v3720_v23  ;;  %v3529_v43 = vpop.f32.mrf.mxu0  ;;  %v1894_v40 = vsel %vm1893_vm14, %v16856_v2, %v1892_v56  ;;  %v1908_v41 = vsel %vm1907_vm1, %v16866_v57, %v1906_v33 }
 0x24a   :  { %23183 = vst [vmem:[#allocation56_spill] sm:$0xff] %v17005_v45  ;;  %v17019_v18 = vadd.f32 %v8418_v11, %v16903_v48  ;;  %v8449_v44 = vmul.f32 %v16908_v0, %v3529_v43  ;;  %v3722_v49 = vpop.f32.mrf.mxu1  ;;  %v1904_v35 = vsel %vm1902_vm13, %v1903_v22, %v1901_v9 }
 0x24b   :  { %23184 = vst [vmem:[#allocation57_spill] sm:$0xff] %v17011_v38  ;;  %v17027_v8 = vadd.f32 %v8420_v31, %v16911_v47  ;;  %v8451_v46 = vmul.f32 %v16916_v55, %v3722_v49  ;;  %v3531_v28 = vpop.f32.mrf.mxu0  ;;  %v2038_v56 = vmul.f32 2.0833333, %v1904_v35 }
 0x24c   :  { %23185 = vst [vmem:[#allocation58_spill] sm:$0xff] %v17019_v18  ;;  %v17033_v48 = vadd.f32 %v8449_v44, %v16919_v53  ;;  %v8450_v0 = vmul.f32 %v16924_v14, %v3531_v28  ;;  %v3724_v26 = vpop.f32.mrf.mxu1  ;;  %v1897_v53 = vsel %vm1895_vm15, %v1896_v5, %v1894_v40 }
 0x24d   :  { %23186 = vst [vmem:[#allocation59_spill] sm:$0xff] %v17027_v8  ;;  %v17039_v27 = vadd.f32 %v8451_v46, %v16927_v39  ;;  %v8452_v47 = vmul.f32 %v16936_v61, %v3724_v26  ;;  %v3761_v55 = vpop.f32.mrf.mxu0  ;;  %v2036_v39 = vmul.f32 2.0833333, %v1890_v4  ;;  %v1911_v61 = vsel %vm1909_vm2, %v1910_v62, %v1908_v41 }
 0x24e   :  { %23187 = vst [vmem:[#allocation60_spill] sm:$0xff] %v17033_v48  ;;  %12421 = vmatmul.mubr.msk.bf16.gmra.mxu0 %vm2520_vm0, %v13973_v52  ;;  %v17051_v59 = vadd.f32 %v8450_v0, %v16940_v54  ;;  %v3954_v22 = vpop.f32.mrf.mxu1  ;;  %v2037_v54 = vmul.f32 2.0833333, %v1897_v53  ;;  %v2039_v7 = vmul.f32 2.0833333, %v1911_v61  ;;  %v2070_v57 = vsub.f32 1.0, %v2038_v56 }
 0x24f   :  { %23188 = vst [vmem:[#allocation61_spill] sm:$0xff] %v17039_v27  ;;  %12437 = vmatmul.mubr.msk.bf16.gmra.mxu1 %vm2520_vm0, %v13973_v52  ;;  %4235 = vmatprep.mubr.bf16.mxu0 %v23120_v63  ;;  %v17060_v2 = vadd.f32 %v8452_v47, %v16947_v3  ;;  %v3763_v13 = vpop.f32.mrf.mxu0  ;;  %v2068_v15 = vsub.f32 1.0, %v2036_v39  ;;  %v13974_v3 = vld [vmem:[%s22941_s3 + $0x48] sm:$0xff]  }
 0x250   :  { %23189 = vst [vmem:[#allocation62_spill] sm:$0xff] %v17051_v59  ;;  %4428 = vmatprep.mubr.bf16.mxu1 %v23120_v63  ;;  %v3956_v4 = vpop.f32.mrf.mxu1  ;;  %v2069_v23 = vsub.f32 1.0, %v2037_v54  ;;  %v2071_v43 = vsub.f32 1.0, %v2039_v7  ;;  %v17081_v62 = vmax.f32 %v2070_v57, 0.0 }
 0x251   :  { %23190 = vst [vmem:[#allocation63_spill] sm:$0xff] %v17060_v2  ;;  %v3765_v10 = vpop.f32.mrf.mxu0  ;;  %v17073_v44 = vmax.f32 %v2068_v15, 0.0 }
 0x252   :  { %v3958_v33 = vpop.f32.mrf.mxu1  ;;  %v17090_v0 = vmax.f32 %v2069_v23, 0.0  ;;  %v17094_v35 = vmax.f32 %v2071_v43, 0.0  ;;  %v17110_v61 = vrot.slane %v17081_v62, %v14362_v16  ;;  %v17116_v54 = vrot.slane %v17081_v62, %v14365_v17 }
 0x253   :  { %v3767_v11 = vpop.f32.mrf.mxu0  ;;  %v17100_v52 = vrot.slane %v17073_v44, %v14362_v16  ;;  %v17106_v39 = vrot.slane %v17073_v44, %v14365_v17 }
 0x254   :  { %v17063_v31 = vpop.f32.mrf.mxu1  ;;  %v17120_v7 = vrot.slane %v17090_v0, %v14362_v16  ;;  %v17126_v57 = vrot.slane %v17090_v0, %v14365_v17  ;;  %v17130_v23 = vrot.slane %v17094_v35, %v14362_v16  ;;  %v17138_v60 = vrot.slane %v17094_v35, %v14365_v17 }
 0x255   :  { %v5797_v14 = vmul.f32 %v17100_v52, %v3761_v55  ;;  %v5799_v37 = vmul.f32 %v17110_v61, %v3954_v22  ;;  %v5829_v22 = vmul.f32 %v17100_v52, %v3765_v10  ;;  %v17409_v18 = vrot.slane %v17090_v0, %v14374_v20 }
 0x256   :  { %v17065_v9 = vpop.f32.mrf.mxu0  ;;  %12422 = vmatmul.mubr.msk.bf16.gmra.mxu0 %vm2520_vm0, %v13974_v3  ;;  %v17075_v49 = vpop.f32.mrf.mxu1  ;;  %v5798_v5 = vmul.f32 %v17120_v7, %v3763_v13  ;;  %v5832_v10 = vmul.f32 %v17130_v23, %v17063_v31 }
 0x257   :  { %12438 = vmatmul.mubr.msk.bf16.gmra.mxu1 %vm2520_vm0, %v13974_v3  ;;  %4245 = vmatprep.mubr.bf16.mxu0 %v23120_v63  ;;  %v13975_v3 = vld [vmem:[%s22941_s3 + $0x50] sm:$0xff]   ;;  %v5863_v31 = vmul.f32 %v17110_v61, %v17075_v49 }
 0x258   :  { %v17083_v46 = vpop.f32.mrf.mxu0  ;;  %4438 = vmatprep.mubr.bf16.mxu1 %v23120_v63  ;;  %v17092_v26 = vpop.f32.mrf.mxu1 }
 0x25a   :  { %v17096_v47 = vpop.f32.mrf.mxu0  ;;  %v17102_v53 = vpop.f32.mrf.mxu1 }
 0x25c   :  { %v17112_v56 = vpop.f32.mrf.mxu0  ;;  %v17122_v15 = vpop.f32.mrf.mxu1 }
 0x25e   :  { %v3781_v43 = vpop.f32.mrf.mxu0  ;;  %12423 = vmatmul.mubr.msk.bf16.gmra.mxu0 %vm2520_vm0, %v13975_v3  ;;  %v3974_v28 = vpop.f32.mrf.mxu1 }
 0x25f   :  { %v6053_v41 = vmul.f32 %v17106_v39, %v3781_v43  ;;  %12439 = vmatmul.mubr.msk.bf16.gmra.mxu1 %vm2520_vm0, %v13975_v3  ;;  %4255 = vmatprep.mubr.bf16.mxu0 %v23120_v63  ;;  %v6055_v6 = vmul.f32 %v17116_v54, %v3974_v28  ;;  %v5800_v43 = vmul.f32 %v17130_v23, %v3956_v4 }
 0x260   :  { %v3783_v40 = vpop.f32.mrf.mxu0  ;;  %4448 = vmatprep.mubr.bf16.mxu1 %v23120_v63  ;;  %v3976_v27 = vpop.f32.mrf.mxu1 }
 0x261   :  { %v17148_v38 = vadd.f32 %v6053_v41, %v5797_v14  ;;  %v6054_v55 = vmul.f32 %v17126_v57, %v3783_v40  ;;  %v17152_v45 = vadd.f32 %v6055_v6, %v5799_v37  ;;  %v6056_v3 = vmul.f32 %v17138_v60, %v3976_v27 }
 0x262   :  { %v3785_v48 = vpop.f32.mrf.mxu0  ;;  %v3978_v2 = vpop.f32.mrf.mxu1  ;;  %v5831_v14 = vmul.f32 %v17110_v61, %v3958_v33  ;;  %v5830_v6 = vmul.f32 %v17120_v7, %v3767_v11 }
 0x263   :  { %v17156_v28 = vadd.f32 %v6054_v55, %v5798_v5  ;;  %v6085_v8 = vmul.f32 %v17106_v39, %v3785_v48  ;;  %v17160_v13 = vadd.f32 %v6056_v3, %v5800_v43  ;;  %v6087_v40 = vmul.f32 %v17116_v54, %v3978_v2  ;;  %v13976_v2 = vld [vmem:[%s22941_s3 + $0x58] sm:$0xff]  }
 0x264   :  { %v3787_v41 = vpop.f32.mrf.mxu0  ;;  %v3980_v4 = vpop.f32.mrf.mxu1 }
 0x265   :  { %v17164_v37 = vadd.f32 %v6085_v8, %v5829_v22  ;;  %v6086_v27 = vmul.f32 %v17126_v57, %v3787_v41  ;;  %v17169_v5 = vadd.f32 %v6087_v40, %v5831_v14  ;;  %v6088_v48 = vmul.f32 %v17138_v60, %v3980_v4 }
 0x266   :  { %v3791_v33 = vpop.f32.mrf.mxu0  ;;  %12424 = vmatmul.mubr.msk.bf16.gmra.mxu0 %vm2520_vm0, %v13976_v2  ;;  %v5861_v8 = vmul.f32 %v17100_v52, %v17065_v9  ;;  %v3984_v43 = vpop.f32.mrf.mxu1  ;;  %v5862_v9 = vmul.f32 %v17120_v7, %v17083_v46 }
 0x267   :  { %v17178_v11 = vadd.f32 %v6086_v27, %v5830_v6  ;;  %v6117_v55 = vmul.f32 %v17106_v39, %v3791_v33  ;;  %12440 = vmatmul.mubr.msk.bf16.gmra.mxu1 %vm2520_vm0, %v13976_v2  ;;  %4265 = vmatprep.mubr.bf16.mxu0 %v23120_v63  ;;  %v17185_v3 = vadd.f32 %v6088_v48, %v5832_v10 }
 0x268   :  { %v6119_v22 = vmul.f32 %v17116_v54, %v3984_v43  ;;  %v3793_v14 = vpop.f32.mrf.mxu0  ;;  %4458 = vmatprep.mubr.bf16.mxu1 %v23120_v63  ;;  %v3986_v6 = vpop.f32.mrf.mxu1  ;;  %v5864_v27 = vmul.f32 %v17130_v23, %v17092_v26  ;;  %v5893_v48 = vmul.f32 %v17100_v52, %v17096_v47  ;;  %v5895_v26 = vmul.f32 %v17110_v61, %v17102_v53 }
 0x269   :  { %v17191_v40 = vadd.f32 %v6117_v55, %v5861_v8  ;;  %v6118_v41 = vmul.f32 %v17126_v57, %v3793_v14  ;;  %v6120_v49 = vmul.f32 %v17138_v60, %v3986_v6  ;;  %v17206_v8 = vrot.slane %v17073_v44, %v14381_v24  ;;  %v13977_v6 = vld [vmem:[%s22941_s3 + $0x60] sm:$0xff]  }
 0x26a   :  { %v17196_v4 = vadd.f32 %v6119_v22, %v5863_v31  ;;  %v3795_v10 = vpop.f32.mrf.mxu0  ;;  %v3988_v2 = vpop.f32.mrf.mxu1  ;;  %v6356_v47 = vrot.slane %v17081_v62, %v14381_v24  ;;  %v5894_v52 = vmul.f32 %v17120_v7, %v17112_v56  ;;  %v5896_v53 = vmul.f32 %v17130_v23, %v17122_v15 }
 0x26b   :  { %v17201_v33 = vadd.f32 %v6118_v41, %v5862_v9  ;;  %v6149_v46 = vmul.f32 %v17106_v39, %v3795_v10  ;;  %v17210_v55 = vadd.f32 %v6120_v49, %v5864_v27  ;;  %v6151_v43 = vmul.f32 %v17116_v54, %v3988_v2 }
 0x26c   :  { %v3797_v31 = vpop.f32.mrf.mxu0  ;;  %v3990_v14 = vpop.f32.mrf.mxu1  ;;  %v6352_v9 = vrot.slane %v17090_v0, %v14381_v24  ;;  %v6360_v56 = vrot.slane %v17094_v35, %v14381_v24 }
 0x26d   :  { %v17217_v39 = vadd.f32 %v6149_v46, %v5893_v48  ;;  %v6150_v22 = vmul.f32 %v17126_v57, %v3797_v31  ;;  %v6279_v61 = vadd.f32 %v6151_v43, %v5895_v26  ;;  %v6152_v54 = vmul.f32 %v17138_v60, %v3990_v14 }
 0x26e   :  { %v3801_v41 = vpop.f32.mrf.mxu0  ;;  %12425 = vmatmul.mubr.msk.bf16.gmra.mxu0 %vm2520_vm0, %v13977_v6  ;;  %v3994_v27 = vpop.f32.mrf.mxu1 }
 0x26f   :  { %v6278_v7 = vadd.f32 %v6150_v22, %v5894_v52  ;;  %v6437_v57 = vmul.f32 %v17206_v8, %v3801_v41  ;;  %12441 = vmatmul.mubr.msk.bf16.gmra.mxu1 %vm2520_vm0, %v13977_v6  ;;  %4275 = vmatprep.mubr.bf16.mxu0 %v23120_v63  ;;  %v6280_v15 = vadd.f32 %v6152_v54, %v5896_v53 }
 0x270   :  { %v6439_v60 = vmul.f32 %v6356_v47, %v3994_v27  ;;  %v3803_v23 = vpop.f32.mrf.mxu0  ;;  %4468 = vmatprep.mubr.bf16.mxu1 %v23120_v63  ;;  %v3996_v48 = vpop.f32.mrf.mxu1 }
 0x271   :  { %v6565_v49 = vadd.f32 %v6437_v57, %v17148_v38  ;;  %v6438_v10 = vmul.f32 %v6352_v9, %v3803_v23  ;;  %v6440_v2 = vmul.f32 %v6360_v56, %v3996_v48 }
 0x272   :  { %v6567_v46 = vadd.f32 %v6439_v60, %v17152_v45  ;;  %v3805_v26 = vpop.f32.mrf.mxu0  ;;  %v3998_v52 = vpop.f32.mrf.mxu1 }
 0x273   :  { %v6566_v43 = vadd.f32 %v6438_v10, %v17156_v28  ;;  %v6469_v31 = vmul.f32 %v17206_v8, %v3805_v26  ;;  %v17240_v22 = vadd.f32 %v6440_v2, %v17160_v13  ;;  %v6471_v14 = vmul.f32 %v6356_v47, %v3998_v52  ;;  %v13978_v28 = vld [vmem:[%s22941_s3 + $0x68] sm:$0xff]  }
 0x274   :  { %v3807_v53 = vpop.f32.mrf.mxu0  ;;  %v4000_v41 = vpop.f32.mrf.mxu1 }
 0x275   :  { %v17243_v54 = vadd.f32 %v6469_v31, %v17164_v37  ;;  %v6470_v38 = vmul.f32 %v6352_v9, %v3807_v53  ;;  %v17246_v6 = vadd.f32 %v6471_v14, %v17169_v5  ;;  %v6472_v45 = vmul.f32 %v6360_v56, %v4000_v41  ;;  %v23191_v53 = vld [vmem:[#allocation12_spill] sm:$0xff] }
 0x276   :  { %v3811_v57 = vpop.f32.mrf.mxu0  ;;  %12426 = vmatmul.mubr.msk.bf16.gmra.mxu0 %vm2520_vm0, %v13978_v28  ;;  %v4004_v37 = vpop.f32.mrf.mxu1 }
 0x277   :  { %v17253_v13 = vadd.f32 %v6470_v38, %v17178_v11  ;;  %v6501_v27 = vmul.f32 %v17206_v8, %v3811_v57  ;;  %12442 = vmatmul.mubr.msk.bf16.gmra.mxu1 %vm2520_vm0, %v13978_v28  ;;  %4285 = vmatprep.mubr.bf16.mxu0 %v23120_v63  ;;  %v17259_v5 = vadd.f32 %v6472_v45, %v17185_v3 }
 0x278   :  { %v6503_v60 = vmul.f32 %v6356_v47, %v4004_v37  ;;  %v3813_v23 = vpop.f32.mrf.mxu0  ;;  %4478 = vmatprep.mubr.bf16.mxu1 %v23120_v63  ;;  %v4006_v11 = vpop.f32.mrf.mxu1  ;;  %v17274_v38 = vrot.slane %v17073_v44, %v23191_v53 }
 0x279   :  { %v17263_v10 = vadd.f32 %v6501_v27, %v17191_v40  ;;  %v6502_v48 = vmul.f32 %v6352_v9, %v3813_v23  ;;  %v6504_v26 = vmul.f32 %v6360_v56, %v4006_v11 }
 0x27a   :  { %v17266_v2 = vadd.f32 %v6503_v60, %v17196_v4  ;;  %v3815_v31 = vpop.f32.mrf.mxu0  ;;  %v4008_v14 = vpop.f32.mrf.mxu1  ;;  %v17281_v4 = vrot.slane %v17081_v62, %v23191_v53 }
 0x27b   :  { %v17269_v52 = vadd.f32 %v6502_v48, %v17201_v33  ;;  %v6533_v3 = vmul.f32 %v17206_v8, %v3815_v31  ;;  %v17277_v40 = vadd.f32 %v6504_v26, %v17210_v55  ;;  %v6535_v41 = vmul.f32 %v6356_v47, %v4008_v14  ;;  %v13979_v47 = vld [vmem:[%s22941_s3 + $0x70] sm:$0xff]  }
 0x27c   :  { %v3817_v45 = vpop.f32.mrf.mxu0  ;;  %v4010_v28 = vpop.f32.mrf.mxu1  ;;  %v17288_v8 = vrot.slane %v17090_v0, %v23191_v53 }
 0x27d   :  { %v17284_v57 = vadd.f32 %v6533_v3, %v17217_v39  ;;  %v6534_v33 = vmul.f32 %v6352_v9, %v3817_v45  ;;  %v17290_v27 = vadd.f32 %v6535_v41, %v6279_v61  ;;  %v6536_v37 = vmul.f32 %v6360_v56, %v4010_v28 }
 0x27e   :  { %v3821_v55 = vpop.f32.mrf.mxu0  ;;  %12427 = vmatmul.mubr.msk.bf16.gmra.mxu0 %vm2520_vm0, %v13979_v47  ;;  %v17298_v39 = vrot.slane %v17094_v35, %v23191_v53  ;;  %v4014_v23 = vpop.f32.mrf.mxu1  ;;  %v23195_v53 = vld [vmem:[#allocation14_spill] sm:$0xff] }
 0x27f   :  { %v17300_v9 = vadd.f32 %v6534_v33, %v6278_v7  ;;  %v6821_v60 = vmul.f32 %v17274_v38, %v3821_v55  ;;  %12443 = vmatmul.mubr.msk.bf16.gmra.mxu1 %vm2520_vm0, %v13979_v47  ;;  %4295 = vmatprep.mubr.bf16.mxu0 %v23120_v63  ;;  %v17305_v61 = vadd.f32 %v6536_v37, %v6280_v15  ;;  %v17321_v33 = vld [vmem:[%s22938_s0 + $0x40] sm:$0x77] }
 0x280   :  { %v6823_v56 = vmul.f32 %v17281_v4, %v4014_v23  ;;  %v3823_v48 = vpop.f32.mrf.mxu0  ;;  %4488 = vmatprep.mubr.bf16.mxu1 %v23120_v63  ;;  %v4016_v7 = vpop.f32.mrf.mxu1  ;;  %v1383_v34 = vrot.slane %v17321_v33, %v14381_v24 }
 0x281   :  { %v17309_v11 = vadd.f32 %v6821_v60, %v6565_v49  ;;  %v6822_v26 = vmul.f32 %v17288_v8, %v3823_v48  ;;  %v6824_v3 = vmul.f32 %v17298_v39, %v4016_v7 }
 0x282   :  { %v17312_v31 = vadd.f32 %v6823_v56, %v6567_v46  ;;  %v3825_v14 = vpop.f32.mrf.mxu0  ;;  %v4018_v45 = vpop.f32.mrf.mxu1  ;;  %v734_v56 = vrot.slane %v17321_v33, %v14362_v16 }
 0x283   :  { %v17315_v41 = vadd.f32 %v6822_v26, %v6566_v43  ;;  %v6853_v15 = vmul.f32 %v17274_v38, %v3825_v14  ;;  %v17324_v49 = vadd.f32 %v6824_v3, %v17240_v22  ;;  %v6855_v28 = vmul.f32 %v17281_v4, %v4018_v45  ;;  %v13980_v22 = vld [vmem:[%s22941_s3 + $0x78] sm:$0xff]  }
 0x284   :  { %v3827_v46 = vpop.f32.mrf.mxu0  ;;  %v4020_v55 = vpop.f32.mrf.mxu1  ;;  %v17354_v14 = vrot.slane %v17073_v44, %v14371_v19 }
 0x285   :  { %v17328_v37 = vadd.f32 %v6853_v15, %v17243_v54  ;;  %v6854_v43 = vmul.f32 %v17288_v8, %v3827_v46  ;;  %v17332_v47 = vadd.f32 %v6855_v28, %v17246_v6  ;;  %v6856_v60 = vmul.f32 %v17298_v39, %v4020_v55 }
 0x286   :  { %v3831_v23 = vpop.f32.mrf.mxu0  ;;  %12428 = vmatmul.mubr.msk.bf16.gmra.mxu0 %vm2520_vm0, %v13980_v22  ;;  %v4024_v26 = vpop.f32.mrf.mxu1  ;;  %v17368_v46 = vrot.slane %v17090_v0, %v14371_v19 }
 0x287   :  { %v17342_v54 = vadd.f32 %v6854_v43, %v17253_v13  ;;  %v6885_v48 = vmul.f32 %v17274_v38, %v3831_v23  ;;  %12444 = vmatmul.mubr.msk.bf16.gmra.mxu1 %vm2520_vm0, %v13980_v22  ;;  %4531 = vmatprep.mubr.bf16.mxu0 %v23120_v63  ;;  %v17348_v6 = vadd.f32 %v6856_v60, %v17259_v5  ;;  %v54_v22 = vld [vmem:[%s22940_s2 + $0x60] sm:$0xff] }
 0x288   :  { %v6887_v7 = vmul.f32 %v17281_v4, %v4024_v26  ;;  %v3833_v3 = vpop.f32.mrf.mxu0  ;;  %4724 = vmatprep.mubr.bf16.mxu1 %v23120_v63  ;;  %v1059_v13 = vrot.slane %v17321_v33, %v14365_v17  ;;  %v4026_v28 = vpop.f32.mrf.mxu1  ;;  %v17364_v5 = vrot.slane %v17081_v62, %v14371_v19  ;;  %v894_v23 = vrot.slane %v734_v56, %v14362_v16 }
 0x289   :  { %v17359_v15 = vadd.f32 %v6885_v48, %v17263_v10  ;;  %v6886_v45 = vmul.f32 %v17288_v8, %v3833_v3  ;;  %v6888_v55 = vmul.f32 %v17298_v39, %v4026_v28  ;;  %v17376_v10 = vrot.slane %v17094_v35, %v14371_v19  ;;  %v70_v48 = vld [vmem:[%s22940_s2 + $0xe0] sm:$0xff]  ;;  %v55_v28 = vld [vmem:[%s22940_s2 + $0x68] sm:$0xff] }
 0x28a   :  { %v17371_v43 = vadd.f32 %v6887_v7, %v17266_v2  ;;  %v3835_v60 = vpop.f32.mrf.mxu0  ;;  %v4028_v7 = vpop.f32.mrf.mxu1  ;;  %v17391_v3 = vrot.slane %v17073_v44, %v14374_v20  ;;  %v17395_v56 = vrot.slane %v17081_v62, %v14374_v20  ;;  %v1219_v59 = vrot.slane %v1059_v13, %v14365_v17  ;;  %v13981_v13 = vld [vmem:[%s22941_s3] sm:$0xff]  }
 0x28b   :  { %v17386_v2 = vadd.f32 %v6886_v45, %v17269_v52  ;;  %v6917_v26 = vmul.f32 %v17274_v38, %v3835_v60  ;;  %v71_v52 = vld [vmem:[%s22940_s2 + $0xe8] sm:$0xff]  ;;  %v17404_v45 = vadd.f32 %v6888_v55, %v17277_v40  ;;  %v6919_v38 = vmul.f32 %v17281_v4, %v4028_v7 }
 0x28c   :  { %v3837_v60 = vpop.f32.mrf.mxu0  ;;  %v4030_v30 = vpop.f32.mrf.mxu1  ;;  %v12246_v40 = vcombine.high %v54_v22, %v70_v48  ;;  %v12245_v1 = vcombine.low %v54_v22, %v70_v48  ;;  %v1300_v48 = vsub.f32 %v1219_v59, %v14403_v36 }
 0x28d   :  { %v17413_v42 = vadd.f32 %v6917_v26, %v17284_v57  ;;  %v6918_v25 = vmul.f32 %v17288_v8, %v3837_v60  ;;  %v17419_v55 = vadd.f32 %v6919_v38, %v17290_v27  ;;  %v6920_v4 = vmul.f32 %v17298_v39, %v4030_v30  ;;  %v17430_v8 = vld [vmem:[%s22938_s0 + $0x48] sm:$0x77]  ;;  %v23192_v38 = vld [vmem:[#allocation9_spill] sm:$0xff] }
 0x28e   :  { %v3841_v7 = vpop.f32.mrf.mxu0  ;;  %12445 = vmatmul.mubr.msk.bf16.vlgmr.msra.gmra.mxu0 %vm2520_vm0, %v13981_v13  ;;  %v976_v57 = vsub.f32 %v894_v23, %v23138_v58  ;;  %v12248_v26 = vcombine.high %v55_v28, %v71_v52  ;;  %v4034_v39 = vpop.f32.mrf.mxu1  ;;  %v23193_v60 = vcombine.low %v16615_v12, %v23192_v38 }
 0x28f   :  { %v17433_v27 = vadd.f32 %v6918_v25, %v17300_v9  ;;  %v7205_v30 = vmul.f32 %v17354_v14, %v3841_v7  ;;  %12461 = vmatmul.mubr.msk.bf16.vlgmr.msra.gmra.mxu1 %vm2520_vm0, %v13981_v13  ;;  %v17441_v23 = vadd.f32 %v6920_v4, %v17305_v61  ;;  %v7207_v29 = vmul.f32 %v17364_v5, %v4034_v39  ;;  %v17495_v39 = vld [vmem:[%s22940_s2 + $0x1f8] sm:$0xff] }
 0x290   :  { %4898 = vmatpush1.bf16.msra.mxu0 %v23193_v60  ;;  %v3843_v21 = vpop.f32.mrf.mxu0  ;;  %v23196_v25 = vcombine.low %v23194_v32, %v23195_v53  ;;  %4541 = vmatprep.mubr.bf16.mxu0 %v23120_v63  ;;  %v12247_v9 = vcombine.low %v55_v28, %v71_v52  ;;  %v4036_v13 = vpop.f32.mrf.mxu1  ;;  %v742_v61 = vrot.slane %v17430_v8, %v14362_v16  ;;  %v17469_v28 = vld [vmem:[%s22940_s2 + $0x1f0] sm:$0xff] }
 0x291   :  { %v17449_v7 = vadd.f32 %v7205_v30, %v17309_v11  ;;  %v7206_v12 = vmul.f32 %v17368_v46, %v3843_v21  ;;  %4734 = vmatprep.mubr.bf16.mxu1 %v23120_v63  ;;  %4899 = vmatprep.subr.bf16.mxu0 %v12246_v40  ;;  %v17456_v22 = vadd.f32 %v7207_v29, %v17312_v31  ;;  %v17464_v21 = vld [vmem:[%s22940_s2 + $0x170] sm:$0xff] }
 0x292   :  { %5091 = vmatpush1.bf16.msra.mxu1 %v23196_v25  ;;  %v7208_v32 = vmul.f32 %v17376_v10, %v4036_v13  ;;  %v3845_v53 = vpop.f32.mrf.mxu0  ;;  %v1543_v11 = vrot.slane %v1383_v34, %v14381_v24  ;;  %v4038_v52 = vpop.f32.mrf.mxu1  ;;  %v12282_v59 = vcombine.high %v17464_v21, %v17469_v28  ;;  %v1656_v30 = vmul.f32 %v976_v57, %v976_v57 }
 0x293   :  { %5092 = vmatprep.subr.bf16.mxu1 %v12248_v26  ;;  %v17472_v29 = vadd.f32 %v7206_v12, %v17315_v41  ;;  %v7237_v31 = vmul.f32 %v17354_v14, %v3845_v53  ;;  %v7239_v4 = vmul.f32 %v17364_v5, %v4038_v52  ;;  %v17485_v41 = vrot.slane %v17094_v35, %v14374_v20 }
 0x294   :  { %4900 = vmatpush1.bf16.msra.mxu0 %v12245_v1  ;;  %v17480_v40 = vadd.f32 %v7208_v32, %v17324_v49  ;;  %v3847_v26 = vpop.f32.mrf.mxu0  ;;  %v17490_v1 = vld [vmem:[%s22940_s2 + $0x178] sm:$0xff]  ;;  %23198 = vst [vmem:[#allocation13_spill] sm:$0xff] %v17495_v39  ;;  %v4040_v60 = vpop.f32.mrf.mxu1  ;;  %v1624_v32 = vsub.f32 %v1543_v11, %v14421_v50  ;;  %v1688_v53 = vmul.f32 %v1300_v48, %v1300_v48 }
 0x295   :  { %23197 = vst [vmem:[#allocation9_spill] sm:$0xff] %v17490_v1  ;;  %v17498_v49 = vadd.f32 %v7237_v31, %v17328_v37  ;;  %v7238_v38 = vmul.f32 %v17368_v46, %v3847_v26  ;;  %5283 = vmatprep.subr.bf16.mxu0 %v12282_v59  ;;  %v12284_v25 = vcombine.high %v17490_v1, %v17495_v39  ;;  %v13982_v37 = vld [vmem:[%s22941_s3 + $0x8] sm:$0xff]  }
 0x296   :  { %5093 = vmatpush1.bf16.msra.mxu1 %v12247_v9  ;;  %v17506_v9 = vadd.f32 %v7239_v4, %v17332_v47  ;;  %v7240_v12 = vmul.f32 %v17376_v10, %v4040_v60  ;;  %v3851_v13 = vpop.f32.mrf.mxu0  ;;  %12446 = vmatmul.mubr.msk.bf16.gmra.mxu0 %vm2520_vm0, %v13982_v37  ;;  %v4044_v59 = vpop.f32.mrf.mxu1  ;;  %v902_v47 = vrot.slane %v742_v61, %v14362_v16 }
 0x297   :  { %v17515_v31 = vadd.f32 %v7238_v38, %v17342_v54  ;;  %v7269_v52 = vmul.f32 %v17354_v14, %v3851_v13  ;;  %12462 = vmatmul.mubr.msk.bf16.gmra.mxu1 %vm2520_vm0, %v13982_v37  ;;  %4551 = vmatprep.mubr.bf16.mxu0 %v23120_v63  ;;  %v7271_v26 = vmul.f32 %v17364_v5, %v4044_v59  ;;  %v23199_v13 = vld [vmem:[#allocation11_spill] sm:$0xff] }
 0x298   :  { %v17522_v4 = vadd.f32 %v7240_v12, %v17348_v6  ;;  %v3853_v60 = vpop.f32.mrf.mxu0  ;;  %4744 = vmatprep.mubr.bf16.mxu1 %v23120_v63  ;;  %v1067_v54 = vrot.slane %v17430_v8, %v14365_v17  ;;  %5476 = vmatprep.subr.bf16.mxu1 %v12284_v25  ;;  %v4046_v38 = vpop.f32.mrf.mxu1  ;;  %v17534_v61 = vrot.slane %v17073_v44, %v23199_v13 }
 0x299   :  { %v17529_v48 = vadd.f32 %v7269_v52, %v17359_v15  ;;  %v7270_v11 = vmul.f32 %v17368_v46, %v3853_v60  ;;  %v17538_v6 = vrot.slane %v17081_v62, %v23199_v13  ;;  %v17541_v12 = vadd.f32 %v7271_v26, %v17371_v43 }
 0x29a   :  { %v7272_v37 = vmul.f32 %v17376_v10, %v4046_v38  ;;  %v3855_v25 = vpop.f32.mrf.mxu0  ;;  %v1720_v59 = vadd.f32 %v1688_v53, %v1656_v30  ;;  %v1752_v15 = vmul.f32 %v1624_v32, %v1624_v32  ;;  %v4048_v57 = vpop.f32.mrf.mxu1  ;;  %v17550_v34 = vrot.slane %v17090_v0, %v23199_v13 }
 0x29b   :  { %v17545_v52 = vadd.f32 %v7270_v11, %v17386_v2  ;;  %v7301_v60 = vmul.f32 %v17354_v14, %v3855_v25  ;;  %v17554_v39 = vrot.slane %v17094_v35, %v23199_v13  ;;  %v7303_v30 = vmul.f32 %v17364_v5, %v4048_v57 }
 0x29c   :  { %v17557_v43 = vadd.f32 %v7272_v37, %v17404_v45  ;;  %v3857_v32 = vpop.f32.mrf.mxu0  ;;  %v978_v2 = vsub.f32 %v902_v47, %v23138_v58  ;;  %v1227_v53 = vrot.slane %v1067_v54, %v14365_v17  ;;  %v4050_v11 = vpop.f32.mrf.mxu1  ;;  %v1391_v38 = vrot.slane %v17430_v8, %v14381_v24 }
 0x29d   :  { %v17563_v14 = vadd.f32 %v7301_v60, %v17413_v42  ;;  %v7302_v26 = vmul.f32 %v17368_v46, %v3857_v32  ;;  %v738_v45 = vrot.slane %v17321_v33, %v14371_v19  ;;  %v17571_v37 = vadd.f32 %v7303_v30, %v17419_v55  ;;  %v13983_v42 = vld [vmem:[%s22941_s3 + $0x10] sm:$0xff]  }
 0x29e   :  { %v7304_v5 = vmul.f32 %v17376_v10, %v4050_v11  ;;  %v3861_v57 = vpop.f32.mrf.mxu0  ;;  %12447 = vmatmul.mubr.msk.bf16.gmra.mxu0 %vm2520_vm0, %v13983_v42  ;;  %v17578_v46 = vadd.f32 %v1752_v15, %v1720_v59  ;;  %v1063_v47 = vrot.slane %v17321_v33, %v14374_v20  ;;  %v4054_v25 = vpop.f32.mrf.mxu1  ;;  %v746_v10 = vrot.slane %v17430_v8, %v14371_v19 }
 0x29f   :  { %v17583_v54 = vadd.f32 %v7302_v26, %v17433_v27  ;;  %v7589_v55 = vmul.f32 %v17391_v3, %v3861_v57  ;;  %12463 = vmatmul.mubr.msk.bf16.gmra.mxu1 %vm2520_vm0, %v13983_v42  ;;  %4561 = vmatprep.mubr.bf16.mxu0 %v23120_v63  ;;  %v7591_v59 = vmul.f32 %v17395_v56, %v4054_v25 }
 0x2a0   :  { %v17591_v60 = vadd.f32 %v7304_v5, %v17441_v23  ;;  %v3863_v15 = vpop.f32.mrf.mxu0  ;;  %4754 = vmatprep.mubr.bf16.mxu1 %v23120_v63  ;;  %v1302_v27 = vsub.f32 %v1227_v53, %v14403_v36  ;;  %v1071_v30 = vrot.slane %v17430_v8, %v14374_v20  ;;  %v4056_v11 = vpop.f32.mrf.mxu1  ;;  %v1551_v57 = vrot.slane %v1391_v38, %v14381_v24 }
 0x2a1   :  { %v17599_v32 = vadd.f32 %v7589_v55, %v17449_v7  ;;  %v7590_v26 = vmul.f32 %v17409_v18, %v3863_v15  ;;  %v898_v23 = vrot.slane %v738_v45, %v14362_v16  ;;  %v17605_v5 = vadd.f32 %v7591_v59, %v17456_v22 }
 0x2a2   :  { %v7592_v42 = vmul.f32 %v17485_v41, %v4056_v11  ;;  %v3865_v25 = vpop.f32.mrf.mxu0  ;;  %v1223_v53 = vrot.slane %v1063_v47, %v14365_v17  ;;  %v1387_v20 = vrot.slane %v17321_v33, %v23199_v13  ;;  %v4058_v15 = vpop.f32.mrf.mxu1  ;;  %v1658_v38 = vmul.f32 %v978_v2, %v978_v2 }
 0x2a3   :  { %v17612_v7 = vadd.f32 %v7590_v26, %v17472_v29  ;;  %v7621_v55 = vmul.f32 %v17391_v3, %v3865_v25  ;;  %v906_v45 = vrot.slane %v746_v10, %v14362_v16  ;;  %v7623_v59 = vmul.f32 %v17395_v56, %v4058_v15 }
 0x2a4   :  { %v17617_v22 = vadd.f32 %v7592_v42, %v17480_v40  ;;  %v3867_v11 = vpop.f32.mrf.mxu0  ;;  %v1231_v47 = vrot.slane %v1071_v30, %v14365_v17  ;;  %v1395_v33 = vrot.slane %v17430_v8, %v23199_v13  ;;  %v4060_v25 = vpop.f32.mrf.mxu1  ;;  %v1626_v2 = vsub.f32 %v1551_v57, %v14421_v50  ;;  %v13984_v8 = vld [vmem:[%s22941_s3 + $0x18] sm:$0xff]  }
 0x2a5   :  { %v17624_v29 = vadd.f32 %v7621_v55, %v17498_v49  ;;  %v7622_v26 = vmul.f32 %v17409_v18, %v3867_v11  ;;  %v977_v10 = vsub.f32 %v898_v23, %v23138_v58  ;;  %v17630_v40 = vadd.f32 %v7623_v59, %v17506_v9 }
 0x2a6   :  { %v7624_v42 = vmul.f32 %v17485_v41, %v4060_v25  ;;  %v3871_v15 = vpop.f32.mrf.mxu0  ;;  %12448 = vmatmul.mubr.msk.bf16.gmra.mxu0 %vm2520_vm0, %v13984_v8  ;;  %v1301_v49 = vsub.f32 %v1223_v53, %v14403_v36  ;;  %v1547_v30 = vrot.slane %v1387_v20, %v14381_v24  ;;  %v4064_v9 = vpop.f32.mrf.mxu1  ;;  %v979_v55 = vsub.f32 %v906_v45, %v23138_v58 }
 0x2a7   :  { %v17640_v57 = vadd.f32 %v7622_v26, %v17515_v31  ;;  %v7653_v23 = vmul.f32 %v17391_v3, %v3871_v15  ;;  %12464 = vmatmul.mubr.msk.bf16.gmra.mxu1 %vm2520_vm0, %v13984_v8  ;;  %4571 = vmatprep.mubr.bf16.mxu0 %v23120_v63  ;;  %v7655_v11 = vmul.f32 %v17395_v56, %v4064_v9  ;;  %13879 = vrsqrt.f32 %v17578_v46 }
 0x2a8   :  { %v17647_v59 = vadd.f32 %v7624_v42, %v17522_v4  ;;  %v3873_v53 = vpop.f32.mrf.mxu0  ;;  %4764 = vmatprep.mubr.bf16.mxu1 %v23120_v63  ;;  %v1303_v20 = vsub.f32 %v1231_v47, %v14403_v36  ;;  %v1555_v31 = vrot.slane %v1395_v33, %v14381_v24  ;;  %v4066_v15 = vpop.f32.mrf.mxu1  ;;  %v1690_v8 = vmul.f32 %v1302_v27, %v1302_v27 }
 0x2a9   :  { %v17654_v26 = vadd.f32 %v7653_v23, %v17529_v48  ;;  %v7654_v25 = vmul.f32 %v17409_v18, %v3873_v53  ;;  %v1657_v45 = vmul.f32 %v977_v10, %v977_v10  ;;  %v17658_v4 = vadd.f32 %v7655_v11, %v17541_v12 }
 0x2aa   :  { %v7656_v42 = vmul.f32 %v17485_v41, %v4066_v15  ;;  %v3875_v9 = vpop.f32.mrf.mxu0  ;;  %v1625_v13 = vsub.f32 %v1547_v30, %v14421_v50  ;;  %v1689_v1 = vmul.f32 %v1301_v49, %v1301_v49  ;;  %v4068_v33 = vpop.f32.mrf.mxu1  ;;  %v1659_v23 = vmul.f32 %v979_v55, %v979_v55 }
 0x2ab   :  { %v17663_v47 = vadd.f32 %v7654_v25, %v17545_v52  ;;  %v7685_v48 = vmul.f32 %v17391_v3, %v3875_v9  ;;  %v7687_v12 = vmul.f32 %v17395_v56, %v4068_v33  ;;  %v1627_v11 = vsub.f32 %v1555_v31, %v14421_v50  ;;  %v13985_v56 = vld [vmem:[%s22941_s3 + $0x20] sm:$0xff]  }
 0x2ac   :  { %v17668_v27 = vadd.f32 %v7656_v42, %v17557_v43  ;;  %v3877_v10 = vpop.f32.mrf.mxu0  ;;  %v1691_v53 = vmul.f32 %v1303_v20, %v1303_v20  ;;  %v4070_v30 = vpop.f32.mrf.mxu1  ;;  %v1722_v3 = vadd.f32 %v1690_v8, %v1658_v38  ;;  %v1754_v25 = vmul.f32 %v1626_v2, %v1626_v2 }
 0x2ad   :  { %v17673_v49 = vadd.f32 %v7685_v48, %v17563_v14  ;;  %v7686_v52 = vmul.f32 %v17409_v18, %v3877_v10  ;;  %v17677_v15 = vadd.f32 %v7687_v12, %v17571_v37  ;;  %v7688_v43 = vmul.f32 %v17485_v41, %v4070_v30 }
 0x2ae   :  { %v3881_v55 = vpop.f32.mrf.mxu0  ;;  %12449 = vmatmul.mubr.msk.bf16.gmra.mxu0 %vm2520_vm0, %v13985_v56  ;;  %v1721_v20 = vadd.f32 %v1689_v1, %v1657_v45  ;;  %v1753_v14 = vmul.f32 %v1625_v13, %v1625_v13  ;;  %v4074_v38 = vpop.f32.mrf.mxu1  ;;  %v1723_v1 = vadd.f32 %v1691_v53, %v1659_v23  ;;  %v1755_v13 = vmul.f32 %v1627_v11, %v1627_v11 }
 0x2af   :  { %v17685_v31 = vadd.f32 %v7686_v52, %v17583_v54  ;;  %v7973_v18 = vmul.f32 %v17534_v61, %v3881_v55  ;;  %12465 = vmatmul.mubr.msk.bf16.gmra.mxu1 %vm2520_vm0, %v13985_v56  ;;  %4581 = vmatprep.mubr.bf16.mxu0 %v23120_v63  ;;  %v17691_v41 = vadd.f32 %v7688_v43, %v17591_v60  ;;  %v13986_v43 = vld [vmem:[%s22941_s3 + $0x28] sm:$0xff]   ;;  %vm1914_vm3 = vcmp.eq.f32.partialorder %v17578_v46, inf }
 0x2b0   :  { %v7975_v37 = vmul.f32 %v17538_v6, %v4074_v38  ;;  %v3883_v2 = vpop.f32.mrf.mxu0  ;;  %4774 = vmatprep.mubr.bf16.mxu1 %v23120_v63  ;;  %v4076_v45 = vpop.f32.mrf.mxu1  ;;  %v17699_v42 = vadd.f32 %v1754_v25, %v1722_v3  ;;  %v17705_v33 = vadd.f32 %v1753_v14, %v1721_v20  ;;  %v17715_v52 = vadd.f32 %v1755_v13, %v1723_v1 }
 0x2b1   :  { %v17696_v54 = vadd.f32 %v7973_v18, %v17599_v32  ;;  %v7974_v8 = vmul.f32 %v17550_v34, %v3883_v2  ;;  %v7976_v60 = vmul.f32 %v17554_v39, %v4076_v45  ;;  %vm1916_vm4 = vcmp.eq.f32.partialorder %v17578_v46, 0.0 }
 0x2b2   :  { %v17702_v9 = vadd.f32 %v7975_v37, %v17605_v5  ;;  %v3885_v48 = vpop.f32.mrf.mxu0  ;;  %v4078_v32 = vpop.f32.mrf.mxu1  ;;  %13881 = vrsqrt.f32 %v17699_v42  ;;  %vm1928_vm5 = vcmp.eq.f32.partialorder %v17699_v42, inf  ;;  %vm1930_vm6 = vcmp.eq.f32.partialorder %v17699_v42, 0.0 }
 0x2b3   :  { %v17708_v12 = vadd.f32 %v7974_v8, %v17612_v7  ;;  %v8005_v23 = vmul.f32 %v17534_v61, %v3885_v48  ;;  %v17712_v10 = vadd.f32 %v7976_v60, %v17617_v22  ;;  %v8007_v11 = vmul.f32 %v17538_v6, %v4078_v32 }
 0x2b4   :  { %v3887_v53 = vpop.f32.mrf.mxu0  ;;  %v4080_v3 = vpop.f32.mrf.mxu1  ;;  %13883 = vrsqrt.f32 %v17705_v33  ;;  %v17757_v60 = vrot.slane %v17073_v44, %v15184_v51  ;;  %v17773_v44 = vrot.slane %v17090_v0, %v15184_v51  ;;  %vm1921_vm7 = vcmp.eq.f32.partialorder %v17705_v33, inf }
 0x2b5   :  { %v17718_v5 = vadd.f32 %v8005_v23, %v17624_v29  ;;  %v8006_v30 = vmul.f32 %v17550_v34, %v3887_v53  ;;  %v17723_v7 = vadd.f32 %v8007_v11, %v17630_v40  ;;  %v8008_v25 = vmul.f32 %v17554_v39, %v4080_v3  ;;  %v13880_v40 = vpop.eup %13879 }
 0x2b6   :  { %v3891_v22 = vpop.f32.mrf.mxu0  ;;  %12450 = vmatmul.mubr.msk.bf16.gmra.mxu0 %vm2520_vm0, %v13986_v43  ;;  %v4084_v56 = vpop.f32.mrf.mxu1  ;;  %13885 = vrsqrt.f32 %v17715_v52  ;;  %v17765_v23 = vrot.slane %v17081_v62, %v15184_v51  ;;  %v13987_v62 = vld [vmem:[%s22941_s3 + $0x30] sm:$0xff]   ;;  %vm1923_vm8 = vcmp.eq.f32.partialorder %v17705_v33, 0.0  ;;  %vm1935_vm9 = vcmp.eq.f32.partialorder %v17715_v52, inf }
 0x2b7   :  { %v17732_v29 = vadd.f32 %v8006_v30, %v17640_v57  ;;  %v8037_v55 = vmul.f32 %v17534_v61, %v3891_v22  ;;  %12466 = vmatmul.mubr.msk.bf16.gmra.mxu1 %vm2520_vm0, %v13986_v43  ;;  %4591 = vmatprep.mubr.bf16.mxu0 %v23120_v63  ;;  %v17738_v20 = vadd.f32 %v8008_v25, %v17647_v59  ;;  %v1917_v22 = vand.u32 2147483648, %v17578_v46 }
 0x2b8   :  { %v8039_v14 = vmul.f32 %v17538_v6, %v4084_v56  ;;  %v3893_v18 = vpop.f32.mrf.mxu0  ;;  %4784 = vmatprep.mubr.bf16.mxu1 %v23120_v63  ;;  %v4086_v37 = vpop.f32.mrf.mxu1  ;;  %vm1937_vm10 = vcmp.eq.f32.partialorder %v17715_v52, 0.0 }
 0x2b9   :  { %v17744_v57 = vadd.f32 %v8037_v55, %v17654_v26  ;;  %v8038_v38 = vmul.f32 %v17550_v34, %v3893_v18  ;;  %v8040_v1 = vmul.f32 %v17554_v39, %v4086_v37 }
 0x2ba   :  { %v17748_v2 = vadd.f32 %v8039_v14, %v17658_v4  ;;  %v3895_v59 = vpop.f32.mrf.mxu0  ;;  %v4088_v45 = vpop.f32.mrf.mxu1 }
 0x2bb   :  { %v17752_v13 = vadd.f32 %v8038_v38, %v17663_v47  ;;  %v8069_v8 = vmul.f32 %v17534_v61, %v3895_v59  ;;  %v17760_v26 = vadd.f32 %v8040_v1, %v17668_v27  ;;  %v8071_v48 = vmul.f32 %v17538_v6, %v4088_v45 }
 0x2bc   :  { %v3897_v4 = vpop.f32.mrf.mxu0  ;;  %v4090_v32 = vpop.f32.mrf.mxu1 }
 0x2bd   :  { %v17768_v47 = vadd.f32 %v8069_v8, %v17673_v49  ;;  %v8070_v61 = vmul.f32 %v17550_v34, %v3897_v4  ;;  %v17776_v27 = vadd.f32 %v8071_v48, %v17677_v15  ;;  %v8072_v6 = vmul.f32 %v17554_v39, %v4090_v32  ;;  %v13988_v32 = vld [vmem:[%s22941_s3 + $0x38] sm:$0xff]  }
 0x2be   :  { %v3901_v11 = vpop.f32.mrf.mxu0  ;;  %12451 = vmatmul.mubr.msk.bf16.gmra.mxu0 %vm2520_vm0, %v13987_v62  ;;  %v17785_v34 = vrot.slane %v17094_v35, %v15184_v51  ;;  %v1913_v49 = vmul.f32 %v13880_v40, %v17578_v46  ;;  %v4094_v53 = vpop.f32.mrf.mxu1  ;;  %v1931_v48 = vand.u32 2147483648, %v17699_v42 }
 0x2bf   :  { %v17789_v0 = vadd.f32 %v8070_v61, %v17685_v31  ;;  %v8357_v15 = vmul.f32 %v17757_v60, %v3901_v11  ;;  %12467 = vmatmul.mubr.msk.bf16.gmra.mxu1 %vm2520_vm0, %v13987_v62  ;;  %4601 = vmatprep.mubr.bf16.mxu0 %v23120_v63  ;;  %v17796_v39 = vadd.f32 %v8072_v6, %v17691_v41  ;;  %v13882_v43 = vpop.eup %13881 }
 0x2c0   :  { %v8359_v35 = vmul.f32 %v17765_v23, %v4094_v53  ;;  %v3903_v30 = vpop.f32.mrf.mxu0  ;;  %4794 = vmatprep.mubr.bf16.mxu1 %v23120_v63  ;;  %v4096_v25 = vpop.f32.mrf.mxu1  ;;  %v1915_v40 = vsel %vm1914_vm3, %v17578_v46, %v1913_v49 }
 0x2c1   :  { %v17801_v31 = vadd.f32 %v8357_v15, %v17696_v54  ;;  %v8358_v3 = vmul.f32 %v17773_v44, %v3903_v30  ;;  %v8360_v41 = vmul.f32 %v17785_v34, %v4096_v25  ;;  %v13884_v14 = vpop.eup %13883  ;;  %v1918_v45 = vsel %vm1916_vm4, %v1917_v22, %v1915_v40 }
 0x2c2   :  { %v17806_v55 = vadd.f32 %v8359_v35, %v17702_v9  ;;  %v3905_v56 = vpop.f32.mrf.mxu0  ;;  %v4098_v38 = vpop.f32.mrf.mxu1  ;;  %v1920_v6 = vmul.f32 %v13884_v14, %v17705_v33 }
 0x2c3   :  { %23200 = vst [vmem:[#allocation14_spill] sm:$0xff] %v17801_v31  ;;  %v17812_v54 = vadd.f32 %v8358_v3, %v17708_v12  ;;  %v8389_v18 = vmul.f32 %v17757_v60, %v3905_v56  ;;  %v17816_v37 = vadd.f32 %v8360_v41, %v17712_v10  ;;  %v8391_v9 = vmul.f32 %v17765_v23, %v4098_v38  ;;  %v13886_v59 = vpop.eup %13885  ;;  %v23218_v31 = vld [vmem:[#allocation9_spill] sm:$0xff] }
 0x2c4   :  { %23201 = vst [vmem:[#allocation64_spill] sm:$0xff] %v17806_v55  ;;  %v3907_v1 = vpop.f32.mrf.mxu0  ;;  %v4100_v8 = vpop.f32.mrf.mxu1  ;;  %v1938_v38 = vand.u32 2147483648, %v17715_v52 }
 0x2c5   :  { %23202 = vst [vmem:[#allocation65_spill] sm:$0xff] %v17812_v54  ;;  %23203 = vst [vmem:[#allocation66_spill] sm:$0xff] %v17816_v37  ;;  %v17822_v46 = vadd.f32 %v8389_v18, %v17718_v5  ;;  %v8390_v12 = vmul.f32 %v17773_v44, %v3907_v1  ;;  %v17827_v10 = vadd.f32 %v8391_v9, %v17723_v7 }
 0x2c6   :  { %v8392_v4 = vmul.f32 %v17785_v34, %v4100_v8  ;;  %v3911_v61 = vpop.f32.mrf.mxu0  ;;  %12452 = vmatmul.mubr.msk.bf16.gmra.mxu0 %vm2520_vm0, %v13988_v32  ;;  %v1927_v5 = vmul.f32 %v13882_v43, %v17699_v42  ;;  %v4104_v49 = vpop.f32.mrf.mxu1 }
 0x2c7   :  { %23204 = vst [vmem:[#allocation67_spill] sm:$0xff] %v17822_v46  ;;  %23205 = vst [vmem:[#allocation68_spill] sm:$0xff] %v17827_v10  ;;  %v17839_v62 = vadd.f32 %v8390_v12, %v17732_v29  ;;  %v8421_v7 = vmul.f32 %v17757_v60, %v3911_v61  ;;  %12468 = vmatmul.mubr.msk.bf16.gmra.mxu1 %vm2520_vm0, %v13988_v32  ;;  %4611 = vmatprep.mubr.bf16.mxu0 %v23120_v63  ;;  %v13989_v32 = vld [vmem:[%s22941_s3 + $0x40] sm:$0xff]  }
 0x2c8   :  { %v17848_v53 = vadd.f32 %v8392_v4, %v17738_v20  ;;  %v8423_v35 = vmul.f32 %v17765_v23, %v4104_v49  ;;  %v3913_v30 = vpop.f32.mrf.mxu0  ;;  %4804 = vmatprep.mubr.bf16.mxu1 %v23120_v63  ;;  %v1934_v29 = vmul.f32 %v13886_v59, %v17715_v52  ;;  %v4106_v22 = vpop.f32.mrf.mxu1  ;;  %v1929_v56 = vsel %vm1928_vm5, %v17699_v42, %v1927_v5  ;;  %v23219_v46 = vld [vmem:[#allocation13_spill] sm:$0xff] }
 0x2c9   :  { %23206 = vst [vmem:[#allocation69_spill] sm:$0xff] %v17839_v62  ;;  %v17854_v3 = vadd.f32 %v8421_v7, %v17744_v57  ;;  %v8422_v25 = vmul.f32 %v17773_v44, %v3913_v30  ;;  %v8424_v43 = vmul.f32 %v17785_v34, %v4106_v22  ;;  %v1924_v57 = vand.u32 2147483648, %v17705_v33 }
 0x2ca   :  { %23207 = vst [vmem:[#allocation70_spill] sm:$0xff] %v17848_v53  ;;  %v17860_v20 = vadd.f32 %v8423_v35, %v17748_v2  ;;  %v3915_v41 = vpop.f32.mrf.mxu0  ;;  %v4108_v18 = vpop.f32.mrf.mxu1  ;;  %v1922_v2 = vsel %vm1921_vm7, %v17705_v33, %v1920_v6  ;;  %v1936_v12 = vsel %vm1935_vm9, %v17715_v52, %v1934_v29  ;;  %v1932_v4 = vsel %vm1930_vm6, %v1931_v48, %v1929_v56 }
 0x2cb   :  { %23208 = vst [vmem:[#allocation71_spill] sm:$0xff] %v17854_v3  ;;  %v17868_v40 = vadd.f32 %v8422_v25, %v17752_v13  ;;  %v8453_v14 = vmul.f32 %v17757_v60, %v3915_v41  ;;  %v17876_v9 = vadd.f32 %v8424_v43, %v17760_v26  ;;  %v8455_v1 = vmul.f32 %v17765_v23, %v4108_v18 }
 0x2cc   :  { %23209 = vst [vmem:[#allocation72_spill] sm:$0xff] %v17860_v20  ;;  %v3917_v59 = vpop.f32.mrf.mxu0  ;;  %v4110_v8 = vpop.f32.mrf.mxu1  ;;  %v2042_v6 = vmul.f32 2.0833333, %v1932_v4 }
 0x2cd   :  { %23210 = vst [vmem:[#allocation73_spill] sm:$0xff] %v17868_v40  ;;  %23211 = vst [vmem:[#allocation74_spill] sm:$0xff] %v17876_v9  ;;  %v17882_v13 = vadd.f32 %v8453_v14, %v17768_v47  ;;  %v8454_v60 = vmul.f32 %v17773_v44, %v3917_v59  ;;  %v17888_v61 = vadd.f32 %v8455_v1, %v17776_v27  ;;  %v2040_v27 = vmul.f32 2.0833333, %v1918_v45 }
 0x2ce   :  { %v8456_v26 = vmul.f32 %v17785_v34, %v4110_v8  ;;  %v4147_v23 = vpop.f32.mrf.mxu0  ;;  %12453 = vmatmul.mubr.msk.bf16.gmra.mxu0 %vm2520_vm0, %v13989_v32  ;;  %v1925_v47 = vsel %vm1923_vm8, %v1924_v57, %v1922_v2  ;;  %v4340_v48 = vpop.f32.mrf.mxu1  ;;  %v1939_v34 = vsel %vm1937_vm10, %v1938_v38, %v1936_v12  ;;  %v2074_v52 = vsub.f32 1.0, %v2042_v6 }
 0x2cf   :  { %23212 = vst [vmem:[#allocation75_spill] sm:$0xff] %v17882_v13  ;;  %23213 = vst [vmem:[#allocation76_spill] sm:$0xff] %v17888_v61  ;;  %v17900_v42 = vadd.f32 %v8454_v60, %v17789_v0  ;;  %12469 = vmatmul.mubr.msk.bf16.gmra.mxu1 %vm2520_vm0, %v13989_v32  ;;  %4621 = vmatprep.mubr.bf16.mxu0 %v23120_v63  ;;  %v2041_v0 = vmul.f32 2.0833333, %v1925_v47  ;;  %v2043_v49 = vmul.f32 2.0833333, %v1939_v34 }
 0x2d0   :  { %v17909_v33 = vadd.f32 %v8456_v26, %v17796_v39  ;;  %v4149_v7 = vpop.f32.mrf.mxu0  ;;  %4814 = vmatprep.mubr.bf16.mxu1 %v23120_v63  ;;  %v4342_v45 = vpop.f32.mrf.mxu1  ;;  %v2072_v30 = vsub.f32 1.0, %v2040_v27  ;;  %v13990_v39 = vld [vmem:[%s22941_s3 + $0x48] sm:$0xff]   ;;  %v17930_v38 = vmax.f32 %v2074_v52, 0.0 }
 0x2d1   :  { %23214 = vst [vmem:[#allocation77_spill] sm:$0xff] %v17900_v42  ;;  %v2073_v22 = vsub.f32 1.0, %v2041_v0  ;;  %v2075_v41 = vsub.f32 1.0, %v2043_v49 }
 0x2d2   :  { %23215 = vst [vmem:[#allocation78_spill] sm:$0xff] %v17909_v33  ;;  %v4151_v35 = vpop.f32.mrf.mxu0  ;;  %v4344_v29 = vpop.f32.mrf.mxu1  ;;  %v17922_v14 = vmax.f32 %v2072_v30, 0.0  ;;  %v17959_v34 = vrot.slane %v17930_v38, %v14362_v16  ;;  %v17965_v0 = vrot.slane %v17930_v38, %v14365_v17 }
 0x2d3   :  { %v17939_v60 = vmax.f32 %v2073_v22, 0.0  ;;  %v17943_v4 = vmax.f32 %v2075_v41, 0.0 }
 0x2d4   :  { %v4153_v25 = vpop.f32.mrf.mxu0  ;;  %v17912_v43 = vpop.f32.mrf.mxu1  ;;  %v17949_v32 = vrot.slane %v17922_v14, %v14362_v16  ;;  %v17955_v27 = vrot.slane %v17922_v14, %v14365_v17  ;;  %v5803_v15 = vmul.f32 %v17959_v34, %v4340_v48 }
 0x2d5   :  { %v17969_v49 = vrot.slane %v17939_v60, %v14362_v16  ;;  %v17975_v52 = vrot.slane %v17939_v60, %v14365_v17  ;;  %v17979_v22 = vrot.slane %v17943_v4, %v14362_v16  ;;  %v17987_v5 = vrot.slane %v17943_v4, %v14365_v17 }
 0x2d6   :  { %v17914_v56 = vpop.f32.mrf.mxu0  ;;  %12454 = vmatmul.mubr.msk.bf16.gmra.mxu0 %vm2520_vm0, %v13990_v39  ;;  %v17924_v18 = vpop.f32.mrf.mxu1  ;;  %v5801_v44 = vmul.f32 %v17949_v32, %v4147_v23  ;;  %v5833_v48 = vmul.f32 %v17949_v32, %v4151_v35 }
 0x2d7   :  { %12470 = vmatmul.mubr.msk.bf16.gmra.mxu1 %vm2520_vm0, %v13990_v39  ;;  %4631 = vmatprep.mubr.bf16.mxu0 %v23120_v63  ;;  %v13991_v39 = vld [vmem:[%s22941_s3 + $0x50] sm:$0xff]   ;;  %v5802_v57 = vmul.f32 %v17969_v49, %v4149_v7  ;;  %v5836_v35 = vmul.f32 %v17979_v22, %v17912_v43  ;;  %v5867_v43 = vmul.f32 %v17959_v34, %v17924_v18 }
 0x2d8   :  { %v17932_v1 = vpop.f32.mrf.mxu0  ;;  %4824 = vmatprep.mubr.bf16.mxu1 %v23120_v63  ;;  %v17941_v8 = vpop.f32.mrf.mxu1 }
 0x2da   :  { %v17945_v26 = vpop.f32.mrf.mxu0  ;;  %v17951_v47 = vpop.f32.mrf.mxu1 }
 0x2dc   :  { %v17961_v6 = vpop.f32.mrf.mxu0  ;;  %v17971_v30 = vpop.f32.mrf.mxu1 }
 0x2de   :  { %v4167_v41 = vpop.f32.mrf.mxu0  ;;  %12455 = vmatmul.mubr.msk.bf16.gmra.mxu0 %vm2520_vm0, %v13991_v39  ;;  %v4360_v59 = vpop.f32.mrf.mxu1 }
 0x2df   :  { %v6057_v12 = vmul.f32 %v17955_v27, %v4167_v41  ;;  %12471 = vmatmul.mubr.msk.bf16.gmra.mxu1 %vm2520_vm0, %v13991_v39  ;;  %4641 = vmatprep.mubr.bf16.mxu0 %v23120_v63  ;;  %v6059_v11 = vmul.f32 %v17965_v0, %v4360_v59  ;;  %v5804_v41 = vmul.f32 %v17979_v22, %v4342_v45 }
 0x2e0   :  { %v4169_v2 = vpop.f32.mrf.mxu0  ;;  %4834 = vmatprep.mubr.bf16.mxu1 %v23120_v63  ;;  %v4362_v61 = vpop.f32.mrf.mxu1 }
 0x2e1   :  { %v17997_v20 = vadd.f32 %v6057_v12, %v5801_v44  ;;  %v6058_v23 = vmul.f32 %v17975_v52, %v4169_v2  ;;  %v18001_v3 = vadd.f32 %v6059_v11, %v5803_v15  ;;  %v6060_v39 = vmul.f32 %v17987_v5, %v4362_v61 }
 0x2e2   :  { %v4171_v13 = vpop.f32.mrf.mxu0  ;;  %v4364_v33 = vpop.f32.mrf.mxu1  ;;  %v5835_v44 = vmul.f32 %v17959_v34, %v4344_v29  ;;  %v5834_v11 = vmul.f32 %v17969_v49, %v4153_v25 }
 0x2e3   :  { %v18005_v59 = vadd.f32 %v6058_v23, %v5802_v57  ;;  %v6089_v9 = vmul.f32 %v17955_v27, %v4171_v13  ;;  %v18009_v7 = vadd.f32 %v6060_v39, %v5804_v41  ;;  %v6091_v2 = vmul.f32 %v17965_v0, %v4364_v33  ;;  %v13992_v33 = vld [vmem:[%s22941_s3 + $0x58] sm:$0xff]  }
 0x2e4   :  { %v4173_v12 = vpop.f32.mrf.mxu0  ;;  %v4366_v45 = vpop.f32.mrf.mxu1 }
 0x2e5   :  { %v18013_v15 = vadd.f32 %v6089_v9, %v5833_v48  ;;  %v6090_v61 = vmul.f32 %v17975_v52, %v4173_v12  ;;  %v18018_v57 = vadd.f32 %v6091_v2, %v5835_v44  ;;  %v6092_v13 = vmul.f32 %v17987_v5, %v4366_v45 }
 0x2e6   :  { %v4177_v29 = vpop.f32.mrf.mxu0  ;;  %12456 = vmatmul.mubr.msk.bf16.gmra.mxu0 %vm2520_vm0, %v13992_v33  ;;  %v5865_v9 = vmul.f32 %v17949_v32, %v17914_v56  ;;  %v5866_v56 = vmul.f32 %v17969_v49, %v17932_v1 }
 0x2e7   :  { %v18027_v25 = vadd.f32 %v6090_v61, %v5834_v11  ;;  %v6121_v23 = vmul.f32 %v17955_v27, %v4177_v29  ;;  %v4370_v41 = vpop.f32.mrf.mxu1  ;;  %12472 = vmatmul.mubr.msk.bf16.gmra.mxu1 %vm2520_vm0, %v13992_v33  ;;  %4651 = vmatprep.mubr.bf16.mxu0 %v23120_v63  ;;  %v18034_v39 = vadd.f32 %v6092_v13, %v5836_v35 }
 0x2e8   :  { %v6123_v48 = vmul.f32 %v17965_v0, %v4370_v41  ;;  %v4179_v44 = vpop.f32.mrf.mxu0  ;;  %4844 = vmatprep.mubr.bf16.mxu1 %v23120_v63  ;;  %v5868_v61 = vmul.f32 %v17979_v22, %v17941_v8  ;;  %v5897_v13 = vmul.f32 %v17949_v32, %v17945_v26  ;;  %v5899_v8 = vmul.f32 %v17959_v34, %v17951_v47 }
 0x2e9   :  { %v18040_v2 = vadd.f32 %v6121_v23, %v5865_v9  ;;  %v6122_v12 = vmul.f32 %v17975_v52, %v4179_v44  ;;  %v4372_v11 = vpop.f32.mrf.mxu1  ;;  %v18055_v9 = vrot.slane %v17922_v14, %v14381_v24  ;;  %v6372_v26 = vrot.slane %v17930_v38, %v14381_v24 }
 0x2ea   :  { %v18045_v45 = vadd.f32 %v6123_v48, %v5867_v43  ;;  %v6124_v18 = vmul.f32 %v17987_v5, %v4372_v11  ;;  %v4181_v35 = vpop.f32.mrf.mxu0  ;;  %v5898_v32 = vmul.f32 %v17969_v49, %v17961_v6  ;;  %v5900_v47 = vmul.f32 %v17979_v22, %v17971_v30  ;;  %v13993_v11 = vld [vmem:[%s22941_s3 + $0x60] sm:$0xff]  }
 0x2eb   :  { %v18050_v29 = vadd.f32 %v6122_v12, %v5866_v56  ;;  %v6153_v1 = vmul.f32 %v17955_v27, %v4181_v35  ;;  %v4374_v33 = vpop.f32.mrf.mxu1  ;;  %v6368_v56 = vrot.slane %v17939_v60, %v14381_v24  ;;  %v6376_v6 = vrot.slane %v17943_v4, %v14381_v24 }
 0x2ec   :  { %v18059_v23 = vadd.f32 %v6124_v18, %v5868_v61  ;;  %v6155_v41 = vmul.f32 %v17965_v0, %v4374_v33  ;;  %v4183_v43 = vpop.f32.mrf.mxu0 }
 0x2ed   :  { %v18066_v27 = vadd.f32 %v6153_v1, %v5897_v13  ;;  %v6154_v48 = vmul.f32 %v17975_v52, %v4183_v43  ;;  %v4376_v44 = vpop.f32.mrf.mxu1 }
 0x2ee   :  { %v6283_v34 = vadd.f32 %v6155_v41, %v5899_v8  ;;  %v6156_v0 = vmul.f32 %v17987_v5, %v4376_v44  ;;  %v4187_v12 = vpop.f32.mrf.mxu0  ;;  %12457 = vmatmul.mubr.msk.bf16.gmra.mxu0 %vm2520_vm0, %v13993_v11 }
 0x2ef   :  { %v6282_v49 = vadd.f32 %v6154_v48, %v5898_v32  ;;  %v6441_v52 = vmul.f32 %v18055_v9, %v4187_v12  ;;  %v4380_v61 = vpop.f32.mrf.mxu1  ;;  %12473 = vmatmul.mubr.msk.bf16.gmra.mxu1 %vm2520_vm0, %v13993_v11  ;;  %4661 = vmatprep.mubr.bf16.mxu0 %v23120_v63 }
 0x2f0   :  { %v6284_v30 = vadd.f32 %v6156_v0, %v5900_v47  ;;  %v6443_v5 = vmul.f32 %v6372_v26, %v4380_v61  ;;  %v4189_v22 = vpop.f32.mrf.mxu0  ;;  %4854 = vmatprep.mubr.bf16.mxu1 %v23120_v63 }
 0x2f1   :  { %v6569_v18 = vadd.f32 %v6441_v52, %v17997_v20  ;;  %v6442_v35 = vmul.f32 %v6368_v56, %v4189_v22  ;;  %v4382_v13 = vpop.f32.mrf.mxu1 }
 0x2f2   :  { %v6571_v1 = vadd.f32 %v6443_v5, %v18001_v3  ;;  %v6444_v33 = vmul.f32 %v6376_v6, %v4382_v13  ;;  %v4191_v8 = vpop.f32.mrf.mxu0 }
 0x2f3   :  { %v6570_v41 = vadd.f32 %v6442_v35, %v18005_v59  ;;  %v6473_v43 = vmul.f32 %v18055_v9, %v4191_v8  ;;  %v4384_v32 = vpop.f32.mrf.mxu1  ;;  %v13994_v59 = vld [vmem:[%s22941_s3 + $0x68] sm:$0xff]  }
 0x2f4   :  { %v18089_v48 = vadd.f32 %v6444_v33, %v18009_v7  ;;  %v6475_v44 = vmul.f32 %v6372_v26, %v4384_v32  ;;  %v4193_v47 = vpop.f32.mrf.mxu0 }
 0x2f5   :  { %v18092_v0 = vadd.f32 %v6473_v43, %v18013_v15  ;;  %v6474_v20 = vmul.f32 %v6368_v56, %v4193_v47  ;;  %v4386_v12 = vpop.f32.mrf.mxu1  ;;  %v23216_v47 = vld [vmem:[#allocation12_spill] sm:$0xff] }
 0x2f6   :  { %v18095_v11 = vadd.f32 %v6475_v44, %v18018_v57  ;;  %v6476_v3 = vmul.f32 %v6376_v6, %v4386_v12  ;;  %v4197_v52 = vpop.f32.mrf.mxu0  ;;  %12458 = vmatmul.mubr.msk.bf16.gmra.mxu0 %vm2520_vm0, %v13994_v59 }
 0x2f7   :  { %v18102_v7 = vadd.f32 %v6474_v20, %v18027_v25  ;;  %v6505_v61 = vmul.f32 %v18055_v9, %v4197_v52  ;;  %v4390_v15 = vpop.f32.mrf.mxu1  ;;  %12474 = vmatmul.mubr.msk.bf16.gmra.mxu1 %vm2520_vm0, %v13994_v59  ;;  %4671 = vmatprep.mubr.bf16.mxu0 %v23120_v63  ;;  %v18123_v20 = vrot.slane %v17922_v14, %v23216_v47 }
 0x2f8   :  { %v18108_v57 = vadd.f32 %v6476_v3, %v18034_v39  ;;  %v6507_v5 = vmul.f32 %v6372_v26, %v4390_v15  ;;  %v4199_v22 = vpop.f32.mrf.mxu0  ;;  %4864 = vmatprep.mubr.bf16.mxu1 %v23120_v63 }
 0x2f9   :  { %v18112_v35 = vadd.f32 %v6505_v61, %v18040_v2  ;;  %v6506_v13 = vmul.f32 %v6368_v56, %v4199_v22  ;;  %v4392_v25 = vpop.f32.mrf.mxu1 }
 0x2fa   :  { %v18115_v33 = vadd.f32 %v6507_v5, %v18045_v45  ;;  %v6508_v8 = vmul.f32 %v6376_v6, %v4392_v25  ;;  %v4201_v43 = vpop.f32.mrf.mxu0  ;;  %v18130_v45 = vrot.slane %v17930_v38, %v23216_v47 }
 0x2fb   :  { %v18118_v32 = vadd.f32 %v6506_v13, %v18050_v29  ;;  %v6537_v39 = vmul.f32 %v18055_v9, %v4201_v43  ;;  %v4394_v44 = vpop.f32.mrf.mxu1  ;;  %v18137_v9 = vrot.slane %v17939_v60, %v23216_v47 }
 0x2fc   :  { %v18126_v2 = vadd.f32 %v6508_v8, %v18059_v23  ;;  %v6539_v12 = vmul.f32 %v6372_v26, %v4394_v44  ;;  %v4203_v3 = vpop.f32.mrf.mxu0  ;;  %v13995_v26 = vld [vmem:[%s22941_s3 + $0x70] sm:$0xff]  }
 0x2fd   :  { %v18133_v52 = vadd.f32 %v6537_v39, %v18066_v27  ;;  %v6538_v29 = vmul.f32 %v6368_v56, %v4203_v3  ;;  %v4396_v59 = vpop.f32.mrf.mxu1  ;;  %v18147_v27 = vrot.slane %v17943_v4, %v23216_v47 }
 0x2fe   :  { %v18139_v61 = vadd.f32 %v6539_v12, %v6283_v34  ;;  %v6540_v15 = vmul.f32 %v6376_v6, %v4396_v59  ;;  %v4207_v23 = vpop.f32.mrf.mxu0  ;;  %12459 = vmatmul.mubr.msk.bf16.gmra.mxu0 %vm2520_vm0, %v13995_v26 }
 0x2ff   :  { %v18149_v56 = vadd.f32 %v6538_v29, %v6282_v49  ;;  %v6825_v5 = vmul.f32 %v18123_v20, %v4207_v23  ;;  %v4400_v22 = vpop.f32.mrf.mxu1  ;;  %12475 = vmatmul.mubr.msk.bf16.gmra.mxu1 %vm2520_vm0, %v13995_v26  ;;  %4681 = vmatprep.mubr.bf16.mxu0 %v23120_v63  ;;  %v18170_v29 = vld [vmem:[%s22938_s0 + $0x50] sm:$0x77] }
 0x300   :  { %v18154_v34 = vadd.f32 %v6540_v15, %v6284_v30  ;;  %v6827_v6 = vmul.f32 %v18130_v45, %v4400_v22  ;;  %v4209_v13 = vpop.f32.mrf.mxu0  ;;  %4874 = vmatprep.mubr.bf16.mxu1 %v23120_v63  ;;  %v1399_v55 = vrot.slane %v18170_v29, %v14381_v24 }
 0x301   :  { %v18158_v25 = vadd.f32 %v6825_v5, %v6569_v18  ;;  %v6826_v8 = vmul.f32 %v18137_v9, %v4209_v13  ;;  %v4402_v49 = vpop.f32.mrf.mxu1 }
 0x302   :  { %v18161_v43 = vadd.f32 %v6827_v6, %v6571_v1  ;;  %v6828_v39 = vmul.f32 %v18147_v27, %v4402_v49  ;;  %v4211_v44 = vpop.f32.mrf.mxu0  ;;  %v750_v6 = vrot.slane %v18170_v29, %v14362_v16 }
 0x303   :  { %v18164_v12 = vadd.f32 %v6826_v8, %v6570_v41  ;;  %v6857_v30 = vmul.f32 %v18123_v20, %v4211_v44  ;;  %v4404_v3 = vpop.f32.mrf.mxu1  ;;  %v1075_v44 = vrot.slane %v18170_v29, %v14365_v17 }
 0x304   :  { %v18173_v18 = vadd.f32 %v6828_v39, %v18089_v48  ;;  %v6859_v59 = vmul.f32 %v18130_v45, %v4404_v3  ;;  %v4213_v1 = vpop.f32.mrf.mxu0  ;;  %v13996_v48 = vld [vmem:[%s22941_s3 + $0x78] sm:$0xff]  }
 0x305   :  { %v18177_v15 = vadd.f32 %v6857_v30, %v18092_v0  ;;  %v6858_v41 = vmul.f32 %v18137_v9, %v4213_v1  ;;  %v4406_v23 = vpop.f32.mrf.mxu1 }
 0x306   :  { %v18181_v26 = vadd.f32 %v6859_v59, %v18095_v11  ;;  %v6860_v5 = vmul.f32 %v18147_v27, %v4406_v23  ;;  %v4217_v22 = vpop.f32.mrf.mxu0  ;;  %12460 = vmatmul.mubr.msk.bf16.gmra.mxu0 %vm2520_vm0, %v13996_v48  ;;  %v910_v23 = vrot.slane %v750_v6, %v14362_v16  ;;  %v18232_v6 = vrot.slane %v17939_v60, %v14371_v19 }
 0x307   :  { %v18191_v0 = vadd.f32 %v6858_v41, %v18102_v7  ;;  %v6889_v13 = vmul.f32 %v18123_v20, %v4217_v22  ;;  %v4410_v8 = vpop.f32.mrf.mxu1  ;;  %12476 = vmatmul.mubr.msk.bf16.gmra.mxu1 %vm2520_vm0, %v13996_v48  ;;  %4917 = vmatprep.mubr.bf16.mxu0 %v23120_v63  ;;  %v18213_v41 = vrot.slane %v17922_v14, %v14371_v19 }
 0x308   :  { %v18197_v11 = vadd.f32 %v6860_v5, %v18108_v57  ;;  %v6891_v49 = vmul.f32 %v18130_v45, %v4410_v8  ;;  %v4219_v39 = vpop.f32.mrf.mxu0  ;;  %5110 = vmatprep.mubr.bf16.mxu1 %v23120_v63  ;;  %v72_v5 = vld [vmem:[%s22940_s2 + $0xf0] sm:$0xff]  ;;  %v57_v8 = vld [vmem:[%s22940_s2 + $0x78] sm:$0xff] }
 0x309   :  { %v18204_v7 = vadd.f32 %v6889_v13, %v18112_v35  ;;  %v6890_v30 = vmul.f32 %v18137_v9, %v4219_v39  ;;  %v4412_v3 = vpop.f32.mrf.mxu1  ;;  %v56_v35 = vld [vmem:[%s22940_s2 + $0x70] sm:$0xff]  ;;  %v18228_v13 = vrot.slane %v17930_v38, %v14371_v19 }
 0x30a   :  { %v18208_v59 = vadd.f32 %v6891_v49, %v18115_v33  ;;  %v6892_v57 = vmul.f32 %v18147_v27, %v4412_v3  ;;  %v4221_v1 = vpop.f32.mrf.mxu0  ;;  %v1235_v3 = vrot.slane %v1075_v44, %v14365_v17  ;;  %v13997_v44 = vld [vmem:[%s22941_s3] sm:$0xff]  }
 0x30b   :  { %v18223_v33 = vadd.f32 %v6890_v30, %v18118_v32  ;;  %v6921_v22 = vmul.f32 %v18123_v20, %v4221_v1  ;;  %v4414_v48 = vpop.f32.mrf.mxu1  ;;  %v73_v32 = vld [vmem:[%s22940_s2 + $0xf8] sm:$0xff]  ;;  %v18246_v30 = vrot.slane %v17943_v4, %v14371_v19 }
 0x30c   :  { %v18241_v49 = vadd.f32 %v6892_v57, %v18126_v2  ;;  %v6923_v20 = vmul.f32 %v18130_v45, %v4414_v48  ;;  %v4223_v39 = vpop.f32.mrf.mxu0  ;;  %v12250_v2 = vcombine.high %v56_v35, %v72_v5 }
 0x30d   :  { %v18250_v1 = vadd.f32 %v6921_v22, %v18133_v52  ;;  %v6922_v40 = vmul.f32 %v18137_v9, %v4223_v39  ;;  %v4416_v42 = vpop.f32.mrf.mxu1  ;;  %v980_v52 = vsub.f32 %v910_v23, %v23138_v58  ;;  %v12252_v9 = vcombine.high %v57_v8, %v73_v32 }
 0x30e   :  { %v18256_v57 = vadd.f32 %v6923_v20, %v18139_v61  ;;  %v6924_v45 = vmul.f32 %v18147_v27, %v4416_v42  ;;  %v4227_v48 = vpop.f32.mrf.mxu0  ;;  %12477 = vmatmul.mubr.msk.bf16.vlgmr.msra.gmra.mxu0 %vm2520_vm0, %v13997_v44  ;;  %v23217_v42 = vcombine.low %v17464_v21, %v17469_v28  ;;  %v12249_v61 = vcombine.low %v56_v35, %v72_v5  ;;  %v23221_v35 = vld [vmem:[#allocation8_spill] sm:$0xff] }
 0x30f   :  { %v18265_v22 = vadd.f32 %v6922_v40, %v18149_v56  ;;  %v7209_v39 = vmul.f32 %v18213_v41, %v4227_v48  ;;  %v4420_v10 = vpop.f32.mrf.mxu1  ;;  %12493 = vmatmul.mubr.msk.bf16.vlgmr.msra.gmra.mxu1 %vm2520_vm0, %v13997_v44  ;;  %v23220_v40 = vcombine.low %v23218_v31, %v23219_v46  ;;  %4927 = vmatprep.mubr.bf16.mxu0 %v23120_v63 }
 0x310   :  { %5284 = vmatpush1.bf16.msra.mxu0 %v23217_v42  ;;  %v18273_v27 = vadd.f32 %v6924_v45, %v18154_v34  ;;  %v7211_v20 = vmul.f32 %v18228_v13, %v4420_v10  ;;  %v4229_v23 = vpop.f32.mrf.mxu0  ;;  %v12251_v56 = vcombine.low %v57_v8, %v73_v32  ;;  %5120 = vmatprep.mubr.bf16.mxu1 %v23120_v63  ;;  %v18289_v10 = vld [vmem:[%s22938_s0 + $0x58] sm:$0x77] }
 0x311   :  { %5477 = vmatpush1.bf16.msra.mxu1 %v23220_v40  ;;  %v18281_v48 = vadd.f32 %v7209_v39, %v18158_v25  ;;  %v7210_v21 = vmul.f32 %v18232_v6, %v4229_v23  ;;  %v4422_v28 = vpop.f32.mrf.mxu1  ;;  %v1559_v34 = vrot.slane %v1399_v55, %v14381_v24  ;;  %5285 = vmatprep.subr.bf16.mxu0 %v12250_v2  ;;  %v13081_v55 = vld [vmem:[%s22942_s4 + $0x74] ss:$8 sps:$4 sm:$0xff]  }
 0x312   :  { %v18292_v31 = vadd.f32 %v7211_v20, %v18161_v43  ;;  %v7212_v46 = vmul.f32 %v18246_v30, %v4422_v28  ;;  %v4231_v25 = vpop.f32.mrf.mxu0  ;;  %v18297_v5 = vrot.slane %v17922_v14, %v23221_v35  ;;  %v1304_v8 = vsub.f32 %v1235_v3, %v14403_v36  ;;  %5478 = vmatprep.subr.bf16.mxu1 %v12252_v9  ;;  %v13084_v42 = vld [vmem:[%s22942_s4 + $0x174] ss:$8 sps:$4 sm:$0xff]  }
 0x313   :  { %v18304_v32 = vadd.f32 %v7210_v21, %v18164_v12  ;;  %v7241_v43 = vmul.f32 %v18213_v41, %v4231_v25  ;;  %v4424_v2 = vpop.f32.mrf.mxu1  ;;  %v18309_v45 = vrot.slane %v17930_v38, %v23221_v35  ;;  %v18313_v44 = vrot.slane %v17939_v60, %v23221_v35 }
 0x314   :  { %5286 = vmatpush1.bf16.msra.mxu0 %v12249_v61  ;;  %v18316_v3 = vadd.f32 %v7212_v46, %v18173_v18  ;;  %v7243_v9 = vmul.f32 %v18228_v13, %v4424_v2  ;;  %v4233_v39 = vpop.f32.mrf.mxu0  ;;  %v758_v12 = vrot.slane %v18289_v10, %v14362_v16  ;;  %v1628_v18 = vsub.f32 %v1559_v34, %v14421_v50  ;;  %v13998_v46 = vld [vmem:[%s22941_s3 + $0x8] sm:$0xff]  }
 0x315   :  { %5479 = vmatpush1.bf16.msra.mxu1 %v12251_v56  ;;  %11225 = vmatprep.subr.bf16.mxu0 %v13081_v55  ;;  %v18325_v20 = vadd.f32 %v7241_v43, %v18177_v15  ;;  %v7242_v61 = vmul.f32 %v18232_v6, %v4233_v39  ;;  %v4426_v23 = vpop.f32.mrf.mxu1  ;;  %v1660_v40 = vmul.f32 %v980_v52, %v980_v52 }
 0x316   :  { %v18330_v21 = vadd.f32 %v7243_v9, %v18181_v26  ;;  %v7244_v28 = vmul.f32 %v18246_v30, %v4426_v23  ;;  %v4237_v56 = vpop.f32.mrf.mxu0  ;;  %12478 = vmatmul.mubr.msk.bf16.gmra.mxu0 %vm2520_vm0, %v13998_v46  ;;  %v1692_v15 = vmul.f32 %v1304_v8, %v1304_v8  ;;  %11278 = vmatprep.subr.bf16.mxu1 %v13084_v42 }
 0x317   :  { %v18338_v25 = vadd.f32 %v7242_v61, %v18191_v0  ;;  %v7273_v34 = vmul.f32 %v18213_v41, %v4237_v56  ;;  %v4430_v52 = vpop.f32.mrf.mxu1  ;;  %12494 = vmatmul.mubr.msk.bf16.gmra.mxu1 %vm2520_vm0, %v13998_v46  ;;  %4937 = vmatprep.mubr.bf16.mxu0 %v23120_v63  ;;  %v18345_v26 = vrot.slane %v17943_v4, %v23221_v35  ;;  %v23222_v61 = vld [vmem:[#allocation11_spill] sm:$0xff] }
 0x318   :  { %v18348_v55 = vadd.f32 %v7244_v28, %v18197_v11  ;;  %v7275_v8 = vmul.f32 %v18228_v13, %v4430_v52  ;;  %v4239_v43 = vpop.f32.mrf.mxu0  ;;  %5130 = vmatprep.mubr.bf16.mxu1 %v23120_v63  ;;  %v918_v0 = vrot.slane %v758_v12, %v14362_v16  ;;  %v1083_v2 = vrot.slane %v18289_v10, %v14365_v17 }
 0x319   :  { %v18356_v9 = vadd.f32 %v7273_v34, %v18204_v7  ;;  %v7274_v39 = vmul.f32 %v18232_v6, %v4239_v43  ;;  %v4432_v42 = vpop.f32.mrf.mxu1  ;;  %v18361_v11 = vrot.slane %v17922_v14, %v23222_v61  ;;  %v18365_v23 = vrot.slane %v17930_v38, %v23222_v61 }
 0x31a   :  { %v18368_v28 = vadd.f32 %v7275_v8, %v18208_v59  ;;  %v7276_v12 = vmul.f32 %v18246_v30, %v4432_v42  ;;  %v4241_v56 = vpop.f32.mrf.mxu0  ;;  %v1724_v46 = vadd.f32 %v1692_v15, %v1660_v40  ;;  %v1756_v7 = vmul.f32 %v1628_v18, %v1628_v18 }
 0x31b   :  { %v18372_v34 = vadd.f32 %v7274_v39, %v18223_v33  ;;  %v7305_v52 = vmul.f32 %v18213_v41, %v4241_v56  ;;  %v4434_v43 = vpop.f32.mrf.mxu1  ;;  %v18377_v37 = vrot.slane %v17939_v60, %v23222_v61  ;;  %v18381_v53 = vrot.slane %v17943_v4, %v23222_v61 }
 0x31c   :  { %v18384_v59 = vadd.f32 %v7276_v12, %v18241_v49  ;;  %v7307_v40 = vmul.f32 %v18228_v13, %v4434_v43  ;;  %v4243_v18 = vpop.f32.mrf.mxu0  ;;  %v982_v33 = vsub.f32 %v918_v0, %v23138_v58  ;;  %v1243_v15 = vrot.slane %v1083_v2, %v14365_v17 }
 0x31d   :  { %v18390_v41 = vadd.f32 %v7305_v52, %v18250_v1  ;;  %v7306_v8 = vmul.f32 %v18232_v6, %v4243_v18  ;;  %v4436_v39 = vpop.f32.mrf.mxu1  ;;  %v1407_v42 = vrot.slane %v18289_v10, %v14381_v24  ;;  %v754_v49 = vrot.slane %v18170_v29, %v14371_v19  ;;  %v13999_v1 = vld [vmem:[%s22941_s3 + $0x10] sm:$0xff]  }
 0x31e   :  { %v18398_v12 = vadd.f32 %v7307_v40, %v18256_v57  ;;  %v7308_v13 = vmul.f32 %v18246_v30, %v4436_v39  ;;  %v4247_v0 = vpop.f32.mrf.mxu0  ;;  %12479 = vmatmul.mubr.msk.bf16.gmra.mxu0 %vm2520_vm0, %v13999_v1  ;;  %v18405_v6 = vadd.f32 %v1756_v7, %v1724_v46  ;;  %v1079_v2 = vrot.slane %v18170_v29, %v23221_v35 }
 0x31f   :  { %v18410_v56 = vadd.f32 %v7306_v8, %v18265_v22  ;;  %v7593_v57 = vmul.f32 %v18297_v5, %v4247_v0  ;;  %v4440_v52 = vpop.f32.mrf.mxu1  ;;  %12495 = vmatmul.mubr.msk.bf16.gmra.mxu1 %vm2520_vm0, %v13999_v1  ;;  %4947 = vmatprep.mubr.bf16.mxu0 %v23120_v63  ;;  %v762_v30 = vrot.slane %v18289_v10, %v14371_v19 }
 0x320   :  { %v18418_v43 = vadd.f32 %v7308_v13, %v18273_v27  ;;  %v7595_v46 = vmul.f32 %v18309_v45, %v4440_v52  ;;  %v4249_v7 = vpop.f32.mrf.mxu0  ;;  %5140 = vmatprep.mubr.bf16.mxu1 %v23120_v63  ;;  %v1306_v22 = vsub.f32 %v1243_v15, %v14403_v36  ;;  %v1087_v40 = vrot.slane %v18289_v10, %v23221_v35 }
 0x321   :  { %v18426_v18 = vadd.f32 %v7593_v57, %v18281_v48  ;;  %v7594_v8 = vmul.f32 %v18313_v44, %v4249_v7  ;;  %v4442_v39 = vpop.f32.mrf.mxu1  ;;  %v1567_v0 = vrot.slane %v1407_v42, %v14381_v24  ;;  %v914_v27 = vrot.slane %v754_v49, %v14362_v16 }
 0x322   :  { %v18432_v13 = vadd.f32 %v7595_v46, %v18292_v31  ;;  %v7596_v1 = vmul.f32 %v18345_v26, %v4442_v39  ;;  %v4251_v52 = vpop.f32.mrf.mxu0  ;;  %v1239_v15 = vrot.slane %v1079_v2, %v14365_v17  ;;  %v1403_v54 = vrot.slane %v18170_v29, %v23222_v61 }
 0x323   :  { %v18439_v48 = vadd.f32 %v7594_v8, %v18304_v32  ;;  %v7625_v57 = vmul.f32 %v18297_v5, %v4251_v52  ;;  %v4444_v7 = vpop.f32.mrf.mxu1  ;;  %v1662_v42 = vmul.f32 %v982_v33, %v982_v33  ;;  %v922_v49 = vrot.slane %v762_v30, %v14362_v16 }
 0x324   :  { %v18444_v31 = vadd.f32 %v7596_v1, %v18316_v3  ;;  %v7627_v46 = vmul.f32 %v18309_v45, %v4444_v7  ;;  %v4253_v39 = vpop.f32.mrf.mxu0  ;;  %v1247_v2 = vrot.slane %v1087_v40, %v14365_v17  ;;  %v1411_v29 = vrot.slane %v18289_v10, %v23222_v61  ;;  %v14000_v10 = vld [vmem:[%s22941_s3 + $0x18] sm:$0xff]  }
 0x325   :  { %v18451_v32 = vadd.f32 %v7625_v57, %v18325_v20  ;;  %v7626_v8 = vmul.f32 %v18313_v44, %v4253_v39  ;;  %v4446_v52 = vpop.f32.mrf.mxu1  ;;  %v1630_v33 = vsub.f32 %v1567_v0, %v14421_v50  ;;  %v981_v30 = vsub.f32 %v914_v27, %v23138_v58 }
 0x326   :  { %v18457_v3 = vadd.f32 %v7627_v46, %v18330_v21  ;;  %v7628_v1 = vmul.f32 %v18345_v26, %v4446_v52  ;;  %v4257_v7 = vpop.f32.mrf.mxu0  ;;  %12480 = vmatmul.mubr.msk.bf16.gmra.mxu0 %vm2520_vm0, %v14000_v10  ;;  %v1305_v20 = vsub.f32 %v1239_v15, %v14403_v36  ;;  %v1563_v40 = vrot.slane %v1403_v54, %v14381_v24 }
 0x327   :  { %v18467_v0 = vadd.f32 %v7626_v8, %v18338_v25  ;;  %v7657_v27 = vmul.f32 %v18297_v5, %v4257_v7  ;;  %v4450_v21 = vpop.f32.mrf.mxu1  ;;  %12496 = vmatmul.mubr.msk.bf16.gmra.mxu1 %vm2520_vm0, %v14000_v10  ;;  %4957 = vmatprep.mubr.bf16.mxu0 %v23120_v63  ;;  %v983_v57 = vsub.f32 %v922_v49, %v23138_v58  ;;  %13887 = vrsqrt.f32 %v18405_v6 }
 0x328   :  { %v18474_v46 = vadd.f32 %v7628_v1, %v18348_v55  ;;  %v7659_v39 = vmul.f32 %v18309_v45, %v4450_v21  ;;  %v4259_v15 = vpop.f32.mrf.mxu0  ;;  %5150 = vmatprep.mubr.bf16.mxu1 %v23120_v63  ;;  %v1307_v54 = vsub.f32 %v1247_v2, %v14403_v36  ;;  %v1571_v25 = vrot.slane %v1411_v29, %v14381_v24 }
 0x329   :  { %v18481_v8 = vadd.f32 %v7657_v27, %v18356_v9  ;;  %v7658_v52 = vmul.f32 %v18313_v44, %v4259_v15  ;;  %v4452_v7 = vpop.f32.mrf.mxu1  ;;  %v1694_v10 = vmul.f32 %v1306_v22, %v1306_v22  ;;  %v1661_v49 = vmul.f32 %v981_v30, %v981_v30 }
 0x32a   :  { %v18485_v55 = vadd.f32 %v7659_v39, %v18368_v28  ;;  %v7660_v1 = vmul.f32 %v18345_v26, %v4452_v7  ;;  %v4261_v21 = vpop.f32.mrf.mxu0  ;;  %v1629_v62 = vsub.f32 %v1563_v40, %v14421_v50  ;;  %v1693_v61 = vmul.f32 %v1305_v20, %v1305_v20 }
 0x32b   :  { %v18490_v2 = vadd.f32 %v7658_v52, %v18372_v34  ;;  %v7689_v9 = vmul.f32 %v18297_v5, %v4261_v21  ;;  %v4454_v29 = vpop.f32.mrf.mxu1  ;;  %v1663_v27 = vmul.f32 %v983_v57, %v983_v57  ;;  %v1631_v39 = vsub.f32 %v1571_v25, %v14421_v50 }
 0x32c   :  { %v18495_v22 = vadd.f32 %v7660_v1, %v18384_v59  ;;  %v7691_v28 = vmul.f32 %v18309_v45, %v4454_v29  ;;  %v4263_v30 = vpop.f32.mrf.mxu0  ;;  %v1695_v15 = vmul.f32 %v1307_v54, %v1307_v54  ;;  %v1726_v5 = vadd.f32 %v1694_v10, %v1662_v42  ;;  %v14001_v45 = vld [vmem:[%s22941_s3 + $0x20] sm:$0xff]  }
 0x32d   :  { %v18500_v20 = vadd.f32 %v7689_v9, %v18390_v41  ;;  %v7690_v34 = vmul.f32 %v18313_v44, %v4263_v30  ;;  %v4456_v40 = vpop.f32.mrf.mxu1  ;;  %v1758_v52 = vmul.f32 %v1630_v33, %v1630_v33  ;;  %v1725_v54 = vadd.f32 %v1693_v61, %v1661_v49 }
 0x32e   :  { %v18504_v7 = vadd.f32 %v7691_v28, %v18398_v12  ;;  %v7692_v59 = vmul.f32 %v18345_v26, %v4456_v40  ;;  %v4267_v57 = vpop.f32.mrf.mxu0  ;;  %12481 = vmatmul.mubr.msk.bf16.gmra.mxu0 %vm2520_vm0, %v14001_v45  ;;  %v1757_v41 = vmul.f32 %v1629_v62, %v1629_v62  ;;  %v1727_v61 = vadd.f32 %v1695_v15, %v1663_v27 }
 0x32f   :  { %v18512_v25 = vadd.f32 %v7690_v34, %v18410_v56  ;;  %v7977_v44 = vmul.f32 %v18361_v11, %v4267_v57  ;;  %v4460_v42 = vpop.f32.mrf.mxu1  ;;  %12497 = vmatmul.mubr.msk.bf16.gmra.mxu1 %vm2520_vm0, %v14001_v45  ;;  %4967 = vmatprep.mubr.bf16.mxu0 %v23120_v63  ;;  %v1759_v62 = vmul.f32 %v1631_v39, %v1631_v39  ;;  %vm1942_vm11 = vcmp.eq.f32.partialorder %v18405_v6, inf }
 0x330   :  { %v18518_v26 = vadd.f32 %v7692_v59, %v18418_v43  ;;  %v7979_v12 = vmul.f32 %v18365_v23, %v4460_v42  ;;  %v4269_v33 = vpop.f32.mrf.mxu0  ;;  %5160 = vmatprep.mubr.bf16.mxu1 %v23120_v63  ;;  %v18526_v1 = vadd.f32 %v1758_v52, %v1726_v5  ;;  %v18532_v29 = vadd.f32 %v1757_v41, %v1725_v54  ;;  %v14002_v59 = vld [vmem:[%s22941_s3 + $0x28] sm:$0xff]  }
 0x331   :  { %v18523_v56 = vadd.f32 %v7977_v44, %v18426_v18  ;;  %v7978_v10 = vmul.f32 %v18377_v37, %v4269_v33  ;;  %v4462_v49 = vpop.f32.mrf.mxu1  ;;  %v18542_v34 = vadd.f32 %v1759_v62, %v1727_v61  ;;  %vm1944_vm12 = vcmp.eq.f32.partialorder %v18405_v6, 0.0 }
 0x332   :  { %v18529_v21 = vadd.f32 %v7979_v12, %v18432_v13  ;;  %v7980_v43 = vmul.f32 %v18381_v53, %v4462_v49  ;;  %v4271_v9 = vpop.f32.mrf.mxu0  ;;  %13889 = vrsqrt.f32 %v18526_v1  ;;  %vm1956_vm13 = vcmp.eq.f32.partialorder %v18526_v1, inf }
 0x333   :  { %v18535_v28 = vadd.f32 %v7978_v10, %v18439_v48  ;;  %v8009_v27 = vmul.f32 %v18361_v11, %v4271_v9  ;;  %v4464_v18 = vpop.f32.mrf.mxu1  ;;  %13891 = vrsqrt.f32 %v18532_v29  ;;  %vm1958_vm14 = vcmp.eq.f32.partialorder %v18526_v1, 0.0 }
 0x334   :  { %v18539_v30 = vadd.f32 %v7980_v43, %v18444_v31  ;;  %v8011_v39 = vmul.f32 %v18365_v23, %v4464_v18  ;;  %v4273_v15 = vpop.f32.mrf.mxu0  ;;  %13893 = vrsqrt.f32 %v18542_v34  ;;  %v18584_v43 = vrot.slane %v17922_v14, %v15184_v51 }
 0x335   :  { %v18545_v13 = vadd.f32 %v8009_v27, %v18451_v32  ;;  %v8010_v40 = vmul.f32 %v18377_v37, %v4273_v15  ;;  %v4466_v5 = vpop.f32.mrf.mxu1  ;;  %v18592_v27 = vrot.slane %v17930_v38, %v15184_v51  ;;  %v18600_v14 = vrot.slane %v17939_v60, %v15184_v51  ;;  %v14003_v38 = vld [vmem:[%s22941_s3 + $0x30] sm:$0xff]  }
 0x336   :  { %v18550_v48 = vadd.f32 %v8011_v39, %v18457_v3  ;;  %v8012_v52 = vmul.f32 %v18381_v53, %v4466_v5  ;;  %v4277_v31 = vpop.f32.mrf.mxu0  ;;  %12482 = vmatmul.mubr.msk.bf16.gmra.mxu0 %vm2520_vm0, %v14002_v59  ;;  %v13888_v3 = vpop.eup %13887  ;;  %vm1949_vm15 = vcmp.eq.f32.partialorder %v18532_v29, inf  ;;  %vm1951_vm1 = vcmp.eq.f32.partialorder %v18532_v29, 0.0 }
 0x337   :  { %v18559_v32 = vadd.f32 %v8010_v40, %v18467_v0  ;;  %v8041_v57 = vmul.f32 %v18361_v11, %v4277_v31  ;;  %v4470_v45 = vpop.f32.mrf.mxu1  ;;  %12498 = vmatmul.mubr.msk.bf16.gmra.mxu1 %vm2520_vm0, %v14002_v59  ;;  %4977 = vmatprep.mubr.bf16.mxu0 %v23120_v63  ;;  %v1945_v31 = vand.u32 2147483648, %v18405_v6  ;;  %vm1963_vm2 = vcmp.eq.f32.partialorder %v18542_v34, inf }
 0x338   :  { %v18565_v54 = vadd.f32 %v8012_v52, %v18474_v46  ;;  %v8043_v41 = vmul.f32 %v18365_v23, %v4470_v45  ;;  %v4279_v44 = vpop.f32.mrf.mxu0  ;;  %5170 = vmatprep.mubr.bf16.mxu1 %v23120_v63  ;;  %vm1965_vm3 = vcmp.eq.f32.partialorder %v18542_v34, 0.0 }
 0x339   :  { %v18571_v0 = vadd.f32 %v8041_v57, %v18481_v8  ;;  %v8042_v42 = vmul.f32 %v18377_v37, %v4279_v44  ;;  %v4472_v12 = vpop.f32.mrf.mxu1 }
 0x33a   :  { %v18575_v33 = vadd.f32 %v8043_v41, %v18485_v55  ;;  %v8044_v61 = vmul.f32 %v18381_v53, %v4472_v12  ;;  %v4281_v46 = vpop.f32.mrf.mxu0 }
 0x33b   :  { %v18579_v62 = vadd.f32 %v8042_v42, %v18490_v2  ;;  %v8073_v10 = vmul.f32 %v18361_v11, %v4281_v46  ;;  %v4474_v49 = vpop.f32.mrf.mxu1 }
 0x33c   :  { %v18587_v8 = vadd.f32 %v8044_v61, %v18495_v22  ;;  %v8075_v9 = vmul.f32 %v18365_v23, %v4474_v49  ;;  %v4283_v55 = vpop.f32.mrf.mxu0 }
 0x33d   :  { %v18595_v2 = vadd.f32 %v8073_v10, %v18500_v20  ;;  %v8074_v11 = vmul.f32 %v18377_v37, %v4283_v55  ;;  %v4476_v18 = vpop.f32.mrf.mxu1  ;;  %v18612_v37 = vrot.slane %v17943_v4, %v15184_v51  ;;  %v1941_v20 = vmul.f32 %v13888_v3, %v18405_v6 }
 0x33e   :  { %v18603_v22 = vadd.f32 %v8075_v9, %v18504_v7  ;;  %v8076_v23 = vmul.f32 %v18381_v53, %v4476_v18  ;;  %v4287_v39 = vpop.f32.mrf.mxu0  ;;  %12483 = vmatmul.mubr.msk.bf16.gmra.mxu0 %vm2520_vm0, %v14003_v38  ;;  %v1959_v9 = vand.u32 2147483648, %v18526_v1  ;;  %v14004_v18 = vld [vmem:[%s22941_s3 + $0x38] sm:$0xff]  }
 0x33f   :  { %v18616_v60 = vadd.f32 %v8074_v11, %v18512_v25  ;;  %v8361_v7 = vmul.f32 %v18584_v43, %v4287_v39  ;;  %v4480_v15 = vpop.f32.mrf.mxu1  ;;  %12499 = vmatmul.mubr.msk.bf16.gmra.mxu1 %vm2520_vm0, %v14003_v38  ;;  %4987 = vmatprep.mubr.bf16.mxu0 %v23120_v63  ;;  %v13890_v59 = vpop.eup %13889  ;;  %v1943_v3 = vsel %vm1942_vm11, %v18405_v6, %v1941_v20 }
 0x340   :  { %v18623_v53 = vadd.f32 %v8076_v23, %v18518_v26  ;;  %v8363_v4 = vmul.f32 %v18592_v27, %v4480_v15  ;;  %v4289_v40 = vpop.f32.mrf.mxu0  ;;  %5180 = vmatprep.mubr.bf16.mxu1 %v23120_v63  ;;  %v13892_v41 = vpop.eup %13891  ;;  %v1946_v49 = vsel %vm1944_vm12, %v1945_v31, %v1943_v3 }
 0x341   :  { %v18628_v25 = vadd.f32 %v8361_v7, %v18523_v56  ;;  %v8362_v5 = vmul.f32 %v18600_v14, %v4289_v40  ;;  %v4482_v52 = vpop.f32.mrf.mxu1  ;;  %v13894_v46 = vpop.eup %13893  ;;  %v1948_v23 = vmul.f32 %v13892_v41, %v18532_v29 }
 0x342   :  { %v18633_v57 = vadd.f32 %v8363_v4, %v18529_v21  ;;  %v8364_v26 = vmul.f32 %v18612_v37, %v4482_v52  ;;  %v4291_v45 = vpop.f32.mrf.mxu0 }
 0x343   :  { %23223 = vst [vmem:[#allocation9_spill] sm:$0xff] %v18628_v25  ;;  %v18639_v56 = vadd.f32 %v8362_v5, %v18535_v28  ;;  %v8393_v44 = vmul.f32 %v18584_v43, %v4291_v45  ;;  %v4484_v42 = vpop.f32.mrf.mxu1 }
 0x344   :  { %23224 = vst [vmem:[#allocation13_spill] sm:$0xff] %v18633_v57  ;;  %v18643_v12 = vadd.f32 %v8364_v26, %v18539_v30  ;;  %v8395_v21 = vmul.f32 %v18592_v27, %v4484_v42  ;;  %v4293_v61 = vpop.f32.mrf.mxu0  ;;  %v1966_v42 = vand.u32 2147483648, %v18542_v34 }
 0x345   :  { %23225 = vst [vmem:[#allocation79_spill] sm:$0xff] %v18639_v56  ;;  %v18649_v6 = vadd.f32 %v8393_v44, %v18545_v13  ;;  %v8394_v28 = vmul.f32 %v18600_v14, %v4293_v61  ;;  %v4486_v10 = vpop.f32.mrf.mxu1  ;;  %v1955_v13 = vmul.f32 %v13890_v59, %v18526_v1  ;;  %v23291_v56 = vld [vmem:[#allocation28_spill] sm:$0xff] }
 0x346   :  { %23226 = vst [vmem:[#allocation80_spill] sm:$0xff] %v18643_v12  ;;  %v18654_v30 = vadd.f32 %v8395_v21, %v18550_v48  ;;  %v8396_v55 = vmul.f32 %v18612_v37, %v4486_v10  ;;  %v4297_v11 = vpop.f32.mrf.mxu0  ;;  %12484 = vmatmul.mubr.msk.bf16.gmra.mxu0 %vm2520_vm0, %v14004_v18 }
 0x347   :  { %23227 = vst [vmem:[#allocation81_spill] sm:$0xff] %v18649_v6  ;;  %v18666_v38 = vadd.f32 %v8394_v28, %v18559_v32  ;;  %v8425_v48 = vmul.f32 %v18584_v43, %v4297_v11  ;;  %v4490_v20 = vpop.f32.mrf.mxu1  ;;  %12500 = vmatmul.mubr.msk.bf16.gmra.mxu1 %vm2520_vm0, %v14004_v18  ;;  %4997 = vmatprep.mubr.bf16.mxu0 %v23120_v63  ;;  %v14005_v18 = vld [vmem:[%s22941_s3 + $0x40] sm:$0xff]  }
 0x348   :  { %23228 = vst [vmem:[#allocation82_spill] sm:$0xff] %v18654_v30  ;;  %v18675_v15 = vadd.f32 %v8396_v55, %v18565_v54  ;;  %v8427_v4 = vmul.f32 %v18592_v27, %v4490_v20  ;;  %v4299_v40 = vpop.f32.mrf.mxu0  ;;  %5190 = vmatprep.mubr.bf16.mxu1 %v23120_v63  ;;  %v1962_v32 = vmul.f32 %v13894_v46, %v18542_v34 }
 0x349   :  { %23229 = vst [vmem:[#allocation83_spill] sm:$0xff] %v18666_v38  ;;  %v18681_v5 = vadd.f32 %v8425_v48, %v18571_v0  ;;  %v8426_v52 = vmul.f32 %v18600_v14, %v4299_v40  ;;  %v4492_v31 = vpop.f32.mrf.mxu1  ;;  %v1957_v45 = vsel %vm1956_vm13, %v18526_v1, %v1955_v13  ;;  %v1952_v0 = vand.u32 2147483648, %v18532_v29 }
 0x34a   :  { %23230 = vst [vmem:[#allocation84_spill] sm:$0xff] %v18675_v15  ;;  %v18687_v54 = vadd.f32 %v8427_v4, %v18575_v33  ;;  %v8428_v59 = vmul.f32 %v18612_v37, %v4492_v31  ;;  %v4301_v26 = vpop.f32.mrf.mxu0  ;;  %v1950_v33 = vsel %vm1949_vm15, %v18532_v29, %v1948_v23  ;;  %v1964_v28 = vsel %vm1963_vm2, %v18542_v34, %v1962_v32 }
 0x34b   :  { %23231 = vst [vmem:[#allocation85_spill] sm:$0xff] %v18681_v5  ;;  %v18695_v3 = vadd.f32 %v8426_v52, %v18579_v62  ;;  %v8457_v41 = vmul.f32 %v18584_v43, %v4301_v26  ;;  %v4494_v44 = vpop.f32.mrf.mxu1  ;;  %v1960_v55 = vsel %vm1958_vm14, %v1959_v9, %v1957_v45 }
 0x34c   :  { %23232 = vst [vmem:[#allocation86_spill] sm:$0xff] %v18687_v54  ;;  %v18703_v21 = vadd.f32 %v8428_v59, %v18587_v8  ;;  %v8459_v61 = vmul.f32 %v18592_v27, %v4494_v44  ;;  %v4303_v46 = vpop.f32.mrf.mxu0  ;;  %v2046_v23 = vmul.f32 2.0833333, %v1960_v55 }
 0x34d   :  { %23233 = vst [vmem:[#allocation87_spill] sm:$0xff] %v18695_v3  ;;  %v18709_v62 = vadd.f32 %v8457_v41, %v18595_v2  ;;  %v8458_v43 = vmul.f32 %v18600_v14, %v4303_v46  ;;  %v4496_v10 = vpop.f32.mrf.mxu1  ;;  %v1953_v2 = vsel %vm1951_vm1, %v1952_v0, %v1950_v33 }
 0x34e   :  { %23234 = vst [vmem:[#allocation88_spill] sm:$0xff] %v18703_v21  ;;  %v18715_v11 = vadd.f32 %v8459_v61, %v18603_v22  ;;  %v8460_v8 = vmul.f32 %v18612_v37, %v4496_v10  ;;  %v4533_v27 = vpop.f32.mrf.mxu0  ;;  %12485 = vmatmul.mubr.msk.bf16.gmra.mxu0 %vm2520_vm0, %v14005_v18  ;;  %v2044_v22 = vmul.f32 2.0833333, %v1946_v49  ;;  %v1967_v37 = vsel %vm1965_vm3, %v1966_v42, %v1964_v28 }
 0x34f   :  { %23235 = vst [vmem:[#allocation89_spill] sm:$0xff] %v18709_v62  ;;  %v18727_v1 = vadd.f32 %v8458_v43, %v18616_v60  ;;  %v4726_v9 = vpop.f32.mrf.mxu1  ;;  %12501 = vmatmul.mubr.msk.bf16.gmra.mxu1 %vm2520_vm0, %v14005_v18  ;;  %5007 = vmatprep.mubr.bf16.mxu0 %v23120_v63  ;;  %v2045_v60 = vmul.f32 2.0833333, %v1953_v2  ;;  %v2047_v20 = vmul.f32 2.0833333, %v1967_v37  ;;  %v2078_v34 = vsub.f32 1.0, %v2046_v23 }
 0x350   :  { %23236 = vst [vmem:[#allocation90_spill] sm:$0xff] %v18715_v11  ;;  %v18736_v29 = vadd.f32 %v8460_v8, %v18623_v53  ;;  %v4535_v48 = vpop.f32.mrf.mxu0  ;;  %5200 = vmatprep.mubr.bf16.mxu1 %v23120_v63  ;;  %v2076_v40 = vsub.f32 1.0, %v2044_v22  ;;  %v14006_v53 = vld [vmem:[%s22941_s3 + $0x48] sm:$0xff]  }
 0x351   :  { %23237 = vst [vmem:[#allocation91_spill] sm:$0xff] %v18727_v1  ;;  %v4728_v49 = vpop.f32.mrf.mxu1  ;;  %v2077_v31 = vsub.f32 1.0, %v2045_v60  ;;  %v2079_v26 = vsub.f32 1.0, %v2047_v20  ;;  %v18751_v44 = vmax.f32 %v2078_v34, 0.0 }
 0x352   :  { %23238 = vst [vmem:[#allocation92_spill] sm:$0xff] %v18736_v29  ;;  %v4537_v4 = vpop.f32.mrf.mxu0  ;;  %v18745_v0 = vmax.f32 %v2076_v40, 0.0  ;;  %v14007_v40 = vld [vmem:[%s22941_s3 + $0x50] sm:$0xff]  }
 0x353   :  { %v4730_v32 = vpop.f32.mrf.mxu1  ;;  %23240 = vst [vmem:[#allocation94_spill] sm:$0xff] %v18751_v44  ;;  %v18756_v42 = vmax.f32 %v2077_v31, 0.0  ;;  %v18760_v46 = vmax.f32 %v2079_v26, 0.0  ;;  %v18776_v8 = vrot.slane %v18751_v44, %v14362_v16  ;;  %v18782_v2 = vrot.slane %v18751_v44, %v14365_v17  ;;  %v13079_v29 = vld [vmem:[%s22942_s4 + $0x70] ss:$8 sps:$4 sm:$0xff]  }
 0x354   :  { %v4539_v52 = vpop.f32.mrf.mxu0  ;;  %23239 = vst [vmem:[#allocation93_spill] sm:$0xff] %v18745_v0  ;;  %v18766_v43 = vrot.slane %v18745_v0, %v14362_v16  ;;  %v18772_v55 = vrot.slane %v18745_v0, %v14365_v17 }
 0x355   :  { %v4732_v59 = vpop.f32.mrf.mxu1  ;;  %23241 = vst [vmem:[#allocation95_spill] sm:$0xff] %v18756_v42  ;;  %v18786_v22 = vrot.slane %v18756_v42, %v14362_v16  ;;  %v18792_v23 = vrot.slane %v18756_v42, %v14365_v17  ;;  %v18796_v60 = vrot.slane %v18760_v46, %v14362_v16  ;;  %v18804_v34 = vrot.slane %v18760_v46, %v14365_v17 }
 0x356   :  { %v18739_v45 = vpop.f32.mrf.mxu0  ;;  %12486 = vmatmul.mubr.msk.bf16.gmra.mxu0 %vm2520_vm0, %v14006_v53  ;;  %v5805_v31 = vmul.f32 %v18766_v43, %v4533_v27  ;;  %v5807_v13 = vmul.f32 %v18776_v8, %v4726_v9  ;;  %v5837_v9 = vmul.f32 %v18766_v43, %v4537_v4 }
 0x357   :  { %v18747_v41 = vpop.f32.mrf.mxu1  ;;  %12502 = vmatmul.mubr.msk.bf16.gmra.mxu1 %vm2520_vm0, %v14006_v53  ;;  %5017 = vmatprep.mubr.bf16.mxu0 %v23120_v63  ;;  %v5806_v39 = vmul.f32 %v18786_v22, %v4535_v48  ;;  %v5839_v48 = vmul.f32 %v18776_v8, %v4730_v32  ;;  %v14008_v32 = vld [vmem:[%s22941_s3 + $0x58] sm:$0xff]  }
 0x358   :  { %v18753_v33 = vpop.f32.mrf.mxu0  ;;  %5210 = vmatprep.mubr.bf16.mxu1 %v23120_v63 }
 0x359   :  { %v18758_v61 = vpop.f32.mrf.mxu1 }
 0x35a   :  { %v18762_v28 = vpop.f32.mrf.mxu0 }
 0x35b   :  { %v18768_v10 = vpop.f32.mrf.mxu1 }
 0x35c   :  { %v18778_v18 = vpop.f32.mrf.mxu0 }
 0x35d   :  { %v18788_v37 = vpop.f32.mrf.mxu1 }
 0x35e   :  { %v4553_v20 = vpop.f32.mrf.mxu0  ;;  %12487 = vmatmul.mubr.msk.bf16.gmra.mxu0 %vm2520_vm0, %v14007_v40 }
 0x35f   :  { %v6061_v26 = vmul.f32 %v18772_v55, %v4553_v20  ;;  %v4746_v53 = vpop.f32.mrf.mxu1  ;;  %12503 = vmatmul.mubr.msk.bf16.gmra.mxu1 %vm2520_vm0, %v14007_v40  ;;  %5027 = vmatprep.mubr.bf16.mxu0 %v23120_v63  ;;  %v5808_v20 = vmul.f32 %v18796_v60, %v4728_v49 }
 0x360   :  { %v6063_v14 = vmul.f32 %v18782_v2, %v4746_v53  ;;  %v4555_v7 = vpop.f32.mrf.mxu0  ;;  %5220 = vmatprep.mubr.bf16.mxu1 %v23120_v63 }
 0x361   :  { %v18814_v54 = vadd.f32 %v6061_v26, %v5805_v31  ;;  %v6062_v27 = vmul.f32 %v18792_v23, %v4555_v7  ;;  %v4748_v11 = vpop.f32.mrf.mxu1 }
 0x362   :  { %v18818_v5 = vadd.f32 %v6063_v14, %v5807_v13  ;;  %v6064_v40 = vmul.f32 %v18804_v34, %v4748_v11  ;;  %v4557_v62 = vpop.f32.mrf.mxu0  ;;  %v5838_v14 = vmul.f32 %v18786_v22, %v4539_v52 }
 0x363   :  { %v18822_v53 = vadd.f32 %v6062_v27, %v5806_v39  ;;  %v6093_v57 = vmul.f32 %v18772_v55, %v4557_v62  ;;  %v4750_v30 = vpop.f32.mrf.mxu1  ;;  %v5840_v39 = vmul.f32 %v18796_v60, %v4732_v59  ;;  %v5871_v59 = vmul.f32 %v18776_v8, %v18747_v41 }
 0x364   :  { %v18826_v31 = vadd.f32 %v6064_v40, %v5808_v20  ;;  %v6095_v7 = vmul.f32 %v18782_v2, %v4750_v30  ;;  %v4559_v26 = vpop.f32.mrf.mxu0 }
 0x365   :  { %v18830_v13 = vadd.f32 %v6093_v57, %v5837_v9  ;;  %v6094_v11 = vmul.f32 %v18792_v23, %v4559_v26  ;;  %v4752_v49 = vpop.f32.mrf.mxu1  ;;  %v5869_v57 = vmul.f32 %v18766_v43, %v18739_v45  ;;  %v5870_v45 = vmul.f32 %v18786_v22, %v18753_v33 }
 0x366   :  { %v18834_v4 = vadd.f32 %v6095_v7, %v5839_v48  ;;  %v6096_v62 = vmul.f32 %v18804_v34, %v4752_v49  ;;  %v4563_v27 = vpop.f32.mrf.mxu0  ;;  %12488 = vmatmul.mubr.msk.bf16.gmra.mxu0 %vm2520_vm0, %v14008_v32 }
 0x367   :  { %v18843_v30 = vadd.f32 %v6094_v11, %v5838_v14  ;;  %v6125_v52 = vmul.f32 %v18772_v55, %v4563_v27  ;;  %v4756_v20 = vpop.f32.mrf.mxu1  ;;  %12504 = vmatmul.mubr.msk.bf16.gmra.mxu1 %vm2520_vm0, %v14008_v32  ;;  %5037 = vmatprep.mubr.bf16.mxu0 %v23120_v63  ;;  %v5872_v11 = vmul.f32 %v18796_v60, %v18758_v61 }
 0x368   :  { %v18850_v40 = vadd.f32 %v6096_v62, %v5840_v39  ;;  %v6127_v9 = vmul.f32 %v18782_v2, %v4756_v20  ;;  %v4565_v48 = vpop.f32.mrf.mxu0  ;;  %5230 = vmatprep.mubr.bf16.mxu1 %v23120_v63  ;;  %v5901_v62 = vmul.f32 %v18766_v43, %v18762_v28  ;;  %v5903_v61 = vmul.f32 %v18776_v8, %v18768_v10 }
 0x369   :  { %v18856_v7 = vadd.f32 %v6125_v52, %v5869_v57  ;;  %v6126_v26 = vmul.f32 %v18792_v23, %v4565_v48  ;;  %v4758_v14 = vpop.f32.mrf.mxu1  ;;  %v18871_v57 = vrot.slane %v18745_v0, %v14381_v24  ;;  %v6388_v28 = vrot.slane %v18751_v44, %v14381_v24 }
 0x36a   :  { %v18861_v49 = vadd.f32 %v6127_v9, %v5871_v59  ;;  %v6128_v41 = vmul.f32 %v18804_v34, %v4758_v14  ;;  %v4567_v39 = vpop.f32.mrf.mxu0  ;;  %v5902_v43 = vmul.f32 %v18786_v22, %v18778_v18  ;;  %v5904_v10 = vmul.f32 %v18796_v60, %v18788_v37  ;;  %v14009_v14 = vld [vmem:[%s22941_s3 + $0x60] sm:$0xff]  }
 0x36b   :  { %v18866_v27 = vadd.f32 %v6126_v26, %v5870_v45  ;;  %v6157_v33 = vmul.f32 %v18772_v55, %v4567_v39  ;;  %v4760_v32 = vpop.f32.mrf.mxu1  ;;  %v6384_v45 = vrot.slane %v18756_v42, %v14381_v24  ;;  %v6392_v18 = vrot.slane %v18760_v46, %v14381_v24 }
 0x36c   :  { %v18875_v52 = vadd.f32 %v6128_v41, %v5872_v11  ;;  %v6159_v20 = vmul.f32 %v18782_v2, %v4760_v32  ;;  %v4569_v59 = vpop.f32.mrf.mxu0 }
 0x36d   :  { %v18882_v55 = vadd.f32 %v6157_v33, %v5901_v62  ;;  %v6158_v9 = vmul.f32 %v18792_v23, %v4569_v59  ;;  %v4762_v48 = vpop.f32.mrf.mxu1 }
 0x36e   :  { %v6287_v8 = vadd.f32 %v6159_v20, %v5903_v61  ;;  %v6160_v2 = vmul.f32 %v18804_v34, %v4762_v48  ;;  %v4573_v26 = vpop.f32.mrf.mxu0  ;;  %12489 = vmatmul.mubr.msk.bf16.gmra.mxu0 %vm2520_vm0, %v14009_v14 }
 0x36f   :  { %v18896_v22 = vadd.f32 %v6158_v9, %v5902_v43  ;;  %v6445_v23 = vmul.f32 %v18871_v57, %v4573_v26  ;;  %v4766_v11 = vpop.f32.mrf.mxu1  ;;  %12505 = vmatmul.mubr.msk.bf16.gmra.mxu1 %vm2520_vm0, %v14009_v14  ;;  %5047 = vmatprep.mubr.bf16.mxu0 %v23120_v63 }
 0x370   :  { %v18901_v37 = vadd.f32 %v6160_v2, %v5904_v10  ;;  %v6447_v60 = vmul.f32 %v6388_v28, %v4766_v11  ;;  %v4575_v34 = vpop.f32.mrf.mxu0  ;;  %5240 = vmatprep.mubr.bf16.mxu1 %v23120_v63 }
 0x371   :  { %v18905_v41 = vadd.f32 %v6445_v23, %v18814_v54  ;;  %v6446_v39 = vmul.f32 %v6384_v45, %v4575_v34  ;;  %v4768_v62 = vpop.f32.mrf.mxu1 }
 0x372   :  { %v18908_v33 = vadd.f32 %v6447_v60, %v18818_v5  ;;  %v6448_v32 = vmul.f32 %v6392_v18, %v4768_v62  ;;  %v4577_v61 = vpop.f32.mrf.mxu0 }
 0x373   :  { %v18911_v20 = vadd.f32 %v6446_v39, %v18822_v53  ;;  %v6477_v59 = vmul.f32 %v18871_v57, %v4577_v61  ;;  %v4770_v43 = vpop.f32.mrf.mxu1  ;;  %v14010_v53 = vld [vmem:[%s22941_s3 + $0x68] sm:$0xff]  }
 0x374   :  { %v18915_v9 = vadd.f32 %v6448_v32, %v18826_v31  ;;  %v6479_v48 = vmul.f32 %v6388_v28, %v4770_v43  ;;  %v4579_v10 = vpop.f32.mrf.mxu0 }
 0x375   :  { %v18918_v54 = vadd.f32 %v6477_v59, %v18830_v13  ;;  %v6478_v2 = vmul.f32 %v6384_v45, %v4579_v10  ;;  %v4772_v26 = vpop.f32.mrf.mxu1  ;;  %v18949_v10 = vrot.slane %v18745_v0, %v23216_v47 }
 0x376   :  { %v18921_v5 = vadd.f32 %v6479_v48, %v18834_v4  ;;  %v6480_v14 = vmul.f32 %v6392_v18, %v4772_v26  ;;  %v4583_v23 = vpop.f32.mrf.mxu0  ;;  %12490 = vmatmul.mubr.msk.bf16.gmra.mxu0 %vm2520_vm0, %v14010_v53 }
 0x377   :  { %v18928_v31 = vadd.f32 %v6478_v2, %v18843_v30  ;;  %v6509_v11 = vmul.f32 %v18871_v57, %v4583_v23  ;;  %v4776_v13 = vpop.f32.mrf.mxu1  ;;  %12506 = vmatmul.mubr.msk.bf16.gmra.mxu1 %vm2520_vm0, %v14010_v53  ;;  %5057 = vmatprep.mubr.bf16.mxu0 %v23120_v63 }
 0x378   :  { %v18934_v4 = vadd.f32 %v6480_v14, %v18850_v40  ;;  %v6511_v60 = vmul.f32 %v6388_v28, %v4776_v13  ;;  %v4585_v34 = vpop.f32.mrf.mxu0  ;;  %5250 = vmatprep.mubr.bf16.mxu1 %v23120_v63 }
 0x379   :  { %v18938_v39 = vadd.f32 %v6509_v11, %v18856_v7  ;;  %v6510_v62 = vmul.f32 %v6384_v45, %v4585_v34  ;;  %v4778_v30 = vpop.f32.mrf.mxu1 }
 0x37a   :  { %v18941_v32 = vadd.f32 %v6511_v60, %v18861_v49  ;;  %v6512_v61 = vmul.f32 %v6392_v18, %v4778_v30  ;;  %v4587_v59 = vpop.f32.mrf.mxu0  ;;  %v18956_v49 = vrot.slane %v18751_v44, %v23216_v47 }
 0x37b   :  { %v18944_v43 = vadd.f32 %v6510_v62, %v18866_v27  ;;  %v6541_v40 = vmul.f32 %v18871_v57, %v4587_v59  ;;  %v4780_v48 = vpop.f32.mrf.mxu1  ;;  %v18963_v57 = vrot.slane %v18756_v42, %v23216_v47 }
 0x37c   :  { %v18952_v7 = vadd.f32 %v6512_v61, %v18875_v52  ;;  %v6543_v2 = vmul.f32 %v6388_v28, %v4780_v48  ;;  %v4589_v26 = vpop.f32.mrf.mxu0  ;;  %v14011_v28 = vld [vmem:[%s22941_s3 + $0x70] sm:$0xff]  }
 0x37d   :  { %v18959_v14 = vadd.f32 %v6541_v40, %v18882_v55  ;;  %v6542_v27 = vmul.f32 %v6384_v45, %v4589_v26  ;;  %v4782_v23 = vpop.f32.mrf.mxu1  ;;  %v18973_v55 = vrot.slane %v18760_v46, %v23216_v47  ;;  %v18978_v45 = vld [vmem:[%s22938_s0 + $0x60] sm:$0x77] }
 0x37e   :  { %v18965_v53 = vadd.f32 %v6543_v2, %v6287_v8  ;;  %v6544_v11 = vmul.f32 %v6392_v18, %v4782_v23  ;;  %v4593_v52 = vpop.f32.mrf.mxu0  ;;  %12491 = vmatmul.mubr.msk.bf16.gmra.mxu0 %vm2520_vm0, %v14011_v28  ;;  %v766_v59 = vrot.slane %v18978_v45, %v14362_v16  ;;  %v1091_v2 = vrot.slane %v18978_v45, %v14365_v17 }
 0x37f   :  { %v18981_v8 = vadd.f32 %v6542_v27, %v18896_v22  ;;  %v6829_v18 = vmul.f32 %v18949_v10, %v4593_v52  ;;  %v4786_v13 = vpop.f32.mrf.mxu1  ;;  %12507 = vmatmul.mubr.msk.bf16.gmra.mxu1 %vm2520_vm0, %v14011_v28  ;;  %5067 = vmatprep.mubr.bf16.mxu0 %v23120_v63  ;;  %v19017_v28 = vrot.slane %v18751_v44, %v14371_v19 }
 0x380   :  { %v18987_v60 = vadd.f32 %v6544_v11, %v18901_v37  ;;  %v6831_v34 = vmul.f32 %v18956_v49, %v4786_v13  ;;  %v4595_v62 = vpop.f32.mrf.mxu0  ;;  %5260 = vmatprep.mubr.bf16.mxu1 %v23120_v63 }
 0x381   :  { %v18992_v30 = vadd.f32 %v6829_v18, %v18905_v41  ;;  %v6830_v22 = vmul.f32 %v18963_v57, %v4595_v62  ;;  %v4788_v61 = vpop.f32.mrf.mxu1 }
 0x382   :  { %v18998_v40 = vadd.f32 %v6831_v34, %v18908_v33  ;;  %v6832_v37 = vmul.f32 %v18973_v55, %v4788_v61  ;;  %v4597_v48 = vpop.f32.mrf.mxu0  ;;  %v19013_v33 = vrot.slane %v18745_v0, %v14371_v19  ;;  %v926_v34 = vrot.slane %v766_v59, %v14362_v16 }
 0x383   :  { %v19004_v26 = vadd.f32 %v6830_v22, %v18911_v20  ;;  %v6861_v41 = vmul.f32 %v18949_v10, %v4597_v48  ;;  %v4790_v27 = vpop.f32.mrf.mxu1  ;;  %v1251_v48 = vrot.slane %v1091_v2, %v14365_v17 }
 0x384   :  { %v19008_v23 = vadd.f32 %v6832_v37, %v18915_v9  ;;  %v6863_v11 = vmul.f32 %v18956_v49, %v4790_v27  ;;  %v4599_v52 = vpop.f32.mrf.mxu0  ;;  %v19025_v9 = vrot.slane %v18756_v42, %v14371_v19  ;;  %v19038_v37 = vrot.slane %v18760_v46, %v14371_v19 }
 0x385   :  { %v19020_v20 = vadd.f32 %v6861_v41, %v18918_v54  ;;  %v6862_v18 = vmul.f32 %v18963_v57, %v4599_v52  ;;  %v4792_v13 = vpop.f32.mrf.mxu1  ;;  %v14012_v54 = vld [vmem:[%s22941_s3 + $0x78] sm:$0xff]   ;;  %v19049_v27 = vrot.slane %v18745_v0, %v23221_v35  ;;  %v1308_v51 = vsub.f32 %v1251_v48, %v14403_v36 }
 0x386   :  { %v19029_v62 = vadd.f32 %v6863_v11, %v18921_v5  ;;  %v6864_v22 = vmul.f32 %v18973_v55, %v4792_v13  ;;  %v4603_v61 = vpop.f32.mrf.mxu0  ;;  %12492 = vmatmul.mubr.msk.bf16.gmra.mxu0 %vm2520_vm0, %v14012_v54  ;;  %v19054_v11 = vld [vmem:[%s22938_s0 + $0x68] sm:$0x77]  ;;  %v19067_v13 = vrot.slane %v18756_v42, %v23221_v35 }
 0x387   :  { %v19042_v59 = vadd.f32 %v6862_v18, %v18928_v31  ;;  %v6893_v5 = vmul.f32 %v18949_v10, %v4603_v61  ;;  %v4796_v41 = vpop.f32.mrf.mxu1  ;;  %12508 = vmatmul.mubr.msk.bf16.gmra.mxu1 %vm2520_vm0, %v14012_v54  ;;  %5303 = vmatprep.mubr.bf16.mxu0 %v23120_v63  ;;  %v19063_v18 = vrot.slane %v18751_v44, %v23221_v35 }
 0x388   :  { %v19057_v2 = vadd.f32 %v6864_v22, %v18934_v4  ;;  %v6895_v31 = vmul.f32 %v18956_v49, %v4796_v41  ;;  %v4605_v52 = vpop.f32.mrf.mxu0  ;;  %5496 = vmatprep.mubr.bf16.mxu1 %v23120_v63  ;;  %v984_v22 = vsub.f32 %v926_v34, %v23138_v58  ;;  %v1415_v41 = vrot.slane %v18978_v45, %v14381_v24 }
 0x389   :  { %v19070_v61 = vadd.f32 %v6893_v5, %v18938_v39  ;;  %v6894_v54 = vmul.f32 %v18963_v57, %v4605_v52  ;;  %v4798_v4 = vpop.f32.mrf.mxu1  ;;  %v774_v39 = vrot.slane %v19054_v11, %v14362_v16  ;;  %v1099_v48 = vrot.slane %v19054_v11, %v14365_v17 }
 0x38a   :  { %v19077_v25 = vadd.f32 %v6895_v31, %v18941_v32  ;;  %v6896_v6 = vmul.f32 %v18973_v55, %v4798_v4  ;;  %v4607_v47 = vpop.f32.mrf.mxu0  ;;  %v19092_v32 = vrot.slane %v18760_v46, %v23221_v35  ;;  %v1664_v3 = vmul.f32 %v984_v22, %v984_v22 }
 0x38b   :  { %v19084_v5 = vadd.f32 %v6894_v54, %v18944_v43  ;;  %v6925_v52 = vmul.f32 %v18949_v10, %v4607_v47  ;;  %v4800_v34 = vpop.f32.mrf.mxu1  ;;  %v13082_v47 = vld [vmem:[%s22942_s4 + $0x170] ss:$8 sps:$4 sm:$0xff]  }
 0x38c   :  { %v19097_v31 = vadd.f32 %v6896_v6, %v18952_v7  ;;  %v6927_v43 = vmul.f32 %v18956_v49, %v4800_v34  ;;  %v4609_v54 = vpop.f32.mrf.mxu0  ;;  %v23242_v10 = vld [vmem:[#allocation11_spill] sm:$0xff]  ;;  %v13087_v49 = vld [vmem:[%s22942_s4 + $0x64] ss:$8 sps:$4 sm:$0xff]   ;;  %v1575_v34 = vrot.slane %v1415_v41, %v14381_v24  ;;  %v934_v41 = vrot.slane %v774_v39, %v14362_v16 }
 0x38d   :  { %v19105_v4 = vrot.slane %v18745_v0, %v23242_v10  ;;  %v19109_v21 = vrot.slane %v18751_v44, %v23242_v10  ;;  %v19112_v1 = vadd.f32 %v6925_v52, %v18959_v14  ;;  %v6926_v6 = vmul.f32 %v18963_v57, %v4609_v54  ;;  %v4802_v7 = vpop.f32.mrf.mxu1  ;;  %v14013_v14 = vld [vmem:[%s22941_s3] sm:$0xff]  }
 0x38e   :  { %v19120_v0 = vadd.f32 %v6927_v43, %v18965_v53  ;;  %v4613_v44 = vpop.f32.mrf.mxu0  ;;  %12509 = vmatmul.mubr.msk.bf16.vlgmr.msra.gmra.mxu0 %vm2520_vm0, %v14013_v14  ;;  %v13090_v57 = vld [vmem:[%s22942_s4 + $0x164] ss:$8 sps:$4 sm:$0xff]   ;;  %v1696_v52 = vmul.f32 %v1308_v51, %v1308_v51  ;;  %v13085_v43 = vld [vmem:[%s22942_s4 + $0x60] ss:$8 sps:$4 sm:$0xff]   ;;  %v1259_v54 = vrot.slane %v1099_v48, %v14365_v17 }
 0x38f   :  { %23243 = vst [vmem:[#allocation96_spill] sm:$0xff] %v19105_v4  ;;  %23244 = vst [vmem:[#allocation97_spill] sm:$0xff] %v19109_v21  ;;  %v6928_v4 = vmul.f32 %v18973_v55, %v4802_v7  ;;  %v19132_v22 = vadd.f32 %v6926_v6, %v18981_v8  ;;  %v7213_v53 = vmul.f32 %v19013_v33, %v4613_v44  ;;  %v4806_v55 = vpop.f32.mrf.mxu1  ;;  %12525 = vmatmul.mubr.msk.bf16.vlgmr.msra.gmra.mxu1 %vm2520_vm0, %v14013_v14  ;;  %v13088_v44 = vld [vmem:[%s22942_s4 + $0x160] ss:$8 sps:$4 sm:$0xff]  }
 0x390   :  { %11226 = vmatpush1.bf16.msra.mxu0 %v13079_v29  ;;  %v7215_v51 = vmul.f32 %v19017_v28, %v4806_v55  ;;  %v4615_v39 = vpop.f32.mrf.mxu0  ;;  %11279 = vmatpush1.bf16.msra.mxu1 %v13082_v47  ;;  %v13093_v29 = vld [vmem:[%s22942_s4 + $0x54] ss:$8 sps:$4 sm:$0xff]   ;;  %v19153_v8 = vrot.slane %v18756_v42, %v23242_v10  ;;  %v1632_v6 = vsub.f32 %v1575_v34, %v14421_v50 }
 0x391   :  { %v19141_v7 = vadd.f32 %v6928_v4, %v18987_v60  ;;  %5313 = vmatprep.mubr.bf16.mxu0 %v23120_v63  ;;  %v19156_v60 = vadd.f32 %v7213_v53, %v18992_v30  ;;  %v7214_v48 = vmul.f32 %v19025_v9, %v4615_v39  ;;  %v4808_v47 = vpop.f32.mrf.mxu1  ;;  %5506 = vmatprep.mubr.bf16.mxu1 %v23120_v63  ;;  %v13096_v4 = vld [vmem:[%s22942_s4 + $0x154] ss:$8 sps:$4 sm:$0xff]  }
 0x392   :  { %23245 = vst [vmem:[#allocation98_spill] sm:$0xff] %v19153_v8  ;;  %11227 = vmatprep.subr.bf16.mxu0 %v13087_v49  ;;  %v19165_v14 = vadd.f32 %v7215_v51, %v18998_v40  ;;  %v7216_v55 = vmul.f32 %v19038_v37, %v4808_v47  ;;  %v4617_v42 = vpop.f32.mrf.mxu0  ;;  %11280 = vmatprep.subr.bf16.mxu1 %v13090_v57 }
 0x393   :  { %v986_v30 = vsub.f32 %v934_v41, %v23138_v58  ;;  %v1423_v53 = vrot.slane %v19054_v11, %v14381_v24  ;;  %v19172_v49 = vadd.f32 %v7214_v48, %v19004_v26  ;;  %v7245_v39 = vmul.f32 %v19013_v33, %v4617_v42  ;;  %v4810_v8 = vpop.f32.mrf.mxu1  ;;  %v13091_v41 = vld [vmem:[%s22942_s4 + $0x50] ss:$8 sps:$4 sm:$0xff]   ;;  %v14014_v48 = vld [vmem:[%s22941_s3 + $0x8] sm:$0xff]  }
 0x394   :  { %11228 = vmatpush1.bf16.msra.mxu0 %v13085_v43  ;;  %v1728_v34 = vadd.f32 %v1696_v52, %v1664_v3  ;;  %v1310_v40 = vsub.f32 %v1259_v54, %v14403_v36  ;;  %v19177_v51 = vadd.f32 %v7216_v55, %v19008_v23  ;;  %v7247_v57 = vmul.f32 %v19017_v28, %v4810_v8  ;;  %v4619_v47 = vpop.f32.mrf.mxu0  ;;  %v13094_v23 = vld [vmem:[%s22942_s4 + $0x150] ss:$8 sps:$4 sm:$0xff]   ;;  %v13099_v43 = vld [vmem:[%s22942_s4 + $0x44] ss:$8 sps:$4 sm:$0xff]  }
 0x395   :  { %11281 = vmatpush1.bf16.msra.mxu1 %v13088_v44  ;;  %11229 = vmatprep.subr.bf16.mxu0 %v13093_v29  ;;  %v770_v42 = vrot.slane %v18978_v45, %v14371_v19  ;;  %v19186_v26 = vadd.f32 %v7245_v39, %v19020_v20  ;;  %v7246_v3 = vmul.f32 %v19025_v9, %v4619_v47  ;;  %v4812_v52 = vpop.f32.mrf.mxu1 }
 0x396   :  { %11282 = vmatprep.subr.bf16.mxu1 %v13096_v4  ;;  %v1760_v54 = vmul.f32 %v1632_v6, %v1632_v6  ;;  %v1095_v44 = vrot.slane %v18978_v45, %v23221_v35  ;;  %v19198_v29 = vadd.f32 %v7247_v57, %v19029_v62  ;;  %v7248_v20 = vmul.f32 %v19038_v37, %v4812_v52  ;;  %v4623_v8 = vpop.f32.mrf.mxu0  ;;  %v13102_v4 = vld [vmem:[%s22942_s4 + $0x144] ss:$8 sps:$4 sm:$0xff]  }
 0x397   :  { %12510 = vmatmul.mubr.msk.bf16.gmra.mxu0 %vm2520_vm0, %v14014_v48  ;;  %v1583_v6 = vrot.slane %v1423_v53, %v14381_v24  ;;  %v1666_v55 = vmul.f32 %v986_v30, %v986_v30  ;;  %v19210_v39 = vadd.f32 %v7246_v3, %v19042_v59  ;;  %v7277_v62 = vmul.f32 %v19013_v33, %v4623_v8  ;;  %v4816_v57 = vpop.f32.mrf.mxu1  ;;  %v13097_v59 = vld [vmem:[%s22942_s4 + $0x40] ss:$8 sps:$4 sm:$0xff]  }
 0x398   :  { %12526 = vmatmul.mubr.msk.bf16.gmra.mxu1 %vm2520_vm0, %v14014_v48  ;;  %5323 = vmatprep.mubr.bf16.mxu0 %v23120_v63  ;;  %v1698_v47 = vmul.f32 %v1310_v40, %v1310_v40  ;;  %v19216_v52 = vadd.f32 %v7248_v20, %v19057_v2  ;;  %v7279_v21 = vmul.f32 %v19017_v28, %v4816_v57  ;;  %v4625_v15 = vpop.f32.mrf.mxu0  ;;  %v13100_v2 = vld [vmem:[%s22942_s4 + $0x140] ss:$8 sps:$4 sm:$0xff]  }
 0x399   :  { %5516 = vmatprep.mubr.bf16.mxu1 %v23120_v63  ;;  %11230 = vmatpush1.bf16.msra.mxu0 %v13091_v41  ;;  %v930_v30 = vrot.slane %v770_v42, %v14362_v16  ;;  %v19225_v53 = vadd.f32 %v7277_v62, %v19070_v61  ;;  %v7278_v40 = vmul.f32 %v19025_v9, %v4625_v15  ;;  %v4818_v3 = vpop.f32.mrf.mxu1  ;;  %v13105_v41 = vld [vmem:[%s22942_s4 + $0x34] ss:$8 sps:$4 sm:$0xff]  }
 0x39a   :  { %11283 = vmatpush1.bf16.msra.mxu1 %v13094_v23  ;;  %11231 = vmatprep.subr.bf16.mxu0 %v13099_v43  ;;  %v1255_v20 = vrot.slane %v1095_v44, %v14365_v17  ;;  %v19236_v42 = vadd.f32 %v7279_v21, %v19077_v25  ;;  %v7280_v61 = vmul.f32 %v19038_v37, %v4818_v3  ;;  %v4627_v8 = vpop.f32.mrf.mxu0  ;;  %v13108_v15 = vld [vmem:[%s22942_s4 + $0x134] ss:$8 sps:$4 sm:$0xff]   ;;  %v13114_v3 = vld [vmem:[%s22942_s4 + $0x124] ss:$8 sps:$4 sm:$0xff]  }
 0x39b   :  { %11284 = vmatprep.subr.bf16.mxu1 %v13102_v4  ;;  %v19242_v23 = vadd.f32 %v1760_v54, %v1728_v34  ;;  %v1634_v43 = vsub.f32 %v1583_v6, %v14421_v50  ;;  %v19246_v48 = vadd.f32 %v7278_v40, %v19084_v5  ;;  %v7309_v44 = vmul.f32 %v19013_v33, %v4627_v8  ;;  %v4820_v62 = vpop.f32.mrf.mxu1  ;;  %v13103_v5 = vld [vmem:[%s22942_s4 + $0x30] ss:$8 sps:$4 sm:$0xff]  }
 0x39c   :  { %v19249_v25 = vadd.f32 %v1698_v47, %v1666_v55  ;;  %v778_v21 = vrot.slane %v19054_v11, %v14371_v19  ;;  %v19254_v4 = vadd.f32 %v7280_v61, %v19097_v31  ;;  %v7311_v57 = vmul.f32 %v19017_v28, %v4820_v62  ;;  %v4629_v34 = vpop.f32.mrf.mxu0  ;;  %v13106_v28 = vld [vmem:[%s22942_s4 + $0x130] ss:$8 sps:$4 sm:$0xff]   ;;  %v13111_v47 = vld [vmem:[%s22942_s4 + $0x24] ss:$8 sps:$4 sm:$0xff]  }
 0x39d   :  { %11232 = vmatpush1.bf16.msra.mxu0 %v13097_v59  ;;  %v985_v54 = vsub.f32 %v930_v30, %v23138_v58  ;;  %v1103_v33 = vrot.slane %v19054_v11, %v23221_v35  ;;  %v19264_v6 = vadd.f32 %v7309_v44, %v19112_v1  ;;  %v7310_v55 = vmul.f32 %v19025_v9, %v4629_v34  ;;  %v4822_v31 = vpop.f32.mrf.mxu1  ;;  %v14015_v9 = vld [vmem:[%s22941_s3 + $0x10] sm:$0xff]  }
 0x39e   :  { %11285 = vmatpush1.bf16.msra.mxu1 %v13100_v2  ;;  %11233 = vmatprep.subr.bf16.mxu0 %v13105_v41  ;;  %v1309_v59 = vsub.f32 %v1255_v20, %v14403_v36  ;;  %v19275_v30 = vadd.f32 %v7311_v57, %v19120_v0  ;;  %v7312_v1 = vmul.f32 %v19038_v37, %v4822_v31  ;;  %v4633_v40 = vpop.f32.mrf.mxu0  ;;  %v13117_v57 = vld [vmem:[%s22942_s4 + $0x14] ss:$8 sps:$4 sm:$0xff]   ;;  %13895 = vrsqrt.f32 %v19242_v23 }
 0x39f   :  { %12511 = vmatmul.mubr.msk.bf16.gmra.mxu0 %vm2520_vm0, %v14015_v9  ;;  %11286 = vmatprep.subr.bf16.mxu1 %v13108_v15  ;;  %v1419_v2 = vrot.slane %v18978_v45, %v23242_v10  ;;  %v19288_v0 = vadd.f32 %v7310_v55, %v19132_v22  ;;  %v7597_v37 = vmul.f32 %v19049_v27, %v4633_v40  ;;  %v4826_v41 = vpop.f32.mrf.mxu1  ;;  %v13109_v45 = vld [vmem:[%s22942_s4 + $0x20] ss:$8 sps:$4 sm:$0xff]   ;;  %v13120_v55 = vld [vmem:[%s22942_s4 + $0x114] ss:$8 sps:$4 sm:$0xff]   ;;  %vm1970_vm4 = vcmp.eq.f32.partialorder %v19242_v23, inf }
 0x3a0   :  { %12527 = vmatmul.mubr.msk.bf16.gmra.mxu1 %vm2520_vm0, %v14015_v9  ;;  %5333 = vmatprep.mubr.bf16.mxu0 %v23120_v63  ;;  %v938_v20 = vrot.slane %v778_v21, %v14362_v16  ;;  %v19295_v61 = vadd.f32 %v7312_v1, %v19141_v7  ;;  %v7599_v8 = vmul.f32 %v19063_v18, %v4826_v41  ;;  %v4635_v15 = vpop.f32.mrf.mxu0  ;;  %v13112_v7 = vld [vmem:[%s22942_s4 + $0x120] ss:$8 sps:$4 sm:$0xff]   ;;  %vm1972_vm5 = vcmp.eq.f32.partialorder %v19242_v23, 0.0 }
 0x3a1   :  { %5526 = vmatprep.mubr.bf16.mxu1 %v23120_v63  ;;  %11234 = vmatpush1.bf16.msra.mxu0 %v13103_v5  ;;  %v1263_v22 = vrot.slane %v1103_v33, %v14365_v17  ;;  %v19304_v44 = vadd.f32 %v7597_v37, %v19156_v60  ;;  %v7598_v62 = vmul.f32 %v19067_v13, %v4635_v15  ;;  %v4828_v21 = vpop.f32.mrf.mxu1 }
 0x3a2   :  { %11287 = vmatpush1.bf16.msra.mxu1 %v13106_v28  ;;  %11235 = vmatprep.subr.bf16.mxu0 %v13111_v47  ;;  %v1427_v34 = vrot.slane %v19054_v11, %v23242_v10  ;;  %v19316_v5 = vadd.f32 %v7599_v8, %v19165_v14  ;;  %v7600_v60 = vmul.f32 %v19092_v32, %v4828_v21  ;;  %v4637_v33 = vpop.f32.mrf.mxu0  ;;  %v13123_v8 = vld [vmem:[%s22942_s4 + $0x4] ss:$8 sps:$4 sm:$0xff]  }
 0x3a3   :  { %11288 = vmatprep.subr.bf16.mxu1 %v13114_v3  ;;  %v1762_v31 = vmul.f32 %v1634_v43, %v1634_v43  ;;  %v1579_v28 = vrot.slane %v1419_v2, %v14381_v24  ;;  %v19324_v47 = vadd.f32 %v7598_v62, %v19172_v49  ;;  %v7629_v1 = vmul.f32 %v19049_v27, %v4637_v33  ;;  %v4830_v11 = vpop.f32.mrf.mxu1  ;;  %v13115_v43 = vld [vmem:[%s22942_s4 + $0x10] ss:$8 sps:$4 sm:$0xff]   ;;  %v13126_v62 = vld [vmem:[%s22942_s4 + $0x104] ss:$8 sps:$4 sm:$0xff]  }
 0x3a4   :  { %v1665_v40 = vmul.f32 %v985_v54, %v985_v54  ;;  %v987_v14 = vsub.f32 %v938_v20, %v23138_v58  ;;  %v19329_v9 = vadd.f32 %v7600_v60, %v19177_v51  ;;  %v7631_v3 = vmul.f32 %v19063_v18, %v4830_v11  ;;  %v4639_v37 = vpop.f32.mrf.mxu0  ;;  %v13118_v51 = vld [vmem:[%s22942_s4 + $0x110] ss:$8 sps:$4 sm:$0xff]  }
 0x3a5   :  { %11236 = vmatpush1.bf16.msra.mxu0 %v13109_v45  ;;  %v1697_v2 = vmul.f32 %v1309_v59, %v1309_v59  ;;  %v1311_v49 = vsub.f32 %v1263_v22, %v14403_v36  ;;  %v19337_v41 = vadd.f32 %v7629_v1, %v19186_v26  ;;  %v7630_v54 = vmul.f32 %v19067_v13, %v4639_v37  ;;  %v4832_v20 = vpop.f32.mrf.mxu1  ;;  %v14016_v22 = vld [vmem:[%s22941_s3 + $0x18] sm:$0xff]  }
 0x3a6   :  { %11289 = vmatpush1.bf16.msra.mxu1 %v13112_v7  ;;  %11237 = vmatprep.subr.bf16.mxu0 %v13117_v57  ;;  %v1587_v59 = vrot.slane %v1427_v34, %v14381_v24  ;;  %v19348_v15 = vadd.f32 %v7631_v3, %v19198_v29  ;;  %v7632_v26 = vmul.f32 %v19092_v32, %v4832_v20  ;;  %v4643_v45 = vpop.f32.mrf.mxu0  ;;  %v13129_v3 = vld [vmem:[%s22942_s4 + $0xf4] ss:$8 sps:$4 sm:$0xff]  }
 0x3a7   :  { %12512 = vmatmul.mubr.msk.bf16.gmra.mxu0 %vm2520_vm0, %v14016_v22  ;;  %11290 = vmatprep.subr.bf16.mxu1 %v13120_v55  ;;  %v1633_v21 = vsub.f32 %v1579_v28, %v14421_v50  ;;  %v19360_v7 = vadd.f32 %v7630_v54, %v19210_v39  ;;  %v7661_v29 = vmul.f32 %v19049_v27, %v4643_v45  ;;  %v4836_v57 = vpop.f32.mrf.mxu1  ;;  %v13121_v39 = vld [vmem:[%s22942_s4] ss:$8 sps:$4 sm:$0xff]  }
 0x3a8   :  { %12528 = vmatmul.mubr.msk.bf16.gmra.mxu1 %vm2520_vm0, %v14016_v22  ;;  %5343 = vmatprep.mubr.bf16.mxu0 %v23120_v63  ;;  %v1667_v34 = vmul.f32 %v987_v14, %v987_v14  ;;  %v19366_v60 = vadd.f32 %v7632_v26, %v19216_v52  ;;  %v7663_v33 = vmul.f32 %v19063_v18, %v4836_v57  ;;  %v4645_v55 = vpop.f32.mrf.mxu0  ;;  %v13124_v52 = vld [vmem:[%s22942_s4 + $0x100] ss:$8 sps:$4 sm:$0xff]  }
 0x3a9   :  { %5536 = vmatprep.mubr.bf16.mxu1 %v23120_v63  ;;  %11238 = vmatpush1.bf16.msra.mxu0 %v13115_v43  ;;  %v1699_v28 = vmul.f32 %v1311_v49, %v1311_v49  ;;  %v19374_v1 = vadd.f32 %v7661_v29, %v19225_v53  ;;  %v7662_v11 = vmul.f32 %v19067_v13, %v4645_v55  ;;  %v4838_v14 = vpop.f32.mrf.mxu1 }
 0x3aa   :  { %11291 = vmatpush1.bf16.msra.mxu1 %v13118_v51  ;;  %11239 = vmatprep.subr.bf16.mxu0 %v13123_v8  ;;  %v1635_v37 = vsub.f32 %v1587_v59, %v14421_v50  ;;  %v19385_v43 = vadd.f32 %v7663_v33, %v19236_v42  ;;  %v7664_v53 = vmul.f32 %v19092_v32, %v4838_v14  ;;  %v4647_v49 = vpop.f32.mrf.mxu0  ;;  %v13132_v51 = vld [vmem:[%s22942_s4 + $0x1f4] ss:$8 sps:$4 sm:$0xff]   ;;  %v13138_v33 = vld [vmem:[%s22942_s4 + $0x1e4] ss:$8 sps:$4 sm:$0xff]  }
 0x3ab   :  { %v19390_v54 = vrot.slane %v18760_v46, %v23242_v10  ;;  %11292 = vmatprep.subr.bf16.mxu1 %v13126_v62  ;;  %v19393_v20 = vadd.f32 %v1762_v31, %v19249_v25  ;;  %v19399_v8 = vadd.f32 %v7662_v11, %v19246_v48  ;;  %v7693_v42 = vmul.f32 %v19049_v27, %v4647_v49  ;;  %v4840_v59 = vpop.f32.mrf.mxu1  ;;  %v13127_v25 = vld [vmem:[%s22942_s4 + $0xf0] ss:$8 sps:$4 sm:$0xff]  }
 0x3ac   :  { %v1729_v26 = vadd.f32 %v1697_v2, %v1665_v40  ;;  %v1761_v45 = vmul.f32 %v1633_v21, %v1633_v21  ;;  %v19403_v22 = vadd.f32 %v7664_v53, %v19254_v4  ;;  %v7695_v62 = vmul.f32 %v19063_v18, %v4840_v59  ;;  %v4649_v29 = vpop.f32.mrf.mxu0  ;;  %v13130_v4 = vld [vmem:[%s22942_s4 + $0x1f0] ss:$8 sps:$4 sm:$0xff]   ;;  %v13135_v21 = vld [vmem:[%s22942_s4 + $0xe4] ss:$8 sps:$4 sm:$0xff]  }
 0x3ad   :  { %11240 = vmatpush1.bf16.msra.mxu0 %v13121_v39  ;;  %v1731_v31 = vadd.f32 %v1699_v28, %v1667_v34  ;;  %v19412_v27 = vadd.f32 %v7693_v42, %v19264_v6  ;;  %v7694_v40 = vmul.f32 %v19067_v13, %v4649_v29  ;;  %v4842_v2 = vpop.f32.mrf.mxu1  ;;  %v1763_v18 = vmul.f32 %v1635_v37, %v1635_v37  ;;  %v14017_v34 = vld [vmem:[%s22941_s3 + $0x20] sm:$0xff]   ;;  %v23247_v28 = vld [vmem:[#allocation96_spill] sm:$0xff]  ;;  %v23287_v14 = vld [vmem:[#allocation23_spill] sm:$0xff] }
 0x3ae   :  { %11293 = vmatpush1.bf16.msra.mxu1 %v13124_v52  ;;  %11241 = vmatprep.subr.bf16.mxu0 %v13129_v3  ;;  %v19423_v57 = vadd.f32 %v7695_v62, %v19275_v30  ;;  %v7696_v6 = vmul.f32 %v19092_v32, %v4842_v2  ;;  %v4653_v13 = vpop.f32.mrf.mxu0  ;;  %v23250_v53 = vld [vmem:[#allocation97_spill] sm:$0xff]  ;;  %13897 = vrsqrt.f32 %v19393_v20  ;;  %vm1984_vm6 = vcmp.eq.f32.partialorder %v19393_v20, inf  ;;  %v23288_v52 = vld [vmem:[#allocation19_spill] sm:$0xff] }
 0x3af   :  { %12513 = vmatmul.mubr.msk.bf16.gmra.mxu0 %vm2520_vm0, %v14017_v34  ;;  %11294 = vmatprep.subr.bf16.mxu1 %v13132_v51  ;;  %v19436_v30 = vadd.f32 %v7694_v40, %v19288_v0  ;;  %v7981_v32 = vmul.f32 %v23247_v28, %v4653_v13  ;;  %v4846_v11 = vpop.f32.mrf.mxu1  ;;  %v13133_v0 = vld [vmem:[%s22942_s4 + $0xe0] ss:$8 sps:$4 sm:$0xff]   ;;  %v13141_v13 = vld [vmem:[%s22942_s4 + $0xd4] ss:$8 sps:$4 sm:$0xff]   ;;  %vm1986_vm7 = vcmp.eq.f32.partialorder %v19393_v20, 0.0  ;;  %v23289_v12 = vpack.c.bf16 %v23287_v14, %v23288_v52 }
 0x3b0   :  { %12529 = vmatmul.mubr.msk.bf16.gmra.mxu1 %vm2520_vm0, %v14017_v34  ;;  %5353 = vmatprep.mubr.bf16.mxu0 %v23120_v63  ;;  %v19444_v37 = vadd.f32 %v7696_v6, %v19295_v61  ;;  %v7983_v49 = vmul.f32 %v23250_v53, %v4846_v11  ;;  %v4655_v51 = vpop.f32.mrf.mxu0  ;;  %v23253_v40 = vld [vmem:[#allocation98_spill] sm:$0xff]  ;;  %v19457_v6 = vadd.f32 %v1761_v45, %v1729_v26  ;;  %v13144_v26 = vld [vmem:[%s22942_s4 + $0x1d4] ss:$8 sps:$4 sm:$0xff]  }
 0x3b1   :  { %5546 = vmatprep.mubr.bf16.mxu1 %v23120_v63  ;;  %11242 = vmatpush2.bf16.msra.mxu0 %v13127_v25  ;;  %v19454_v29 = vadd.f32 %v7981_v32, %v19304_v44  ;;  %v7982_v2 = vmul.f32 %v23253_v40, %v4655_v51  ;;  %v4848_v61 = vpop.f32.mrf.mxu1  ;;  %v13136_v25 = vld [vmem:[%s22942_s4 + $0x1e0] ss:$8 sps:$4 sm:$0xff]   ;;  %v19469_v11 = vadd.f32 %v1763_v18, %v1731_v31  ;;  %v13139_v31 = vld [vmem:[%s22942_s4 + $0xd0] ss:$8 sps:$4 sm:$0xff]  }
 0x3b2   :  { %11295 = vmatpush2.bf16.msra.mxu1 %v13130_v4  ;;  %11243 = vmatprep.subr.bf16.mxu0 %v13135_v21  ;;  %v19466_v34 = vadd.f32 %v7983_v49, %v19316_v5  ;;  %v7984_v44 = vmul.f32 %v19390_v54, %v4848_v61  ;;  %v4657_v32 = vpop.f32.mrf.mxu0  ;;  %13899 = vrsqrt.f32 %v19457_v6  ;;  %vm1977_vm8 = vcmp.eq.f32.partialorder %v19457_v6, inf  ;;  %v13184_v52 = vld [vmem:[%s22942_s4 + $0x360] ss:$8 sps:$4 sm:$0xff]  }
 0x3b3   :  { %11296 = vmatprep.subr.bf16.mxu1 %v13138_v33  ;;  %v19475_v45 = vadd.f32 %v7982_v2, %v19324_v47  ;;  %v8013_v4 = vmul.f32 %v23247_v28, %v4657_v32  ;;  %v4850_v21 = vpop.f32.mrf.mxu1  ;;  %13901 = vrsqrt.f32 %v19469_v11  ;;  %vm1979_vm9 = vcmp.eq.f32.partialorder %v19457_v6, 0.0 }
 0x3b4   :  { %v19479_v51 = vadd.f32 %v7984_v44, %v19329_v9  ;;  %v8015_v5 = vmul.f32 %v23250_v53, %v4850_v21  ;;  %v4659_v49 = vpop.f32.mrf.mxu0  ;;  %v13142_v9 = vld [vmem:[%s22942_s4 + $0x1d0] ss:$8 sps:$4 sm:$0xff]   ;;  %v14018_v44 = vld [vmem:[%s22941_s3 + $0x28] sm:$0xff]   ;;  %vm1991_vm10 = vcmp.eq.f32.partialorder %v19469_v11, inf  ;;  %vm1993_vm11 = vcmp.eq.f32.partialorder %v19469_v11, 0.0 }
 0x3b5   :  { %11244 = vmatpush2.bf16.msra.mxu0 %v13133_v0  ;;  %v19487_v18 = vadd.f32 %v8013_v4, %v19337_v41  ;;  %v8014_v47 = vmul.f32 %v23253_v40, %v4659_v49  ;;  %v4852_v33 = vpop.f32.mrf.mxu1  ;;  %v13147_v0 = vld [vmem:[%s22942_s4 + $0xc4] ss:$8 sps:$4 sm:$0xff]  }
 0x3b6   :  { %11297 = vmatpush2.bf16.msra.mxu1 %v13136_v25  ;;  %11245 = vmatprep.subr.bf16.mxu0 %v13141_v13  ;;  %v19498_v2 = vadd.f32 %v8015_v5, %v19348_v15  ;;  %v8016_v41 = vmul.f32 %v19390_v54, %v4852_v33  ;;  %v4663_v61 = vpop.f32.mrf.mxu0  ;;  %v13150_v25 = vld [vmem:[%s22942_s4 + $0x1c4] ss:$8 sps:$4 sm:$0xff]   ;;  %v13896_v33 = vpop.eup %13895 }
 0x3b7   :  { %12514 = vmatmul.mubr.msk.bf16.gmra.mxu0 %vm2520_vm0, %v14018_v44  ;;  %11298 = vmatprep.subr.bf16.mxu1 %v13144_v26  ;;  %v19510_v13 = vadd.f32 %v8014_v47, %v19360_v7  ;;  %v8045_v15 = vmul.f32 %v23247_v28, %v4663_v61  ;;  %v4856_v32 = vpop.f32.mrf.mxu1  ;;  %v13145_v7 = vld [vmem:[%s22942_s4 + $0xc0] ss:$8 sps:$4 sm:$0xff]  }
 0x3b8   :  { %12530 = vmatmul.mubr.msk.bf16.gmra.mxu1 %vm2520_vm0, %v14018_v44  ;;  %5363 = vmatprep.mubr.bf16.mxu0 %v23120_v63  ;;  %v19516_v4 = vadd.f32 %v8016_v41, %v19366_v60  ;;  %v8047_v21 = vmul.f32 %v23250_v53, %v4856_v32  ;;  %v4665_v26 = vpop.f32.mrf.mxu0  ;;  %v13148_v60 = vld [vmem:[%s22942_s4 + $0x1c0] ss:$8 sps:$4 sm:$0xff]  }
 0x3b9   :  { %5556 = vmatprep.mubr.bf16.mxu1 %v23120_v63  ;;  %11246 = vmatpush2.bf16.msra.mxu0 %v13139_v31  ;;  %v19524_v5 = vadd.f32 %v8045_v15, %v19374_v1  ;;  %v8046_v49 = vmul.f32 %v23253_v40, %v4665_v26  ;;  %v4858_v47 = vpop.f32.mrf.mxu1  ;;  %v13153_v31 = vld [vmem:[%s22942_s4 + $0xb4] ss:$8 sps:$4 sm:$0xff]   ;;  %v23254_v32 = vld [vmem:[#allocation17_spill] sm:$0xff] }
 0x3ba   :  { %11299 = vmatpush2.bf16.msra.mxu1 %v13142_v9  ;;  %11247 = vmatprep.subr.bf16.mxu0 %v13147_v0  ;;  %v19534_v41 = vadd.f32 %v8047_v21, %v19385_v43  ;;  %v8048_v1 = vmul.f32 %v19390_v54, %v4858_v47  ;;  %v4667_v61 = vpop.f32.mrf.mxu0  ;;  %v13156_v9 = vld [vmem:[%s22942_s4 + $0x1b4] ss:$8 sps:$4 sm:$0xff]   ;;  %v23255_v26 = vld [vmem:[#allocation93_spill] sm:$0xff]  ;;  %v23256_v47 = vld [vmem:[#allocation94_spill] sm:$0xff] }
 0x3bb   :  { %11300 = vmatprep.subr.bf16.mxu1 %v13150_v25  ;;  %v19541_v0 = vadd.f32 %v8046_v49, %v19399_v8  ;;  %v8077_v44 = vmul.f32 %v23247_v28, %v4667_v61  ;;  %v4860_v15 = vpop.f32.mrf.mxu1  ;;  %v19546_v62 = vrot.slane %v23255_v26, %v23254_v32  ;;  %v19554_v3 = vrot.slane %v23256_v47, %v23254_v32  ;;  %v23257_v8 = vld [vmem:[#allocation95_spill] sm:$0xff]  ;;  %v13898_v47 = vpop.eup %13897 }
 0x3bc   :  { %v19549_v43 = vadd.f32 %v8048_v1, %v19403_v22  ;;  %v8079_v21 = vmul.f32 %v23250_v53, %v4860_v15  ;;  %v4669_v25 = vpop.f32.mrf.mxu0  ;;  %v19558_v49 = vrot.slane %v23257_v8, %v23254_v32  ;;  %v13151_v28 = vld [vmem:[%s22942_s4 + $0xb0] ss:$8 sps:$4 sm:$0xff]   ;;  %v1969_v1 = vmul.f32 %v13896_v33, %v19242_v23 }
 0x3bd   :  { %11248 = vmatpush2.bf16.msra.mxu0 %v13145_v7  ;;  %v19564_v61 = vadd.f32 %v8077_v44, %v19412_v27  ;;  %v8078_v22 = vmul.f32 %v23253_v40, %v4669_v25  ;;  %v4862_v53 = vpop.f32.mrf.mxu1  ;;  %v13154_v15 = vld [vmem:[%s22942_s4 + $0x1b0] ss:$8 sps:$4 sm:$0xff]   ;;  %v13159_v7 = vld [vmem:[%s22942_s4 + $0xa4] ss:$8 sps:$4 sm:$0xff]   ;;  %v1973_v25 = vand.u32 2147483648, %v19242_v23 }
 0x3be   :  { %11301 = vmatpush2.bf16.msra.mxu1 %v13148_v60  ;;  %11249 = vmatprep.subr.bf16.mxu0 %v13153_v31  ;;  %v19575_v26 = vadd.f32 %v8079_v21, %v19423_v57  ;;  %v8080_v27 = vmul.f32 %v19390_v54, %v4862_v53  ;;  %v4673_v44 = vpop.f32.mrf.mxu0  ;;  %v14019_v40 = vld [vmem:[%s22941_s3 + $0x30] sm:$0xff]   ;;  %v19584_v60 = vrot.slane %v18760_v46, %v23254_v32  ;;  %v13162_v57 = vld [vmem:[%s22942_s4 + $0x1a4] ss:$8 sps:$4 sm:$0xff]  }
 0x3bf   :  { %12515 = vmatmul.mubr.msk.bf16.gmra.mxu0 %vm2520_vm0, %v14019_v40  ;;  %11302 = vmatprep.subr.bf16.mxu1 %v13156_v9  ;;  %v19591_v54 = vadd.f32 %v8078_v22, %v19436_v30  ;;  %v8365_v31 = vmul.f32 %v19546_v62, %v4673_v44  ;;  %v4866_v33 = vpop.f32.mrf.mxu1  ;;  %v13157_v30 = vld [vmem:[%s22942_s4 + $0xa0] ss:$8 sps:$4 sm:$0xff]   ;;  %v1971_v53 = vsel %vm1970_vm4, %v19242_v23, %v1969_v1  ;;  %v13168_v1 = vld [vmem:[%s22942_s4 + $0x194] ss:$8 sps:$4 sm:$0xff]   ;;  %v13166_v23 = vld [vmem:[%s22942_s4 + $0x190] ss:$8 sps:$4 sm:$0xff]  }
 0x3c0   :  { %12531 = vmatmul.mubr.msk.bf16.gmra.mxu1 %vm2520_vm0, %v14019_v40  ;;  %5373 = vmatprep.mubr.bf16.mxu0 %v23120_v63  ;;  %v19597_v46 = vadd.f32 %v8080_v27, %v19444_v37  ;;  %v8367_v21 = vmul.f32 %v19554_v3, %v4866_v33  ;;  %v4675_v9 = vpop.f32.mrf.mxu0  ;;  %v13900_v27 = vpop.eup %13899 }
 0x3c1   :  { %5566 = vmatprep.mubr.bf16.mxu1 %v23120_v63  ;;  %11250 = vmatpush2.bf16.msra.mxu0 %v13151_v28  ;;  %v19606_v8 = vadd.f32 %v8365_v31, %v19454_v29  ;;  %v8366_v22 = vmul.f32 %v19558_v49, %v4675_v9  ;;  %v4868_v37 = vpop.f32.mrf.mxu1  ;;  %v13160_v28 = vld [vmem:[%s22942_s4 + $0x1a0] ss:$8 sps:$4 sm:$0xff]   ;;  %v13165_v29 = vld [vmem:[%s22942_s4 + $0x94] ss:$8 sps:$4 sm:$0xff]   ;;  %v1976_v39 = vmul.f32 %v13900_v27, %v19457_v6 }
 0x3c2   :  { %11303 = vmatpush2.bf16.msra.mxu1 %v13154_v15  ;;  %11251 = vmatprep.subr.bf16.mxu0 %v13159_v7  ;;  %v19620_v44 = vadd.f32 %v8367_v21, %v19466_v34  ;;  %v8368_v40 = vmul.f32 %v19584_v60, %v4868_v37  ;;  %v4677_v31 = vpop.f32.mrf.mxu0  ;;  %v13902_v15 = vpop.eup %13901  ;;  %v19638_v37 = vsel %vm1972_vm5, %v1973_v25, %v1971_v53  ;;  %v13171_v25 = vld [vmem:[%s22942_s4 + $0x84] ss:$8 sps:$4 sm:$0xff]   ;;  %v14020_v53 = vld [vmem:[%s22941_s3 + $0x38] sm:$0xff]  }
 0x3c3   :  { %23258 = vst [vmem:[#allocation96_spill] sm:$0xff] %v19606_v8  ;;  %11304 = vmatprep.subr.bf16.mxu1 %v13162_v57  ;;  %v19627_v7 = vadd.f32 %v8366_v22, %v19475_v45  ;;  %v8397_v33 = vmul.f32 %v19546_v62, %v4677_v31  ;;  %v4870_v9 = vpop.f32.mrf.mxu1  ;;  %v1983_v45 = vmul.f32 %v13898_v47, %v19393_v20  ;;  %v13163_v22 = vld [vmem:[%s22942_s4 + $0x90] ss:$8 sps:$4 sm:$0xff]  }
 0x3c4   :  { %23259 = vst [vmem:[#allocation97_spill] sm:$0xff] %v19620_v44  ;;  %v19633_v34 = vadd.f32 %v8368_v40, %v19479_v51  ;;  %v8399_v57 = vmul.f32 %v19554_v3, %v4870_v9  ;;  %v4679_v21 = vpop.f32.mrf.mxu0  ;;  %v1987_v9 = vand.u32 2147483648, %v19393_v20 }
 0x3c5   :  { %23260 = vst [vmem:[#allocation98_spill] sm:$0xff] %v19627_v7  ;;  %11252 = vmatpush2.bf16.msra.mxu0 %v13157_v30  ;;  %v19645_v31 = vadd.f32 %v8397_v33, %v19487_v18  ;;  %v8398_v51 = vmul.f32 %v19558_v49, %v4679_v21  ;;  %v4872_v40 = vpop.f32.mrf.mxu1 }
 0x3c6   :  { %23261 = vst [vmem:[#allocation93_spill] sm:$0xff] %v19633_v34  ;;  %11305 = vmatpush2.bf16.msra.mxu1 %v13160_v28  ;;  %11253 = vmatprep.subr.bf16.mxu0 %v13165_v29  ;;  %v19657_v18 = vadd.f32 %v8399_v57, %v19498_v2  ;;  %v8400_v30 = vmul.f32 %v19584_v60, %v4872_v40  ;;  %v4683_v47 = vpop.f32.mrf.mxu0  ;;  %v13174_v29 = vld [vmem:[%s22942_s4 + $0x184] ss:$8 sps:$4 sm:$0xff]  }
 0x3c7   :  { %23262 = vst [vmem:[#allocation94_spill] sm:$0xff] %v19645_v31  ;;  %12516 = vmatmul.mubr.msk.bf16.gmra.mxu0 %vm2520_vm0, %v14020_v53  ;;  %v1990_v28 = vmul.f32 %v13902_v15, %v19469_v11  ;;  %11306 = vmatprep.subr.bf16.mxu1 %v13168_v1  ;;  %v19672_v27 = vadd.f32 %v8398_v51, %v19510_v13  ;;  %v4876_v57 = vpop.f32.mrf.mxu1  ;;  %v1980_v13 = vand.u32 2147483648, %v19457_v6  ;;  %v13169_v51 = vld [vmem:[%s22942_s4 + $0x80] ss:$8 sps:$4 sm:$0xff]  }
 0x3c8   :  { %23263 = vst [vmem:[#allocation95_spill] sm:$0xff] %v19657_v18  ;;  %v8429_v33 = vmul.f32 %v19546_v62, %v4683_v47  ;;  %12532 = vmatmul.mubr.msk.bf16.gmra.mxu1 %vm2520_vm0, %v14020_v53  ;;  %5383 = vmatprep.mubr.bf16.mxu0 %v23120_v63  ;;  %v19681_v15 = vadd.f32 %v8400_v30, %v19516_v4  ;;  %v4685_v40 = vpop.f32.mrf.mxu0  ;;  %v13172_v4 = vld [vmem:[%s22942_s4 + $0x180] ss:$8 sps:$4 sm:$0xff]  }
 0x3c9   :  { %23264 = vst [vmem:[#allocation99_spill] sm:$0xff] %v19672_v27  ;;  %v8431_v21 = vmul.f32 %v19554_v3, %v4876_v57  ;;  %5576 = vmatprep.mubr.bf16.mxu1 %v23120_v63  ;;  %11254 = vmatpush2.bf16.msra.mxu0 %v13163_v22  ;;  %v8430_v53 = vmul.f32 %v19558_v49, %v4685_v40  ;;  %v4878_v1 = vpop.f32.mrf.mxu1  ;;  %v13177_v22 = vld [vmem:[%s22942_s4 + $0x274] ss:$8 sps:$4 sm:$0xff]  }
 0x3ca   :  { %23265 = vst [vmem:[#allocation100_spill] sm:$0xff] %v19681_v15  ;;  %v19690_v47 = vadd.f32 %v8429_v33, %v19524_v5  ;;  %11307 = vmatpush2.bf16.msra.mxu1 %v13166_v23  ;;  %11255 = vmatprep.subr.bf16.mxu0 %v13171_v25  ;;  %v8432_v33 = vmul.f32 %v19584_v60, %v4878_v1  ;;  %v4687_v57 = vpop.f32.mrf.mxu0  ;;  %v13180_v25 = vld [vmem:[%s22942_s4 + $0x374] ss:$8 sps:$4 sm:$0xff]  }
 0x3cb   :  { %v19703_v5 = vadd.f32 %v8431_v21, %v19534_v41  ;;  %v1985_v23 = vsel %vm1984_vm6, %v19393_v20, %v1983_v45  ;;  %11308 = vmatprep.subr.bf16.mxu1 %v13174_v29  ;;  %v19715_v2 = vadd.f32 %v8430_v53, %v19541_v0  ;;  %v8461_v41 = vmul.f32 %v19546_v62, %v4687_v57  ;;  %v4880_v21 = vpop.f32.mrf.mxu1  ;;  %v14023_v40 = vld [vmem:[%s22941_s3 + $0x50] sm:$0xff]  }
 0x3cc   :  { %23266 = vst [vmem:[#allocation101_spill] sm:$0xff] %v19690_v47  ;;  %v1978_v1 = vsel %vm1977_vm8, %v19457_v6, %v1976_v39  ;;  %v1994_v45 = vand.u32 2147483648, %v19469_v11  ;;  %v19723_v29 = vadd.f32 %v8432_v33, %v19549_v43  ;;  %v8463_v30 = vmul.f32 %v19554_v3, %v4880_v21  ;;  %v4689_v48 = vpop.f32.mrf.mxu0 }
 0x3cd   :  { %23267 = vst [vmem:[#allocation102_spill] sm:$0xff] %v19703_v5  ;;  %23268 = vst [vmem:[#allocation103_spill] sm:$0xff] %v19715_v2  ;;  %v1992_v0 = vsel %vm1991_vm10, %v19469_v11, %v1990_v28  ;;  %11256 = vmatpush2.bf16.msra.mxu0 %v13169_v51  ;;  %v19731_v62 = vadd.f32 %v8461_v41, %v19564_v61  ;;  %v8462_v39 = vmul.f32 %v19558_v49, %v4689_v48  ;;  %v4882_v53 = vpop.f32.mrf.mxu1  ;;  %v14021_v51 = vld [vmem:[%s22941_s3 + $0x40] sm:$0xff]  }
 0x3ce   :  { %23269 = vst [vmem:[#allocation104_spill] sm:$0xff] %v19723_v29  ;;  %v1988_v43 = vsel %vm1986_vm7, %v1987_v9, %v1985_v23  ;;  %11309 = vmatpush2.bf16.msra.mxu1 %v13172_v4  ;;  %11331 = vmatprep.subr.bf16.mxu0 %v13177_v22  ;;  %v19737_v3 = vadd.f32 %v8463_v30, %v19575_v26  ;;  %v4919_v28 = vpop.f32.mrf.mxu0  ;;  %v2048_v61 = vmul.f32 2.0833333, %v19638_v37 }
 0x3cf   :  { %23270 = vst [vmem:[#allocation105_spill] sm:$0xff] %v19731_v62  ;;  %v8464_v33 = vmul.f32 %v19584_v60, %v4882_v53  ;;  %12517 = vmatmul.mubr.msk.bf16.gmra.mxu0 %vm2520_vm0, %v14021_v51  ;;  %v1981_v48 = vsel %vm1979_vm9, %v1980_v13, %v1978_v1  ;;  %11384 = vmatprep.subr.bf16.mxu1 %v13180_v25  ;;  %v5112_v26 = vpop.f32.mrf.mxu1  ;;  %v2050_v13 = vmul.f32 2.0833333, %v1988_v43 }
 0x3d0   :  { %23271 = vst [vmem:[#allocation106_spill] sm:$0xff] %v19737_v3  ;;  %v19749_v49 = vadd.f32 %v8462_v39, %v19591_v54  ;;  %12533 = vmatmul.mubr.msk.bf16.gmra.mxu1 %vm2520_vm0, %v14021_v51  ;;  %v1995_v60 = vsel %vm1993_vm11, %v1994_v45, %v1992_v0  ;;  %5393 = vmatprep.mubr.bf16.mxu0 %v23120_v63  ;;  %v4921_v4 = vpop.f32.mrf.mxu0  ;;  %v2049_v54 = vmul.f32 2.0833333, %v1981_v48  ;;  %v2080_v23 = vsub.f32 1.0, %v2048_v61  ;;  %v14022_v39 = vld [vmem:[%s22941_s3 + $0x48] sm:$0xff]  }
 0x3d1   :  { %v19759_v9 = vadd.f32 %v8464_v33, %v19597_v46  ;;  %5586 = vmatprep.mubr.bf16.mxu1 %v23120_v63  ;;  %v5114_v37 = vpop.f32.mrf.mxu1  ;;  %v2051_v30 = vmul.f32 2.0833333, %v1995_v60  ;;  %v2082_v41 = vsub.f32 1.0, %v2050_v13 }
 0x3d2   :  { %23272 = vst [vmem:[#allocation107_spill] sm:$0xff] %v19749_v49  ;;  %v4923_v11 = vpop.f32.mrf.mxu0  ;;  %v2081_v46 = vsub.f32 1.0, %v2049_v54  ;;  %v19772_v53 = vmax.f32 %v2080_v23, 0.0 }
 0x3d3   :  { %23273 = vst [vmem:[#allocation108_spill] sm:$0xff] %v19759_v9  ;;  %v5116_v25 = vpop.f32.mrf.mxu1  ;;  %v2083_v45 = vsub.f32 1.0, %v2051_v30  ;;  %v19778_v33 = vmax.f32 %v2082_v41, 0.0 }
 0x3d4   :  { %v4925_v21 = vpop.f32.mrf.mxu0  ;;  %v19783_v48 = vmax.f32 %v2081_v46, 0.0  ;;  %v19793_v54 = vrot.slane %v19772_v53, %v14362_v16  ;;  %v19799_v23 = vrot.slane %v19772_v53, %v14365_v17 }
 0x3d5   :  { %v5118_v1 = vpop.f32.mrf.mxu1  ;;  %v19787_v60 = vmax.f32 %v2083_v45, 0.0  ;;  %v19803_v41 = vrot.slane %v19778_v33, %v14362_v16  ;;  %v19809_v45 = vrot.slane %v19778_v33, %v14365_v17 }
 0x3d6   :  { %v19766_v0 = vpop.f32.mrf.mxu0  ;;  %v19819_v20 = vrot.slane %v19783_v48, %v14365_v17  ;;  %v5809_v3 = vmul.f32 %v19793_v54, %v4919_v28 }
 0x3d7   :  { %12518 = vmatmul.mubr.msk.bf16.gmra.mxu0 %vm2520_vm0, %v14022_v39  ;;  %v19774_v43 = vpop.f32.mrf.mxu1  ;;  %v19823_v57 = vrot.slane %v19787_v60, %v14362_v16  ;;  %v19831_v5 = vrot.slane %v19787_v60, %v14365_v17  ;;  %v5811_v29 = vmul.f32 %v19803_v41, %v5112_v26  ;;  %v5841_v26 = vmul.f32 %v19793_v54, %v4923_v11 }
 0x3d8   :  { %12534 = vmatmul.mubr.msk.bf16.gmra.mxu1 %vm2520_vm0, %v14022_v39  ;;  %5403 = vmatprep.mubr.bf16.mxu0 %v23120_v63  ;;  %v19780_v51 = vpop.f32.mrf.mxu0  ;;  %v19813_v39 = vrot.slane %v19783_v48, %v14362_v16 }
 0x3d9   :  { %5596 = vmatprep.mubr.bf16.mxu1 %v23120_v63  ;;  %v19785_v61 = vpop.f32.mrf.mxu1 }
 0x3da   :  { %v19789_v13 = vpop.f32.mrf.mxu0  ;;  %v5810_v49 = vmul.f32 %v19813_v39, %v4921_v4 }
 0x3db   :  { %v19795_v30 = vpop.f32.mrf.mxu1 }
 0x3dc   :  { %v19805_v46 = vpop.f32.mrf.mxu0 }
 0x3dd   :  { %v19815_v6 = vpop.f32.mrf.mxu1 }
 0x3de   :  { %v4939_v22 = vpop.f32.mrf.mxu0 }
 0x3df   :  { %12519 = vmatmul.mubr.msk.bf16.gmra.mxu0 %vm2520_vm0, %v14023_v40  ;;  %v6065_v47 = vmul.f32 %v19799_v23, %v4939_v22  ;;  %v5132_v62 = vpop.f32.mrf.mxu1  ;;  %v5812_v22 = vmul.f32 %v19823_v57, %v5114_v37 }
 0x3e0   :  { %12535 = vmatmul.mubr.msk.bf16.gmra.mxu1 %vm2520_vm0, %v14023_v40  ;;  %5413 = vmatprep.mubr.bf16.mxu0 %v23120_v63  ;;  %v6067_v9 = vmul.f32 %v19809_v45, %v5132_v62  ;;  %v4941_v2 = vpop.f32.mrf.mxu0 }
 0x3e1   :  { %5606 = vmatprep.mubr.bf16.mxu1 %v23120_v63  ;;  %v19841_v44 = vadd.f32 %v6065_v47, %v5809_v3  ;;  %v6066_v28 = vmul.f32 %v19819_v20, %v4941_v2  ;;  %v5134_v18 = vpop.f32.mrf.mxu1  ;;  %v5843_v47 = vmul.f32 %v19803_v41, %v5116_v25  ;;  %v14024_v25 = vld [vmem:[%s22941_s3 + $0x58] sm:$0xff]  }
 0x3e2   :  { %v19845_v8 = vadd.f32 %v6067_v9, %v5811_v29  ;;  %v6068_v40 = vmul.f32 %v19831_v5, %v5134_v18  ;;  %v4943_v31 = vpop.f32.mrf.mxu0  ;;  %v5842_v29 = vmul.f32 %v19813_v39, %v4925_v21 }
 0x3e3   :  { %v19849_v62 = vadd.f32 %v6066_v28, %v5810_v49  ;;  %v6097_v34 = vmul.f32 %v19799_v23, %v4943_v31  ;;  %v5136_v15 = vpop.f32.mrf.mxu1  ;;  %v5844_v49 = vmul.f32 %v19823_v57, %v5118_v1  ;;  %v5875_v1 = vmul.f32 %v19803_v41, %v19774_v43 }
 0x3e4   :  { %v19853_v3 = vadd.f32 %v6068_v40, %v5812_v22  ;;  %v6099_v2 = vmul.f32 %v19809_v45, %v5136_v15  ;;  %v4945_v4 = vpop.f32.mrf.mxu0 }
 0x3e5   :  { %v19857_v9 = vadd.f32 %v6097_v34, %v5841_v26  ;;  %v6098_v18 = vmul.f32 %v19819_v20, %v4945_v4  ;;  %v5138_v37 = vpop.f32.mrf.mxu1  ;;  %v5873_v34 = vmul.f32 %v19793_v54, %v19766_v0  ;;  %v5874_v0 = vmul.f32 %v19813_v39, %v19780_v51 }
 0x3e6   :  { %v19861_v11 = vadd.f32 %v6099_v2, %v5843_v47  ;;  %v6100_v31 = vmul.f32 %v19831_v5, %v5138_v37  ;;  %v4949_v28 = vpop.f32.mrf.mxu0 }
 0x3e7   :  { %12520 = vmatmul.mubr.msk.bf16.gmra.mxu0 %vm2520_vm0, %v14024_v25  ;;  %v19870_v15 = vadd.f32 %v6098_v18, %v5842_v29  ;;  %v6129_v21 = vmul.f32 %v19799_v23, %v4949_v28  ;;  %v5142_v22 = vpop.f32.mrf.mxu1  ;;  %v5876_v18 = vmul.f32 %v19823_v57, %v19785_v61 }
 0x3e8   :  { %12536 = vmatmul.mubr.msk.bf16.gmra.mxu1 %vm2520_vm0, %v14024_v25  ;;  %5423 = vmatprep.mubr.bf16.mxu0 %v23120_v63  ;;  %v19877_v40 = vadd.f32 %v6100_v31, %v5844_v49  ;;  %v6131_v26 = vmul.f32 %v19809_v45, %v5142_v22  ;;  %v4951_v47 = vpop.f32.mrf.mxu0  ;;  %v5905_v31 = vmul.f32 %v19793_v54, %v19789_v13 }
 0x3e9   :  { %5616 = vmatprep.mubr.bf16.mxu1 %v23120_v63  ;;  %v19883_v2 = vadd.f32 %v6129_v21, %v5873_v34  ;;  %v6130_v4 = vmul.f32 %v19819_v20, %v4951_v47  ;;  %v5144_v29 = vpop.f32.mrf.mxu1  ;;  %v5907_v34 = vmul.f32 %v19803_v41, %v19795_v30  ;;  %v5908_v47 = vmul.f32 %v19823_v57, %v19815_v6 }
 0x3ea   :  { %v19888_v37 = vadd.f32 %v6131_v26, %v5875_v1  ;;  %v6132_v43 = vmul.f32 %v19831_v5, %v5144_v29  ;;  %v4953_v49 = vpop.f32.mrf.mxu0  ;;  %v5906_v1 = vmul.f32 %v19813_v39, %v19805_v46  ;;  %v14025_v46 = vld [vmem:[%s22941_s3 + $0x60] sm:$0xff]   ;;  %v6400_v6 = vrot.slane %v19783_v48, %v14381_v24 }
 0x3eb   :  { %v19893_v28 = vadd.f32 %v6130_v4, %v5874_v0  ;;  %v6161_v51 = vmul.f32 %v19799_v23, %v4953_v49  ;;  %v5146_v25 = vpop.f32.mrf.mxu1  ;;  %v6396_v23 = vrot.slane %v19772_v53, %v14381_v24  ;;  %v6404_v0 = vrot.slane %v19778_v33, %v14381_v24 }
 0x3ec   :  { %v19898_v21 = vadd.f32 %v6132_v43, %v5876_v18  ;;  %v6163_v61 = vmul.f32 %v19809_v45, %v5146_v25  ;;  %v4955_v22 = vpop.f32.mrf.mxu0  ;;  %v6408_v18 = vrot.slane %v19787_v60, %v14381_v24 }
 0x3ed   :  { %v19903_v26 = vadd.f32 %v6161_v51, %v5905_v31  ;;  %v6162_v13 = vmul.f32 %v19819_v20, %v4955_v22  ;;  %v5148_v54 = vpop.f32.mrf.mxu1 }
 0x3ee   :  { %v19910_v30 = vadd.f32 %v6163_v61, %v5907_v34  ;;  %v6164_v41 = vmul.f32 %v19831_v5, %v5148_v54  ;;  %v4959_v45 = vpop.f32.mrf.mxu0 }
 0x3ef   :  { %12521 = vmatmul.mubr.msk.bf16.gmra.mxu0 %vm2520_vm0, %v14025_v46  ;;  %v19919_v20 = vadd.f32 %v6162_v13, %v5906_v1  ;;  %v6449_v39 = vmul.f32 %v6396_v23, %v4959_v45  ;;  %v5152_v4 = vpop.f32.mrf.mxu1 }
 0x3f0   :  { %12537 = vmatmul.mubr.msk.bf16.gmra.mxu1 %vm2520_vm0, %v14025_v46  ;;  %5433 = vmatprep.mubr.bf16.mxu0 %v23120_v63  ;;  %v19925_v5 = vadd.f32 %v6164_v41, %v5908_v47  ;;  %v6451_v57 = vmul.f32 %v6404_v0, %v5152_v4  ;;  %v4961_v29 = vpop.f32.mrf.mxu0 }
 0x3f1   :  { %5626 = vmatprep.mubr.bf16.mxu1 %v23120_v63  ;;  %v19931_v43 = vadd.f32 %v6449_v39, %v19841_v44  ;;  %v6450_v49 = vmul.f32 %v6400_v6, %v4961_v29  ;;  %v5154_v31 = vpop.f32.mrf.mxu1 }
 0x3f2   :  { %v19934_v51 = vadd.f32 %v6451_v57, %v19845_v8  ;;  %v6452_v25 = vmul.f32 %v6408_v18, %v5154_v31  ;;  %v4963_v34 = vpop.f32.mrf.mxu0 }
 0x3f3   :  { %v19937_v61 = vadd.f32 %v6450_v49, %v19849_v62  ;;  %v6481_v22 = vmul.f32 %v6396_v23, %v4963_v34  ;;  %v5156_v1 = vpop.f32.mrf.mxu1  ;;  %v14026_v62 = vld [vmem:[%s22941_s3 + $0x68] sm:$0xff]  }
 0x3f4   :  { %v19940_v13 = vadd.f32 %v6452_v25, %v19853_v3  ;;  %v6483_v54 = vmul.f32 %v6404_v0, %v5156_v1  ;;  %v4965_v47 = vpop.f32.mrf.mxu0 }
 0x3f5   :  { %v19943_v44 = vadd.f32 %v6481_v22, %v19857_v9  ;;  %v6482_v41 = vmul.f32 %v6400_v6, %v4965_v47  ;;  %v5158_v45 = vpop.f32.mrf.mxu1 }
 0x3f6   :  { %v19946_v8 = vadd.f32 %v6483_v54, %v19861_v11  ;;  %v6484_v46 = vmul.f32 %v6408_v18, %v5158_v45  ;;  %v4969_v39 = vpop.f32.mrf.mxu0 }
 0x3f7   :  { %12522 = vmatmul.mubr.msk.bf16.gmra.mxu0 %vm2520_vm0, %v14026_v62  ;;  %v19953_v3 = vadd.f32 %v6482_v41, %v19870_v15  ;;  %v6513_v4 = vmul.f32 %v6396_v23, %v4969_v39  ;;  %v5162_v57 = vpop.f32.mrf.mxu1  ;;  %v19967_v15 = vld [vmem:[%s22938_s0 + $0x70] sm:$0x77] }
 0x3f8   :  { %12538 = vmatmul.mubr.msk.bf16.gmra.mxu1 %vm2520_vm0, %v14026_v62  ;;  %5443 = vmatprep.mubr.bf16.mxu0 %v23120_v63  ;;  %v19958_v9 = vadd.f32 %v6484_v46, %v19877_v40  ;;  %v6515_v11 = vmul.f32 %v6404_v0, %v5162_v57  ;;  %v4971_v29 = vpop.f32.mrf.mxu0  ;;  %v782_v46 = vrot.slane %v19967_v15, %v14362_v16 }
 0x3f9   :  { %5636 = vmatprep.mubr.bf16.mxu1 %v23120_v63  ;;  %v19962_v49 = vadd.f32 %v6513_v4, %v19883_v2  ;;  %v6514_v31 = vmul.f32 %v6400_v6, %v4971_v29  ;;  %v5164_v25 = vpop.f32.mrf.mxu1  ;;  %v23275_v4 = vld [vmem:[#allocation12_spill] sm:$0xff] }
 0x3fa   :  { %23274 = vst [vmem:[#allocation109_spill] sm:$0xff] %v19958_v9  ;;  %v19970_v34 = vadd.f32 %v6515_v11, %v19888_v37  ;;  %v6516_v22 = vmul.f32 %v6408_v18, %v5164_v25  ;;  %v4973_v40 = vpop.f32.mrf.mxu0  ;;  %v6780_v57 = vrot.slane %v19772_v53, %v23275_v4  ;;  %v6788_v11 = vrot.slane %v19778_v33, %v23275_v4 }
 0x3fb   :  { %v19973_v1 = vadd.f32 %v6514_v31, %v19893_v28  ;;  %v6545_v54 = vmul.f32 %v6396_v23, %v4973_v40  ;;  %v5166_v47 = vpop.f32.mrf.mxu1  ;;  %v1107_v28 = vrot.slane %v19967_v15, %v14365_v17  ;;  %v20010_v40 = vrot.slane %v19787_v60, %v23275_v4 }
 0x3fc   :  { %v19976_v2 = vadd.f32 %v6516_v22, %v19898_v21  ;;  %v6547_v41 = vmul.f32 %v6404_v0, %v5166_v47  ;;  %v4975_v45 = vpop.f32.mrf.mxu0 }
 0x3fd   :  { %v19981_v39 = vadd.f32 %v6545_v54, %v19903_v26  ;;  %v6546_v37 = vmul.f32 %v6400_v6, %v4975_v45  ;;  %v5168_v62 = vpop.f32.mrf.mxu1  ;;  %v14027_v26 = vld [vmem:[%s22941_s3 + $0x70] sm:$0xff]   ;;  %v1267_v45 = vrot.slane %v1107_v28, %v14365_v17 }
 0x3fe   :  { %v19988_v23 = vadd.f32 %v6547_v41, %v19910_v30  ;;  %v6548_v21 = vmul.f32 %v6408_v18, %v5168_v62  ;;  %v4979_v0 = vpop.f32.mrf.mxu0  ;;  %v20002_v30 = vrot.slane %v19783_v48, %v23275_v4 }
 0x3ff   :  { %12523 = vmatmul.mubr.msk.bf16.gmra.mxu0 %vm2520_vm0, %v14027_v26  ;;  %v19997_v6 = vadd.f32 %v6546_v37, %v19919_v20  ;;  %v6833_v29 = vmul.f32 %v6780_v57, %v4979_v0  ;;  %v5172_v31 = vpop.f32.mrf.mxu1  ;;  %v1431_v20 = vrot.slane %v19967_v15, %v14381_v24 }
 0x400   :  { %12539 = vmatmul.mubr.msk.bf16.gmra.mxu1 %vm2520_vm0, %v14027_v26  ;;  %5453 = vmatprep.mubr.bf16.mxu0 %v23120_v63  ;;  %v20006_v18 = vadd.f32 %v6548_v21, %v19925_v5  ;;  %v6835_v25 = vmul.f32 %v6788_v11, %v5172_v31  ;;  %v4981_v22 = vpop.f32.mrf.mxu0  ;;  %v942_v5 = vrot.slane %v782_v46, %v14362_v16 }
 0x401   :  { %23276 = vst [vmem:[#allocation110_spill] sm:$0xff] %v19997_v6  ;;  %5646 = vmatprep.mubr.bf16.mxu1 %v23120_v63  ;;  %v20016_v54 = vadd.f32 %v6833_v29, %v19931_v43  ;;  %v6834_v47 = vmul.f32 %v20002_v30, %v4981_v22  ;;  %v5174_v41 = vpop.f32.mrf.mxu1  ;;  %v1591_v46 = vrot.slane %v1431_v20, %v14381_v24  ;;  %v14028_v20 = vld [vmem:[%s22941_s3 + $0x78] sm:$0xff]  }
 0x402   :  { %23277 = vst [vmem:[#allocation111_spill] sm:$0xff] %v20006_v18  ;;  %v20022_v37 = vadd.f32 %v6835_v25, %v19934_v51  ;;  %v6836_v62 = vmul.f32 %v20010_v40, %v5174_v41  ;;  %v4983_v21 = vpop.f32.mrf.mxu0  ;;  %v20037_v51 = vld [vmem:[%s22938_s0 + $0x78] sm:$0x77]  ;;  %v988_v25 = vsub.f32 %v942_v5, %v23138_v58 }
 0x403   :  { %v20026_v63 = vadd.f32 %v6834_v47, %v19937_v61  ;;  %v6865_v0 = vmul.f32 %v6780_v57, %v4983_v21  ;;  %v5176_v26 = vpop.f32.mrf.mxu1  ;;  %v23279_v21 = vld [vmem:[#allocation20_spill] sm:$0xff]  ;;  %v790_v5 = vrot.slane %v20037_v51, %v14362_v16  ;;  %v1636_v27 = vsub.f32 %v1591_v46, %v14421_v50 }
 0x404   :  { %v20029_v43 = vadd.f32 %v6836_v62, %v19940_v13  ;;  %v6867_v29 = vmul.f32 %v6788_v11, %v5176_v26  ;;  %v20031_v31 = vpop.f32.mrf.mxu0  ;;  %v1312_v13 = vsub.f32 %v1267_v45, %v14403_v36  ;;  %v23281_v45 = vld [vmem:[#allocation25_spill] sm:$0xff]  ;;  %v1668_v59 = vmul.f32 %v988_v25, %v988_v25  ;;  %v13192_v18 = vld [vmem:[%s22942_s4 + $0x354] ss:$8 sps:$4 sm:$0xff]  }
 0x405   :  { %v20040_v28 = vadd.f32 %v6865_v0, %v19943_v44  ;;  %v20042_v61 = vpop.f32.mrf.mxu1  ;;  %v23278_v44 = vld [vmem:[#allocation24_spill] sm:$0xff]  ;;  %v23282_v26 = vld [vmem:[#allocation21_spill] sm:$0xff] }
 0x406   :  { %v20047_v22 = vadd.f32 %v6867_v29, %v19946_v8  ;;  %v4989_v47 = vpop.f32.mrf.mxu0  ;;  %v23280_v0 = vpack.c.bf16 %v23278_v44, %v23279_v21  ;;  %v23283_v29 = vpack.c.bf16 %v23281_v45, %v23282_v26  ;;  %v1700_v44 = vmul.f32 %v1312_v13, %v1312_v13 }
 0x407   :  { %12524 = vmatmul.mubr.msk.bf16.gmra.mxu0 %vm2520_vm0, %v14028_v20  ;;  %v6897_v41 = vmul.f32 %v6780_v57, %v4989_v47  ;;  %v5182_v62 = vpop.f32.mrf.mxu1 }
 0x408   :  { %12540 = vmatmul.mubr.msk.bf16.gmra.mxu1 %vm2520_vm0, %v14028_v20  ;;  %11257 = vmatprep.mubr.bf16.mxu0 %v23280_v0  ;;  %v6899_v8 = vmul.f32 %v6788_v11, %v5182_v62  ;;  %v4991_v7 = vpop.f32.mrf.mxu0 }
 0x409   :  { %11310 = vmatprep.mubr.bf16.mxu1 %v23283_v29  ;;  %v20064_v47 = vadd.f32 %v6897_v41, %v19962_v49  ;;  %v6898_v20 = vmul.f32 %v20002_v30, %v4991_v7  ;;  %v5184_v42 = vpop.f32.mrf.mxu1  ;;  %v13175_v49 = vld [vmem:[%s22942_s4 + $0x270] ss:$8 sps:$4 sm:$0xff]   ;;  %v950_v7 = vrot.slane %v790_v5, %v14362_v16  ;;  %v1732_v5 = vadd.f32 %v1700_v44, %v1668_v59 }
 0x40a   :  { %v20068_v21 = vadd.f32 %v6899_v8, %v19970_v34  ;;  %v6900_v62 = vmul.f32 %v20010_v40, %v5184_v42  ;;  %v4993_v0 = vpop.f32.mrf.mxu0  ;;  %v13178_v42 = vld [vmem:[%s22942_s4 + $0x370] ss:$8 sps:$4 sm:$0xff]   ;;  %v786_v59 = vrot.slane %v19967_v15, %v14371_v19 }
 0x40b   :  { %v20072_v45 = vadd.f32 %v6898_v20, %v19973_v1  ;;  %v6929_v26 = vmul.f32 %v6780_v57, %v4993_v0  ;;  %v5186_v29 = vpop.f32.mrf.mxu1  ;;  %v1764_v1 = vmul.f32 %v1636_v27, %v1636_v27  ;;  %v1115_v57 = vrot.slane %v20037_v51, %v14365_v17  ;;  %v23285_v0 = vld [vmem:[#allocation18_spill] sm:$0xff] }
 0x40c   :  { %v20079_v46 = vadd.f32 %v6900_v62, %v19976_v2  ;;  %v6931_v25 = vmul.f32 %v6788_v11, %v5186_v29  ;;  %v20081_v34 = vpop.f32.mrf.mxu0  ;;  %v20095_v2 = vrot.slane %v19772_v53, %v14371_v19  ;;  %v13183_v11 = vld [vmem:[%s22942_s4 + $0x264] ss:$8 sps:$4 sm:$0xff]   ;;  %v1439_v27 = vrot.slane %v20037_v51, %v14381_v24 }
 0x40d   :  { %v20089_v13 = vadd.f32 %v6929_v26, %v19981_v39  ;;  %v20091_v41 = vpop.f32.mrf.mxu1  ;;  %v20107_v39 = vrot.slane %v19778_v33, %v14371_v19  ;;  %v23284_v62 = vld [vmem:[#allocation22_spill] sm:$0xff] }
 0x40e   :  { %v20103_v8 = vadd.f32 %v6931_v25, %v19988_v23  ;;  %v4999_v20 = vpop.f32.mrf.mxu0  ;;  %v23286_v26 = vpack.c.bf16 %v23284_v62, %v23285_v0  ;;  %v13186_v29 = vld [vmem:[%s22942_s4 + $0x364] ss:$8 sps:$4 sm:$0xff]   ;;  %v1111_v23 = vrot.slane %v19967_v15, %v23221_v35  ;;  %v20125_v62 = vrot.slane %v19783_v48, %v14371_v19  ;;  %v13181_v0 = vld [vmem:[%s22942_s4 + $0x260] ss:$8 sps:$4 sm:$0xff]  }
 0x40f   :  { %v7217_v44 = vmul.f32 %v20095_v2, %v4999_v20  ;;  %v5192_v25 = vpop.f32.mrf.mxu1  ;;  %v23290_v20 = vld [vmem:[#allocation32_spill] sm:$0xff]  ;;  %v1599_v6 = vrot.slane %v1439_v27, %v14381_v24 }
 0x410   :  { %11258 = vmatmul.mubr.bf16.vlgmr.msra.gmra.mxu0 %v23286_v26  ;;  %11311 = vmatmul.mubr.bf16.vlgmr.msra.gmra.mxu1 %v23289_v12  ;;  %v990_v26 = vsub.f32 %v950_v7, %v23138_v58  ;;  %v7219_v55 = vmul.f32 %v20107_v39, %v5192_v25  ;;  %v23292_v38 = vpack.c.bf16 %v23290_v20, %v23291_v56  ;;  %v5001_v14 = vpop.f32.mrf.mxu0  ;;  %v23293_v56 = vld [vmem:[#allocation33_spill] sm:$0xff] }
 0x411   :  { %11332 = vmatpush1.bf16.msra.mxu0 %v13175_v49  ;;  %11385 = vmatpush1.bf16.msra.mxu1 %v13178_v42  ;;  %v20137_v12 = vrot.slane %v19787_v60, %v14371_v19  ;;  %v13189_v49 = vld [vmem:[%s22942_s4 + $0x254] ss:$8 sps:$4 sm:$0xff]   ;;  %v1275_v7 = vrot.slane %v1115_v57, %v14365_v17  ;;  %v20147_v42 = vadd.f32 %v7217_v44, %v20016_v54  ;;  %v5194_v4 = vpop.f32.mrf.mxu1 }
 0x412   :  { %11267 = vmatprep.mubr.bf16.mxu0 %v23292_v38  ;;  %v23294_v38 = vld [vmem:[#allocation29_spill] sm:$0xff]  ;;  %v7218_v20 = vmul.f32 %v20125_v62, %v5001_v14  ;;  %11333 = vmatprep.subr.bf16.mxu0 %v13183_v11  ;;  %v20158_v9 = vadd.f32 %v7219_v55, %v20022_v37  ;;  %v5003_v57 = vpop.f32.mrf.mxu0  ;;  %v946_v44 = vrot.slane %v786_v59, %v14362_v16  ;;  %v13187_v55 = vld [vmem:[%s22942_s4 + $0x250] ss:$8 sps:$4 sm:$0xff]  }
 0x413   :  { %v23295_v25 = vpack.c.bf16 %v23293_v56, %v23294_v38  ;;  %v7220_v54 = vmul.f32 %v20137_v12, %v5194_v4  ;;  %11386 = vmatprep.subr.bf16.mxu1 %v13186_v29  ;;  %v1271_v56 = vrot.slane %v1111_v23, %v14365_v17  ;;  %v7249_v11 = vmul.f32 %v20095_v2, %v5003_v57  ;;  %v5196_v38 = vpop.f32.mrf.mxu1  ;;  %v13190_v59 = vld [vmem:[%s22942_s4 + $0x350] ss:$8 sps:$4 sm:$0xff]   ;;  %v23298_v57 = vld [vmem:[#allocation26_spill] sm:$0xff] }
 0x414   :  { %v20164_v14 = vadd.f32 %v7218_v20, %v20026_v63  ;;  %v1435_v4 = vrot.slane %v19967_v15, %v23242_v10  ;;  %v794_v37 = vrot.slane %v20037_v51, %v14371_v19  ;;  %v7251_v63 = vmul.f32 %v20107_v39, %v5196_v38  ;;  %v20178_v29 = vpop.f32.mrf.mxu0  ;;  %v23300_v19 = vld [vmem:[#allocation31_spill] sm:$0xff] }
 0x415   :  { %11320 = vmatprep.mubr.bf16.mxu1 %v23295_v25  ;;  %11334 = vmatpush1.bf16.msra.mxu0 %v13181_v0  ;;  %v20175_v27 = vadd.f32 %v7220_v54, %v20029_v43  ;;  %v1119_v23 = vrot.slane %v20037_v51, %v23221_v35  ;;  %v20186_v15 = vadd.f32 %v7249_v11, %v20040_v28  ;;  %v20188_v0 = vpop.f32.mrf.mxu1  ;;  %v13195_v43 = vld [vmem:[%s22942_s4 + $0x244] ss:$8 sps:$4 sm:$0xff]  }
 0x416   :  { %11387 = vmatpush1.bf16.msra.mxu1 %v13184_v52  ;;  %11335 = vmatprep.subr.bf16.mxu0 %v13189_v49  ;;  %23296 = vst [vmem:[#allocation24_spill] sm:$0xff] %v20188_v0  ;;  %v20193_v52 = vadd.f32 %v1764_v1, %v1732_v5  ;;  %v1314_v49 = vsub.f32 %v1275_v7, %v14403_v36  ;;  %v5009_v20 = vpop.f32.mrf.mxu0  ;;  %v23297_v54 = vld [vmem:[#allocation30_spill] sm:$0xff] }
 0x417   :  { %11388 = vmatprep.subr.bf16.mxu1 %v13192_v18  ;;  %v20197_v25 = vadd.f32 %v7251_v63, %v20047_v22  ;;  %v23299_v38 = vpack.c.bf16 %v23297_v54, %v23298_v57  ;;  %v13198_v18 = vld [vmem:[%s22942_s4 + $0x344] ss:$8 sps:$4 sm:$0xff]   ;;  %v1638_v28 = vsub.f32 %v1599_v6, %v14421_v50  ;;  %v1670_v11 = vmul.f32 %v990_v26, %v990_v26  ;;  %v5202_v7 = vpop.f32.mrf.mxu1  ;;  %v23301_v22 = vld [vmem:[#allocation27_spill] sm:$0xff]  ;;  %v13193_v54 = vld [vmem:[%s22942_s4 + $0x240] ss:$8 sps:$4 sm:$0xff]  }
 0x418   :  { %v989_v1 = vsub.f32 %v946_v44, %v23138_v58  ;;  %v7281_v5 = vmul.f32 %v20095_v2, %v5009_v20  ;;  %v23302_v63 = vpack.c.bf16 %v23300_v19, %v23301_v22  ;;  %v1313_v57 = vsub.f32 %v1271_v56, %v14403_v36  ;;  %v23303_v26 = vld [vmem:[#allocation38_spill] sm:$0xff]  ;;  %v5011_v0 = vpop.f32.mrf.mxu0  ;;  %v23307_v22 = vld [vmem:[#allocation35_spill] sm:$0xff] }
 0x419   :  { %11268 = vmatmul.mubr.bf16.gmra.mxu0 %v23299_v38  ;;  %v1595_v38 = vrot.slane %v1435_v4, %v14381_v24  ;;  %v7283_v6 = vmul.f32 %v20107_v39, %v5202_v7  ;;  %v23304_v44 = vld [vmem:[#allocation34_spill] sm:$0xff]  ;;  %v954_v56 = vrot.slane %v794_v37, %v14362_v16  ;;  %v1279_v4 = vrot.slane %v1119_v23, %v14365_v17 }
 0x41a   :  { %11321 = vmatmul.mubr.bf16.gmra.mxu1 %v23302_v63  ;;  %11336 = vmatpush1.bf16.msra.mxu0 %v13187_v55  ;;  %v23305_v20 = vpack.c.bf16 %v23303_v26, %v23304_v44  ;;  %v13196_v19 = vld [vmem:[%s22942_s4 + $0x340] ss:$8 sps:$4 sm:$0xff]   ;;  %v13201_v55 = vld [vmem:[%s22942_s4 + $0x234] ss:$8 sps:$4 sm:$0xff]   ;;  %v20229_v7 = vadd.f32 %v7281_v5, %v20064_v47  ;;  %v7282_v26 = vmul.f32 %v20125_v62, %v5011_v0  ;;  %v5204_v44 = vpop.f32.mrf.mxu1  ;;  %v5013_v5 = vpop.f32.mrf.mxu0  ;;  %13903 = vrsqrt.f32 %v20193_v52 }
 0x41b   :  { %11389 = vmatpush1.bf16.msra.mxu1 %v13190_v59  ;;  %v23306_v59 = vld [vmem:[#allocation39_spill] sm:$0xff]  ;;  %11337 = vmatprep.subr.bf16.mxu0 %v13195_v43  ;;  %v1443_v37 = vrot.slane %v20037_v51, %v23242_v10  ;;  %v20241_v23 = vadd.f32 %v7283_v6, %v20068_v21  ;;  %v7284_v47 = vmul.f32 %v20137_v12, %v5204_v44  ;;  %vm1998_vm0 = vcmp.eq.f32.partialorder %v20193_v52, inf }
 0x41c   :  { %11363 = vmatprep.mubr.bf16.mxu0 %v23305_v20  ;;  %v23308_v63 = vpack.c.bf16 %v23306_v59, %v23307_v22  ;;  %v13204_v20 = vld [vmem:[%s22942_s4 + $0x334] ss:$8 sps:$4 sm:$0xff]   ;;  %11390 = vmatprep.subr.bf16.mxu1 %v13198_v18  ;;  %v1702_v59 = vmul.f32 %v1314_v49, %v1314_v49  ;;  %v1669_v22 = vmul.f32 %v989_v1, %v989_v1  ;;  %v13199_v51 = vld [vmem:[%s22942_s4 + $0x230] ss:$8 sps:$4 sm:$0xff]   ;;  %v20256_v18 = vpop.f32.mrf.mxu0  ;;  %vm2000_vm12 = vcmp.eq.f32.partialorder %v20193_v52, 0.0 }
 0x41d   :  { %v20245_v0 = vadd.f32 %v7282_v26, %v20072_v45  ;;  %v7313_v43 = vmul.f32 %v20095_v2, %v5013_v5  ;;  %v1637_v21 = vsub.f32 %v1595_v38, %v14421_v50  ;;  %v1701_v6 = vmul.f32 %v1313_v57, %v1313_v57  ;;  %v13202_v45 = vld [vmem:[%s22942_s4 + $0x330] ss:$8 sps:$4 sm:$0xff]   ;;  %v13207_v2 = vld [vmem:[%s22942_s4 + $0x224] ss:$8 sps:$4 sm:$0xff]  }
 0x41e   :  { %11416 = vmatprep.mubr.bf16.mxu1 %v23308_v63  ;;  %v5206_v63 = vpop.f32.mrf.mxu1  ;;  %11338 = vmatpush1.bf16.msra.mxu0 %v13193_v54  ;;  %v20253_v44 = vadd.f32 %v7284_v47, %v20079_v46  ;;  %v991_v1 = vsub.f32 %v954_v56, %v23138_v58  ;;  %v13210_v57 = vld [vmem:[%s22942_s4 + $0x324] ss:$8 sps:$4 sm:$0xff]   ;;  %v1315_v38 = vsub.f32 %v1279_v4, %v14403_v36 }
 0x41f   :  { %v7315_v49 = vmul.f32 %v20107_v39, %v5206_v63  ;;  %11391 = vmatpush1.bf16.msra.mxu1 %v13196_v19  ;;  %11339 = vmatprep.subr.bf16.mxu0 %v13201_v55  ;;  %v20266_v54 = vadd.f32 %v7313_v43, %v20089_v13  ;;  %v20272_v39 = vrot.slane %v19772_v53, %v23221_v35  ;;  %v5019_v13 = vpop.f32.mrf.mxu0 }
 0x420   :  { %v20268_v46 = vpop.f32.mrf.mxu1  ;;  %11392 = vmatprep.subr.bf16.mxu1 %v13204_v20  ;;  %v1603_v19 = vrot.slane %v1443_v37, %v14381_v24  ;;  %v20284_v55 = vrot.slane %v19778_v33, %v23221_v35  ;;  %v1734_v56 = vadd.f32 %v1702_v59, %v1670_v11  ;;  %v1766_v26 = vmul.f32 %v1638_v28, %v1638_v28  ;;  %v13208_v37 = vld [vmem:[%s22942_s4 + $0x320] ss:$8 sps:$4 sm:$0xff]   ;;  %v13213_v59 = vld [vmem:[%s22942_s4 + $0x214] ss:$8 sps:$4 sm:$0xff]  }
 0x421   :  { %v20280_v58 = vadd.f32 %v7315_v49, %v20103_v8  ;;  %v7601_v20 = vmul.f32 %v20272_v39, %v5019_v13  ;;  %v20289_v5 = vrot.slane %v19783_v48, %v23221_v35  ;;  %v20293_v36 = vrot.slane %v19787_v60, %v23221_v35  ;;  %v13205_v8 = vld [vmem:[%s22942_s4 + $0x220] ss:$8 sps:$4 sm:$0xff]   ;;  %v5021_v28 = vpop.f32.mrf.mxu0  ;;  %v13216_v49 = vld [vmem:[%s22942_s4 + $0x314] ss:$8 sps:$4 sm:$0xff]  }
 0x422   :  { %v5212_v47 = vpop.f32.mrf.mxu1  ;;  %11340 = vmatpush1.bf16.msra.mxu0 %v13199_v51  ;;  %v1733_v4 = vadd.f32 %v1701_v6, %v1669_v22  ;;  %v1765_v43 = vmul.f32 %v1637_v21, %v1637_v21  ;;  %v1671_v63 = vmul.f32 %v991_v1, %v991_v1 }
 0x423   :  { %v7603_v11 = vmul.f32 %v20284_v55, %v5212_v47  ;;  %11393 = vmatpush1.bf16.msra.mxu1 %v13202_v45  ;;  %11341 = vmatprep.subr.bf16.mxu0 %v13207_v2  ;;  %v20307_v51 = vadd.f32 %v7601_v20, %v20147_v42  ;;  %v7602_v22 = vmul.f32 %v20289_v5, %v5021_v28  ;;  %v5023_v1 = vpop.f32.mrf.mxu0 }
 0x424   :  { %v5214_v6 = vpop.f32.mrf.mxu1  ;;  %11394 = vmatprep.subr.bf16.mxu1 %v13210_v57  ;;  %v1639_v45 = vsub.f32 %v1603_v19, %v14421_v50  ;;  %v1703_v2 = vmul.f32 %v1315_v38, %v1315_v38  ;;  %v7633_v20 = vmul.f32 %v20272_v39, %v5023_v1  ;;  %v13211_v57 = vld [vmem:[%s22942_s4 + $0x210] ss:$8 sps:$4 sm:$0xff]   ;;  %v20325_v28 = vadd.f32 %v1766_v26, %v1734_v56  ;;  %v13219_v19 = vld [vmem:[%s22942_s4 + $0x204] ss:$8 sps:$4 sm:$0xff]   ;;  %v13228_v1 = vld [vmem:[%s22942_s4 + $0x3f4] ss:$8 sps:$4 sm:$0xff]  }
 0x425   :  { %v20315_v13 = vadd.f32 %v7603_v11, %v20158_v9  ;;  %v7604_v21 = vmul.f32 %v20293_v36, %v5214_v6  ;;  %v20319_v42 = vadd.f32 %v7602_v22, %v20164_v14  ;;  %v20331_v38 = vpop.f32.mrf.mxu0  ;;  %v13214_v14 = vld [vmem:[%s22942_s4 + $0x310] ss:$8 sps:$4 sm:$0xff]  }
 0x426   :  { %v5216_v47 = vpop.f32.mrf.mxu1  ;;  %11342 = vmatpush1.bf16.msra.mxu0 %v13205_v8  ;;  %v20340_v56 = vadd.f32 %v7633_v20, %v20186_v15  ;;  %v20347_v8 = vadd.f32 %v1765_v43, %v1733_v4  ;;  %v1735_v11 = vadd.f32 %v1703_v2, %v1671_v63  ;;  %v13217_v15 = vld [vmem:[%s22942_s4 + $0x200] ss:$8 sps:$4 sm:$0xff]   ;;  %13905 = vrsqrt.f32 %v20325_v28  ;;  %v13225_v43 = vld [vmem:[%s22942_s4 + $0x2f4] ss:$8 sps:$4 sm:$0xff]  }
 0x427   :  { %v20328_v50 = vadd.f32 %v7604_v21, %v20175_v27  ;;  %v7635_v9 = vmul.f32 %v20284_v55, %v5216_v47  ;;  %11395 = vmatpush1.bf16.msra.mxu1 %v13208_v37  ;;  %11343 = vmatprep.subr.bf16.mxu0 %v13213_v59  ;;  %v13222_v27 = vld [vmem:[%s22942_s4 + $0x304] ss:$8 sps:$4 sm:$0xff]   ;;  %v1767_v37 = vmul.f32 %v1639_v45, %v1639_v45  ;;  %v5029_v22 = vpop.f32.mrf.mxu0  ;;  %vm2012_vm13 = vcmp.eq.f32.partialorder %v20325_v28, inf }
 0x428   :  { %v20342_v26 = vpop.f32.mrf.mxu1  ;;  %11396 = vmatprep.subr.bf16.mxu1 %v13216_v49  ;;  %v7665_v6 = vmul.f32 %v20272_v39, %v5029_v22  ;;  %13907 = vrsqrt.f32 %v20347_v8  ;;  %v13904_v22 = vpop.eup %13903  ;;  %vm2005_vm14 = vcmp.eq.f32.partialorder %v20347_v8, inf  ;;  %vm2014_vm15 = vcmp.eq.f32.partialorder %v20325_v28, 0.0 }
 0x429   :  { %v20350_v59 = vadd.f32 %v7635_v9, %v20197_v25  ;;  %v5031_v4 = vpop.f32.mrf.mxu0  ;;  %v13220_v25 = vld [vmem:[%s22942_s4 + $0x300] ss:$8 sps:$4 sm:$0xff]   ;;  %v20372_v20 = vadd.f32 %v1767_v37, %v1735_v11  ;;  %vm2007_vm1 = vcmp.eq.f32.partialorder %v20347_v8, 0.0 }
 0x42a   :  { %v5222_v21 = vpop.f32.mrf.mxu1  ;;  %11344 = vmatpush1.bf16.msra.mxu0 %v13211_v57  ;;  %v20365_v63 = vadd.f32 %v7665_v6, %v20229_v7  ;;  %v7666_v45 = vmul.f32 %v20289_v5, %v5031_v4 }
 0x42b   :  { %v7667_v49 = vmul.f32 %v20284_v55, %v5222_v21  ;;  %11397 = vmatpush1.bf16.msra.mxu1 %v13214_v14  ;;  %11345 = vmatprep.subr.bf16.mxu0 %v13219_v19  ;;  %v5033_v9 = vpop.f32.mrf.mxu0  ;;  %v13234_v21 = vld [vmem:[%s22942_s4 + $0x3e4] ss:$8 sps:$4 sm:$0xff]   ;;  %13909 = vrsqrt.f32 %v20372_v20  ;;  %vm2019_vm2 = vcmp.eq.f32.partialorder %v20372_v20, inf  ;;  %vm2021_vm3 = vcmp.eq.f32.partialorder %v20372_v20, 0.0 }
 0x42c   :  { %v5224_v2 = vpop.f32.mrf.mxu1  ;;  %11398 = vmatprep.subr.bf16.mxu1 %v13222_v27  ;;  %v20379_v7 = vadd.f32 %v7666_v45, %v20245_v0  ;;  %v7697_v14 = vmul.f32 %v20272_v39, %v5033_v9  ;;  %v13223_v27 = vld [vmem:[%s22942_s4 + $0x2f0] ss:$8 sps:$4 sm:$0xff]   ;;  %v13231_v39 = vld [vmem:[%s22942_s4 + $0x2e4] ss:$8 sps:$4 sm:$0xff]   ;;  %v13229_v45 = vld [vmem:[%s22942_s4 + $0x2e0] ss:$8 sps:$4 sm:$0xff]  }
 0x42d   :  { %v20375_v47 = vadd.f32 %v7667_v49, %v20241_v23  ;;  %v7668_v57 = vmul.f32 %v20293_v36, %v5224_v2  ;;  %v20389_v37 = vpop.f32.mrf.mxu0  ;;  %v13226_v0 = vld [vmem:[%s22942_s4 + $0x3f0] ss:$8 sps:$4 sm:$0xff]   ;;  %v13237_v9 = vld [vmem:[%s22942_s4 + $0x2d4] ss:$8 sps:$4 sm:$0xff]  }
 0x42e   :  { %v5226_v19 = vpop.f32.mrf.mxu1  ;;  %11346 = vmatpush1.bf16.msra.mxu0 %v13217_v15  ;;  %v20398_v6 = vadd.f32 %v7697_v14, %v20266_v54  ;;  %v20415_v54 = vrot.slane %v19778_v33, %v23242_v10 }
 0x42f   :  { %v20386_v11 = vadd.f32 %v7668_v57, %v20253_v44  ;;  %v7699_v23 = vmul.f32 %v20284_v55, %v5226_v19  ;;  %11399 = vmatpush1.bf16.msra.mxu1 %v13220_v25  ;;  %11347 = vmatprep.subr.bf16.mxu0 %v13225_v43  ;;  %v20404_v55 = vrot.slane %v19772_v53, %v23242_v10  ;;  %v5039_v49 = vpop.f32.mrf.mxu0  ;;  %v13232_v57 = vld [vmem:[%s22942_s4 + $0x3e0] ss:$8 sps:$4 sm:$0xff]  }
 0x430   :  { %v20400_v44 = vpop.f32.mrf.mxu1  ;;  %11400 = vmatprep.subr.bf16.mxu1 %v13228_v1  ;;  %v20420_v43 = vrot.slane %v19783_v48, %v23242_v10  ;;  %v20428_v1 = vrot.slane %v19787_v60, %v23242_v10 }
 0x431   :  { %v20411_v15 = vadd.f32 %v7699_v23, %v20280_v58  ;;  %v7985_v4 = vmul.f32 %v20404_v55, %v5039_v49  ;;  %v5041_v2 = vpop.f32.mrf.mxu0  ;;  %v13240_v23 = vld [vmem:[%s22942_s4 + $0x3d4] ss:$8 sps:$4 sm:$0xff]  }
 0x432   :  { %v5232_v25 = vpop.f32.mrf.mxu1  ;;  %11348 = vmatpush2.bf16.msra.mxu0 %v13223_v27  ;;  %v7986_v19 = vmul.f32 %v20420_v43, %v5041_v2  ;;  %v13235_v2 = vld [vmem:[%s22942_s4 + $0x2d0] ss:$8 sps:$4 sm:$0xff]  }
 0x433   :  { %v7987_v58 = vmul.f32 %v20415_v54, %v5232_v25  ;;  %11401 = vmatpush2.bf16.msra.mxu1 %v13226_v0  ;;  %11349 = vmatprep.subr.bf16.mxu0 %v13231_v39  ;;  %v20437_v14 = vadd.f32 %v7985_v4, %v20307_v51  ;;  %v1997_v0 = vmul.f32 %v13904_v22, %v20193_v52  ;;  %v5043_v25 = vpop.f32.mrf.mxu0  ;;  %v13906_v22 = vpop.eup %13905 }
 0x434   :  { %v5234_v27 = vpop.f32.mrf.mxu1  ;;  %11402 = vmatprep.subr.bf16.mxu1 %v13234_v21  ;;  %v20450_v51 = vadd.f32 %v7986_v19, %v20319_v42  ;;  %v8017_v4 = vmul.f32 %v20404_v55, %v5043_v25  ;;  %v13238_v42 = vld [vmem:[%s22942_s4 + $0x3d0] ss:$8 sps:$4 sm:$0xff]   ;;  %v2001_v19 = vand.u32 2147483648, %v20193_v52 }
 0x435   :  { %v20445_v39 = vadd.f32 %v7987_v58, %v20315_v13  ;;  %v7988_v49 = vmul.f32 %v20428_v1, %v5234_v27  ;;  %v20460_v27 = vpop.f32.mrf.mxu0 }
 0x436   :  { %v5236_v21 = vpop.f32.mrf.mxu1  ;;  %11350 = vmatpush2.bf16.msra.mxu0 %v13229_v45  ;;  %v13243_v45 = vld [vmem:[%s22942_s4 + $0x2c4] ss:$8 sps:$4 sm:$0xff]   ;;  %v20470_v25 = vadd.f32 %v8017_v4, %v20340_v56  ;;  %v20486_v56 = vrot.slane %v19772_v53, %v23254_v32  ;;  %v20502_v53 = vrot.slane %v19787_v60, %v23254_v32 }
 0x437   :  { %v20457_v13 = vadd.f32 %v7988_v49, %v20328_v50  ;;  %v8019_v58 = vmul.f32 %v20415_v54, %v5236_v21  ;;  %11403 = vmatpush2.bf16.msra.mxu1 %v13232_v57  ;;  %11351 = vmatprep.subr.bf16.mxu0 %v13237_v9  ;;  %v13246_v57 = vld [vmem:[%s22942_s4 + $0x3c4] ss:$8 sps:$4 sm:$0xff]   ;;  %v1999_v9 = vsel %vm1998_vm0, %v20193_v52, %v1997_v0  ;;  %v13908_v49 = vpop.eup %13907  ;;  %v5049_v10 = vpop.f32.mrf.mxu0  ;;  %v13241_v0 = vld [vmem:[%s22942_s4 + $0x2c0] ss:$8 sps:$4 sm:$0xff]   ;;  %v13252_v52 = vld [vmem:[%s22942_s4 + $0x3b4] ss:$8 sps:$4 sm:$0xff]  }
 0x438   :  { %v20472_v50 = vpop.f32.mrf.mxu1  ;;  %11404 = vmatprep.subr.bf16.mxu1 %v13240_v23  ;;  %v20490_v23 = vrot.slane %v19778_v33, %v23254_v32  ;;  %v8049_v4 = vmul.f32 %v20404_v55, %v5049_v10  ;;  %v20514_v24 = vsel %vm2000_vm12, %v2001_v19, %v1999_v9  ;;  %v13910_v19 = vpop.eup %13909  ;;  %v6868_v9 = vmul.f32 %v20010_v40, %v20042_v61 }
 0x439   :  { %v20482_v21 = vadd.f32 %v8019_v58, %v20350_v59  ;;  %v20498_v59 = vrot.slane %v19783_v48, %v23254_v32  ;;  %v2011_v58 = vmul.f32 %v13906_v22, %v20325_v28  ;;  %v5051_v10 = vpop.f32.mrf.mxu0  ;;  %v13249_v48 = vld [vmem:[%s22942_s4 + $0x2b4] ss:$8 sps:$4 sm:$0xff]  }
 0x43a   :  { %v5242_v35 = vpop.f32.mrf.mxu1  ;;  %11352 = vmatpush2.bf16.msra.mxu0 %v13235_v2  ;;  %v13244_v2 = vld [vmem:[%s22942_s4 + $0x3c0] ss:$8 sps:$4 sm:$0xff]   ;;  %v20521_v60 = vadd.f32 %v8049_v4, %v20365_v63  ;;  %v8050_v22 = vmul.f32 %v20420_v43, %v5051_v10 }
 0x43b   :  { %v8051_v33 = vmul.f32 %v20415_v54, %v5242_v35  ;;  %11405 = vmatpush2.bf16.msra.mxu1 %v13238_v42  ;;  %11353 = vmatprep.subr.bf16.mxu0 %v13243_v45  ;;  %v6866_v35 = vmul.f32 %v20002_v30, %v20031_v31  ;;  %v2004_v45 = vmul.f32 %v13908_v49, %v20347_v8  ;;  %v5053_v10 = vpop.f32.mrf.mxu0 }
 0x43c   :  { %v5244_v42 = vpop.f32.mrf.mxu1  ;;  %11406 = vmatprep.subr.bf16.mxu1 %v13246_v57  ;;  %v6930_v31 = vmul.f32 %v20002_v30, %v20081_v34  ;;  %v6932_v57 = vmul.f32 %v20010_v40, %v20091_v41  ;;  %v20539_v32 = vadd.f32 %v8050_v22, %v20379_v7  ;;  %v8081_v49 = vmul.f32 %v20404_v55, %v5053_v10  ;;  %v13247_v30 = vld [vmem:[%s22942_s4 + $0x2b0] ss:$8 sps:$4 sm:$0xff]   ;;  %v13255_v55 = vld [vmem:[%s22942_s4 + $0x2a4] ss:$8 sps:$4 sm:$0xff]  }
 0x43d   :  { %v20533_v63 = vadd.f32 %v8051_v33, %v20375_v47  ;;  %v8052_v4 = vmul.f32 %v20428_v1, %v5244_v42  ;;  %v20548_v61 = vsel %vm2012_vm13, %v20325_v28, %v2011_v58  ;;  %v7250_v34 = vmul.f32 %v20125_v62, %v20178_v29  ;;  %v20556_v47 = vpop.f32.mrf.mxu0  ;;  %v13250_v7 = vld [vmem:[%s22942_s4 + $0x3b0] ss:$8 sps:$4 sm:$0xff]   ;;  %v23309_v33 = vld [vmem:[#allocation109_spill] sm:$0xff] }
 0x43e   :  { %v5246_v17 = vpop.f32.mrf.mxu1  ;;  %11354 = vmatpush2.bf16.msra.mxu0 %v13241_v0  ;;  %v6994_v0 = vadd.f32 %v6866_v35, %v19953_v3  ;;  %v20566_v29 = vadd.f32 %v8081_v49, %v20398_v6  ;;  %v20579_v58 = vmul.f32 %v13910_v19, %v20372_v20  ;;  %v6996_v3 = vadd.f32 %v6868_v9, %v23309_v33 }
 0x43f   :  { %v20553_v40 = vadd.f32 %v8052_v4, %v20386_v11  ;;  %v8083_v41 = vmul.f32 %v20415_v54, %v5246_v17  ;;  %11407 = vmatpush2.bf16.msra.mxu1 %v13244_v2  ;;  %11355 = vmatprep.subr.bf16.mxu0 %v13249_v48  ;;  %v13258_v17 = vld [vmem:[%s22942_s4 + $0x3a4] ss:$8 sps:$4 sm:$0xff]   ;;  %v20576_v54 = vsel %vm2005_vm14, %v20347_v8, %v2004_v45  ;;  %v23311_v48 = vld [vmem:[#allocation24_spill] sm:$0xff]  ;;  %v5059_v42 = vpop.f32.mrf.mxu0 }
 0x440   :  { %v20568_v11 = vpop.f32.mrf.mxu1  ;;  %11408 = vmatprep.subr.bf16.mxu1 %v13252_v52  ;;  %v23310_v2 = vld [vmem:[#allocation110_spill] sm:$0xff]  ;;  %v7252_v35 = vmul.f32 %v20137_v12, %v23311_v48  ;;  %v23312_v52 = vld [vmem:[#allocation111_spill] sm:$0xff]  ;;  %v7314_v45 = vmul.f32 %v20125_v62, %v20256_v18  ;;  %v7634_v19 = vmul.f32 %v20289_v5, %v20331_v38  ;;  %v8369_v10 = vmul.f32 %v20486_v56, %v5059_v42 }
 0x441   :  { %v7058_v6 = vadd.f32 %v6930_v31, %v23310_v2  ;;  %v20586_v22 = vadd.f32 %v8083_v41, %v20411_v15  ;;  %v7060_v4 = vadd.f32 %v6932_v57, %v23312_v52  ;;  %v13253_v31 = vld [vmem:[%s22942_s4 + $0x2a0] ss:$8 sps:$4 sm:$0xff]   ;;  %v7378_v49 = vadd.f32 %v7250_v34, %v6994_v0  ;;  %v5061_v41 = vpop.f32.mrf.mxu0  ;;  %v13261_v18 = vld [vmem:[%s22942_s4 + $0x294] ss:$8 sps:$4 sm:$0xff]   ;;  %v13267_v52 = vld [vmem:[%s22942_s4 + $0x284] ss:$8 sps:$4 sm:$0xff]  }
 0x442   :  { %v5252_v9 = vpop.f32.mrf.mxu1  ;;  %11356 = vmatpush2.bf16.msra.mxu0 %v13247_v30  ;;  %v7636_v15 = vmul.f32 %v20293_v36, %v20342_v26  ;;  %v13256_v62 = vld [vmem:[%s22942_s4 + $0x3a0] ss:$8 sps:$4 sm:$0xff]   ;;  %v7316_v38 = vmul.f32 %v20137_v12, %v20268_v46  ;;  %v8018_v30 = vmul.f32 %v20420_v43, %v20460_v27  ;;  %v20611_v26 = vadd.f32 %v8369_v10, %v20437_v14 }
 0x443   :  { %v8371_v57 = vmul.f32 %v20490_v23, %v5252_v9  ;;  %11409 = vmatpush2.bf16.msra.mxu1 %v13250_v7  ;;  %11357 = vmatprep.subr.bf16.mxu0 %v13255_v55  ;;  %v8370_v34 = vmul.f32 %v20498_v59, %v5061_v41  ;;  %v13264_v55 = vld [vmem:[%s22942_s4 + $0x394] ss:$8 sps:$4 sm:$0xff]   ;;  %v7380_v0 = vadd.f32 %v7252_v35, %v6996_v3  ;;  %v5063_v27 = vpop.f32.mrf.mxu0  ;;  %v13259_v3 = vld [vmem:[%s22942_s4 + $0x290] ss:$8 sps:$4 sm:$0xff]  }
 0x444   :  { %23313 = vst [vmem:[#allocation20_spill] sm:$0xff] %v20611_v26  ;;  %v5254_v7 = vpop.f32.mrf.mxu1  ;;  %11410 = vmatprep.subr.bf16.mxu1 %v13258_v17  ;;  %v8020_v33 = vmul.f32 %v20428_v1, %v20472_v50  ;;  %v7442_v14 = vadd.f32 %v7314_v45, %v7058_v6  ;;  %v7762_v2 = vadd.f32 %v7634_v19, %v7378_v49  ;;  %v2015_v45 = vand.u32 2147483648, %v20325_v28  ;;  %v13270_v49 = vld [vmem:[%s22942_s4 + $0x384] ss:$8 sps:$4 sm:$0xff]  }
 0x445   :  { %v20620_v12 = vadd.f32 %v8371_v57, %v20445_v39  ;;  %v8372_v46 = vmul.f32 %v20502_v53, %v5254_v7  ;;  %v20624_v48 = vadd.f32 %v8370_v34, %v20450_v51  ;;  %v8401_v17 = vmul.f32 %v20486_v56, %v5063_v27  ;;  %v5065_v6 = vpop.f32.mrf.mxu0  ;;  %v13262_v51 = vld [vmem:[%s22942_s4 + $0x390] ss:$8 sps:$4 sm:$0xff]   ;;  %v13268_v7 = vld [vmem:[%s22942_s4 + $0x380] ss:$8 sps:$4 sm:$0xff]  }
 0x446   :  { %v5256_v42 = vpop.f32.mrf.mxu1  ;;  %11358 = vmatpush2.bf16.msra.mxu0 %v13253_v31  ;;  %v7764_v50 = vadd.f32 %v7636_v15, %v7380_v0  ;;  %v7444_v19 = vadd.f32 %v7316_v38, %v7060_v4  ;;  %v8402_v9 = vmul.f32 %v20498_v59, %v5065_v6  ;;  %v7698_v15 = vmul.f32 %v20289_v5, %v20389_v37  ;;  %v13265_v5 = vld [vmem:[%s22942_s4 + $0x280] ss:$8 sps:$4 sm:$0xff]  }
 0x447   :  { %23314 = vst [vmem:[#allocation25_spill] sm:$0xff] %v20620_v12  ;;  %23315 = vst [vmem:[#allocation21_spill] sm:$0xff] %v20624_v48  ;;  %v20631_v39 = vadd.f32 %v8372_v46, %v20457_v13  ;;  %v8403_v35 = vmul.f32 %v20490_v23, %v5256_v42  ;;  %11411 = vmatpush2.bf16.msra.mxu1 %v13256_v62  ;;  %11359 = vmatprep.subr.bf16.mxu0 %v13261_v18  ;;  %v5069_v41 = vpop.f32.mrf.mxu0  ;;  %v2008_v0 = vand.u32 2147483648, %v20347_v8  ;;  %v13280_v8 = vld [vmem:[%s22942_s4 + $0x560] ss:$8 sps:$4 sm:$0xff]  }
 0x448   :  { %v8146_v13 = vadd.f32 %v8018_v30, %v7762_v2  ;;  %v20643_v10 = vadd.f32 %v8401_v17, %v20470_v25  ;;  %v5258_v31 = vpop.f32.mrf.mxu1  ;;  %11412 = vmatprep.subr.bf16.mxu1 %v13264_v55  ;;  %v8148_v57 = vadd.f32 %v8020_v33, %v7764_v50  ;;  %v7700_v62 = vmul.f32 %v20293_v36, %v20400_v44  ;;  %v13273_v55 = vld [vmem:[%s22942_s4 + $0x474] ss:$8 sps:$4 sm:$0xff]  }
 0x449   :  { %23316 = vst [vmem:[#allocation22_spill] sm:$0xff] %v20631_v39  ;;  %v20653_v4 = vadd.f32 %v8403_v35, %v20482_v21  ;;  %v8404_v25 = vmul.f32 %v20502_v53, %v5258_v31  ;;  %v8433_v30 = vmul.f32 %v20486_v56, %v5069_v41  ;;  %v5071_v44 = vpop.f32.mrf.mxu0  ;;  %v8082_v33 = vmul.f32 %v20420_v43, %v20556_v47  ;;  %v13276_v17 = vld [vmem:[%s22942_s4 + $0x574] ss:$8 sps:$4 sm:$0xff]   ;;  %v13279_v31 = vld [vmem:[%s22942_s4 + $0x464] ss:$8 sps:$4 sm:$0xff]  }
 0x44a   :  { %23317 = vst [vmem:[#allocation18_spill] sm:$0xff] %v20643_v10  ;;  %v20660_v38 = vadd.f32 %v8402_v9, %v8146_v13  ;;  %v5262_v34 = vpop.f32.mrf.mxu1  ;;  %11360 = vmatpush2.bf16.msra.mxu0 %v13259_v3  ;;  %v8434_v27 = vmul.f32 %v20498_v59, %v5071_v44  ;;  %v8084_v3 = vmul.f32 %v20428_v1, %v20568_v11  ;;  %v23378_v39 = vld [vmem:[#allocation70_spill] sm:$0xff] }
 0x44b   :  { %23318 = vst [vmem:[#allocation23_spill] sm:$0xff] %v20653_v4  ;;  %v20668_v21 = vadd.f32 %v8404_v25, %v8148_v57  ;;  %v8435_v36 = vmul.f32 %v20490_v23, %v5262_v34  ;;  %11413 = vmatpush2.bf16.msra.mxu1 %v13262_v51  ;;  %11361 = vmatprep.subr.bf16.mxu0 %v13267_v52  ;;  %v23327_v57 = vld [vmem:[#allocation36_spill] sm:$0xff] }
 0x44c   :  { %23319 = vst [vmem:[#allocation19_spill] sm:$0xff] %v20660_v38  ;;  %v20681_v46 = vadd.f32 %v8433_v30, %v20521_v60  ;;  %v5264_v2 = vpop.f32.mrf.mxu1  ;;  %11414 = vmatprep.subr.bf16.mxu1 %v13270_v49  ;;  %v5073_v60 = vpop.f32.mrf.mxu0  ;;  %v7826_v35 = vadd.f32 %v7698_v15, %v7442_v14  ;;  %v20698_v6 = vadd.f32 %v8434_v27, %v20539_v32  ;;  %v13271_v14 = vld [vmem:[%s22942_s4 + $0x470] ss:$8 sps:$4 sm:$0xff]   ;;  %v13282_v30 = vld [vmem:[%s22942_s4 + $0x564] ss:$8 sps:$4 sm:$0xff]  }
 0x44d   :  { %23320 = vst [vmem:[#allocation32_spill] sm:$0xff] %v20668_v21  ;;  %v20692_v50 = vadd.f32 %v8435_v36, %v20533_v63  ;;  %v8436_v43 = vmul.f32 %v20502_v53, %v5264_v2  ;;  %v8465_v51 = vmul.f32 %v20486_v56, %v5073_v60  ;;  %v7828_v1 = vadd.f32 %v7700_v62, %v7444_v19  ;;  %v23379_v21 = vld [vmem:[#allocation66_spill] sm:$0xff] }
 0x44e   :  { %23321 = vst [vmem:[#allocation28_spill] sm:$0xff] %v20681_v46  ;;  %23323 = vst [vmem:[#allocation29_spill] sm:$0xff] %v20698_v6  ;;  %v5266_v52 = vpop.f32.mrf.mxu1  ;;  %11362 = vmatpush2.bf16.msra.mxu0 %v13265_v5  ;;  %v5075_v13 = vpop.f32.mrf.mxu0  ;;  %v8210_v32 = vadd.f32 %v8082_v33, %v7826_v35  ;;  %v2020_v62 = vsel %vm2019_vm2, %v20372_v20, %v20579_v58  ;;  %v23332_v5 = vld [vmem:[#allocation16_spill] sm:$0xff]  ;;  %v2016_v44 = vsel %vm2014_vm15, %v2015_v45, %v20548_v61  ;;  %v13277_v45 = vld [vmem:[%s22942_s4 + $0x460] ss:$8 sps:$4 sm:$0xff]  }
 0x44f   :  { %23322 = vst [vmem:[#allocation33_spill] sm:$0xff] %v20692_v50  ;;  %v20703_v63 = vadd.f32 %v8436_v43, %v20553_v40  ;;  %v8467_v11 = vmul.f32 %v20490_v23, %v5266_v52  ;;  %11415 = vmatpush2.bf16.msra.mxu1 %v13268_v7  ;;  %11437 = vmatprep.subr.bf16.mxu0 %v13273_v55  ;;  %v13274_v23 = vld [vmem:[%s22942_s4 + $0x570] ss:$8 sps:$4 sm:$0xff]   ;;  %v2022_v40 = vand.u32 2147483648, %v20372_v20  ;;  %v23334_v7 = vld [vmem:[#allocation46_spill] sm:$0xff] }
 0x450   :  { %v20711_v56 = vadd.f32 %v8465_v51, %v20566_v29  ;;  %v8466_v19 = vmul.f32 %v20498_v59, %v5075_v13  ;;  %v5268_v9 = vpop.f32.mrf.mxu1  ;;  %11490 = vmatprep.subr.bf16.mxu1 %v13276_v17  ;;  %v8212_v49 = vadd.f32 %v8084_v3, %v7828_v1  ;;  %v23328_v59 = vld [vmem:[#allocation15_spill] sm:$0xff]  ;;  %v20728_v41 = vpop.f32.mrf.mxu0  ;;  %v23335_v55 = vld [vmem:[#allocation42_spill] sm:$0xff]  ;;  %v2009_v28 = vsel %vm2007_vm1, %v2008_v0, %v20576_v54 }
 0x451   :  { %23324 = vst [vmem:[#allocation30_spill] sm:$0xff] %v20703_v63  ;;  %v20722_v15 = vadd.f32 %v8467_v11, %v20586_v22  ;;  %v8468_v29 = vmul.f32 %v20502_v53, %v5268_v9  ;;  %v23329_v25 = vpack.c.bf16 %v23327_v57, %v23328_v59  ;;  %v23331_v53 = vld [vmem:[#allocation37_spill] sm:$0xff]  ;;  %v23336_v33 = vpack.c.bf16 %v23334_v7, %v23335_v55  ;;  %v23338_v17 = vld [vmem:[#allocation47_spill] sm:$0xff]  ;;  %v23342_v57 = vld [vmem:[#allocation40_spill] sm:$0xff] }
 0x452   :  { %23325 = vst [vmem:[#allocation26_spill] sm:$0xff] %v20711_v56  ;;  %v20739_v34 = vadd.f32 %v8466_v19, %v8210_v32  ;;  %v23333_v36 = vpack.c.bf16 %v23331_v53, %v23332_v5  ;;  %v20749_v58 = vpop.f32.mrf.mxu1  ;;  %v23339_v3 = vld [vmem:[#allocation43_spill] sm:$0xff]  ;;  %v20764_v61 = vpop.f32.mrf.mxu0  ;;  %v2052_v60 = vmul.f32 2.0833333, %v20514_v24  ;;  %v2023_v35 = vsel %vm2021_vm3, %v2022_v40, %v2020_v62  ;;  %v13294_v62 = vld [vmem:[%s22942_s4 + $0x544] ss:$8 sps:$4 sm:$0xff]  }
 0x453   :  { %23326 = vst [vmem:[#allocation31_spill] sm:$0xff] %v20722_v15  ;;  %11364 = vmatmul.mubr.bf16.vlgmr.msra.gmra.mxu0 %v23329_v25  ;;  %v20756_v2 = vadd.f32 %v8468_v29, %v8212_v49  ;;  %v23340_v43 = vpack.c.bf16 %v23338_v17, %v23339_v3  ;;  %v13285_v54 = vld [vmem:[%s22942_s4 + $0x454] ss:$8 sps:$4 sm:$0xff]   ;;  %v2054_v52 = vmul.f32 2.0833333, %v2016_v44  ;;  %v23344_v53 = vld [vmem:[#allocation45_spill] sm:$0xff]  ;;  %v23380_v48 = vpack.c.bf16 %v23378_v39, %v23379_v21 }
 0x454   :  { %23330 = vst [vmem:[#allocation27_spill] sm:$0xff] %v20739_v34  ;;  %11417 = vmatmul.mubr.bf16.vlgmr.msra.gmra.mxu1 %v23333_v36  ;;  %11373 = vmatprep.mubr.bf16.mxu0 %v23336_v33  ;;  %v20772_v51 = vpop.f32.mrf.mxu1  ;;  %v20782_v24 = vpop.f32.mrf.mxu0  ;;  %v13288_v20 = vld [vmem:[%s22942_s4 + $0x554] ss:$8 sps:$4 sm:$0xff]   ;;  %v2053_v11 = vmul.f32 2.0833333, %v2009_v28  ;;  %v2084_v9 = vsub.f32 1.0, %v2052_v60 }
 0x455   :  { %23337 = vst [vmem:[#allocation38_spill] sm:$0xff] %v20756_v2  ;;  %11426 = vmatprep.mubr.bf16.mxu1 %v23340_v43  ;;  %11438 = vmatpush1.bf16.msra.mxu0 %v13271_v14  ;;  %v2055_v14 = vmul.f32 2.0833333, %v2023_v35  ;;  %v13283_v19 = vld [vmem:[%s22942_s4 + $0x450] ss:$8 sps:$4 sm:$0xff]   ;;  %v2086_v49 = vsub.f32 1.0, %v2054_v52 }
 0x456   :  { %11491 = vmatpush1.bf16.msra.mxu1 %v13274_v23  ;;  %11439 = vmatprep.subr.bf16.mxu0 %v13279_v31  ;;  %v20789_v13 = vpop.f32.mrf.mxu1  ;;  %v20791_v32 = vpop.f32.mrf.mxu0  ;;  %v13286_v40 = vld [vmem:[%s22942_s4 + $0x550] ss:$8 sps:$4 sm:$0xff]   ;;  %v13291_v31 = vld [vmem:[%s22942_s4 + $0x444] ss:$8 sps:$4 sm:$0xff]   ;;  %v13289_v60 = vld [vmem:[%s22942_s4 + $0x440] ss:$8 sps:$4 sm:$0xff]  }
 0x457   :  { %11492 = vmatprep.subr.bf16.mxu1 %v13282_v30  ;;  %v23341_v29 = vld [vmem:[#allocation44_spill] sm:$0xff]  ;;  %v2085_v30 = vsub.f32 1.0, %v2053_v11  ;;  %v23345_v5 = vld [vmem:[#allocation41_spill] sm:$0xff]  ;;  %v23347_v7 = vld [vmem:[#allocation54_spill] sm:$0xff]  ;;  %v2087_v17 = vsub.f32 1.0, %v2055_v14  ;;  %v20828_v35 = vmax.f32 %v2084_v9, 0.0 }
 0x458   :  { %v20796_v23 = vpop.f32.mrf.mxu1  ;;  %v23343_v59 = vpack.c.bf16 %v23341_v29, %v23342_v57  ;;  %v20807_v25 = vpop.f32.mrf.mxu0  ;;  %v23346_v36 = vpack.c.bf16 %v23344_v53, %v23345_v5  ;;  %v23348_v55 = vld [vmem:[#allocation50_spill] sm:$0xff]  ;;  %v23350_v3 = vld [vmem:[#allocation55_spill] sm:$0xff] }
 0x459   :  { %11440 = vmatpush1.bf16.msra.mxu0 %v13277_v45  ;;  %v23349_v33 = vpack.c.bf16 %v23347_v7, %v23348_v55  ;;  %v23351_v43 = vld [vmem:[#allocation51_spill] sm:$0xff]  ;;  %v20858_v29 = vrot.slane %v20828_v35, %v14362_v16  ;;  %v13303_v53 = vld [vmem:[%s22942_s4 + $0x424] ss:$8 sps:$4 sm:$0xff]   ;;  %v13361_v6 = vld [vmem:[%s22942_s4 + $0x480] ss:$8 sps:$4 sm:$0xff]  }
 0x45a   :  { %11493 = vmatpush1.bf16.msra.mxu1 %v13280_v8  ;;  %11441 = vmatprep.subr.bf16.mxu0 %v13285_v54  ;;  %v20815_v44 = vpop.f32.mrf.mxu1  ;;  %v23352_v28 = vpack.c.bf16 %v23350_v3, %v23351_v43  ;;  %v20823_v45 = vpop.f32.mrf.mxu0  ;;  %v13292_v54 = vld [vmem:[%s22942_s4 + $0x540] ss:$8 sps:$4 sm:$0xff]   ;;  %v13297_v52 = vld [vmem:[%s22942_s4 + $0x434] ss:$8 sps:$4 sm:$0xff]   ;;  %v13306_v55 = vld [vmem:[%s22942_s4 + $0x524] ss:$8 sps:$4 sm:$0xff]  }
 0x45b   :  { %11374 = vmatmul.mubr.bf16.gmra.mxu0 %v23343_v59  ;;  %11494 = vmatprep.subr.bf16.mxu1 %v13288_v20  ;;  %v20838_v20 = vmax.f32 %v2086_v49, 0.0  ;;  %v13300_v14 = vld [vmem:[%s22942_s4 + $0x534] ss:$8 sps:$4 sm:$0xff]   ;;  %v13295_v49 = vld [vmem:[%s22942_s4 + $0x430] ss:$8 sps:$4 sm:$0xff]  }
 0x45c   :  { %11427 = vmatmul.mubr.bf16.gmra.mxu1 %v23346_v36  ;;  %11469 = vmatprep.mubr.bf16.mxu0 %v23349_v33  ;;  %v20830_v8 = vpop.f32.mrf.mxu1  ;;  %v20840_v11 = vpop.f32.mrf.mxu0  ;;  %v13298_v59 = vld [vmem:[%s22942_s4 + $0x530] ss:$8 sps:$4 sm:$0xff]   ;;  %v5813_v33 = vmul.f32 %v20858_v29, %v20728_v41 }
 0x45d   :  { %11442 = vmatpush1.bf16.msra.mxu0 %v13283_v19  ;;  %11522 = vmatprep.mubr.bf16.mxu1 %v23352_v28  ;;  %v20845_v19 = vmax.f32 %v2085_v30, 0.0  ;;  %v20874_v5 = vrot.slane %v20838_v20, %v14362_v16  ;;  %v13355_v56 = vld [vmem:[%s22942_s4 + $0x490] ss:$8 sps:$4 sm:$0xff]  }
 0x45e   :  { %11495 = vmatpush1.bf16.msra.mxu1 %v13286_v40  ;;  %11443 = vmatprep.subr.bf16.mxu0 %v13291_v31  ;;  %v20847_v9 = vpop.f32.mrf.mxu1  ;;  %v20849_v40 = vmax.f32 %v2087_v17, 0.0  ;;  %v20851_v31 = vpop.f32.mrf.mxu0 }
 0x45f   :  { %11496 = vmatprep.subr.bf16.mxu1 %v13294_v62  ;;  %v23353_v62 = vld [vmem:[#allocation6_spill] sm:$0xff]  ;;  %v20887_v17 = vrot.slane %v20845_v19, %v14362_v16 }
 0x460   :  { %v20860_v57 = vpop.f32.mrf.mxu1  ;;  %v20867_v30 = vrot.slane %v20828_v35, %v23353_v62  ;;  %v5325_v36 = vpop.f32.mrf.mxu0  ;;  %v20878_v7 = vrot.slane %v20838_v20, %v23353_v62  ;;  %v20892_v28 = vrot.slane %v20845_v19, %v23353_v62 }
 0x461   :  { %11444 = vmatpush1.bf16.msra.mxu0 %v13289_v60  ;;  %v5815_v60 = vmul.f32 %v20874_v5, %v20749_v58  ;;  %v5814_v27 = vmul.f32 %v20887_v17, %v20764_v61 }
 0x462   :  { %11497 = vmatpush1.bf16.msra.mxu1 %v13292_v54  ;;  %11445 = vmatprep.subr.bf16.mxu0 %v13297_v52  ;;  %v6069_v3 = vmul.f32 %v20867_v30, %v5325_v36  ;;  %v5518_v43 = vpop.f32.mrf.mxu1  ;;  %v20898_v54 = vrot.slane %v20849_v40, %v14362_v16  ;;  %v5327_v52 = vpop.f32.mrf.mxu0  ;;  %v13301_v36 = vld [vmem:[%s22942_s4 + $0x420] ss:$8 sps:$4 sm:$0xff]  }
 0x463   :  { %11498 = vmatprep.subr.bf16.mxu1 %v13300_v14  ;;  %v6071_v41 = vmul.f32 %v20878_v7, %v5518_v43  ;;  %v20903_v14 = vrot.slane %v20849_v40, %v23353_v62  ;;  %v6070_v22 = vmul.f32 %v20892_v28, %v5327_v52  ;;  %v13309_v43 = vld [vmem:[%s22942_s4 + $0x414] ss:$8 sps:$4 sm:$0xff]  }
 0x464   :  { %v20910_v58 = vadd.f32 %v6069_v3, %v5813_v33  ;;  %v5520_v1 = vpop.f32.mrf.mxu1  ;;  %v5816_v0 = vmul.f32 %v20898_v54, %v20772_v51  ;;  %v5845_v33 = vmul.f32 %v20858_v29, %v20782_v24  ;;  %v5847_v51 = vmul.f32 %v20874_v5, %v20789_v13 }
 0x465   :  { %11446 = vmatpush1.bf16.msra.mxu0 %v13295_v49  ;;  %v13304_v49 = vld [vmem:[%s22942_s4 + $0x520] ss:$8 sps:$4 sm:$0xff]   ;;  %v20921_v37 = vadd.f32 %v6071_v41, %v5815_v60  ;;  %v6072_v61 = vmul.f32 %v20903_v14, %v5520_v1  ;;  %v20929_v3 = vadd.f32 %v6070_v22, %v5814_v27  ;;  %v13307_v41 = vld [vmem:[%s22942_s4 + $0x410] ss:$8 sps:$4 sm:$0xff]  }
 0x466   :  { %11499 = vmatpush1.bf16.msra.mxu1 %v13298_v59  ;;  %11447 = vmatprep.subr.bf16.mxu0 %v13303_v53  ;;  %v5329_v59 = vpop.f32.mrf.mxu0  ;;  %v13312_v53 = vld [vmem:[%s22942_s4 + $0x514] ss:$8 sps:$4 sm:$0xff]   ;;  %v5522_v18 = vpop.f32.mrf.mxu1  ;;  %v13310_v27 = vld [vmem:[%s22942_s4 + $0x510] ss:$8 sps:$4 sm:$0xff]  }
 0x467   :  { %11500 = vmatprep.subr.bf16.mxu1 %v13306_v55  ;;  %v6101_v52 = vmul.f32 %v20867_v30, %v5329_v59  ;;  %v20934_v60 = vadd.f32 %v6072_v61, %v5816_v0  ;;  %v6103_v1 = vmul.f32 %v20878_v7, %v5522_v18  ;;  %v13315_v18 = vld [vmem:[%s22942_s4 + $0x404] ss:$8 sps:$4 sm:$0xff]   ;;  %v5879_v59 = vmul.f32 %v20874_v5, %v20815_v44  ;;  %v13316_v44 = vld [vmem:[%s22942_s4 + $0x500] ss:$8 sps:$4 sm:$0xff]  }
 0x468   :  { %v20937_v55 = vpop.f32.mrf.mxu0  ;;  %v20944_v22 = vpop.f32.mrf.mxu1 }
 0x469   :  { %11448 = vmatpush1.bf16.msra.mxu0 %v13301_v36  ;;  %v20942_v24 = vadd.f32 %v6101_v52, %v5845_v33  ;;  %v20952_v0 = vadd.f32 %v6103_v1, %v5847_v51  ;;  %v13318_v36 = vld [vmem:[%s22942_s4 + $0x504] ss:$8 sps:$4 sm:$0xff]   ;;  %v5878_v51 = vmul.f32 %v20887_v17, %v20823_v45 }
 0x46a   :  { %11501 = vmatpush1.bf16.msra.mxu1 %v13304_v49  ;;  %11449 = vmatprep.subr.bf16.mxu0 %v13309_v43  ;;  %v5335_v13 = vpop.f32.mrf.mxu0  ;;  %v5877_v49 = vmul.f32 %v20858_v29, %v20807_v25  ;;  %v5528_v61 = vpop.f32.mrf.mxu1 }
 0x46b   :  { %11502 = vmatprep.subr.bf16.mxu1 %v13312_v53  ;;  %v6133_v43 = vmul.f32 %v20867_v30, %v5335_v13  ;;  %v6135_v33 = vmul.f32 %v20878_v7, %v5528_v61  ;;  %v13313_v53 = vld [vmem:[%s22942_s4 + $0x400] ss:$8 sps:$4 sm:$0xff]   ;;  %v5880_v61 = vmul.f32 %v20898_v54, %v20830_v8  ;;  %v5911_v8 = vmul.f32 %v20874_v5, %v20847_v9  ;;  %v13322_v9 = vld [vmem:[%s22942_s4 + $0x5f0] ss:$8 sps:$4 sm:$0xff]   ;;  %v13327_v5 = vld [vmem:[%s22942_s4 + $0x4e4] ss:$8 sps:$4 sm:$0xff]  }
 0x46c   :  { %v5337_v52 = vpop.f32.mrf.mxu0  ;;  %v5530_v13 = vpop.f32.mrf.mxu1 }
 0x46d   :  { %11450 = vmatpush1.bf16.msra.mxu0 %v13307_v41  ;;  %v20968_v1 = vadd.f32 %v6133_v43, %v5877_v49  ;;  %v6134_v25 = vmul.f32 %v20892_v28, %v5337_v52  ;;  %v13321_v41 = vld [vmem:[%s22942_s4 + $0x4f4] ss:$8 sps:$4 sm:$0xff]   ;;  %v20979_v47 = vadd.f32 %v6135_v33, %v5879_v59  ;;  %v6136_v45 = vmul.f32 %v20903_v14, %v5530_v13  ;;  %v13319_v13 = vld [vmem:[%s22942_s4 + $0x4f0] ss:$8 sps:$4 sm:$0xff]  }
 0x46e   :  { %11503 = vmatpush1.bf16.msra.mxu1 %v13310_v27  ;;  %11451 = vmatprep.subr.bf16.mxu0 %v13315_v18  ;;  %v5339_v27 = vpop.f32.mrf.mxu0  ;;  %v13324_v18 = vld [vmem:[%s22942_s4 + $0x5f4] ss:$8 sps:$4 sm:$0xff]   ;;  %v5909_v49 = vmul.f32 %v20858_v29, %v20840_v11  ;;  %v5532_v42 = vpop.f32.mrf.mxu1 }
 0x46f   :  { %11504 = vmatprep.subr.bf16.mxu1 %v13318_v36  ;;  %v20987_v43 = vadd.f32 %v6134_v25, %v5878_v51  ;;  %v6165_v52 = vmul.f32 %v20867_v30, %v5339_v27  ;;  %v20992_v59 = vadd.f32 %v6136_v45, %v5880_v61  ;;  %v6167_v36 = vmul.f32 %v20878_v7, %v5532_v42  ;;  %v23354_v30 = vld [vmem:[#allocation10_spill] sm:$0xff] }
 0x470   :  { %v20995_v33 = vpop.f32.mrf.mxu0  ;;  %v21002_v29 = vpop.f32.mrf.mxu1  ;;  %v21009_v42 = vrot.slane %v20828_v35, %v23354_v30  ;;  %v6420_v51 = vrot.slane %v20838_v20, %v23354_v30  ;;  %v13330_v25 = vld [vmem:[%s22942_s4 + $0x5e4] ss:$8 sps:$4 sm:$0xff]   ;;  %v21024_v61 = vrot.slane %v20845_v19, %v23354_v30 }
 0x471   :  { %11452 = vmatpush1.bf16.msra.mxu0 %v13313_v53  ;;  %v21000_v11 = vadd.f32 %v6165_v52, %v5909_v49  ;;  %v21014_v7 = vadd.f32 %v6167_v36, %v5911_v8  ;;  %v13325_v49 = vld [vmem:[%s22942_s4 + $0x4e0] ss:$8 sps:$4 sm:$0xff]  }
 0x472   :  { %11505 = vmatpush1.bf16.msra.mxu1 %v13316_v44  ;;  %11453 = vmatprep.subr.bf16.mxu0 %v13321_v41  ;;  %v5345_v53 = vpop.f32.mrf.mxu0  ;;  %v5538_v41 = vpop.f32.mrf.mxu1 }
 0x473   :  { %11506 = vmatprep.subr.bf16.mxu1 %v13324_v18  ;;  %v6453_v44 = vmul.f32 %v21009_v42, %v5345_v53  ;;  %v6455_v45 = vmul.f32 %v6420_v51, %v5538_v41  ;;  %v21028_v18 = vrot.slane %v20849_v40, %v23354_v30  ;;  %v13333_v30 = vld [vmem:[%s22942_s4 + $0x4d4] ss:$8 sps:$4 sm:$0xff]  }
 0x474   :  { %v5347_v27 = vpop.f32.mrf.mxu0  ;;  %v5540_v36 = vpop.f32.mrf.mxu1 }
 0x475   :  { %11454 = vmatpush2.bf16.msra.mxu0 %v13319_v13  ;;  %v21034_v52 = vadd.f32 %v6453_v44, %v20910_v58  ;;  %v6454_v8 = vmul.f32 %v21024_v61, %v5347_v27  ;;  %v13328_v13 = vld [vmem:[%s22942_s4 + $0x5e0] ss:$8 sps:$4 sm:$0xff]   ;;  %v21044_v53 = vadd.f32 %v6455_v45, %v20921_v37  ;;  %v6456_v41 = vmul.f32 %v21028_v18, %v5540_v36 }
 0x476   :  { %11507 = vmatpush2.bf16.msra.mxu1 %v13322_v9  ;;  %11455 = vmatprep.subr.bf16.mxu0 %v13327_v5  ;;  %v5349_v58 = vpop.f32.mrf.mxu0  ;;  %v13336_v9 = vld [vmem:[%s22942_s4 + $0x5d4] ss:$8 sps:$4 sm:$0xff]   ;;  %v5542_v27 = vpop.f32.mrf.mxu1 }
 0x477   :  { %11508 = vmatprep.subr.bf16.mxu1 %v13330_v25  ;;  %v21051_v5 = vadd.f32 %v6454_v8, %v20929_v3  ;;  %v6485_v44 = vmul.f32 %v21009_v42, %v5349_v58  ;;  %v21055_v62 = vadd.f32 %v6456_v41, %v20934_v60  ;;  %v6487_v16 = vmul.f32 %v6420_v51, %v5542_v27  ;;  %v13331_v25 = vld [vmem:[%s22942_s4 + $0x4d0] ss:$8 sps:$4 sm:$0xff]  }
 0x478   :  { %v21057_v37 = vpop.f32.mrf.mxu0  ;;  %v21065_v3 = vpop.f32.mrf.mxu1  ;;  %v13334_v60 = vld [vmem:[%s22942_s4 + $0x5d0] ss:$8 sps:$4 sm:$0xff]  }
 0x479   :  { %11456 = vmatpush2.bf16.msra.mxu0 %v13325_v49  ;;  %v21063_v45 = vadd.f32 %v6485_v44, %v20942_v24  ;;  %v13339_v49 = vld [vmem:[%s22942_s4 + $0x4c4] ss:$8 sps:$4 sm:$0xff]   ;;  %v21074_v8 = vadd.f32 %v6487_v16, %v20952_v0  ;;  %v13337_v44 = vld [vmem:[%s22942_s4 + $0x4c0] ss:$8 sps:$4 sm:$0xff]  }
 0x47a   :  { %11509 = vmatpush2.bf16.msra.mxu1 %v13328_v13  ;;  %11457 = vmatprep.subr.bf16.mxu0 %v13333_v30  ;;  %v5355_v36 = vpop.f32.mrf.mxu0  ;;  %v13342_v24 = vld [vmem:[%s22942_s4 + $0x5c4] ss:$8 sps:$4 sm:$0xff]   ;;  %v5548_v30 = vpop.f32.mrf.mxu1 }
 0x47b   :  { %11510 = vmatprep.subr.bf16.mxu1 %v13336_v9  ;;  %v6517_v13 = vmul.f32 %v21009_v42, %v5355_v36  ;;  %v6519_v41 = vmul.f32 %v6420_v51, %v5548_v30  ;;  %v13340_v9 = vld [vmem:[%s22942_s4 + $0x5c0] ss:$8 sps:$4 sm:$0xff]  }
 0x47c   :  { %v5357_v58 = vpop.f32.mrf.mxu0  ;;  %v5550_v0 = vpop.f32.mrf.mxu1 }
 0x47d   :  { %11458 = vmatpush2.bf16.msra.mxu0 %v13331_v25  ;;  %v21084_v27 = vadd.f32 %v6517_v13, %v20968_v1  ;;  %v6518_v16 = vmul.f32 %v21024_v61, %v5357_v58  ;;  %v13345_v25 = vld [vmem:[%s22942_s4 + $0x4b4] ss:$8 sps:$4 sm:$0xff]   ;;  %v21094_v36 = vadd.f32 %v6519_v41, %v20979_v47  ;;  %v6520_v30 = vmul.f32 %v21028_v18, %v5550_v0 }
 0x47e   :  { %11511 = vmatpush2.bf16.msra.mxu1 %v13334_v60  ;;  %11459 = vmatprep.subr.bf16.mxu0 %v13339_v49  ;;  %v5359_v1 = vpop.f32.mrf.mxu0  ;;  %v13348_v60 = vld [vmem:[%s22942_s4 + $0x5b4] ss:$8 sps:$4 sm:$0xff]   ;;  %v5552_v58 = vpop.f32.mrf.mxu1 }
 0x47f   :  { %11512 = vmatprep.subr.bf16.mxu1 %v13342_v24  ;;  %v21101_v49 = vadd.f32 %v6518_v16, %v20987_v43  ;;  %v6549_v13 = vmul.f32 %v21009_v42, %v5359_v1  ;;  %v21105_v50 = vadd.f32 %v6520_v30, %v20992_v59  ;;  %v6551_v15 = vmul.f32 %v6420_v51, %v5552_v58  ;;  %v13343_v24 = vld [vmem:[%s22942_s4 + $0x4b0] ss:$8 sps:$4 sm:$0xff]   ;;  %v13351_v51 = vld [vmem:[%s22942_s4 + $0x4a4] ss:$8 sps:$4 sm:$0xff]   ;;  %v13352_v58 = vld [vmem:[%s22942_s4 + $0x5a0] ss:$8 sps:$4 sm:$0xff]  }
 0x480   :  { %v5361_v47 = vpop.f32.mrf.mxu0  ;;  %v5554_v0 = vpop.f32.mrf.mxu1  ;;  %v13346_v43 = vld [vmem:[%s22942_s4 + $0x5b0] ss:$8 sps:$4 sm:$0xff]  }
 0x481   :  { %11460 = vmatpush2.bf16.msra.mxu0 %v13337_v44  ;;  %v21111_v41 = vadd.f32 %v6549_v13, %v21000_v11  ;;  %v23355_v42 = vld [vmem:[#allocation12_spill] sm:$0xff]  ;;  %v21124_v44 = vadd.f32 %v6551_v15, %v21014_v7  ;;  %v13349_v15 = vld [vmem:[%s22942_s4 + $0x4a0] ss:$8 sps:$4 sm:$0xff]  }
 0x482   :  { %11513 = vmatpush2.bf16.msra.mxu1 %v13340_v9  ;;  %11461 = vmatprep.subr.bf16.mxu0 %v13345_v25  ;;  %v21118_v59 = vrot.slane %v20828_v35, %v23355_v42  ;;  %v5365_v11 = vpop.f32.mrf.mxu0  ;;  %v21128_v16 = vrot.slane %v20838_v20, %v23355_v42  ;;  %v13354_v9 = vld [vmem:[%s22942_s4 + $0x5a4] ss:$8 sps:$4 sm:$0xff]   ;;  %v5558_v30 = vpop.f32.mrf.mxu1 }
 0x483   :  { %11514 = vmatprep.subr.bf16.mxu1 %v13348_v60 }
 0x484   :  { %v6837_v25 = vmul.f32 %v21118_v59, %v5365_v11  ;;  %v6839_v1 = vmul.f32 %v21128_v16, %v5558_v30  ;;  %v21135_v13 = vpop.f32.mrf.mxu0  ;;  %v21143_v60 = vpop.f32.mrf.mxu1 }
 0x485   :  { %11462 = vmatpush2.bf16.msra.mxu0 %v13343_v24  ;;  %v13357_v24 = vld [vmem:[%s22942_s4 + $0x494] ss:$8 sps:$4 sm:$0xff]  }
 0x486   :  { %v21141_v7 = vadd.f32 %v6837_v25, %v21034_v52  ;;  %11515 = vmatpush2.bf16.msra.mxu1 %v13346_v43  ;;  %11463 = vmatprep.subr.bf16.mxu0 %v13351_v51  ;;  %v21152_v11 = vadd.f32 %v6839_v1, %v21044_v53  ;;  %v5369_v30 = vpop.f32.mrf.mxu0  ;;  %v13360_v52 = vld [vmem:[%s22942_s4 + $0x594] ss:$8 sps:$4 sm:$0xff]   ;;  %v5562_v51 = vpop.f32.mrf.mxu1  ;;  %v13358_v1 = vld [vmem:[%s22942_s4 + $0x590] ss:$8 sps:$4 sm:$0xff]  }
 0x487   :  { %11516 = vmatprep.subr.bf16.mxu1 %v13354_v9  ;;  %v6869_v43 = vmul.f32 %v21118_v59, %v5369_v30  ;;  %v6871_v25 = vmul.f32 %v21128_v16, %v5562_v51 }
 0x488   :  { %v21159_v46 = vpop.f32.mrf.mxu0  ;;  %v21167_v9 = vpop.f32.mrf.mxu1 }
 0x489   :  { %11464 = vmatpush2.bf16.msra.mxu0 %v13349_v15  ;;  %v21165_v53 = vadd.f32 %v6869_v43, %v21063_v45  ;;  %v13363_v15 = vld [vmem:[%s22942_s4 + $0x484] ss:$8 sps:$4 sm:$0xff]   ;;  %v21176_v30 = vadd.f32 %v6871_v25, %v21074_v8  ;;  %v5910_v8 = vmul.f32 %v20887_v17, %v20851_v31  ;;  %v21194_v25 = vrot.slane %v20849_v40, %v23355_v42 }
 0x48a   :  { %11517 = vmatpush2.bf16.msra.mxu1 %v13352_v58  ;;  %11465 = vmatprep.subr.bf16.mxu0 %v13357_v24  ;;  %v5375_v51 = vpop.f32.mrf.mxu0  ;;  %v13366_v45 = vld [vmem:[%s22942_s4 + $0x584] ss:$8 sps:$4 sm:$0xff]   ;;  %v6166_v58 = vmul.f32 %v20892_v28, %v20995_v33  ;;  %v21185_v24 = vrot.slane %v20845_v19, %v23355_v42  ;;  %v5568_v63 = vpop.f32.mrf.mxu1  ;;  %v5912_v42 = vmul.f32 %v20898_v54, %v20860_v57 }
 0x48b   :  { %11518 = vmatprep.subr.bf16.mxu1 %v13360_v52  ;;  %v6901_v43 = vmul.f32 %v21118_v59, %v5375_v51  ;;  %v6168_v52 = vmul.f32 %v20903_v14, %v21002_v29  ;;  %v6903_v2 = vmul.f32 %v21128_v16, %v5568_v63  ;;  %v6550_v51 = vmul.f32 %v21024_v61, %v5361_v47  ;;  %v13364_v63 = vld [vmem:[%s22942_s4 + $0x580] ss:$8 sps:$4 sm:$0xff]  }
 0x48c   :  { %v5377_v33 = vpop.f32.mrf.mxu0  ;;  %v5570_v29 = vpop.f32.mrf.mxu1  ;;  %v6552_v47 = vmul.f32 %v21028_v18, %v5554_v0 }
 0x48d   :  { %11466 = vmatpush2.bf16.msra.mxu0 %v13355_v56  ;;  %v21202_v34 = vadd.f32 %v6901_v43, %v21084_v27  ;;  %v6902_v31 = vmul.f32 %v21185_v24, %v5377_v33  ;;  %v13369_v56 = vld [vmem:[%s22942_s4 + $0x674] ss:$8 sps:$4 sm:$0xff]   ;;  %v21215_v27 = vadd.f32 %v6903_v2, %v21094_v36  ;;  %v6294_v33 = vadd.f32 %v6166_v58, %v5910_v8 }
 0x48e   :  { %11519 = vmatpush2.bf16.msra.mxu1 %v13358_v1  ;;  %11467 = vmatprep.subr.bf16.mxu0 %v13363_v15  ;;  %v6904_v1 = vmul.f32 %v21194_v25, %v5570_v29  ;;  %v5379_v15 = vpop.f32.mrf.mxu0  ;;  %v13372_v43 = vld [vmem:[%s22942_s4 + $0x774] ss:$8 sps:$4 sm:$0xff]   ;;  %v5572_v57 = vpop.f32.mrf.mxu1  ;;  %v6296_v26 = vadd.f32 %v6168_v52, %v5912_v42 }
 0x48f   :  { %11520 = vmatprep.subr.bf16.mxu1 %v13366_v45  ;;  %v21222_v12 = vadd.f32 %v6902_v31, %v21101_v49  ;;  %v6933_v4 = vmul.f32 %v21118_v59, %v5379_v15  ;;  %v6935_v2 = vmul.f32 %v21128_v16, %v5572_v57  ;;  %v23356_v45 = vld [vmem:[#allocation7_spill] sm:$0xff]  ;;  %v6678_v10 = vadd.f32 %v6550_v51, %v6294_v33  ;;  %v13375_v51 = vld [vmem:[%s22942_s4 + $0x664] ss:$8 sps:$4 sm:$0xff]   ;;  %v23358_v31 = vld [vmem:[#allocation48_spill] sm:$0xff] }
 0x490   :  { %v21226_v0 = vadd.f32 %v6904_v1, %v21105_v50  ;;  %v5381_v36 = vpop.f32.mrf.mxu0  ;;  %v21231_v29 = vrot.slane %v20828_v35, %v23356_v45  ;;  %v5574_v59 = vpop.f32.mrf.mxu1  ;;  %v13367_v50 = vld [vmem:[%s22942_s4 + $0x670] ss:$8 sps:$4 sm:$0xff]   ;;  %v6680_v16 = vadd.f32 %v6552_v47, %v6296_v26  ;;  %v21249_v52 = vrot.slane %v20838_v20, %v23356_v45  ;;  %v13378_v47 = vld [vmem:[%s22942_s4 + $0x764] ss:$8 sps:$4 sm:$0xff]  }
 0x491   :  { %11468 = vmatpush2.bf16.msra.mxu0 %v13361_v6  ;;  %v21234_v58 = vadd.f32 %v6933_v4, %v21111_v41  ;;  %v6934_v49 = vmul.f32 %v21185_v24, %v5381_v36  ;;  %v21241_v6 = vadd.f32 %v6935_v2, %v21124_v44  ;;  %v6936_v8 = vmul.f32 %v21194_v25, %v5574_v59  ;;  %v13370_v4 = vld [vmem:[%s22942_s4 + $0x770] ss:$8 sps:$4 sm:$0xff]   ;;  %v23360_v15 = vld [vmem:[#allocation53_spill] sm:$0xff]  ;;  %v23363_v57 = vld [vmem:[#allocation62_spill] sm:$0xff] }
 0x492   :  { %11521 = vmatpush2.bf16.msra.mxu1 %v13364_v63  ;;  %11543 = vmatprep.subr.bf16.mxu0 %v13369_v56  ;;  %v5385_v41 = vpop.f32.mrf.mxu0  ;;  %v23357_v44 = vld [vmem:[#allocation52_spill] sm:$0xff]  ;;  %v5578_v42 = vpop.f32.mrf.mxu1  ;;  %v23364_v2 = vld [vmem:[#allocation58_spill] sm:$0xff] }
 0x493   :  { %11596 = vmatprep.subr.bf16.mxu1 %v13372_v43  ;;  %v21254_v26 = vadd.f32 %v6934_v49, %v6678_v10  ;;  %v23359_v63 = vpack.c.bf16 %v23357_v44, %v23358_v31  ;;  %v7221_v56 = vmul.f32 %v21231_v29, %v5385_v41  ;;  %v21263_v1 = vadd.f32 %v6936_v8, %v6680_v16  ;;  %v23361_v43 = vld [vmem:[#allocation49_spill] sm:$0xff]  ;;  %v23366_v41 = vld [vmem:[#allocation63_spill] sm:$0xff] }
 0x494   :  { %v23362_v33 = vpack.c.bf16 %v23360_v15, %v23361_v43  ;;  %v7223_v10 = vmul.f32 %v21249_v52, %v5578_v42  ;;  %v23365_v36 = vpack.c.bf16 %v23363_v57, %v23364_v2  ;;  %v21272_v49 = vpop.f32.mrf.mxu0  ;;  %v23367_v44 = vld [vmem:[#allocation59_spill] sm:$0xff]  ;;  %v21280_v16 = vpop.f32.mrf.mxu1  ;;  %v13373_v8 = vld [vmem:[%s22942_s4 + $0x660] ss:$8 sps:$4 sm:$0xff]  }
 0x495   :  { %11470 = vmatmul.mubr.bf16.vlgmr.msra.gmra.mxu0 %v23359_v63  ;;  %v21275_v59 = vadd.f32 %v7221_v56, %v21141_v7  ;;  %v23368_v31 = vpack.c.bf16 %v23366_v41, %v23367_v44  ;;  %v13376_v7 = vld [vmem:[%s22942_s4 + $0x760] ss:$8 sps:$4 sm:$0xff]   ;;  %v13382_v57 = vld [vmem:[%s22942_s4 + $0x750] ss:$8 sps:$4 sm:$0xff]  }
 0x496   :  { %11523 = vmatmul.mubr.bf16.vlgmr.msra.gmra.mxu1 %v23362_v33  ;;  %11479 = vmatprep.mubr.bf16.mxu0 %v23365_v36  ;;  %v21286_v63 = vadd.f32 %v7223_v10, %v21152_v11  ;;  %v5389_v56 = vpop.f32.mrf.mxu0  ;;  %v5582_v15 = vpop.f32.mrf.mxu1  ;;  %v13384_v11 = vld [vmem:[%s22942_s4 + $0x754] ss:$8 sps:$4 sm:$0xff]   ;;  %v21320_v36 = vrot.slane %v20845_v19, %v23356_v45 }
 0x497   :  { %11532 = vmatprep.mubr.bf16.mxu1 %v23368_v31  ;;  %11544 = vmatpush1.bf16.msra.mxu0 %v13367_v50  ;;  %v13381_v50 = vld [vmem:[%s22942_s4 + $0x654] ss:$8 sps:$4 sm:$0xff]   ;;  %v7253_v42 = vmul.f32 %v21231_v29, %v5389_v56  ;;  %v21331_v56 = vrot.slane %v20849_v40, %v23356_v45 }
 0x498   :  { %11597 = vmatpush1.bf16.msra.mxu1 %v13370_v4  ;;  %11545 = vmatprep.subr.bf16.mxu0 %v13375_v51  ;;  %v7255_v4 = vmul.f32 %v21249_v52, %v5582_v15  ;;  %v21299_v51 = vpop.f32.mrf.mxu0  ;;  %v21304_v33 = vpop.f32.mrf.mxu1  ;;  %v23369_v41 = vld [vmem:[#allocation60_spill] sm:$0xff] }
 0x499   :  { %11598 = vmatprep.subr.bf16.mxu1 %v13378_v47  ;;  %v21302_v43 = vadd.f32 %v7253_v42, %v21165_v53  ;;  %v13379_v47 = vld [vmem:[%s22942_s4 + $0x650] ss:$8 sps:$4 sm:$0xff]   ;;  %v13387_v53 = vld [vmem:[%s22942_s4 + $0x644] ss:$8 sps:$4 sm:$0xff]  }
 0x49a   :  { %v21310_v10 = vadd.f32 %v7255_v4, %v21176_v30  ;;  %v5395_v2 = vpop.f32.mrf.mxu0  ;;  %v23370_v44 = vld [vmem:[#allocation56_spill] sm:$0xff]  ;;  %v23373_v42 = vld [vmem:[#allocation57_spill] sm:$0xff] }
 0x49b   :  { %11546 = vmatpush1.bf16.msra.mxu0 %v13373_v8  ;;  %v23371_v31 = vpack.c.bf16 %v23369_v41, %v23370_v44  ;;  %v7285_v30 = vmul.f32 %v21231_v29, %v5395_v2  ;;  %v5588_v8 = vpop.f32.mrf.mxu1  ;;  %v23375_v41 = vld [vmem:[#allocation69_spill] sm:$0xff] }
 0x49c   :  { %11599 = vmatpush1.bf16.msra.mxu1 %v13376_v7  ;;  %11547 = vmatprep.subr.bf16.mxu0 %v13381_v50  ;;  %v13390_v7 = vld [vmem:[%s22942_s4 + $0x744] ss:$8 sps:$4 sm:$0xff]   ;;  %v7287_v4 = vmul.f32 %v21249_v52, %v5588_v8  ;;  %v5397_v2 = vpop.f32.mrf.mxu0  ;;  %v13385_v8 = vld [vmem:[%s22942_s4 + $0x640] ss:$8 sps:$4 sm:$0xff]  }
 0x49d   :  { %11480 = vmatmul.mubr.bf16.gmra.mxu0 %v23371_v31  ;;  %11600 = vmatprep.subr.bf16.mxu1 %v13384_v11  ;;  %v23372_v50 = vld [vmem:[#allocation61_spill] sm:$0xff]  ;;  %v21341_v31 = vadd.f32 %v7285_v30, %v21202_v34  ;;  %v7286_v45 = vmul.f32 %v21320_v36, %v5397_v2  ;;  %v5590_v38 = vpop.f32.mrf.mxu1 }
 0x49e   :  { %v23374_v15 = vpack.c.bf16 %v23372_v50, %v23373_v42  ;;  %v23376_v44 = vld [vmem:[#allocation65_spill] sm:$0xff]  ;;  %v21351_v50 = vadd.f32 %v7287_v4, %v21215_v27  ;;  %v7288_v42 = vmul.f32 %v21331_v56, %v5590_v38  ;;  %v5399_v39 = vpop.f32.mrf.mxu0  ;;  %v13396_v38 = vld [vmem:[%s22942_s4 + $0x734] ss:$8 sps:$4 sm:$0xff]  }
 0x49f   :  { %v23377_v11 = vpack.c.bf16 %v23375_v41, %v23376_v44  ;;  %11548 = vmatpush1.bf16.msra.mxu0 %v13379_v47  ;;  %v13388_v34 = vld [vmem:[%s22942_s4 + $0x740] ss:$8 sps:$4 sm:$0xff]   ;;  %v21361_v21 = vadd.f32 %v7286_v45, %v21222_v12  ;;  %v7317_v27 = vmul.f32 %v21231_v29, %v5399_v39  ;;  %v5592_v47 = vpop.f32.mrf.mxu1  ;;  %v13391_v29 = vld [vmem:[%s22942_s4 + $0x630] ss:$8 sps:$4 sm:$0xff]   ;;  %v13399_v2 = vld [vmem:[%s22942_s4 + $0x624] ss:$8 sps:$4 sm:$0xff]  }
 0x4a0   :  { %11533 = vmatmul.mubr.bf16.gmra.mxu1 %v23374_v15  ;;  %11549 = vmatprep.subr.bf16.mxu0 %v13387_v53  ;;  %v7319_v53 = vmul.f32 %v21249_v52, %v5592_v47  ;;  %v5401_v30 = vpop.f32.mrf.mxu0  ;;  %v23381_v4 = vld [vmem:[#allocation8_spill] sm:$0xff]  ;;  %v13397_v47 = vld [vmem:[%s22942_s4 + $0x620] ss:$8 sps:$4 sm:$0xff]  }
 0x4a1   :  { %11575 = vmatprep.mubr.bf16.mxu0 %v23377_v11  ;;  %11628 = vmatprep.mubr.bf16.mxu1 %v23380_v48  ;;  %v13393_v48 = vld [vmem:[%s22942_s4 + $0x634] ss:$8 sps:$4 sm:$0xff]   ;;  %v21372_v15 = vadd.f32 %v7317_v27, %v21234_v58  ;;  %v7318_v12 = vmul.f32 %v21320_v36, %v5401_v30  ;;  %v21380_v41 = vrot.slane %v20828_v35, %v23381_v4  ;;  %v13394_v58 = vld [vmem:[%s22942_s4 + $0x730] ss:$8 sps:$4 sm:$0xff]  }
 0x4a2   :  { %11601 = vmatpush1.bf16.msra.mxu1 %v13382_v57  ;;  %v21368_v57 = vadd.f32 %v7288_v42, %v21226_v0  ;;  %v21383_v0 = vadd.f32 %v7319_v53, %v21241_v6  ;;  %v5405_v44 = vpop.f32.mrf.mxu0  ;;  %v7572_v11 = vrot.slane %v20838_v20, %v23381_v4  ;;  %v13402_v42 = vld [vmem:[%s22942_s4 + $0x724] ss:$8 sps:$4 sm:$0xff]  }
 0x4a3   :  { %11602 = vmatprep.subr.bf16.mxu1 %v13390_v7  ;;  %11550 = vmatpush1.bf16.msra.mxu0 %v13385_v8  ;;  %v5594_v7 = vpop.f32.mrf.mxu1  ;;  %v21395_v45 = vadd.f32 %v7318_v12, %v21254_v26  ;;  %v7605_v6 = vmul.f32 %v21380_v41, %v5405_v44  ;;  %v13403_v44 = vld [vmem:[%s22942_s4 + $0x610] ss:$8 sps:$4 sm:$0xff]  }
 0x4a4   :  { %v7320_v52 = vmul.f32 %v21331_v56, %v5594_v7  ;;  %11551 = vmatprep.subr.bf16.mxu0 %v13393_v48  ;;  %v21404_v48 = vpop.f32.mrf.mxu0 }
 0x4a5   :  { %v5598_v8 = vpop.f32.mrf.mxu1  ;;  %v21407_v27 = vadd.f32 %v7605_v6, %v21275_v59  ;;  %v13405_v59 = vld [vmem:[%s22942_s4 + $0x614] ss:$8 sps:$4 sm:$0xff]   ;;  %v13406_v6 = vld [vmem:[%s22942_s4 + $0x710] ss:$8 sps:$4 sm:$0xff]  }
 0x4a6   :  { %11603 = vmatpush1.bf16.msra.mxu1 %v13388_v34  ;;  %v21402_v34 = vadd.f32 %v7320_v52, %v21263_v1  ;;  %v7607_v39 = vmul.f32 %v7572_v11, %v5598_v8  ;;  %v13400_v1 = vld [vmem:[%s22942_s4 + $0x720] ss:$8 sps:$4 sm:$0xff]   ;;  %v5409_v53 = vpop.f32.mrf.mxu0 }
 0x4a7   :  { %11604 = vmatprep.subr.bf16.mxu1 %v13396_v38  ;;  %11552 = vmatpush1.bf16.msra.mxu0 %v13391_v29  ;;  %v21409_v26 = vpop.f32.mrf.mxu1  ;;  %v7637_v30 = vmul.f32 %v21380_v41, %v5409_v53 }
 0x4a8   :  { %v21415_v38 = vadd.f32 %v7607_v39, %v21286_v63  ;;  %11553 = vmatprep.subr.bf16.mxu0 %v13399_v2  ;;  %v13408_v63 = vld [vmem:[%s22942_s4 + $0x714] ss:$8 sps:$4 sm:$0xff]   ;;  %v21427_v29 = vpop.f32.mrf.mxu0 }
 0x4a9   :  { %v5602_v12 = vpop.f32.mrf.mxu1  ;;  %v21430_v52 = vadd.f32 %v7637_v30, %v21302_v43  ;;  %v13411_v43 = vld [vmem:[%s22942_s4 + $0x604] ss:$8 sps:$4 sm:$0xff]  }
 0x4aa   :  { %11605 = vmatpush1.bf16.msra.mxu1 %v13394_v58  ;;  %v7639_v7 = vmul.f32 %v7572_v11, %v5602_v12  ;;  %v5415_v8 = vpop.f32.mrf.mxu0 }
 0x4ab   :  { %11606 = vmatprep.subr.bf16.mxu1 %v13402_v42  ;;  %11554 = vmatpush1.bf16.msra.mxu0 %v13397_v47  ;;  %v21432_v58 = vpop.f32.mrf.mxu1  ;;  %v21448_v42 = vrot.slane %v20845_v19, %v23381_v4  ;;  %v7669_v39 = vmul.f32 %v21380_v41, %v5415_v8  ;;  %v13414_v47 = vld [vmem:[%s22942_s4 + $0x704] ss:$8 sps:$4 sm:$0xff]  }
 0x4ac   :  { %23382 = vst [vmem:[#allocation34_spill] sm:$0xff] %v21432_v58  ;;  %v21438_v2 = vadd.f32 %v7639_v7, %v21310_v10  ;;  %11555 = vmatprep.subr.bf16.mxu0 %v13405_v59  ;;  %v5417_v59 = vpop.f32.mrf.mxu0  ;;  %v13409_v7 = vld [vmem:[%s22942_s4 + $0x600] ss:$8 sps:$4 sm:$0xff]  }
 0x4ad   :  { %v5608_v10 = vpop.f32.mrf.mxu1  ;;  %v21459_v30 = vadd.f32 %v7669_v39, %v21341_v31  ;;  %v7670_v12 = vmul.f32 %v21448_v42, %v5417_v59  ;;  %v13412_v31 = vld [vmem:[%s22942_s4 + $0x700] ss:$8 sps:$4 sm:$0xff]  }
 0x4ae   :  { %11607 = vmatpush1.bf16.msra.mxu1 %v13400_v1  ;;  %v21456_v1 = vrot.slane %v20849_v40, %v23381_v4  ;;  %v7671_v53 = vmul.f32 %v7572_v11, %v5608_v10  ;;  %v5419_v39 = vpop.f32.mrf.mxu0 }
 0x4af   :  { %11608 = vmatprep.subr.bf16.mxu1 %v13408_v63  ;;  %11556 = vmatpush1.bf16.msra.mxu0 %v13403_v44  ;;  %v5610_v63 = vpop.f32.mrf.mxu1  ;;  %v13417_v44 = vld [vmem:[%s22942_s4 + $0x6f4] ss:$8 sps:$4 sm:$0xff]   ;;  %v21476_v10 = vadd.f32 %v7670_v12, %v21361_v21 }
 0x4b0   :  { %v21466_v8 = vadd.f32 %v7671_v53, %v21351_v50  ;;  %v7672_v4 = vmul.f32 %v21456_v1, %v5610_v63  ;;  %11557 = vmatprep.subr.bf16.mxu0 %v13411_v43  ;;  %v7701_v50 = vmul.f32 %v21380_v41, %v5419_v39  ;;  %v5421_v63 = vpop.f32.mrf.mxu0  ;;  %v13415_v41 = vld [vmem:[%s22942_s4 + $0x6f0] ss:$8 sps:$4 sm:$0xff]  }
 0x4b1   :  { %v5612_v53 = vpop.f32.mrf.mxu1  ;;  %v7702_v21 = vmul.f32 %v21448_v42, %v5421_v63 }
 0x4b2   :  { %11609 = vmatpush1.bf16.msra.mxu1 %v13406_v6  ;;  %v13420_v6 = vld [vmem:[%s22942_s4 + $0x7f4] ss:$8 sps:$4 sm:$0xff]   ;;  %v21483_v43 = vadd.f32 %v7672_v4, %v21368_v57  ;;  %v7703_v59 = vmul.f32 %v7572_v11, %v5612_v53  ;;  %v21486_v58 = vadd.f32 %v7701_v50, %v21372_v15  ;;  %v13418_v15 = vld [vmem:[%s22942_s4 + $0x7f0] ss:$8 sps:$4 sm:$0xff]   ;;  %v13423_v50 = vld [vmem:[%s22942_s4 + $0x6e4] ss:$8 sps:$4 sm:$0xff]  }
 0x4b3   :  { %11610 = vmatprep.subr.bf16.mxu1 %v13414_v47  ;;  %11558 = vmatpush1.bf16.msra.mxu0 %v13409_v7  ;;  %v5614_v12 = vpop.f32.mrf.mxu1  ;;  %v23383_v47 = vld [vmem:[#allocation11_spill] sm:$0xff]  ;;  %v5425_v7 = vpop.f32.mrf.mxu0  ;;  %v13426_v53 = vld [vmem:[%s22942_s4 + $0x7e4] ss:$8 sps:$4 sm:$0xff]  }
 0x4b4   :  { %v21494_v39 = vrot.slane %v20828_v35, %v23383_v47  ;;  %v21497_v57 = vadd.f32 %v7703_v59, %v21383_v0  ;;  %v7704_v11 = vmul.f32 %v21456_v1, %v5614_v12  ;;  %11559 = vmatprep.subr.bf16.mxu0 %v13417_v44  ;;  %v21505_v4 = vrot.slane %v20838_v20, %v23383_v47 }
 0x4b5   :  { %v21511_v0 = vadd.f32 %v7702_v21, %v21395_v45  ;;  %v5618_v44 = vpop.f32.mrf.mxu1  ;;  %v21521_v12 = vpop.f32.mrf.mxu0  ;;  %v13421_v21 = vld [vmem:[%s22942_s4 + $0x6e0] ss:$8 sps:$4 sm:$0xff]  }
 0x4b6   :  { %23384 = vst [vmem:[#allocation39_spill] sm:$0xff] %v21497_v57  ;;  %11611 = vmatpush1.bf16.msra.mxu1 %v13412_v31  ;;  %v7989_v31 = vmul.f32 %v21494_v39, %v5425_v7  ;;  %v21518_v59 = vadd.f32 %v7704_v11, %v21402_v34  ;;  %v7991_v63 = vmul.f32 %v21505_v4, %v5618_v44 }
 0x4b7   :  { %11612 = vmatprep.subr.bf16.mxu1 %v13420_v6  ;;  %v6102_v57 = vmul.f32 %v20892_v28, %v20937_v55  ;;  %11560 = vmatpush2.bf16.msra.mxu0 %v13415_v41  ;;  %v21528_v6 = vpop.f32.mrf.mxu1  ;;  %v6104_v34 = vmul.f32 %v20903_v14, %v20944_v22  ;;  %v13424_v28 = vld [vmem:[%s22942_s4 + $0x7e0] ss:$8 sps:$4 sm:$0xff]   ;;  %v5429_v55 = vpop.f32.mrf.mxu0  ;;  %v5846_v41 = vmul.f32 %v20887_v17, %v20791_v32 }
 0x4b8   :  { %v21526_v45 = vadd.f32 %v7989_v31, %v21407_v27  ;;  %v21536_v11 = vadd.f32 %v7991_v63, %v21415_v38  ;;  %11561 = vmatprep.subr.bf16.mxu0 %v13423_v50  ;;  %v13429_v27 = vld [vmem:[%s22942_s4 + $0x6d4] ss:$8 sps:$4 sm:$0xff]   ;;  %v8021_v14 = vmul.f32 %v21494_v39, %v5429_v55  ;;  %v5848_v50 = vmul.f32 %v20898_v54, %v20796_v23  ;;  %v13427_v23 = vld [vmem:[%s22942_s4 + $0x6d0] ss:$8 sps:$4 sm:$0xff]  }
 0x4b9   :  { %v5622_v22 = vpop.f32.mrf.mxu1  ;;  %v13432_v38 = vld [vmem:[%s22942_s4 + $0x7d4] ss:$8 sps:$4 sm:$0xff]   ;;  %v6486_v31 = vmul.f32 %v21024_v61, %v21057_v37  ;;  %v6488_v32 = vmul.f32 %v21028_v18, %v21065_v3  ;;  %v21561_v44 = vpop.f32.mrf.mxu0  ;;  %v6838_v63 = vmul.f32 %v21185_v24, %v21135_v13  ;;  %v6840_v18 = vmul.f32 %v21194_v25, %v21143_v60  ;;  %v13430_v3 = vld [vmem:[%s22942_s4 + $0x7d0] ss:$8 sps:$4 sm:$0xff]  }
 0x4ba   :  { %11613 = vmatpush2.bf16.msra.mxu1 %v13418_v15  ;;  %v23385_v15 = vld [vmem:[#allocation17_spill] sm:$0xff]  ;;  %v8023_v17 = vmul.f32 %v21505_v4, %v5622_v22  ;;  %v6232_v61 = vadd.f32 %v6104_v34, %v5848_v50  ;;  %v21594_v60 = vrot.slane %v20849_v40, %v23383_v47 }
 0x4bb   :  { %11614 = vmatprep.subr.bf16.mxu1 %v13426_v53  ;;  %v21552_v7 = vrot.slane %v20828_v35, %v23385_v15  ;;  %v6230_v53 = vadd.f32 %v6102_v57, %v5846_v41  ;;  %v21566_v35 = vadd.f32 %v8021_v14, %v21430_v52  ;;  %11562 = vmatpush2.bf16.msra.mxu0 %v13421_v21  ;;  %v21568_v55 = vpop.f32.mrf.mxu1  ;;  %v5435_v13 = vpop.f32.mrf.mxu0  ;;  %v13435_v52 = vld [vmem:[%s22942_s4 + $0x6c4] ss:$8 sps:$4 sm:$0xff]  }
 0x4bc   :  { %v21575_v54 = vrot.slane %v20838_v20, %v23385_v15  ;;  %v21580_v37 = vadd.f32 %v8023_v17, %v21438_v2  ;;  %11563 = vmatprep.subr.bf16.mxu0 %v13429_v27  ;;  %v21590_v20 = vrot.slane %v20845_v19, %v23383_v47  ;;  %v8053_v2 = vmul.f32 %v21494_v39, %v5435_v13  ;;  %v13438_v21 = vld [vmem:[%s22942_s4 + $0x7c4] ss:$8 sps:$4 sm:$0xff]  }
 0x4bd   :  { %v5628_v57 = vpop.f32.mrf.mxu1  ;;  %v21602_v34 = vrot.slane %v20845_v19, %v23385_v15  ;;  %v6616_v27 = vadd.f32 %v6488_v32, %v6232_v61  ;;  %v5437_v14 = vpop.f32.mrf.mxu0  ;;  %v21607_v47 = vrot.slane %v20849_v40, %v23385_v15  ;;  %v6966_v22 = vadd.f32 %v6838_v63, %v21051_v5  ;;  %v13433_v32 = vld [vmem:[%s22942_s4 + $0x6c0] ss:$8 sps:$4 sm:$0xff]  }
 0x4be   :  { %11615 = vmatpush2.bf16.msra.mxu1 %v13424_v28  ;;  %v6614_v28 = vadd.f32 %v6486_v31, %v6230_v53  ;;  %v8055_v41 = vmul.f32 %v21505_v4, %v5628_v57  ;;  %v21613_v50 = vadd.f32 %v8053_v2, %v21459_v30  ;;  %v8054_v19 = vmul.f32 %v21590_v20, %v5437_v14  ;;  %v13441_v30 = vld [vmem:[%s22942_s4 + $0x6b4] ss:$8 sps:$4 sm:$0xff]  }
 0x4bf   :  { %11616 = vmatprep.subr.bf16.mxu1 %v13432_v38  ;;  %v6870_v38 = vmul.f32 %v21185_v24, %v21159_v46  ;;  %11564 = vmatpush2.bf16.msra.mxu0 %v13427_v23  ;;  %v5630_v31 = vpop.f32.mrf.mxu1  ;;  %v6968_v17 = vadd.f32 %v6840_v18, %v21055_v62  ;;  %v13436_v46 = vld [vmem:[%s22942_s4 + $0x7c0] ss:$8 sps:$4 sm:$0xff]   ;;  %v5439_v24 = vpop.f32.mrf.mxu0  ;;  %v6872_v15 = vmul.f32 %v21194_v25, %v21167_v9  ;;  %v13444_v23 = vld [vmem:[%s22942_s4 + $0x7b4] ss:$8 sps:$4 sm:$0xff]  }
 0x4c0   :  { %v21621_v40 = vadd.f32 %v8055_v41, %v21466_v8  ;;  %v8056_v5 = vmul.f32 %v21594_v60, %v5630_v31  ;;  %11565 = vmatprep.subr.bf16.mxu0 %v13435_v52  ;;  %v7222_v62 = vmul.f32 %v21320_v36, %v21272_v49  ;;  %v21635_v8 = vadd.f32 %v8054_v19, %v21476_v10 }
 0x4c1   :  { %v8085_v53 = vmul.f32 %v21494_v39, %v5439_v24  ;;  %v5632_v63 = vpop.f32.mrf.mxu1  ;;  %v7224_v61 = vmul.f32 %v21331_v56, %v21280_v16  ;;  %v7254_v9 = vmul.f32 %v21320_v36, %v21299_v51  ;;  %v21649_v10 = vpop.f32.mrf.mxu0  ;;  %v6998_v18 = vadd.f32 %v6870_v38, %v6614_v28  ;;  %v13439_v51 = vld [vmem:[%s22942_s4 + $0x6b0] ss:$8 sps:$4 sm:$0xff]  }
 0x4c2   :  { %11617 = vmatpush2.bf16.msra.mxu1 %v13430_v3  ;;  %v21646_v25 = vadd.f32 %v8056_v5, %v21483_v43  ;;  %v8087_v49 = vmul.f32 %v21505_v4, %v5632_v63  ;;  %v7256_v39 = vmul.f32 %v21331_v56, %v21304_v33  ;;  %v7606_v3 = vmul.f32 %v21448_v42, %v21404_v48  ;;  %v23386_v33 = vld [vmem:[#allocation39_spill] sm:$0xff]  ;;  %v13447_v4 = vld [vmem:[%s22942_s4 + $0x6a4] ss:$8 sps:$4 sm:$0xff]  }
 0x4c3   :  { %11618 = vmatprep.subr.bf16.mxu1 %v13438_v21  ;;  %v21656_v13 = vadd.f32 %v8085_v53, %v21486_v58  ;;  %11566 = vmatpush2.bf16.msra.mxu0 %v13433_v32  ;;  %v21658_v16 = vpop.f32.mrf.mxu1  ;;  %v7608_v36 = vmul.f32 %v21456_v1, %v21409_v26  ;;  %v7638_v43 = vmul.f32 %v21448_v42, %v21427_v29  ;;  %v13442_v48 = vld [vmem:[%s22942_s4 + $0x7b0] ss:$8 sps:$4 sm:$0xff]   ;;  %v5445_v58 = vpop.f32.mrf.mxu0  ;;  %v23387_v26 = vld [vmem:[#allocation34_spill] sm:$0xff]  ;;  %v13456_v63 = vld [vmem:[%s22942_s4 + $0x794] ss:$8 sps:$4 sm:$0xff]  }
 0x4c4   :  { %v21668_v56 = vadd.f32 %v8087_v49, %v23386_v33  ;;  %11567 = vmatprep.subr.bf16.mxu0 %v13441_v30  ;;  %v7000_v52 = vadd.f32 %v6872_v15, %v6616_v27  ;;  %v7350_v2 = vadd.f32 %v7222_v62, %v6966_v22  ;;  %v7640_v57 = vmul.f32 %v21456_v1, %v23387_v26  ;;  %v13450_v21 = vld [vmem:[%s22942_s4 + $0x7a4] ss:$8 sps:$4 sm:$0xff]   ;;  %v13445_v32 = vld [vmem:[%s22942_s4 + $0x6a0] ss:$8 sps:$4 sm:$0xff]   ;;  %v13451_v33 = vld [vmem:[%s22942_s4 + $0x690] ss:$8 sps:$4 sm:$0xff]  }
 0x4c5   :  { %v7990_v29 = vmul.f32 %v21590_v20, %v21521_v12  ;;  %v5638_v42 = vpop.f32.mrf.mxu1  ;;  %v7352_v28 = vadd.f32 %v7224_v61, %v6968_v17  ;;  %v7382_v41 = vadd.f32 %v7254_v9, %v6998_v18  ;;  %v7992_v14 = vmul.f32 %v21594_v60, %v21528_v6  ;;  %v5447_v22 = vpop.f32.mrf.mxu0 }
 0x4c6   :  { %11619 = vmatpush2.bf16.msra.mxu1 %v13436_v46  ;;  %v8022_v27 = vmul.f32 %v21590_v20, %v21561_v44  ;;  %v7384_v38 = vadd.f32 %v7256_v39, %v7000_v52  ;;  %v7734_v1 = vadd.f32 %v7606_v3, %v7350_v2  ;;  %v8024_v12 = vmul.f32 %v21594_v60, %v21568_v55  ;;  %v13448_v44 = vld [vmem:[%s22942_s4 + $0x7a0] ss:$8 sps:$4 sm:$0xff]   ;;  %v13453_v55 = vld [vmem:[%s22942_s4 + $0x694] ss:$8 sps:$4 sm:$0xff]   ;;  %v13459_v52 = vld [vmem:[%s22942_s4 + $0x684] ss:$8 sps:$4 sm:$0xff]  }
 0x4c7   :  { %11620 = vmatprep.subr.bf16.mxu1 %v13444_v23  ;;  %v8373_v19 = vmul.f32 %v21552_v7, %v5445_v58  ;;  %11568 = vmatpush2.bf16.msra.mxu0 %v13439_v51  ;;  %v5640_v31 = vpop.f32.mrf.mxu1  ;;  %v7736_v17 = vadd.f32 %v7608_v36, %v7352_v28  ;;  %v7766_v5 = vadd.f32 %v7638_v43, %v7382_v41  ;;  %v5449_v46 = vpop.f32.mrf.mxu0 }
 0x4c8   :  { %v8375_v6 = vmul.f32 %v21575_v54, %v5638_v42  ;;  %11569 = vmatprep.subr.bf16.mxu0 %v13447_v4  ;;  %v7768_v24 = vadd.f32 %v7640_v57, %v7384_v38  ;;  %v8118_v30 = vadd.f32 %v7990_v29, %v7734_v1  ;;  %v8374_v15 = vmul.f32 %v21602_v34, %v5447_v22  ;;  %v13462_v57 = vld [vmem:[%s22942_s4 + $0x784] ss:$8 sps:$4 sm:$0xff]   ;;  %v13457_v38 = vld [vmem:[%s22942_s4 + $0x680] ss:$8 sps:$4 sm:$0xff]  }
 0x4c9   :  { %v8405_v62 = vmul.f32 %v21552_v7, %v5449_v46  ;;  %v5642_v53 = vpop.f32.mrf.mxu1  ;;  %v8120_v23 = vadd.f32 %v7992_v14, %v7736_v17  ;;  %v8150_v61 = vadd.f32 %v8022_v27, %v7766_v5  ;;  %v8376_v9 = vmul.f32 %v21607_v47, %v5640_v31  ;;  %v5451_v18 = vpop.f32.mrf.mxu0  ;;  %v13460_v1 = vld [vmem:[%s22942_s4 + $0x780] ss:$8 sps:$4 sm:$0xff]   ;;  %v13468_v17 = vld [vmem:[%s22942_s4 + $0x974] ss:$8 sps:$4 sm:$0xff]  }
 0x4ca   :  { %11621 = vmatpush2.bf16.msra.mxu1 %v13442_v48  ;;  %v8407_v49 = vmul.f32 %v21575_v54, %v5642_v53  ;;  %v8152_v39 = vadd.f32 %v8024_v12, %v7768_v24  ;;  %v21708_v3 = vadd.f32 %v8373_v19, %v21526_v45  ;;  %v8406_v36 = vmul.f32 %v21602_v34, %v5451_v18  ;;  %v13471_v53 = vld [vmem:[%s22942_s4 + $0x864] ss:$8 sps:$4 sm:$0xff]  }
 0x4cb   :  { %11622 = vmatprep.subr.bf16.mxu1 %v13450_v21  ;;  %v21711_v51 = vadd.f32 %v8405_v62, %v21566_v35  ;;  %11570 = vmatpush2.bf16.msra.mxu0 %v13445_v32  ;;  %v5644_v43 = vpop.f32.mrf.mxu1  ;;  %v21718_v48 = vadd.f32 %v8375_v6, %v21536_v11  ;;  %v13454_v35 = vld [vmem:[%s22942_s4 + $0x790] ss:$8 sps:$4 sm:$0xff]   ;;  %v5455_v4 = vpop.f32.mrf.mxu0  ;;  %v21730_v2 = vadd.f32 %v8374_v15, %v8118_v30 }
 0x4cc   :  { %v21721_v58 = vadd.f32 %v8407_v49, %v21580_v37  ;;  %v8408_v45 = vmul.f32 %v21607_v47, %v5644_v43  ;;  %11571 = vmatprep.subr.bf16.mxu0 %v13453_v55  ;;  %v21734_v37 = vadd.f32 %v8406_v36, %v8150_v61  ;;  %v8086_v29 = vmul.f32 %v21590_v20, %v21649_v10  ;;  %v23388_v61 = vld [vmem:[#allocation67_spill] sm:$0xff]  ;;  %v13474_v36 = vld [vmem:[%s22942_s4 + $0x964] ss:$8 sps:$4 sm:$0xff]   ;;  %v23391_v43 = vld [vmem:[#allocation68_spill] sm:$0xff] }
 0x4cd   :  { %v8629_v11 = vpack.c.bf16 %v21711_v51, %v21708_v3  ;;  %v5648_v26 = vpop.f32.mrf.mxu1  ;;  %v21741_v42 = vadd.f32 %v8376_v9, %v8120_v23  ;;  %v5457_v41 = vpop.f32.mrf.mxu0  ;;  %v8088_v14 = vmul.f32 %v21594_v60, %v21658_v16  ;;  %v8437_v27 = vmul.f32 %v21552_v7, %v5455_v4  ;;  %v13465_v16 = vld [vmem:[%s22942_s4 + $0x874] ss:$8 sps:$4 sm:$0xff]   ;;  %v23389_v9 = vld [vmem:[#allocation14_spill] sm:$0xff] }
 0x4ce   :  { %11623 = vmatpush2.bf16.msra.mxu1 %v13448_v44  ;;  %v8631_v21 = vpack.c.bf16 %v21721_v58, %v21718_v48  ;;  %v21745_v28 = vadd.f32 %v8408_v45, %v8152_v39  ;;  %v8630_v20 = vpack.c.bf16 %v21734_v37, %v21730_v2  ;;  %v8439_v10 = vmul.f32 %v21575_v54, %v5648_v26  ;;  %v23394_v45 = vld [vmem:[#allocation77_spill] sm:$0xff]  ;;  %v13777_v2 = vld [vmem:[%s22942_s4 + $0xe34] ss:$8 sps:$4 sm:$0xff]  }
 0x4cf   :  { %11624 = vmatprep.subr.bf16.mxu1 %v13456_v63  ;;  %11572 = vmatpush2.bf16.msra.mxu0 %v13451_v33  ;;  %v5650_v22 = vpop.f32.mrf.mxu1  ;;  %v5459_v60 = vpop.f32.mrf.mxu0  ;;  %v8438_v19 = vmul.f32 %v21602_v34, %v5457_v41  ;;  %v8214_v5 = vadd.f32 %v8086_v29, %v21511_v0  ;;  %v8216_v55 = vadd.f32 %v8088_v14, %v21518_v59  ;;  %v13463_v59 = vld [vmem:[%s22942_s4 + $0x870] ss:$8 sps:$4 sm:$0xff]   ;;  %v23398_v29 = vld [vmem:[#allocation74_spill] sm:$0xff]  ;;  %v13780_v37 = vld [vmem:[%s22942_s4 + $0xf34] ss:$8 sps:$4 sm:$0xff]  }
 0x4d0   :  { %11573 = vmatprep.subr.bf16.mxu0 %v13459_v52  ;;  %v8632_v12 = vpack.c.bf16 %v21745_v28, %v21741_v42  ;;  %v8469_v31 = vmul.f32 %v21552_v7, %v5459_v60  ;;  %v8440_v6 = vmul.f32 %v21607_v47, %v5650_v22  ;;  %v21774_v24 = vadd.f32 %v8437_v27, %v21613_v50  ;;  %v23392_v33 = vld [vmem:[#allocation64_spill] sm:$0xff]  ;;  %v13469_v27 = vld [vmem:[%s22942_s4 + $0x860] ss:$8 sps:$4 sm:$0xff]  }
 0x4d1   :  { %v5652_v32 = vpop.f32.mrf.mxu1  ;;  %v5461_v46 = vpop.f32.mrf.mxu0  ;;  %v21781_v62 = vadd.f32 %v8439_v10, %v21621_v40  ;;  %v23390_v49 = vpack.c.bf16 %v23388_v61, %v23389_v9  ;;  %v13472_v10 = vld [vmem:[%s22942_s4 + $0x960] ss:$8 sps:$4 sm:$0xff]   ;;  %v13477_v60 = vld [vmem:[%s22942_s4 + $0x854] ss:$8 sps:$4 sm:$0xff]   ;;  %v13775_v42 = vld [vmem:[%s22942_s4 + $0xe30] ss:$8 sps:$4 sm:$0xff]  }
 0x4d2   :  { %11625 = vmatpush2.bf16.msra.mxu1 %v13454_v35  ;;  %v8471_v44 = vmul.f32 %v21575_v54, %v5652_v32  ;;  %v21777_v30 = vadd.f32 %v8469_v31, %v21656_v13  ;;  %v8470_v7 = vmul.f32 %v21602_v34, %v5461_v46  ;;  %v21791_v13 = vadd.f32 %v8438_v19, %v21635_v8  ;;  %v23395_v35 = vld [vmem:[#allocation73_spill] sm:$0xff]  ;;  %v13480_v31 = vld [vmem:[%s22942_s4 + $0x954] ss:$8 sps:$4 sm:$0xff]   ;;  %v13778_v28 = vld [vmem:[%s22942_s4 + $0xf30] ss:$8 sps:$4 sm:$0xff]  }
 0x4d3   :  { %11626 = vmatprep.subr.bf16.mxu1 %v13462_v57  ;;  %11574 = vmatpush2.bf16.msra.mxu0 %v13457_v38  ;;  %v5654_v15 = vpop.f32.mrf.mxu1  ;;  %v11259_v50 = vpop.f32.mrf.mxu0  ;;  %v21804_v63 = vadd.f32 %v8440_v6, %v21646_v25  ;;  %v23393_v25 = vpack.c.bf16 %v23391_v43, %v23392_v33  ;;  %v23396_v4 = vpack.c.bf16 %v23394_v45, %v23395_v35  ;;  %v23397_v57 = vld [vmem:[#allocation78_spill] sm:$0xff]  ;;  %v23406_v9 = vld [vmem:[#allocation83_spill] sm:$0xff]  ;;  %v23409_v43 = vld [vmem:[#allocation84_spill] sm:$0xff] }
 0x4d4   :  { %v21784_v0 = vadd.f32 %v8471_v44, %v21668_v56  ;;  %v8472_v54 = vmul.f32 %v21607_v47, %v5654_v15  ;;  %11649 = vmatprep.subr.bf16.mxu0 %v13465_v16  ;;  %v8661_v34 = vpack.c.bf16 %v21777_v30, %v21774_v24  ;;  %v21795_v40 = vadd.f32 %v8470_v7, %v8214_v5  ;;  %v13466_v56 = vld [vmem:[%s22942_s4 + $0x970] ss:$8 sps:$4 sm:$0xff]   ;;  %v13481_v35 = vld [vmem:[%s22942_s4 + $0x840] ss:$8 sps:$4 sm:$0xff]  }
 0x4d5   :  { %v11312_v47 = vpop.f32.mrf.mxu1  ;;  %v11261_v39 = vpop.f32.mrf.mxu0  ;;  %v23399_v41 = vpack.c.bf16 %v23397_v57, %v23398_v29  ;;  %v13475_v5 = vld [vmem:[%s22942_s4 + $0x850] ss:$8 sps:$4 sm:$0xff]   ;;  %v13489_v29 = vld [vmem:[%s22942_s4 + $0x834] ss:$8 sps:$4 sm:$0xff]  }
 0x4d6   :  { %11627 = vmatpush2.bf16.msra.mxu1 %v13460_v1  ;;  %v8663_v8 = vpack.c.bf16 %v21784_v0, %v21781_v62  ;;  %v21808_v23 = vadd.f32 %v8472_v54, %v8216_v55  ;;  %11576 = vmatmul.mubr.bf16.vlgmr.msra.gmra.mxu0 %v23390_v49  ;;  %v21813_v18 = vadd.f32 %v11312_v47, %v11259_v50  ;;  %v13478_v44 = vld [vmem:[%s22942_s4 + $0x950] ss:$8 sps:$4 sm:$0xff]   ;;  %v13483_v55 = vld [vmem:[%s22942_s4 + $0x844] ss:$8 sps:$4 sm:$0xff]  }
 0x4d7   :  { %11702 = vmatprep.subr.bf16.mxu1 %v13468_v17  ;;  %11585 = vmatprep.mubr.bf16.mxu0 %v23396_v4  ;;  %v11314_v52 = vpop.f32.mrf.mxu1  ;;  %v8662_v26 = vpack.c.bf16 %v21795_v40, %v21791_v13  ;;  %v11263_v22 = vpop.f32.mrf.mxu0  ;;  %v23400_v7 = vld [vmem:[#allocation75_spill] sm:$0xff]  ;;  %v23403_v47 = vld [vmem:[#allocation76_spill] sm:$0xff] }
 0x4d8   :  { %11650 = vmatpush1.bf16.msra.mxu0 %v13463_v59  ;;  %v21829_v14 = vadd.f32 %v11314_v52, %v11261_v39  ;;  %v8664_v38 = vpack.c.bf16 %v21808_v23, %v21804_v63  ;;  %v23401_v15 = vld [vmem:[#allocation71_spill] sm:$0xff]  ;;  %v23410_v33 = vld [vmem:[#allocation80_spill] sm:$0xff]  ;;  %v13484_v52 = vld [vmem:[%s22942_s4 + $0x940] ss:$8 sps:$4 sm:$0xff]  }
 0x4d9   :  { %11629 = vmatmul.mubr.bf16.vlgmr.msra.gmra.mxu1 %v23393_v25  ;;  %11651 = vmatprep.subr.bf16.mxu0 %v13471_v53  ;;  %v11316_v1 = vpop.f32.mrf.mxu1  ;;  %v11265_v19 = vpop.f32.mrf.mxu0  ;;  %v23402_v54 = vpack.c.bf16 %v23400_v7, %v23401_v15  ;;  %v23404_v53 = vld [vmem:[#allocation72_spill] sm:$0xff]  ;;  %v23407_v49 = vld [vmem:[#allocation79_spill] sm:$0xff]  ;;  %v23411_v25 = vpack.c.bf16 %v23409_v43, %v23410_v33  ;;  %v13507_v15 = vld [vmem:[%s22942_s4 + $0x804] ss:$8 sps:$4 sm:$0xff]  }
 0x4da   :  { %11638 = vmatprep.mubr.bf16.mxu1 %v23399_v41  ;;  %11703 = vmatpush1.bf16.msra.mxu1 %v13466_v56  ;;  %v21842_v16 = vadd.f32 %v11316_v1, %v11263_v22  ;;  %v13486_v56 = vld [vmem:[%s22942_s4 + $0x944] ss:$8 sps:$4 sm:$0xff]   ;;  %v23405_v61 = vpack.c.bf16 %v23403_v47, %v23404_v53  ;;  %v23408_v39 = vpack.c.bf16 %v23406_v9, %v23407_v49  ;;  %v13492_v22 = vld [vmem:[%s22942_s4 + $0x934] ss:$8 sps:$4 sm:$0xff]   ;;  %v13502_v7 = vld [vmem:[%s22942_s4 + $0x910] ss:$8 sps:$4 sm:$0xff]  }
 0x4db   :  { %11704 = vmatprep.subr.bf16.mxu1 %v13474_v36  ;;  %v11318_v32 = vpop.f32.mrf.mxu1  ;;  %v11269_v6 = vpop.f32.mrf.mxu0  ;;  %v13513_v47 = vld [vmem:[%s22942_s4 + $0x8f4] ss:$8 sps:$4 sm:$0xff]   ;;  %v13514_v9 = vld [vmem:[%s22942_s4 + $0x9f0] ss:$8 sps:$4 sm:$0xff]   ;;  %v13519_v49 = vld [vmem:[%s22942_s4 + $0x8e4] ss:$8 sps:$4 sm:$0xff]  }
 0x4dc   :  { %11652 = vmatpush1.bf16.msra.mxu0 %v13469_v27  ;;  %v21847_v17 = vadd.f32 %v11318_v32, %v11265_v19  ;;  %v13490_v19 = vld [vmem:[%s22942_s4 + $0x930] ss:$8 sps:$4 sm:$0xff]   ;;  %v13498_v32 = vld [vmem:[%s22942_s4 + $0x924] ss:$8 sps:$4 sm:$0xff]   ;;  %v13516_v53 = vld [vmem:[%s22942_s4 + $0x9f4] ss:$8 sps:$4 sm:$0xff]  }
 0x4dd   :  { %11653 = vmatprep.subr.bf16.mxu0 %v13477_v60  ;;  %v11322_v46 = vpop.f32.mrf.mxu1  ;;  %v11271_v50 = vpop.f32.mrf.mxu0  ;;  %v13487_v60 = vld [vmem:[%s22942_s4 + $0x830] ss:$8 sps:$4 sm:$0xff]   ;;  %v13520_v43 = vld [vmem:[%s22942_s4 + $0x9e0] ss:$8 sps:$4 sm:$0xff]   ;;  %v13525_v33 = vld [vmem:[%s22942_s4 + $0x8d4] ss:$8 sps:$4 sm:$0xff]  }
 0x4de   :  { %11705 = vmatpush1.bf16.msra.mxu1 %v13472_v10  ;;  %11586 = vmatmul.mubr.bf16.gmra.mxu0 %v23402_v54  ;;  %v21861_v59 = vadd.f32 %v11322_v46, %v11269_v6  ;;  %v13496_v6 = vld [vmem:[%s22942_s4 + $0x920] ss:$8 sps:$4 sm:$0xff]   ;;  %v13504_v46 = vld [vmem:[%s22942_s4 + $0x914] ss:$8 sps:$4 sm:$0xff]   ;;  %v13510_v54 = vld [vmem:[%s22942_s4 + $0x904] ss:$8 sps:$4 sm:$0xff]  }
 0x4df   :  { %11706 = vmatprep.subr.bf16.mxu1 %v13480_v31  ;;  %11681 = vmatprep.mubr.bf16.mxu0 %v23408_v39  ;;  %v11324_v36 = vpop.f32.mrf.mxu1  ;;  %v11273_v4 = vpop.f32.mrf.mxu0  ;;  %v13495_v31 = vld [vmem:[%s22942_s4 + $0x824] ss:$8 sps:$4 sm:$0xff]  }
 0x4e0   :  { %11654 = vmatpush1.bf16.msra.mxu0 %v13475_v5  ;;  %v21875_v45 = vadd.f32 %v11324_v36, %v11271_v50  ;;  %v13493_v5 = vld [vmem:[%s22942_s4 + $0x820] ss:$8 sps:$4 sm:$0xff]   ;;  %v13522_v39 = vld [vmem:[%s22942_s4 + $0x9e4] ss:$8 sps:$4 sm:$0xff]  }
 0x4e1   :  { %11639 = vmatmul.mubr.bf16.gmra.mxu1 %v23405_v61  ;;  %11655 = vmatprep.subr.bf16.mxu0 %v13483_v55  ;;  %v11326_v57 = vpop.f32.mrf.mxu1  ;;  %v11275_v27 = vpop.f32.mrf.mxu0  ;;  %v13499_v55 = vld [vmem:[%s22942_s4 + $0x810] ss:$8 sps:$4 sm:$0xff]   ;;  %v13505_v50 = vld [vmem:[%s22942_s4 + $0x800] ss:$8 sps:$4 sm:$0xff]  }
 0x4e2   :  { %11734 = vmatprep.mubr.bf16.mxu1 %v23411_v25  ;;  %11707 = vmatpush1.bf16.msra.mxu1 %v13478_v44  ;;  %v21886_v41 = vadd.f32 %v11326_v57, %v11273_v4  ;;  %v13501_v44 = vld [vmem:[%s22942_s4 + $0x814] ss:$8 sps:$4 sm:$0xff]   ;;  %v13511_v61 = vld [vmem:[%s22942_s4 + $0x8f0] ss:$8 sps:$4 sm:$0xff]   ;;  %v13517_v36 = vld [vmem:[%s22942_s4 + $0x8e0] ss:$8 sps:$4 sm:$0xff]  }
 0x4e3   :  { %11708 = vmatprep.subr.bf16.mxu1 %v13486_v56  ;;  %v11328_v10 = vpop.f32.mrf.mxu1  ;;  %v13508_v56 = vld [vmem:[%s22942_s4 + $0x900] ss:$8 sps:$4 sm:$0xff]   ;;  %v13528_v25 = vld [vmem:[%s22942_s4 + $0x9d4] ss:$8 sps:$4 sm:$0xff]   ;;  %v13526_v4 = vld [vmem:[%s22942_s4 + $0x9d0] ss:$8 sps:$4 sm:$0xff]  }
 0x4e4   :  { %11656 = vmatpush1.bf16.msra.mxu0 %v13481_v35  ;;  %v21891_v1 = vadd.f32 %v11328_v10, %v11275_v27  ;;  %v13523_v35 = vld [vmem:[%s22942_s4 + $0x8d0] ss:$8 sps:$4 sm:$0xff]   ;;  %v13534_v57 = vld [vmem:[%s22942_s4 + $0x9c4] ss:$8 sps:$4 sm:$0xff]   ;;  %v13532_v27 = vld [vmem:[%s22942_s4 + $0x9c0] ss:$8 sps:$4 sm:$0xff]  }
 0x4e5   :  { %11657 = vmatprep.subr.bf16.mxu0 %v13489_v29  ;;  %v13529_v29 = vld [vmem:[%s22942_s4 + $0x8c0] ss:$8 sps:$4 sm:$0xff]   ;;  %v13540_v10 = vld [vmem:[%s22942_s4 + $0x9b4] ss:$8 sps:$4 sm:$0xff]  }
 0x4e6   :  { %11709 = vmatpush1.bf16.msra.mxu1 %v13484_v52  ;;  %v13531_v52 = vld [vmem:[%s22942_s4 + $0x8c4] ss:$8 sps:$4 sm:$0xff]  }
 0x4e7   :  { %11710 = vmatprep.subr.bf16.mxu1 %v13492_v22  ;;  %v13537_v22 = vld [vmem:[%s22942_s4 + $0x8b4] ss:$8 sps:$4 sm:$0xff]  }
 0x4e8   :  { %11658 = vmatpush1.bf16.msra.mxu0 %v13487_v60  ;;  %v13535_v60 = vld [vmem:[%s22942_s4 + $0x8b0] ss:$8 sps:$4 sm:$0xff]  }
 0x4e9   :  { %11659 = vmatprep.subr.bf16.mxu0 %v13495_v31  ;;  %v13543_v31 = vld [vmem:[%s22942_s4 + $0x8a4] ss:$8 sps:$4 sm:$0xff]  }
 0x4ea   :  { %11711 = vmatpush1.bf16.msra.mxu1 %v13490_v19  ;;  %v13538_v19 = vld [vmem:[%s22942_s4 + $0x9b0] ss:$8 sps:$4 sm:$0xff]  }
 0x4eb   :  { %11712 = vmatprep.subr.bf16.mxu1 %v13498_v32  ;;  %v13546_v32 = vld [vmem:[%s22942_s4 + $0x9a4] ss:$8 sps:$4 sm:$0xff]  }
 0x4ec   :  { %11660 = vmatpush1.bf16.msra.mxu0 %v13493_v5  ;;  %v13541_v5 = vld [vmem:[%s22942_s4 + $0x8a0] ss:$8 sps:$4 sm:$0xff]  }
 0x4ed   :  { %11661 = vmatprep.subr.bf16.mxu0 %v13501_v44  ;;  %v13549_v44 = vld [vmem:[%s22942_s4 + $0x894] ss:$8 sps:$4 sm:$0xff]  }
 0x4ee   :  { %11713 = vmatpush1.bf16.msra.mxu1 %v13496_v6  ;;  %v13544_v6 = vld [vmem:[%s22942_s4 + $0x9a0] ss:$8 sps:$4 sm:$0xff]  }
 0x4ef   :  { %11714 = vmatprep.subr.bf16.mxu1 %v13504_v46  ;;  %v13552_v46 = vld [vmem:[%s22942_s4 + $0x994] ss:$8 sps:$4 sm:$0xff]  }
 0x4f0   :  { %11662 = vmatpush1.bf16.msra.mxu0 %v13499_v55  ;;  %v13547_v55 = vld [vmem:[%s22942_s4 + $0x890] ss:$8 sps:$4 sm:$0xff]  }
 0x4f1   :  { %11663 = vmatprep.subr.bf16.mxu0 %v13507_v15  ;;  %v13555_v15 = vld [vmem:[%s22942_s4 + $0x884] ss:$8 sps:$4 sm:$0xff]  }
 0x4f2   :  { %11715 = vmatpush1.bf16.msra.mxu1 %v13502_v7  ;;  %v13550_v7 = vld [vmem:[%s22942_s4 + $0x990] ss:$8 sps:$4 sm:$0xff]  }
 0x4f3   :  { %11716 = vmatprep.subr.bf16.mxu1 %v13510_v54  ;;  %v13558_v54 = vld [vmem:[%s22942_s4 + $0x984] ss:$8 sps:$4 sm:$0xff]  }
 0x4f4   :  { %11664 = vmatpush1.bf16.msra.mxu0 %v13505_v50  ;;  %v13553_v50 = vld [vmem:[%s22942_s4 + $0x880] ss:$8 sps:$4 sm:$0xff]  }
 0x4f5   :  { %11665 = vmatprep.subr.bf16.mxu0 %v13513_v47  ;;  %v13561_v47 = vld [vmem:[%s22942_s4 + $0xa74] ss:$8 sps:$4 sm:$0xff]  }
 0x4f6   :  { %11717 = vmatpush1.bf16.msra.mxu1 %v13508_v56  ;;  %v13556_v56 = vld [vmem:[%s22942_s4 + $0x980] ss:$8 sps:$4 sm:$0xff]  }
 0x4f7   :  { %11718 = vmatprep.subr.bf16.mxu1 %v13516_v53  ;;  %v13564_v53 = vld [vmem:[%s22942_s4 + $0xb74] ss:$8 sps:$4 sm:$0xff]  }
 0x4f8   :  { %11666 = vmatpush2.bf16.msra.mxu0 %v13511_v61 }
 0x4f9   :  { %11667 = vmatprep.subr.bf16.mxu0 %v13519_v49 }
 0x4fa   :  { %11719 = vmatpush2.bf16.msra.mxu1 %v13514_v9 }
 0x4fb   :  { %11720 = vmatprep.subr.bf16.mxu1 %v13522_v39  ;;  %v13559_v39 = vld [vmem:[%s22942_s4 + $0xa70] ss:$8 sps:$4 sm:$0xff]  }
 0x4fc   :  { %11668 = vmatpush2.bf16.msra.mxu0 %v13517_v36  ;;  %v13562_v36 = vld [vmem:[%s22942_s4 + $0xb70] ss:$8 sps:$4 sm:$0xff]  }
 0x4fd   :  { %11669 = vmatprep.subr.bf16.mxu0 %v13525_v33  ;;  %v13567_v33 = vld [vmem:[%s22942_s4 + $0xa64] ss:$8 sps:$4 sm:$0xff]  }
 0x4fe   :  { %11721 = vmatpush2.bf16.msra.mxu1 %v13520_v43 }
 0x4ff   :  { %11722 = vmatprep.subr.bf16.mxu1 %v13528_v25 }
 0x500   :  { %11670 = vmatpush2.bf16.msra.mxu0 %v13523_v35  ;;  %v23412_v35 = vld [vmem:[#allocation81_spill] sm:$0xff] }
 0x501   :  { %11671 = vmatprep.subr.bf16.mxu0 %v13531_v52 }
 0x502   :  { %11723 = vmatpush2.bf16.msra.mxu1 %v13526_v4 }
 0x503   :  { %11724 = vmatprep.subr.bf16.mxu1 %v13534_v57 }
 0x504   :  { %11672 = vmatpush2.bf16.msra.mxu0 %v13529_v29  ;;  %v13570_v29 = vld [vmem:[%s22942_s4 + $0xb64] ss:$8 sps:$4 sm:$0xff]  }
 0x505   :  { %11673 = vmatprep.subr.bf16.mxu0 %v13537_v22  ;;  %v23416_v22 = vld [vmem:[#allocation13_spill] sm:$0xff] }
 0x506   :  { %11725 = vmatpush2.bf16.msra.mxu1 %v13532_v27  ;;  %v23415_v27 = vld [vmem:[#allocation82_spill] sm:$0xff] }
 0x507   :  { %11726 = vmatprep.subr.bf16.mxu1 %v13540_v10  ;;  %v23417_v10 = vpack.c.bf16 %v23415_v27, %v23416_v22  ;;  %v23427_v27 = vld [vmem:[#allocation90_spill] sm:$0xff] }
 0x508   :  { %11674 = vmatpush2.bf16.msra.mxu0 %v13535_v60  ;;  %v23418_v60 = vld [vmem:[#allocation91_spill] sm:$0xff]  ;;  %v23428_v22 = vld [vmem:[#allocation86_spill] sm:$0xff] }
 0x509   :  { %11675 = vmatprep.subr.bf16.mxu0 %v13543_v31 }
 0x50a   :  { %11727 = vmatpush2.bf16.msra.mxu1 %v13538_v19  ;;  %v23419_v19 = vld [vmem:[#allocation87_spill] sm:$0xff] }
 0x50b   :  { %11728 = vmatprep.subr.bf16.mxu1 %v13546_v32  ;;  %v23420_v31 = vpack.c.bf16 %v23418_v60, %v23419_v19  ;;  %v23430_v60 = vld [vmem:[#allocation99_spill] sm:$0xff]  ;;  %v23431_v19 = vld [vmem:[#allocation98_spill] sm:$0xff] }
 0x50c   :  { %11676 = vmatpush2.bf16.msra.mxu0 %v13541_v5  ;;  %v23421_v5 = vld [vmem:[#allocation92_spill] sm:$0xff] }
 0x50d   :  { %11677 = vmatprep.subr.bf16.mxu0 %v13549_v44 }
 0x50e   :  { %11729 = vmatpush2.bf16.msra.mxu1 %v13544_v6  ;;  %v23422_v6 = vld [vmem:[#allocation88_spill] sm:$0xff] }
 0x50f   :  { %11730 = vmatprep.subr.bf16.mxu1 %v13552_v46  ;;  %v23423_v44 = vpack.c.bf16 %v23421_v5, %v23422_v6  ;;  %v23433_v5 = vld [vmem:[#allocation100_spill] sm:$0xff]  ;;  %v23434_v6 = vld [vmem:[#allocation93_spill] sm:$0xff] }
 0x510   :  { %11678 = vmatpush2.bf16.msra.mxu0 %v13547_v55 }
 0x511   :  { %11679 = vmatprep.subr.bf16.mxu0 %v13555_v15  ;;  %v13568_v15 = vld [vmem:[%s22942_s4 + $0xb60] ss:$8 sps:$4 sm:$0xff]  }
 0x512   :  { %11731 = vmatpush2.bf16.msra.mxu1 %v13550_v7  ;;  %v13565_v7 = vld [vmem:[%s22942_s4 + $0xa60] ss:$8 sps:$4 sm:$0xff]  }
 0x513   :  { %11732 = vmatprep.subr.bf16.mxu1 %v13558_v54  ;;  %v11365_v61 = vpop.f32.mrf.mxu0 }
 0x514   :  { %11680 = vmatpush2.bf16.msra.mxu0 %v13553_v50  ;;  %v11366_v9 = vadd.f32 %v11365_v61, %v21813_v18  ;;  %v11418_v49 = vpop.f32.mrf.mxu1  ;;  %v23413_v18 = vld [vmem:[#allocation9_spill] sm:$0xff]  ;;  %v13573_v50 = vld [vmem:[%s22942_s4 + $0xa54] ss:$8 sps:$4 sm:$0xff]  }
 0x515   :  { %11755 = vmatprep.subr.bf16.mxu0 %v13561_v47  ;;  %v11367_v43 = vpop.f32.mrf.mxu0  ;;  %v23414_v4 = vpack.c.bf16 %v23412_v35, %v23413_v18  ;;  %v23424_v18 = vld [vmem:[#allocation89_spill] sm:$0xff] }
 0x516   :  { %11733 = vmatpush2.bf16.msra.mxu1 %v13556_v56  ;;  %v22047_v25 = vadd.f32 %v11418_v49, %v11366_v9  ;;  %v11368_v52 = vadd.f32 %v11367_v43, %v21829_v14  ;;  %v11420_v57 = vpop.f32.mrf.mxu1 }
 0x517   :  { %11808 = vmatprep.subr.bf16.mxu1 %v13564_v53  ;;  %11682 = vmatmul.mubr.bf16.vlgmr.msra.gmra.mxu0 %v23414_v4  ;;  %v11369_v32 = vpop.f32.mrf.mxu0  ;;  %v13576_v53 = vld [vmem:[%s22942_s4 + $0xb54] ss:$8 sps:$4 sm:$0xff]  }
 0x518   :  { %11691 = vmatprep.mubr.bf16.mxu0 %v23420_v31  ;;  %11756 = vmatpush1.bf16.msra.mxu0 %v13559_v39  ;;  %v22065_v14 = vadd.f32 %v11420_v57, %v11368_v52  ;;  %v11370_v46 = vadd.f32 %v11369_v32, %v21842_v16  ;;  %v11422_v55 = vpop.f32.mrf.mxu1  ;;  %v23432_v31 = vpack.c.bf16 %v23430_v60, %v23431_v19  ;;  %v13607_v60 = vld [vmem:[%s22942_s4 + $0xaf0] ss:$8 sps:$4 sm:$0xff]  }
 0x519   :  { %11735 = vmatmul.mubr.bf16.vlgmr.msra.gmra.mxu1 %v23417_v10  ;;  %11757 = vmatprep.subr.bf16.mxu0 %v13567_v33  ;;  %v11371_v54 = vpop.f32.mrf.mxu0  ;;  %v13579_v33 = vld [vmem:[%s22942_s4 + $0xa44] ss:$8 sps:$4 sm:$0xff]   ;;  %v23429_v10 = vpack.c.bf16 %v23427_v27, %v23428_v22  ;;  %v13604_v27 = vld [vmem:[%s22942_s4 + $0xb00] ss:$8 sps:$4 sm:$0xff]   ;;  %v13609_v22 = vld [vmem:[%s22942_s4 + $0xaf4] ss:$8 sps:$4 sm:$0xff]  }
 0x51a   :  { %11744 = vmatprep.mubr.bf16.mxu1 %v23423_v44  ;;  %11809 = vmatpush1.bf16.msra.mxu1 %v13562_v36  ;;  %v22077_v56 = vadd.f32 %v11422_v55, %v11370_v46  ;;  %v11372_v16 = vadd.f32 %v11371_v54, %v21847_v17  ;;  %v11424_v47 = vpop.f32.mrf.mxu1  ;;  %v13571_v36 = vld [vmem:[%s22942_s4 + $0xa50] ss:$8 sps:$4 sm:$0xff]   ;;  %v23435_v44 = vpack.c.bf16 %v23433_v5, %v23434_v6  ;;  %v13613_v5 = vld [vmem:[%s22942_s4 + $0xae0] ss:$8 sps:$4 sm:$0xff]  }
 0x51b   :  { %11810 = vmatprep.subr.bf16.mxu1 %v13570_v29  ;;  %v11375_v61 = vpop.f32.mrf.mxu0  ;;  %v13574_v17 = vld [vmem:[%s22942_s4 + $0xb50] ss:$8 sps:$4 sm:$0xff]   ;;  %v13582_v29 = vld [vmem:[%s22942_s4 + $0xb44] ss:$8 sps:$4 sm:$0xff]   ;;  %v13616_v6 = vld [vmem:[%s22942_s4 + $0xbe0] ss:$8 sps:$4 sm:$0xff]  }
 0x51c   :  { %11758 = vmatpush1.bf16.msra.mxu0 %v13565_v7  ;;  %v22083_v9 = vadd.f32 %v11424_v47, %v11372_v16  ;;  %v11376_v49 = vadd.f32 %v11375_v61, %v21861_v59  ;;  %v11428_v39 = vpop.f32.mrf.mxu1  ;;  %v23425_v59 = vld [vmem:[#allocation85_spill] sm:$0xff]  ;;  %v13588_v47 = vld [vmem:[%s22942_s4 + $0xb34] ss:$8 sps:$4 sm:$0xff]   ;;  %v13610_v19 = vld [vmem:[%s22942_s4 + $0xbf0] ss:$8 sps:$4 sm:$0xff]  }
 0x51d   :  { %11759 = vmatprep.subr.bf16.mxu0 %v13573_v50  ;;  %v11377_v43 = vpop.f32.mrf.mxu0  ;;  %v23426_v4 = vpack.c.bf16 %v23424_v18, %v23425_v59  ;;  %v13577_v7 = vld [vmem:[%s22942_s4 + $0xa40] ss:$8 sps:$4 sm:$0xff]   ;;  %v13585_v50 = vld [vmem:[%s22942_s4 + $0xa34] ss:$8 sps:$4 sm:$0xff]   ;;  %v13595_v59 = vld [vmem:[%s22942_s4 + $0xa10] ss:$8 sps:$4 sm:$0xff]  }
 0x51e   :  { %11811 = vmatpush1.bf16.msra.mxu1 %v13568_v15  ;;  %v22095_v35 = vadd.f32 %v11428_v39, %v11376_v49  ;;  %v11378_v52 = vadd.f32 %v11377_v43, %v21875_v45  ;;  %v11430_v57 = vpop.f32.mrf.mxu1  ;;  %v13580_v15 = vld [vmem:[%s22942_s4 + $0xb40] ss:$8 sps:$4 sm:$0xff]   ;;  %v13583_v49 = vld [vmem:[%s22942_s4 + $0xa30] ss:$8 sps:$4 sm:$0xff]   ;;  %v13600_v18 = vld [vmem:[%s22942_s4 + $0xb14] ss:$8 sps:$4 sm:$0xff]  }
 0x51f   :  { %11692 = vmatmul.mubr.bf16.gmra.mxu0 %v23426_v4  ;;  %11812 = vmatprep.subr.bf16.mxu1 %v13576_v53  ;;  %v11379_v32 = vpop.f32.mrf.mxu0  ;;  %v13586_v39 = vld [vmem:[%s22942_s4 + $0xb30] ss:$8 sps:$4 sm:$0xff]   ;;  %v13592_v43 = vld [vmem:[%s22942_s4 + $0xb20] ss:$8 sps:$4 sm:$0xff]  }
 0x520   :  { %11787 = vmatprep.mubr.bf16.mxu0 %v23432_v31  ;;  %11760 = vmatpush1.bf16.msra.mxu0 %v13571_v36  ;;  %v22113_v45 = vadd.f32 %v11430_v57, %v11378_v52  ;;  %v11380_v46 = vadd.f32 %v11379_v32, %v21886_v41  ;;  %v11432_v55 = vpop.f32.mrf.mxu1  ;;  %v13594_v36 = vld [vmem:[%s22942_s4 + $0xb24] ss:$8 sps:$4 sm:$0xff]   ;;  %v13598_v4 = vld [vmem:[%s22942_s4 + $0xb10] ss:$8 sps:$4 sm:$0xff]  }
 0x521   :  { %11745 = vmatmul.mubr.bf16.gmra.mxu1 %v23429_v10  ;;  %11761 = vmatprep.subr.bf16.mxu0 %v13579_v33  ;;  %v11381_v54 = vpop.f32.mrf.mxu0  ;;  %v13597_v33 = vld [vmem:[%s22942_s4 + $0xa14] ss:$8 sps:$4 sm:$0xff]   ;;  %v13603_v52 = vld [vmem:[%s22942_s4 + $0xa04] ss:$8 sps:$4 sm:$0xff]  }
 0x522   :  { %11840 = vmatprep.mubr.bf16.mxu1 %v23435_v44  ;;  %11813 = vmatpush1.bf16.msra.mxu1 %v13574_v17  ;;  %v22125_v16 = vadd.f32 %v11432_v55, %v11380_v46  ;;  %v11382_v41 = vadd.f32 %v11381_v54, %v21891_v1  ;;  %v11434_v53 = vpop.f32.mrf.mxu1  ;;  %v13591_v1 = vld [vmem:[%s22942_s4 + $0xa24] ss:$8 sps:$4 sm:$0xff]   ;;  %v13589_v17 = vld [vmem:[%s22942_s4 + $0xa20] ss:$8 sps:$4 sm:$0xff]   ;;  %v13612_v10 = vld [vmem:[%s22942_s4 + $0xbf4] ss:$8 sps:$4 sm:$0xff]  }
 0x523   :  { %11814 = vmatprep.subr.bf16.mxu1 %v13582_v29  ;;  %v13606_v57 = vld [vmem:[%s22942_s4 + $0xb04] ss:$8 sps:$4 sm:$0xff]   ;;  %v13601_v29 = vld [vmem:[%s22942_s4 + $0xa00] ss:$8 sps:$4 sm:$0xff]   ;;  %v13621_v44 = vld [vmem:[%s22942_s4 + $0xad4] ss:$8 sps:$4 sm:$0xff]  }
 0x524   :  { %11762 = vmatpush1.bf16.msra.mxu0 %v13577_v7  ;;  %v22131_v61 = vadd.f32 %v11434_v53, %v11382_v41  ;;  %v13615_v31 = vld [vmem:[%s22942_s4 + $0xae4] ss:$8 sps:$4 sm:$0xff]   ;;  %v13624_v46 = vld [vmem:[%s22942_s4 + $0xbd4] ss:$8 sps:$4 sm:$0xff]   ;;  %v13619_v55 = vld [vmem:[%s22942_s4 + $0xad0] ss:$8 sps:$4 sm:$0xff]  }
 0x525   :  { %11763 = vmatprep.subr.bf16.mxu0 %v13585_v50  ;;  %v13618_v32 = vld [vmem:[%s22942_s4 + $0xbe4] ss:$8 sps:$4 sm:$0xff]   ;;  %v13622_v7 = vld [vmem:[%s22942_s4 + $0xbd0] ss:$8 sps:$4 sm:$0xff]   ;;  %v13625_v50 = vld [vmem:[%s22942_s4 + $0xac0] ss:$8 sps:$4 sm:$0xff]  }
 0x526   :  { %11815 = vmatpush1.bf16.msra.mxu1 %v13580_v15  ;;  %v13627_v15 = vld [vmem:[%s22942_s4 + $0xac4] ss:$8 sps:$4 sm:$0xff]   ;;  %v13628_v41 = vld [vmem:[%s22942_s4 + $0xbc0] ss:$8 sps:$4 sm:$0xff]   ;;  %v13636_v53 = vld [vmem:[%s22942_s4 + $0xbb4] ss:$8 sps:$4 sm:$0xff]  }
 0x527   :  { %11816 = vmatprep.subr.bf16.mxu1 %v13588_v47  ;;  %v13630_v54 = vld [vmem:[%s22942_s4 + $0xbc4] ss:$8 sps:$4 sm:$0xff]   ;;  %v13633_v47 = vld [vmem:[%s22942_s4 + $0xab4] ss:$8 sps:$4 sm:$0xff]  }
 0x528   :  { %11764 = vmatpush1.bf16.msra.mxu0 %v13583_v49  ;;  %v13631_v49 = vld [vmem:[%s22942_s4 + $0xab0] ss:$8 sps:$4 sm:$0xff]  }
 0x529   :  { %11765 = vmatprep.subr.bf16.mxu0 %v13591_v1  ;;  %v13639_v1 = vld [vmem:[%s22942_s4 + $0xaa4] ss:$8 sps:$4 sm:$0xff]  }
 0x52a   :  { %11817 = vmatpush1.bf16.msra.mxu1 %v13586_v39  ;;  %v13634_v39 = vld [vmem:[%s22942_s4 + $0xbb0] ss:$8 sps:$4 sm:$0xff]  }
 0x52b   :  { %11818 = vmatprep.subr.bf16.mxu1 %v13594_v36  ;;  %v13642_v36 = vld [vmem:[%s22942_s4 + $0xba4] ss:$8 sps:$4 sm:$0xff]  }
 0x52c   :  { %11766 = vmatpush1.bf16.msra.mxu0 %v13589_v17  ;;  %v13637_v17 = vld [vmem:[%s22942_s4 + $0xaa0] ss:$8 sps:$4 sm:$0xff]  }
 0x52d   :  { %11767 = vmatprep.subr.bf16.mxu0 %v13597_v33  ;;  %v13645_v33 = vld [vmem:[%s22942_s4 + $0xa94] ss:$8 sps:$4 sm:$0xff]  }
 0x52e   :  { %11819 = vmatpush1.bf16.msra.mxu1 %v13592_v43  ;;  %v13640_v43 = vld [vmem:[%s22942_s4 + $0xba0] ss:$8 sps:$4 sm:$0xff]  }
 0x52f   :  { %11820 = vmatprep.subr.bf16.mxu1 %v13600_v18  ;;  %v13648_v18 = vld [vmem:[%s22942_s4 + $0xb94] ss:$8 sps:$4 sm:$0xff]  }
 0x530   :  { %11768 = vmatpush1.bf16.msra.mxu0 %v13595_v59  ;;  %v13643_v59 = vld [vmem:[%s22942_s4 + $0xa90] ss:$8 sps:$4 sm:$0xff]  }
 0x531   :  { %11769 = vmatprep.subr.bf16.mxu0 %v13603_v52  ;;  %v13651_v52 = vld [vmem:[%s22942_s4 + $0xa84] ss:$8 sps:$4 sm:$0xff]  }
 0x532   :  { %11821 = vmatpush1.bf16.msra.mxu1 %v13598_v4  ;;  %v13646_v4 = vld [vmem:[%s22942_s4 + $0xb90] ss:$8 sps:$4 sm:$0xff]  }
 0x533   :  { %11822 = vmatprep.subr.bf16.mxu1 %v13606_v57  ;;  %v13654_v57 = vld [vmem:[%s22942_s4 + $0xb84] ss:$8 sps:$4 sm:$0xff]  }
 0x534   :  { %11770 = vmatpush1.bf16.msra.mxu0 %v13601_v29  ;;  %v13649_v29 = vld [vmem:[%s22942_s4 + $0xa80] ss:$8 sps:$4 sm:$0xff]  }
 0x535   :  { %11771 = vmatprep.subr.bf16.mxu0 %v13609_v22  ;;  %v13657_v22 = vld [vmem:[%s22942_s4 + $0xc74] ss:$8 sps:$4 sm:$0xff]  }
 0x536   :  { %11823 = vmatpush1.bf16.msra.mxu1 %v13604_v27  ;;  %v13652_v27 = vld [vmem:[%s22942_s4 + $0xb80] ss:$8 sps:$4 sm:$0xff]  }
 0x537   :  { %11824 = vmatprep.subr.bf16.mxu1 %v13612_v10  ;;  %v13660_v10 = vld [vmem:[%s22942_s4 + $0xd74] ss:$8 sps:$4 sm:$0xff]  }
 0x538   :  { %11772 = vmatpush2.bf16.msra.mxu0 %v13607_v60  ;;  %v13655_v60 = vld [vmem:[%s22942_s4 + $0xc70] ss:$8 sps:$4 sm:$0xff]  }
 0x539   :  { %11773 = vmatprep.subr.bf16.mxu0 %v13615_v31  ;;  %v13663_v31 = vld [vmem:[%s22942_s4 + $0xc64] ss:$8 sps:$4 sm:$0xff]  }
 0x53a   :  { %11825 = vmatpush2.bf16.msra.mxu1 %v13610_v19  ;;  %v13658_v19 = vld [vmem:[%s22942_s4 + $0xd70] ss:$8 sps:$4 sm:$0xff]  }
 0x53b   :  { %11826 = vmatprep.subr.bf16.mxu1 %v13618_v32  ;;  %v23436_v32 = vld [vmem:[#allocation94_spill] sm:$0xff] }
 0x53c   :  { %11774 = vmatpush2.bf16.msra.mxu0 %v13613_v5  ;;  %v23437_v5 = vld [vmem:[#allocation96_spill] sm:$0xff] }
 0x53d   :  { %11775 = vmatprep.subr.bf16.mxu0 %v13621_v44  ;;  %v13666_v44 = vld [vmem:[%s22942_s4 + $0xd64] ss:$8 sps:$4 sm:$0xff]  }
 0x53e   :  { %11827 = vmatpush2.bf16.msra.mxu1 %v13616_v6  ;;  %v23438_v6 = vpack.c.bf16 %v23436_v32, %v23437_v5  ;;  %v13673_v5 = vld [vmem:[%s22942_s4 + $0xc40] ss:$8 sps:$4 sm:$0xff]  }
 0x53f   :  { %11828 = vmatprep.subr.bf16.mxu1 %v13624_v46  ;;  %v23439_v46 = vld [vmem:[#allocation95_spill] sm:$0xff] }
 0x540   :  { %11776 = vmatpush2.bf16.msra.mxu0 %v13619_v55  ;;  %v23440_v55 = vld [vmem:[#allocation97_spill] sm:$0xff] }
 0x541   :  { %11777 = vmatprep.subr.bf16.mxu0 %v13627_v15  ;;  %v23442_v15 = vld [vmem:[#allocation107_spill] sm:$0xff] }
 0x542   :  { %11829 = vmatpush2.bf16.msra.mxu1 %v13622_v7  ;;  %v23441_v7 = vpack.c.bf16 %v23439_v46, %v23440_v55  ;;  %v13684_v46 = vld [vmem:[%s22942_s4 + $0xd34] ss:$8 sps:$4 sm:$0xff]   ;;  %v13679_v55 = vld [vmem:[%s22942_s4 + $0xc30] ss:$8 sps:$4 sm:$0xff]  }
 0x543   :  { %11830 = vmatprep.subr.bf16.mxu1 %v13630_v54  ;;  %v23443_v54 = vld [vmem:[#allocation103_spill] sm:$0xff] }
 0x544   :  { %11778 = vmatpush2.bf16.msra.mxu0 %v13625_v50  ;;  %v23444_v50 = vpack.c.bf16 %v23442_v15, %v23443_v54  ;;  %v13687_v15 = vld [vmem:[%s22942_s4 + $0xc24] ss:$8 sps:$4 sm:$0xff]  }
 0x545   :  { %11779 = vmatprep.subr.bf16.mxu0 %v13633_v47  ;;  %v23446_v47 = vld [vmem:[#allocation104_spill] sm:$0xff]  ;;  %v13690_v54 = vld [vmem:[%s22942_s4 + $0xd24] ss:$8 sps:$4 sm:$0xff]  }
 0x546   :  { %11831 = vmatpush2.bf16.msra.mxu1 %v13628_v41  ;;  %v23445_v41 = vld [vmem:[#allocation108_spill] sm:$0xff] }
 0x547   :  { %11832 = vmatprep.subr.bf16.mxu1 %v13636_v53  ;;  %v23447_v53 = vpack.c.bf16 %v23445_v41, %v23446_v47  ;;  %v13688_v41 = vld [vmem:[%s22942_s4 + $0xd20] ss:$8 sps:$4 sm:$0xff]   ;;  %v13693_v47 = vld [vmem:[%s22942_s4 + $0xc14] ss:$8 sps:$4 sm:$0xff]  }
 0x548   :  { %11780 = vmatpush2.bf16.msra.mxu0 %v13631_v49  ;;  %v13661_v49 = vld [vmem:[%s22942_s4 + $0xc60] ss:$8 sps:$4 sm:$0xff]  }
 0x549   :  { %11781 = vmatprep.subr.bf16.mxu0 %v13639_v1  ;;  %v13669_v1 = vld [vmem:[%s22942_s4 + $0xc54] ss:$8 sps:$4 sm:$0xff]  }
 0x54a   :  { %11833 = vmatpush2.bf16.msra.mxu1 %v13634_v39  ;;  %v13664_v39 = vld [vmem:[%s22942_s4 + $0xd60] ss:$8 sps:$4 sm:$0xff]  }
 0x54b   :  { %11834 = vmatprep.subr.bf16.mxu1 %v13642_v36  ;;  %v13672_v36 = vld [vmem:[%s22942_s4 + $0xd54] ss:$8 sps:$4 sm:$0xff]  }
 0x54c   :  { %11782 = vmatpush2.bf16.msra.mxu0 %v13637_v17  ;;  %v13667_v17 = vld [vmem:[%s22942_s4 + $0xc50] ss:$8 sps:$4 sm:$0xff]  }
 0x54d   :  { %11783 = vmatprep.subr.bf16.mxu0 %v13645_v33  ;;  %v13675_v33 = vld [vmem:[%s22942_s4 + $0xc44] ss:$8 sps:$4 sm:$0xff]  }
 0x54e   :  { %11835 = vmatpush2.bf16.msra.mxu1 %v13640_v43  ;;  %v13670_v43 = vld [vmem:[%s22942_s4 + $0xd50] ss:$8 sps:$4 sm:$0xff]  }
 0x54f   :  { %11836 = vmatprep.subr.bf16.mxu1 %v13648_v18  ;;  %v23448_v18 = vld [vmem:[#allocation105_spill] sm:$0xff] }
 0x550   :  { %11784 = vmatpush2.bf16.msra.mxu0 %v13643_v59  ;;  %v23449_v59 = vld [vmem:[#allocation101_spill] sm:$0xff] }
 0x551   :  { %11785 = vmatprep.subr.bf16.mxu0 %v13651_v52  ;;  %v13678_v52 = vld [vmem:[%s22942_s4 + $0xd44] ss:$8 sps:$4 sm:$0xff]  }
 0x552   :  { %11837 = vmatpush2.bf16.msra.mxu1 %v13646_v4  ;;  %v23450_v4 = vpack.c.bf16 %v23448_v18, %v23449_v59  ;;  %v13708_v18 = vld [vmem:[%s22942_s4 + $0xdf4] ss:$8 sps:$4 sm:$0xff]   ;;  %v13703_v59 = vld [vmem:[%s22942_s4 + $0xcf0] ss:$8 sps:$4 sm:$0xff]  }
 0x553   :  { %11838 = vmatprep.subr.bf16.mxu1 %v13654_v57  ;;  %v23451_v57 = vld [vmem:[#allocation106_spill] sm:$0xff] }
 0x554   :  { %11786 = vmatpush2.bf16.msra.mxu0 %v13649_v29  ;;  %v23452_v29 = vld [vmem:[#allocation102_spill] sm:$0xff] }
 0x555   :  { %11861 = vmatprep.subr.bf16.mxu0 %v13657_v22  ;;  %v23454_v22 = vld [vmem:[#allocation19_spill] sm:$0xff]  ;;  %v22721_v3 = vpop.f32.mrf.mxu0 }
 0x556   :  { %11839 = vmatpush2.bf16.msra.mxu1 %v13652_v27  ;;  %v23453_v27 = vpack.c.bf16 %v23451_v57, %v23452_v29  ;;  %v13714_v57 = vld [vmem:[%s22942_s4 + $0xde4] ss:$8 sps:$4 sm:$0xff]   ;;  %v13709_v29 = vld [vmem:[%s22942_s4 + $0xce0] ss:$8 sps:$4 sm:$0xff]   ;;  %v22723_v51 = vpop.f32.mrf.mxu1 }
 0x557   :  { %11914 = vmatprep.subr.bf16.mxu1 %v13660_v10  ;;  %11788 = vmatmul.mubr.bf16.vlgmr.msra.gmra.mxu0 %v23438_v6  ;;  %v23455_v10 = vld [vmem:[#allocation21_spill] sm:$0xff]  ;;  %v22725_v48 = vpop.f32.mrf.mxu0 }
 0x558   :  { %11797 = vmatprep.mubr.bf16.mxu0 %v23444_v50  ;;  %11862 = vmatpush1.bf16.msra.mxu0 %v13655_v60  ;;  %v23456_v60 = vpack.c.bf16 %v23454_v22, %v23455_v10  ;;  %v13676_v6 = vld [vmem:[%s22942_s4 + $0xd40] ss:$8 sps:$4 sm:$0xff]   ;;  %v13717_v22 = vld [vmem:[%s22942_s4 + $0xcd4] ss:$8 sps:$4 sm:$0xff]   ;;  %v22727_v58 = vpop.f32.mrf.mxu1 }
 0x559   :  { %11841 = vmatmul.mubr.bf16.vlgmr.msra.gmra.mxu1 %v23441_v7  ;;  %11863 = vmatprep.subr.bf16.mxu0 %v13663_v31  ;;  %v23458_v31 = vld [vmem:[#allocation22_spill] sm:$0xff]  ;;  %v13682_v7 = vld [vmem:[%s22942_s4 + $0xd30] ss:$8 sps:$4 sm:$0xff]   ;;  %v13720_v10 = vld [vmem:[%s22942_s4 + $0xdd4] ss:$8 sps:$4 sm:$0xff]  }
 0x55a   :  { %11850 = vmatprep.mubr.bf16.mxu1 %v23447_v53  ;;  %11915 = vmatpush1.bf16.msra.mxu1 %v13658_v19  ;;  %v23457_v19 = vld [vmem:[#allocation32_spill] sm:$0xff]  ;;  %v13685_v50 = vld [vmem:[%s22942_s4 + $0xc20] ss:$8 sps:$4 sm:$0xff]  }
 0x55b   :  { %11916 = vmatprep.subr.bf16.mxu1 %v13666_v44  ;;  %v23459_v32 = vpack.c.bf16 %v23457_v19, %v23458_v31  ;;  %v13681_v44 = vld [vmem:[%s22942_s4 + $0xc34] ss:$8 sps:$4 sm:$0xff]   ;;  %v13718_v19 = vld [vmem:[%s22942_s4 + $0xdd0] ss:$8 sps:$4 sm:$0xff]   ;;  %v13723_v31 = vld [vmem:[%s22942_s4 + $0xcc4] ss:$8 sps:$4 sm:$0xff]  }
 0x55c   :  { %11864 = vmatpush1.bf16.msra.mxu0 %v13661_v49  ;;  %v13696_v53 = vld [vmem:[%s22942_s4 + $0xd14] ss:$8 sps:$4 sm:$0xff]   ;;  %v13691_v49 = vld [vmem:[%s22942_s4 + $0xc10] ss:$8 sps:$4 sm:$0xff]  }
 0x55d   :  { %11865 = vmatprep.subr.bf16.mxu0 %v13669_v1  ;;  %v13699_v1 = vld [vmem:[%s22942_s4 + $0xc04] ss:$8 sps:$4 sm:$0xff]  }
 0x55e   :  { %11917 = vmatpush1.bf16.msra.mxu1 %v13664_v39  ;;  %v13694_v39 = vld [vmem:[%s22942_s4 + $0xd10] ss:$8 sps:$4 sm:$0xff]  }
 0x55f   :  { %11798 = vmatmul.mubr.bf16.gmra.mxu0 %v23450_v4  ;;  %11918 = vmatprep.subr.bf16.mxu1 %v13672_v36  ;;  %v13702_v36 = vld [vmem:[%s22942_s4 + $0xd04] ss:$8 sps:$4 sm:$0xff]   ;;  %v13706_v4 = vld [vmem:[%s22942_s4 + $0xdf0] ss:$8 sps:$4 sm:$0xff]  }
 0x560   :  { %11893 = vmatprep.mubr.bf16.mxu0 %v23456_v60  ;;  %11866 = vmatpush1.bf16.msra.mxu0 %v13667_v17  ;;  %v13697_v17 = vld [vmem:[%s22942_s4 + $0xc00] ss:$8 sps:$4 sm:$0xff]   ;;  %v13715_v60 = vld [vmem:[%s22942_s4 + $0xcd0] ss:$8 sps:$4 sm:$0xff]  }
 0x561   :  { %11851 = vmatmul.mubr.bf16.gmra.mxu1 %v23453_v27  ;;  %11867 = vmatprep.subr.bf16.mxu0 %v13675_v33  ;;  %v13705_v33 = vld [vmem:[%s22942_s4 + $0xcf4] ss:$8 sps:$4 sm:$0xff]   ;;  %v13712_v27 = vld [vmem:[%s22942_s4 + $0xde0] ss:$8 sps:$4 sm:$0xff]  }
 0x562   :  { %11946 = vmatprep.mubr.bf16.mxu1 %v23459_v32  ;;  %11919 = vmatpush1.bf16.msra.mxu1 %v13670_v43  ;;  %v13700_v43 = vld [vmem:[%s22942_s4 + $0xd00] ss:$8 sps:$4 sm:$0xff]   ;;  %v13726_v32 = vld [vmem:[%s22942_s4 + $0xdc4] ss:$8 sps:$4 sm:$0xff]  }
 0x563   :  { %11920 = vmatprep.subr.bf16.mxu1 %v13678_v52  ;;  %v13711_v52 = vld [vmem:[%s22942_s4 + $0xce4] ss:$8 sps:$4 sm:$0xff]  }
 0x564   :  { %11868 = vmatpush1.bf16.msra.mxu0 %v13673_v5  ;;  %v13721_v5 = vld [vmem:[%s22942_s4 + $0xcc0] ss:$8 sps:$4 sm:$0xff]  }
 0x565   :  { %11869 = vmatprep.subr.bf16.mxu0 %v13681_v44  ;;  %v13729_v44 = vld [vmem:[%s22942_s4 + $0xcb4] ss:$8 sps:$4 sm:$0xff]  }
 0x566   :  { %11921 = vmatpush1.bf16.msra.mxu1 %v13676_v6  ;;  %v13724_v6 = vld [vmem:[%s22942_s4 + $0xdc0] ss:$8 sps:$4 sm:$0xff]  }
 0x567   :  { %11922 = vmatprep.subr.bf16.mxu1 %v13684_v46  ;;  %v13732_v46 = vld [vmem:[%s22942_s4 + $0xdb4] ss:$8 sps:$4 sm:$0xff]  }
 0x568   :  { %11870 = vmatpush1.bf16.msra.mxu0 %v13679_v55  ;;  %v13727_v55 = vld [vmem:[%s22942_s4 + $0xcb0] ss:$8 sps:$4 sm:$0xff]  }
 0x569   :  { %11871 = vmatprep.subr.bf16.mxu0 %v13687_v15  ;;  %v13735_v15 = vld [vmem:[%s22942_s4 + $0xca4] ss:$8 sps:$4 sm:$0xff]  }
 0x56a   :  { %11923 = vmatpush1.bf16.msra.mxu1 %v13682_v7  ;;  %v13730_v7 = vld [vmem:[%s22942_s4 + $0xdb0] ss:$8 sps:$4 sm:$0xff]  }
 0x56b   :  { %11924 = vmatprep.subr.bf16.mxu1 %v13690_v54  ;;  %v13738_v54 = vld [vmem:[%s22942_s4 + $0xda4] ss:$8 sps:$4 sm:$0xff]  }
 0x56c   :  { %11872 = vmatpush1.bf16.msra.mxu0 %v13685_v50  ;;  %v13733_v50 = vld [vmem:[%s22942_s4 + $0xca0] ss:$8 sps:$4 sm:$0xff]  }
 0x56d   :  { %11873 = vmatprep.subr.bf16.mxu0 %v13693_v47  ;;  %v13741_v47 = vld [vmem:[%s22942_s4 + $0xc94] ss:$8 sps:$4 sm:$0xff]  }
 0x56e   :  { %11925 = vmatpush1.bf16.msra.mxu1 %v13688_v41  ;;  %v13736_v41 = vld [vmem:[%s22942_s4 + $0xda0] ss:$8 sps:$4 sm:$0xff]  }
 0x56f   :  { %11926 = vmatprep.subr.bf16.mxu1 %v13696_v53  ;;  %v13744_v53 = vld [vmem:[%s22942_s4 + $0xd94] ss:$8 sps:$4 sm:$0xff]  }
 0x570   :  { %11874 = vmatpush1.bf16.msra.mxu0 %v13691_v49  ;;  %v13739_v49 = vld [vmem:[%s22942_s4 + $0xc90] ss:$8 sps:$4 sm:$0xff]  }
 0x571   :  { %11875 = vmatprep.subr.bf16.mxu0 %v13699_v1  ;;  %v13747_v1 = vld [vmem:[%s22942_s4 + $0xc84] ss:$8 sps:$4 sm:$0xff]  }
 0x572   :  { %11927 = vmatpush1.bf16.msra.mxu1 %v13694_v39  ;;  %v13742_v39 = vld [vmem:[%s22942_s4 + $0xd90] ss:$8 sps:$4 sm:$0xff]  }
 0x573   :  { %11928 = vmatprep.subr.bf16.mxu1 %v13702_v36  ;;  %v13750_v36 = vld [vmem:[%s22942_s4 + $0xd84] ss:$8 sps:$4 sm:$0xff]  }
 0x574   :  { %11876 = vmatpush1.bf16.msra.mxu0 %v13697_v17  ;;  %v13745_v17 = vld [vmem:[%s22942_s4 + $0xc80] ss:$8 sps:$4 sm:$0xff]  }
 0x575   :  { %11877 = vmatprep.subr.bf16.mxu0 %v13705_v33  ;;  %v13753_v33 = vld [vmem:[%s22942_s4 + $0xe74] ss:$8 sps:$4 sm:$0xff]  }
 0x576   :  { %11929 = vmatpush1.bf16.msra.mxu1 %v13700_v43  ;;  %v13748_v43 = vld [vmem:[%s22942_s4 + $0xd80] ss:$8 sps:$4 sm:$0xff]  }
 0x577   :  { %11930 = vmatprep.subr.bf16.mxu1 %v13708_v18  ;;  %v13756_v18 = vld [vmem:[%s22942_s4 + $0xf74] ss:$8 sps:$4 sm:$0xff]  }
 0x578   :  { %11878 = vmatpush2.bf16.msra.mxu0 %v13703_v59  ;;  %v13751_v59 = vld [vmem:[%s22942_s4 + $0xe70] ss:$8 sps:$4 sm:$0xff]  }
 0x579   :  { %11879 = vmatprep.subr.bf16.mxu0 %v13711_v52  ;;  %v13759_v52 = vld [vmem:[%s22942_s4 + $0xe64] ss:$8 sps:$4 sm:$0xff]  }
 0x57a   :  { %11931 = vmatpush2.bf16.msra.mxu1 %v13706_v4  ;;  %v13754_v4 = vld [vmem:[%s22942_s4 + $0xf70] ss:$8 sps:$4 sm:$0xff]  }
 0x57b   :  { %11932 = vmatprep.subr.bf16.mxu1 %v13714_v57  ;;  %v23460_v57 = vld [vmem:[#allocation18_spill] sm:$0xff] }
 0x57c   :  { %11880 = vmatpush2.bf16.msra.mxu0 %v13709_v29  ;;  %v23461_v29 = vld [vmem:[#allocation20_spill] sm:$0xff] }
 0x57d   :  { %11881 = vmatprep.subr.bf16.mxu0 %v13717_v22  ;;  %v13762_v22 = vld [vmem:[%s22942_s4 + $0xf64] ss:$8 sps:$4 sm:$0xff]  }
 0x57e   :  { %11933 = vmatpush2.bf16.msra.mxu1 %v13712_v27  ;;  %v23462_v27 = vpack.c.bf16 %v23460_v57, %v23461_v29  ;;  %v13792_v57 = vld [vmem:[%s22942_s4 + $0xf14] ss:$8 sps:$4 sm:$0xff]   ;;  %v13787_v29 = vld [vmem:[%s22942_s4 + $0xe10] ss:$8 sps:$4 sm:$0xff]  }
 0x57f   :  { %11934 = vmatprep.subr.bf16.mxu1 %v13720_v10  ;;  %v23463_v10 = vld [vmem:[#allocation23_spill] sm:$0xff] }
 0x580   :  { %11882 = vmatpush2.bf16.msra.mxu0 %v13715_v60  ;;  %v23464_v60 = vld [vmem:[#allocation25_spill] sm:$0xff] }
 0x581   :  { %11883 = vmatprep.subr.bf16.mxu0 %v13723_v31  ;;  %v23466_v31 = vld [vmem:[#allocation27_spill] sm:$0xff] }
 0x582   :  { %11935 = vmatpush2.bf16.msra.mxu1 %v13718_v19  ;;  %v23465_v19 = vpack.c.bf16 %v23463_v10, %v23464_v60  ;;  %v13798_v10 = vld [vmem:[%s22942_s4 + $0xf04] ss:$8 sps:$4 sm:$0xff]   ;;  %v13793_v60 = vld [vmem:[%s22942_s4 + $0xe00] ss:$8 sps:$4 sm:$0xff]  }
 0x583   :  { %11936 = vmatprep.subr.bf16.mxu1 %v13726_v32  ;;  %v23467_v32 = vld [vmem:[#allocation29_spill] sm:$0xff] }
 0x584   :  { %11884 = vmatpush2.bf16.msra.mxu0 %v13721_v5  ;;  %v23468_v5 = vpack.c.bf16 %v23466_v31, %v23467_v32  ;;  %v13801_v31 = vld [vmem:[%s22942_s4 + $0xef4] ss:$8 sps:$4 sm:$0xff]  }
 0x585   :  { %11885 = vmatprep.subr.bf16.mxu0 %v13729_v44  ;;  %v23470_v44 = vld [vmem:[#allocation30_spill] sm:$0xff]  ;;  %v13804_v32 = vld [vmem:[%s22942_s4 + $0xff4] ss:$8 sps:$4 sm:$0xff]  }
 0x586   :  { %11937 = vmatpush2.bf16.msra.mxu1 %v13724_v6  ;;  %v23469_v6 = vld [vmem:[#allocation38_spill] sm:$0xff] }
 0x587   :  { %11938 = vmatprep.subr.bf16.mxu1 %v13732_v46  ;;  %v23471_v46 = vpack.c.bf16 %v23469_v6, %v23470_v44  ;;  %v13802_v6 = vld [vmem:[%s22942_s4 + $0xff0] ss:$8 sps:$4 sm:$0xff]   ;;  %v13807_v44 = vld [vmem:[%s22942_s4 + $0xee4] ss:$8 sps:$4 sm:$0xff]  }
 0x588   :  { %11886 = vmatpush2.bf16.msra.mxu0 %v13727_v55  ;;  %v13757_v55 = vld [vmem:[%s22942_s4 + $0xe60] ss:$8 sps:$4 sm:$0xff]  }
 0x589   :  { %11887 = vmatprep.subr.bf16.mxu0 %v13735_v15  ;;  %v13765_v15 = vld [vmem:[%s22942_s4 + $0xe54] ss:$8 sps:$4 sm:$0xff]  }
 0x58a   :  { %11939 = vmatpush2.bf16.msra.mxu1 %v13730_v7  ;;  %v13760_v7 = vld [vmem:[%s22942_s4 + $0xf60] ss:$8 sps:$4 sm:$0xff]  }
 0x58b   :  { %11940 = vmatprep.subr.bf16.mxu1 %v13738_v54  ;;  %v13768_v54 = vld [vmem:[%s22942_s4 + $0xf54] ss:$8 sps:$4 sm:$0xff]  }
 0x58c   :  { %11888 = vmatpush2.bf16.msra.mxu0 %v13733_v50  ;;  %v13763_v50 = vld [vmem:[%s22942_s4 + $0xe50] ss:$8 sps:$4 sm:$0xff]  }
 0x58d   :  { %11889 = vmatprep.subr.bf16.mxu0 %v13741_v47  ;;  %v13771_v47 = vld [vmem:[%s22942_s4 + $0xe44] ss:$8 sps:$4 sm:$0xff]  }
 0x58e   :  { %11941 = vmatpush2.bf16.msra.mxu1 %v13736_v41  ;;  %v13766_v41 = vld [vmem:[%s22942_s4 + $0xf50] ss:$8 sps:$4 sm:$0xff]  }
 0x58f   :  { %11942 = vmatprep.subr.bf16.mxu1 %v13744_v53  ;;  %v23472_v53 = vld [vmem:[#allocation26_spill] sm:$0xff] }
 0x590   :  { %11890 = vmatpush2.bf16.msra.mxu0 %v13739_v49  ;;  %v23473_v49 = vld [vmem:[#allocation28_spill] sm:$0xff] }
 0x591   :  { %11891 = vmatprep.subr.bf16.mxu0 %v13747_v1  ;;  %v13774_v1 = vld [vmem:[%s22942_s4 + $0xf44] ss:$8 sps:$4 sm:$0xff]  }
 0x592   :  { %11943 = vmatpush2.bf16.msra.mxu1 %v13742_v39  ;;  %v23474_v39 = vpack.c.bf16 %v23472_v53, %v23473_v49  ;;  %v13822_v53 = vld [vmem:[%s22942_s4 + $0xfc4] ss:$8 sps:$4 sm:$0xff]   ;;  %v13817_v49 = vld [vmem:[%s22942_s4 + $0xec0] ss:$8 sps:$4 sm:$0xff]  }
 0x593   :  { %11944 = vmatprep.subr.bf16.mxu1 %v13750_v36  ;;  %v23475_v36 = vld [vmem:[#allocation31_spill] sm:$0xff] }
 0x594   :  { %11892 = vmatpush2.bf16.msra.mxu0 %v13745_v17  ;;  %v23476_v17 = vld [vmem:[#allocation33_spill] sm:$0xff] }
 0x595   :  { %11967 = vmatprep.subr.bf16.mxu0 %v13753_v33  ;;  %v13769_v33 = vld [vmem:[%s22942_s4 + $0xe40] ss:$8 sps:$4 sm:$0xff]  }
 0x596   :  { %11945 = vmatpush2.bf16.msra.mxu1 %v13748_v43  ;;  %v23477_v43 = vpack.c.bf16 %v23475_v36, %v23476_v17  ;;  %v13828_v36 = vld [vmem:[%s22942_s4 + $0xfb4] ss:$8 sps:$4 sm:$0xff]   ;;  %v13823_v17 = vld [vmem:[%s22942_s4 + $0xeb0] ss:$8 sps:$4 sm:$0xff]  }
 0x597   :  { %12020 = vmatprep.subr.bf16.mxu1 %v13756_v18  ;;  %11894 = vmatmul.mubr.bf16.vlgmr.msra.gmra.mxu0 %v23462_v27  ;;  %v13772_v18 = vld [vmem:[%s22942_s4 + $0xf40] ss:$8 sps:$4 sm:$0xff]   ;;  %v13790_v27 = vld [vmem:[%s22942_s4 + $0xf10] ss:$8 sps:$4 sm:$0xff]  }
 0x598   :  { %11903 = vmatprep.mubr.bf16.mxu0 %v23468_v5  ;;  %11968 = vmatpush1.bf16.msra.mxu0 %v13751_v59  ;;  %v13781_v59 = vld [vmem:[%s22942_s4 + $0xe20] ss:$8 sps:$4 sm:$0xff]   ;;  %v13799_v5 = vld [vmem:[%s22942_s4 + $0xef0] ss:$8 sps:$4 sm:$0xff]  }
 0x599   :  { %11947 = vmatmul.mubr.bf16.vlgmr.msra.gmra.mxu1 %v23465_v19  ;;  %11969 = vmatprep.subr.bf16.mxu0 %v13759_v52  ;;  %v13789_v52 = vld [vmem:[%s22942_s4 + $0xe14] ss:$8 sps:$4 sm:$0xff]   ;;  %v13796_v19 = vld [vmem:[%s22942_s4 + $0xf00] ss:$8 sps:$4 sm:$0xff]  }
 0x59a   :  { %11956 = vmatprep.mubr.bf16.mxu1 %v23471_v46  ;;  %12021 = vmatpush1.bf16.msra.mxu1 %v13754_v4  ;;  %v13784_v4 = vld [vmem:[%s22942_s4 + $0xf20] ss:$8 sps:$4 sm:$0xff]   ;;  %v13810_v46 = vld [vmem:[%s22942_s4 + $0xfe4] ss:$8 sps:$4 sm:$0xff]  }
 0x59b   :  { %12022 = vmatprep.subr.bf16.mxu1 %v13762_v22  ;;  %v13795_v22 = vld [vmem:[%s22942_s4 + $0xe04] ss:$8 sps:$4 sm:$0xff]  }
 0x59c   :  { %11970 = vmatpush1.bf16.msra.mxu0 %v13757_v55  ;;  %v13805_v55 = vld [vmem:[%s22942_s4 + $0xee0] ss:$8 sps:$4 sm:$0xff]  }
 0x59d   :  { %11971 = vmatprep.subr.bf16.mxu0 %v13765_v15  ;;  %v13813_v15 = vld [vmem:[%s22942_s4 + $0xed4] ss:$8 sps:$4 sm:$0xff]  }
 0x59e   :  { %12023 = vmatpush1.bf16.msra.mxu1 %v13760_v7  ;;  %v13808_v7 = vld [vmem:[%s22942_s4 + $0xfe0] ss:$8 sps:$4 sm:$0xff]  }
 0x59f   :  { %11904 = vmatmul.mubr.bf16.gmra.mxu0 %v23474_v39  ;;  %12024 = vmatprep.subr.bf16.mxu1 %v13768_v54  ;;  %v13816_v54 = vld [vmem:[%s22942_s4 + $0xfd4] ss:$8 sps:$4 sm:$0xff]   ;;  %v13820_v39 = vld [vmem:[%s22942_s4 + $0xfc0] ss:$8 sps:$4 sm:$0xff]  }
 0x5a0   :  { %11999 = vmatprep.mubr.bf16.mxu0 %v8630_v20  ;;  %11972 = vmatpush1.bf16.msra.mxu0 %v13763_v50  ;;  %v13783_v20 = vld [vmem:[%s22942_s4 + $0xe24] ss:$8 sps:$4 sm:$0xff]   ;;  %v13811_v50 = vld [vmem:[%s22942_s4 + $0xed0] ss:$8 sps:$4 sm:$0xff]  }
 0x5a1   :  { %11957 = vmatmul.mubr.bf16.gmra.mxu1 %v23477_v43  ;;  %11973 = vmatprep.subr.bf16.mxu0 %v13771_v47  ;;  %v13819_v47 = vld [vmem:[%s22942_s4 + $0xec4] ss:$8 sps:$4 sm:$0xff]   ;;  %v13826_v43 = vld [vmem:[%s22942_s4 + $0xfb0] ss:$8 sps:$4 sm:$0xff]  }
 0x5a2   :  { %12052 = vmatprep.mubr.bf16.mxu1 %v8632_v12  ;;  %12025 = vmatpush1.bf16.msra.mxu1 %v13766_v41  ;;  %v13786_v12 = vld [vmem:[%s22942_s4 + $0xf24] ss:$8 sps:$4 sm:$0xff]   ;;  %v13814_v41 = vld [vmem:[%s22942_s4 + $0xfd0] ss:$8 sps:$4 sm:$0xff]  }
 0x5a3   :  { %12026 = vmatprep.subr.bf16.mxu1 %v13774_v1  ;;  %v13825_v1 = vld [vmem:[%s22942_s4 + $0xeb4] ss:$8 sps:$4 sm:$0xff]  }
 0x5a4   :  { %11974 = vmatpush1.bf16.msra.mxu0 %v13769_v33  ;;  %v13831_v33 = vld [vmem:[%s22942_s4 + $0xea4] ss:$8 sps:$4 sm:$0xff]  }
 0x5a5   :  { %11975 = vmatprep.subr.bf16.mxu0 %v13777_v2  ;;  %v13829_v2 = vld [vmem:[%s22942_s4 + $0xea0] ss:$8 sps:$4 sm:$0xff]  }
 0x5a6   :  { %12027 = vmatpush1.bf16.msra.mxu1 %v13772_v18  ;;  %v13834_v18 = vld [vmem:[%s22942_s4 + $0xfa4] ss:$8 sps:$4 sm:$0xff]  }
 0x5a7   :  { %12028 = vmatprep.subr.bf16.mxu1 %v13780_v37  ;;  %v13832_v37 = vld [vmem:[%s22942_s4 + $0xfa0] ss:$8 sps:$4 sm:$0xff]  }
 0x5a8   :  { %11976 = vmatpush1.bf16.msra.mxu0 %v13775_v42  ;;  %v13837_v42 = vld [vmem:[%s22942_s4 + $0xe94] ss:$8 sps:$4 sm:$0xff]  }
 0x5a9   :  { %11977 = vmatprep.subr.bf16.mxu0 %v13783_v20  ;;  %v13835_v20 = vld [vmem:[%s22942_s4 + $0xe90] ss:$8 sps:$4 sm:$0xff]  }
 0x5aa   :  { %12029 = vmatpush1.bf16.msra.mxu1 %v13778_v28  ;;  %v13840_v28 = vld [vmem:[%s22942_s4 + $0xf94] ss:$8 sps:$4 sm:$0xff]  }
 0x5ab   :  { %12030 = vmatprep.subr.bf16.mxu1 %v13786_v12  ;;  %v13838_v12 = vld [vmem:[%s22942_s4 + $0xf90] ss:$8 sps:$4 sm:$0xff]  }
 0x5ac   :  { %11978 = vmatpush1.bf16.msra.mxu0 %v13781_v59  ;;  %v13843_v59 = vld [vmem:[%s22942_s4 + $0xe84] ss:$8 sps:$4 sm:$0xff]  }
 0x5ad   :  { %11979 = vmatprep.subr.bf16.mxu0 %v13789_v52  ;;  %v13841_v52 = vld [vmem:[%s22942_s4 + $0xe80] ss:$8 sps:$4 sm:$0xff]  }
 0x5ae   :  { %12031 = vmatpush1.bf16.msra.mxu1 %v13784_v4  ;;  %v13846_v4 = vld [vmem:[%s22942_s4 + $0xf84] ss:$8 sps:$4 sm:$0xff]  }
 0x5af   :  { %12032 = vmatprep.subr.bf16.mxu1 %v13792_v57  ;;  %v13844_v57 = vld [vmem:[%s22942_s4 + $0xf80] ss:$8 sps:$4 sm:$0xff]  }
 0x5b0   :  { %11980 = vmatpush1.bf16.msra.mxu0 %v13787_v29 }
 0x5b1   :  { %11981 = vmatprep.subr.bf16.mxu0 %v13795_v22 }
 0x5b2   :  { %12033 = vmatpush1.bf16.msra.mxu1 %v13790_v27 }
 0x5b3   :  { %12034 = vmatprep.subr.bf16.mxu1 %v13798_v10 }
 0x5b4   :  { %11982 = vmatpush1.bf16.msra.mxu0 %v13793_v60 }
 0x5b5   :  { %11983 = vmatprep.subr.bf16.mxu0 %v13801_v31 }
 0x5b6   :  { %12035 = vmatpush1.bf16.msra.mxu1 %v13796_v19 }
 0x5b7   :  { %12036 = vmatprep.subr.bf16.mxu1 %v13804_v32 }
 0x5b8   :  { %11984 = vmatpush2.bf16.msra.mxu0 %v13799_v5 }
 0x5b9   :  { %11985 = vmatprep.subr.bf16.mxu0 %v13807_v44 }
 0x5ba   :  { %12037 = vmatpush2.bf16.msra.mxu1 %v13802_v6 }
 0x5bb   :  { %12038 = vmatprep.subr.bf16.mxu1 %v13810_v46 }
 0x5bc   :  { %11986 = vmatpush2.bf16.msra.mxu0 %v13805_v55 }
 0x5bd   :  { %11987 = vmatprep.subr.bf16.mxu0 %v13813_v15 }
 0x5be   :  { %12039 = vmatpush2.bf16.msra.mxu1 %v13808_v7 }
 0x5bf   :  { %12040 = vmatprep.subr.bf16.mxu1 %v13816_v54 }
 0x5c0   :  { %11988 = vmatpush2.bf16.msra.mxu0 %v13811_v50 }
 0x5c1   :  { %11989 = vmatprep.subr.bf16.mxu0 %v13819_v47 }
 0x5c2   :  { %12041 = vmatpush2.bf16.msra.mxu1 %v13814_v41 }
 0x5c3   :  { %12042 = vmatprep.subr.bf16.mxu1 %v13822_v53 }
 0x5c4   :  { %11990 = vmatpush2.bf16.msra.mxu0 %v13817_v49 }
 0x5c5   :  { %11991 = vmatprep.subr.bf16.mxu0 %v13825_v1 }
 0x5c6   :  { %12043 = vmatpush2.bf16.msra.mxu1 %v13820_v39 }
 0x5c7   :  { %12044 = vmatprep.subr.bf16.mxu1 %v13828_v36 }
 0x5c8   :  { %11992 = vmatpush2.bf16.msra.mxu0 %v13823_v17 }
 0x5c9   :  { %11993 = vmatprep.subr.bf16.mxu0 %v13831_v33 }
 0x5ca   :  { %12045 = vmatpush2.bf16.msra.mxu1 %v13826_v43 }
 0x5cb   :  { %12046 = vmatprep.subr.bf16.mxu1 %v13834_v18 }
 0x5cc   :  { %11994 = vmatpush2.bf16.msra.mxu0 %v13829_v2 }
 0x5cd   :  { %11995 = vmatprep.subr.bf16.mxu0 %v13837_v42 }
 0x5ce   :  { %12047 = vmatpush2.bf16.msra.mxu1 %v13832_v37 }
 0x5cf   :  { %12048 = vmatprep.subr.bf16.mxu1 %v13840_v28 }
 0x5d0   :  { %11996 = vmatpush2.bf16.msra.mxu0 %v13835_v20 }
 0x5d1   :  { %11997 = vmatprep.subr.bf16.mxu0 %v13843_v59 }
 0x5d2   :  { %12049 = vmatpush2.bf16.msra.mxu1 %v13838_v12 }
 0x5d3   :  { %12050 = vmatprep.subr.bf16.mxu1 %v13846_v4 }
 0x5d4   :  { %11998 = vmatpush2.bf16.msra.mxu0 %v13841_v52 }
 0x5d6   :  { %12051 = vmatpush2.bf16.msra.mxu1 %v13844_v57 }
 0x5d7   :  { %12000 = vmatmul.mubr.bf16.vlgmr.msra.gmra.mxu0 %v8629_v11  ;;  %v22729_v11 = vpop.f32.mrf.mxu0 }
 0x5d8   :  { %12009 = vmatprep.mubr.bf16.mxu0 %v8662_v26 }
 0x5d9   :  { %12053 = vmatmul.mubr.bf16.vlgmr.msra.gmra.mxu1 %v8631_v21  ;;  %v22731_v21 = vpop.f32.mrf.mxu1  ;;  %v22733_v13 = vpop.f32.mrf.mxu0 }
 0x5da   :  { %12062 = vmatprep.mubr.bf16.mxu1 %v8664_v38 }
 0x5db   :  { %v22735_v24 = vpop.f32.mrf.mxu1  ;;  %v22737_v30 = vpop.f32.mrf.mxu0 }
 0x5dd   :  { %v22739_v62 = vpop.f32.mrf.mxu1  ;;  %v22741_v0 = vpop.f32.mrf.mxu0 }
 0x5df   :  { %12010 = vmatmul.mubr.bf16.gmra.mxu0 %v8661_v34  ;;  %v22743_v34 = vpop.f32.mrf.mxu1  ;;  %v22745_v40 = vpop.f32.mrf.mxu0 }
 0x5e1   :  { %12063 = vmatmul.mubr.bf16.gmra.mxu1 %v8663_v8  ;;  %v22747_v63 = vpop.f32.mrf.mxu1  ;;  %v22749_v8 = vpop.f32.mrf.mxu0 }
 0x5e3   :  { %v22751_v23 = vpop.f32.mrf.mxu1  ;;  %v11577_v26 = vpop.f32.mrf.mxu0 }
 0x5e5   :  { %v22753_v38 = vpop.f32.mrf.mxu1  ;;  %v11579_v29 = vpop.f32.mrf.mxu0 }
 0x5e7   :  { %v22755_v27 = vpop.f32.mrf.mxu1  ;;  %v22757_v22 = vpop.f32.mrf.mxu0 }
 0x5e9   :  { %v22759_v10 = vpop.f32.mrf.mxu1  ;;  %v22761_v60 = vpop.f32.mrf.mxu0 }
 0x5eb   :  { %v22763_v19 = vpop.f32.mrf.mxu1  ;;  %v22765_v31 = vpop.f32.mrf.mxu0 }
 0x5ed   :  { %v22767_v32 = vpop.f32.mrf.mxu1  ;;  %v22769_v5 = vpop.f32.mrf.mxu0 }
 0x5ef   :  { %v22771_v6 = vpop.f32.mrf.mxu1  ;;  %v22773_v44 = vpop.f32.mrf.mxu0 }
 0x5f1   :  { %v22775_v46 = vpop.f32.mrf.mxu1  ;;  %v22777_v55 = vpop.f32.mrf.mxu0 }
 0x5f3   :  { %v22779_v7 = vpop.f32.mrf.mxu1  ;;  %v11683_v15 = vpop.f32.mrf.mxu0 }
 0x5f4   :  { %23478 = vst [vmem:[#allocation35_spill] sm:$0xff] %v22779_v7 }
 0x5f5   :  { %v22781_v54 = vpop.f32.mrf.mxu1  ;;  %v11685_v50 = vpop.f32.mrf.mxu0 }
 0x5f7   :  { %v22783_v41 = vpop.f32.mrf.mxu1  ;;  %v22785_v47 = vpop.f32.mrf.mxu0 }
 0x5f9   :  { %v22787_v53 = vpop.f32.mrf.mxu1  ;;  %v22789_v49 = vpop.f32.mrf.mxu0 }
 0x5fb   :  { %v22791_v39 = vpop.f32.mrf.mxu1  ;;  %v22793_v1 = vpop.f32.mrf.mxu0 }
 0x5fd   :  { %v22795_v36 = vpop.f32.mrf.mxu1  ;;  %v22797_v17 = vpop.f32.mrf.mxu0 }
 0x5fe   :  { %23479 = vst [vmem:[#allocation109_spill] sm:$0xff] %v22795_v36 }
 0x5ff   :  { %v22799_v43 = vpop.f32.mrf.mxu1  ;;  %v22801_v33 = vpop.f32.mrf.mxu0 }
 0x600   :  { %23480 = vst [vmem:[#allocation110_spill] sm:$0xff] %v22799_v43  ;;  %23481 = vst [vmem:[#allocation24_spill] sm:$0xff] %v22801_v33 }
 0x601   :  { %v22803_v18 = vpop.f32.mrf.mxu1  ;;  %v22805_v2 = vpop.f32.mrf.mxu0 }
 0x602   :  { %23482 = vst [vmem:[#allocation111_spill] sm:$0xff] %v22803_v18  ;;  %23483 = vst [vmem:[#allocation36_spill] sm:$0xff] %v22805_v2 }
 0x603   :  { %v22807_v37 = vpop.f32.mrf.mxu1 }
 0x604   :  { %23484 = vst [vmem:[#allocation15_spill] sm:$0xff] %v22807_v37 }
 0x617   :  { %v11789_v42 = vpop.f32.mrf.mxu0 }
 0x619   :  { %v22809_v28 = vpop.f32.mrf.mxu1  ;;  %v22811_v20 = vpop.f32.mrf.mxu0 }
 0x61b   :  { %v22813_v12 = vpop.f32.mrf.mxu1  ;;  %v22815_v59 = vpop.f32.mrf.mxu0 }
 0x61c   :  { %23485 = vst [vmem:[#allocation37_spill] sm:$0xff] %v22813_v12 }
 0x61d   :  { %v22817_v4 = vpop.f32.mrf.mxu1  ;;  %v22819_v52 = vpop.f32.mrf.mxu0 }
 0x61e   :  { %23486 = vst [vmem:[#allocation16_spill] sm:$0xff] %v22817_v4 }
 0x61f   :  { %v22821_v57 = vpop.f32.mrf.mxu1  ;;  %v22823_v18 = vpop.f32.mrf.mxu0 }
 0x620   :  { %23487 = vst [vmem:[#allocation46_spill] sm:$0xff] %v22821_v57  ;;  %23488 = vst [vmem:[#allocation42_spill] sm:$0xff] %v22823_v18  ;;  %v11472_v57 = vadd.f32 %v22721_v3, %v22047_v25  ;;  %v11482_v3 = vadd.f32 %v22737_v30, %v22095_v35  ;;  %v11486_v35 = vadd.f32 %v22745_v40, %v22125_v16 }
 0x621   :  { %v22825_v2 = vpop.f32.mrf.mxu1  ;;  %v22827_v37 = vpop.f32.mrf.mxu0 }
 0x622   :  { %23489 = vst [vmem:[#allocation47_spill] sm:$0xff] %v22825_v2  ;;  %23490 = vst [vmem:[#allocation43_spill] sm:$0xff] %v22827_v37  ;;  %v11474_v2 = vadd.f32 %v22725_v48, %v22065_v14  ;;  %v11539_v16 = vadd.f32 %v22747_v63, %v11486_v35 }
 0x623   :  { %v22829_v43 = vpop.f32.mrf.mxu1  ;;  %v22831_v33 = vpop.f32.mrf.mxu0 }
 0x624   :  { %23491 = vst [vmem:[#allocation44_spill] sm:$0xff] %v22829_v43  ;;  %23492 = vst [vmem:[#allocation40_spill] sm:$0xff] %v22831_v33  ;;  %v11525_v43 = vadd.f32 %v22723_v51, %v11472_v57  ;;  %v11478_v33 = vadd.f32 %v22733_v13, %v22083_v9  ;;  %v11535_v13 = vadd.f32 %v22739_v62, %v11482_v3 }
 0x625   :  { %v22833_v36 = vpop.f32.mrf.mxu1  ;;  %v22835_v12 = vpop.f32.mrf.mxu0 }
 0x626   :  { %23493 = vst [vmem:[#allocation45_spill] sm:$0xff] %v22833_v36  ;;  %23494 = vst [vmem:[#allocation41_spill] sm:$0xff] %v22835_v12  ;;  %v11476_v36 = vadd.f32 %v22729_v11, %v22077_v56  ;;  %v11578_v25 = vadd.f32 %v11577_v26, %v11525_v43  ;;  %v11484_v56 = vadd.f32 %v22741_v0, %v22113_v45 }
 0x627   :  { %v22837_v7 = vpop.f32.mrf.mxu1  ;;  %v11531_v11 = vadd.f32 %v22735_v24, %v11478_v33  ;;  %v11488_v24 = vadd.f32 %v22749_v8, %v22131_v61  ;;  %v11588_v0 = vadd.f32 %v22765_v31, %v11535_v13  ;;  %v23497_v33 = vld [vmem:[#allocation35_spill] sm:$0xff] }
 0x628   :  { %23495 = vst [vmem:[#allocation54_spill] sm:$0xff] %v22837_v7  ;;  %v11527_v7 = vadd.f32 %v22727_v58, %v11474_v2  ;;  %v11529_v14 = vadd.f32 %v22731_v21, %v11476_v36  ;;  %v11631_v58 = vadd.f32 %v22753_v38, %v11578_v25  ;;  %v11537_v45 = vadd.f32 %v22743_v34, %v11484_v56  ;;  %v23498_v2 = vld [vmem:[#allocation109_spill] sm:$0xff]  ;;  %v23503_v56 = vld [vmem:[#allocation42_spill] sm:$0xff]  ;;  %v23505_v13 = vld [vmem:[#allocation111_spill] sm:$0xff] }
 0x629   :  { %v11584_v26 = vadd.f32 %v22761_v60, %v11531_v11  ;;  %v11541_v61 = vadd.f32 %v22751_v23, %v11488_v24  ;;  %v11641_v8 = vadd.f32 %v22767_v32, %v11588_v0  ;;  %v23500_v25 = vld [vmem:[#allocation37_spill] sm:$0xff]  ;;  %v23504_v11 = vld [vmem:[#allocation16_spill] sm:$0xff] }
 0x62a   :  { %v11580_v48 = vadd.f32 %v11579_v29, %v11527_v7  ;;  %v11582_v9 = vadd.f32 %v22757_v22, %v11529_v14  ;;  %v11684_v29 = vadd.f32 %v11683_v15, %v11631_v58  ;;  %v11590_v40 = vadd.f32 %v22769_v5, %v11537_v45  ;;  %v23501_v14 = vld [vmem:[#allocation110_spill] sm:$0xff] }
 0x62b   :  { %v11637_v22 = vadd.f32 %v22763_v19, %v11584_v26  ;;  %v11594_v19 = vadd.f32 %v22777_v55, %v11541_v61  ;;  %v23507_v45 = vld [vmem:[#allocation46_spill] sm:$0xff] }
 0x62c   :  { %v11633_v21 = vadd.f32 %v22755_v27, %v11580_v48  ;;  %v11635_v62 = vadd.f32 %v22759_v10, %v11582_v9  ;;  %v11737_v60 = vadd.f32 %v22781_v54, %v11684_v29  ;;  %v11592_v10 = vadd.f32 %v22773_v44, %v11539_v16  ;;  %v23502_v48 = vld [vmem:[#allocation36_spill] sm:$0xff]  ;;  %v23509_v16 = vld [vmem:[#allocation15_spill] sm:$0xff] }
 0x62d   :  { %v11690_v63 = vadd.f32 %v22789_v49, %v11637_v22  ;;  %v11694_v54 = vadd.f32 %v22793_v1, %v11641_v8  ;;  %v11647_v55 = vadd.f32 %v23497_v33, %v11594_v19  ;;  %v23510_v22 = vld [vmem:[#allocation47_spill] sm:$0xff]  ;;  %v23515_v33 = vld [vmem:[#allocation6_spill] sm:$0xff] }
 0x62e   :  { %v11686_v38 = vadd.f32 %v11685_v50, %v11633_v21  ;;  %v11688_v15 = vadd.f32 %v22785_v47, %v11635_v62  ;;  %v11790_v5 = vadd.f32 %v11789_v42, %v11737_v60  ;;  %v11643_v50 = vadd.f32 %v22771_v6, %v11590_v40  ;;  %v23499_v42 = vld [vmem:[#allocation24_spill] sm:$0xff]  ;;  %v23506_v21 = vld [vmem:[#allocation43_spill] sm:$0xff] }
 0x62f   :  { %v11645_v32 = vadd.f32 %v22775_v46, %v11592_v10  ;;  %v11747_v1 = vadd.f32 %v23498_v2, %v11694_v54  ;;  %v23511_v60 = vld [vmem:[#allocation40_spill] sm:$0xff]  ;;  %v23516_v2 = vld [vmem:[#allocation45_spill] sm:$0xff] }
 0x630   :  { %v11739_v31 = vadd.f32 %v22783_v41, %v11686_v38  ;;  %v11741_v36 = vadd.f32 %v22787_v53, %v11688_v15  ;;  %v11696_v44 = vadd.f32 %v22797_v17, %v11643_v50  ;;  %v11743_v41 = vadd.f32 %v22791_v39, %v11690_v63  ;;  %v650_v38 = vld [vmem:[%s22943_s5] sm:$0x3]  ;;  %s14054_s5 = smov [#allocation2]  }
 0x631   :  { %v11843_v49 = vadd.f32 %v22809_v28, %v11790_v5  ;;  %v11698_v57 = vadd.f32 %v23499_v42, %v11645_v32  ;;  %v11700_v28 = vadd.f32 %v23502_v48, %v11647_v55  ;;  %v23512_v5 = vld [vmem:[#allocation44_spill] sm:$0xff]  ;;  %v12081_v55 = vrot.slane %v650_v38, %v23515_v33  ;;  %s12194_s7 = sshll.u32 %s14054_s5, 4  ;;  %s12195_s7 = int_to_ptr.vmem [resolvable:$true] %s12194_s7 }
 0x632   :  { %v11792_v23 = vadd.f32 %v22811_v20, %v11739_v31  ;;  %v11794_v6 = vadd.f32 %v22815_v59, %v11741_v36  ;;  %v11796_v3 = vadd.f32 %v22819_v52, %v11743_v41  ;;  %v11749_v39 = vadd.f32 %v23501_v14, %v11696_v44  ;;  %v23514_v36 = vld [vmem:[#allocation5_spill] sm:$0xff]  ;;  %s14029_s8 = scalar_lea.vmem %s12195_s7, 1024  ;;  %p14034_p1 = scmp.lt.s32.totalorder %s12195_s7, %s12195_s7 }
 0x633   :  { %v11800_v59 = vadd.f32 %v23503_v56, %v11747_v1  ;;  %v11751_v35 = vadd.f32 %v23505_v13, %v11698_v57  ;;  %v11753_v40 = vadd.f32 %v23509_v16, %v11700_v28  ;;  %p14030_p0 = scmp.ne.s32.totalorder %s12195_s7, %s14029_s8  ;;  %p14035_p2 = scmp.lt.s32.totalorder %s14029_s8, %s14029_s8 }
 0x634   :  { %v11845_v20 = vadd.f32 %v23500_v25, %v11792_v23  ;;  %v11847_v58 = vadd.f32 %v23504_v11, %v11794_v6  ;;  %v11802_v26 = vadd.f32 %v23506_v21, %v11749_v39  ;;  %v11849_v52 = vadd.f32 %v23507_v45, %v11796_v3 }
 0x635   :  { %v11804_v15 = vadd.f32 %v23511_v60, %v11751_v35  ;;  %v12077_v23 = vrot.slane %v650_v38, %v23514_v36  ;;  %p14036_p3 = por %p14035_p2, %p14034_p1 }
 0x636   :  { %v11855_v50 = vadd.f32 %v23512_v5, %v11802_v26 }
 0x637   :  { %p14037_p4 = pnand %p14036_p3, %p14030_p0 }
 0x657   :  { %v22839_v4 = vpop.f32.mrf.mxu0 }
 0x658   :  { %v11896_v46 = vadd.f32 %v22839_v4, %v11843_v49 }
 0x659   :  { %v22843_v18 = vpop.f32.mrf.mxu1  ;;  %v22847_v37 = vpop.f32.mrf.mxu0 }
 0x65a   :  { %23496 = vst [vmem:[#allocation50_spill] sm:$0xff] %v22843_v18  ;;  %v11898_v9 = vadd.f32 %v22847_v37, %v11845_v20  ;;  %v11853_v37 = vadd.f32 %v23510_v22, %v11800_v59 }
 0x65b   :  { %v22852_v12 = vpop.f32.mrf.mxu1  ;;  %v22859_v18 = vpop.f32.mrf.mxu0 }
 0x65c   :  { %v11900_v0 = vadd.f32 %v22859_v18, %v11847_v58  ;;  %v11951_v8 = vadd.f32 %v22852_v12, %v11898_v9  ;;  %v23513_v18 = vld [vmem:[#allocation41_spill] sm:$0xff]  ;;  %v11857_v12 = vadd.f32 %v23516_v2, %v11804_v15 }
 0x65d   :  { %v22862_v51 = vpop.f32.mrf.mxu1  ;;  %v11901_v30 = vpop.f32.mrf.mxu0  ;;  %v11806_v19 = vadd.f32 %v23513_v18, %v11753_v40 }
 0x65e   :  { %v11902_v10 = vadd.f32 %v11901_v30, %v11849_v52  ;;  %v11953_v44 = vadd.f32 %v22862_v51, %v11900_v0 }
 0x65f   :  { %v22874_v7 = vpop.f32.mrf.mxu1  ;;  %v11905_v27 = vpop.f32.mrf.mxu0 }
 0x660   :  { %v11906_v54 = vadd.f32 %v11905_v27, %v11853_v37  ;;  %v11955_v42 = vadd.f32 %v22874_v7, %v11902_v10  ;;  %v23517_v27 = vld [vmem:[#allocation54_spill] sm:$0xff] }
 0x661   :  { %v22886_v34 = vpop.f32.mrf.mxu1  ;;  %v11907_v47 = vpop.f32.mrf.mxu0  ;;  %v23508_v24 = vld [vmem:[#allocation50_spill] sm:$0xff]  ;;  %v11859_v3 = vadd.f32 %v23517_v27, %v11806_v19 }
 0x662   :  { %v11949_v4 = vadd.f32 %v23508_v24, %v11896_v46  ;;  %v11908_v30 = vadd.f32 %v11907_v47, %v11855_v50  ;;  %v11959_v46 = vadd.f32 %v22886_v34, %v11906_v54 }
 0x663   :  { %v11960_v43 = vpop.f32.mrf.mxu1  ;;  %v11909_v53 = vpop.f32.mrf.mxu0 }
 0x664   :  { %v11910_v14 = vadd.f32 %v11909_v53, %v11857_v12  ;;  %v11961_v11 = vadd.f32 %v11960_v43, %v11908_v30 }
 0x665   :  { %v11962_v17 = vpop.f32.mrf.mxu1  ;;  %v11911_v29 = vpop.f32.mrf.mxu0 }
 0x666   :  { %v11912_v47 = vadd.f32 %v11911_v29, %v11859_v3  ;;  %v11963_v21 = vadd.f32 %v11962_v17, %v11910_v14 }
 0x667   :  { %v11964_v62 = vpop.f32.mrf.mxu1 }
 0x668   :  { %v11965_v0 = vadd.f32 %v11964_v62, %v11912_v47 }
 0x697   :  { %v12001_v61 = vpop.f32.mrf.mxu0 }
 0x698   :  { %v12002_v31 = vadd.f32 %v12001_v61, %v11949_v4 }
 0x699   :  { %v12054_v63 = vpop.f32.mrf.mxu1  ;;  %v12003_v32 = vpop.f32.mrf.mxu0 }
 0x69a   :  { %v12055_v41 = vadd.f32 %v12054_v63, %v12002_v31  ;;  %v12004_v49 = vadd.f32 %v12003_v32, %v11951_v8 }
 0x69b   :  { %v12056_v6 = vpop.f32.mrf.mxu1  ;;  %v12005_v1 = vpop.f32.mrf.mxu0 }
 0x69c   :  { %v12057_v57 = vadd.f32 %v12056_v6, %v12004_v49  ;;  %v12006_v25 = vadd.f32 %v12005_v1, %v11953_v44  ;;  %v12084_v39 = vmul.f32 %v12077_v23, %v12055_v41 }
 0x69d   :  { %v12058_v20 = vpop.f32.mrf.mxu1  ;;  %v12007_v51 = vpop.f32.mrf.mxu0 }
 0x69e   :  { %v12085_v48 = vmul.f32 %v12081_v55, %v12057_v57  ;;  %v12059_v28 = vadd.f32 %v12058_v20, %v12006_v25  ;;  %v12008_v56 = vadd.f32 %v12007_v51, %v11955_v42 }
 0x69f   :  { %v12060_v59 = vpop.f32.mrf.mxu1  ;;  %v12011_v58 = vpop.f32.mrf.mxu0 }
 0x6a0   :  { %v12061_v9 = vadd.f32 %v12060_v59, %v12008_v56  ;;  %v12012_v13 = vadd.f32 %v12011_v58, %v11959_v46  ;;  %v12092_v35 = vadd.f32 %v12085_v48, %v12084_v39  ;;  %v12086_v45 = vmul.f32 %v12077_v23, %v12059_v28 }
 0x6a1   :  { %v12064_v7 = vpop.f32.mrf.mxu1  ;;  %v12013_v26 = vpop.f32.mrf.mxu0 }
 0x6a2   :  { %v12087_v52 = vmul.f32 %v12081_v55, %v12061_v9  ;;  %v12065_v24 = vadd.f32 %v12064_v7, %v12012_v13  ;;  %v12014_v34 = vadd.f32 %v12013_v26, %v11961_v11  ;;  %12093 = vadd.xlane.f32.xlu1 %v12092_v35 }
 0x6a3   :  { %v12066_v53 = vpop.f32.mrf.mxu1  ;;  %v12015_v4 = vpop.f32.mrf.mxu0 }
 0x6a4   :  { %v12067_v38 = vadd.f32 %v12066_v53, %v12014_v34  ;;  %v12016_v16 = vadd.f32 %v12015_v4, %v11963_v21  ;;  %v12095_v43 = vadd.f32 %v12087_v52, %v12086_v45  ;;  %v12088_v29 = vmul.f32 %v12077_v23, %v12065_v24 }
 0x6a5   :  { %v12068_v40 = vpop.f32.mrf.mxu1  ;;  %v12017_v22 = vpop.f32.mrf.mxu0 }
 0x6a6   :  { %v12089_v37 = vmul.f32 %v12081_v55, %v12067_v38  ;;  %v12069_v60 = vadd.f32 %v12068_v40, %v12016_v16  ;;  %v12018_v15 = vadd.f32 %v12017_v22, %v11965_v0  ;;  %12096 = vadd.xlane.f32.xlu0 %v12095_v43 }
 0x6a7   :  { %v12070_v17 = vpop.f32.mrf.mxu1 }
 0x6a8   :  { %v12071_v61 = vadd.f32 %v12070_v17, %v12018_v15  ;;  %v12098_v8 = vadd.f32 %v12089_v37, %v12088_v29  ;;  %v12090_v10 = vmul.f32 %v12077_v23, %v12069_v60 }
 0x6aa   :  { %v12091_v31 = vmul.f32 %v12081_v55, %v12071_v61  ;;  %12099 = vadd.xlane.f32.xlu1 %v12098_v8 }
 0x6ac   :  { %v12101_v63 = vadd.f32 %v12091_v31, %v12090_v10 }
 0x6ae   :  { %12102 = vadd.xlane.f32.xlu0 %v12101_v63 }
 0x72b   :  { %v12094_v5 = vpop.xlane.xlu1 %12093 }
 0x72c   :  { %v12105_v62 = vmul.f32 0.00390625, %v12094_v5 }
 0x72e   :  { %v12109_v50 = vsub.f32 %v12084_v39, %v12105_v62  ;;  %v12110_v18 = vsub.f32 %v12085_v48, %v12105_v62 }
 0x72f   :  { %v12097_v19 = vpop.xlane.xlu0 %12096 }
 0x730   :  { %v12106_v54 = vmul.f32 0.00390625, %v12097_v19  ;;  %v12117_v36 = vmul.f32 %v12109_v50, %v12109_v50  ;;  %v12118_v32 = vmul.f32 %v12110_v18, %v12110_v18 }
 0x732   :  { %v12111_v44 = vsub.f32 %v12086_v45, %v12106_v54  ;;  %v12112_v41 = vsub.f32 %v12087_v52, %v12106_v54  ;;  %v12125_v49 = vadd.f32 %v12118_v32, %v12117_v36 }
 0x733   :  { %v12100_v6 = vpop.xlane.xlu1 %12099 }
 0x734   :  { %v12107_v33 = vmul.f32 0.00390625, %v12100_v6  ;;  %12126 = vadd.xlane.f32.xlu1 %v12125_v49  ;;  %v12119_v2 = vmul.f32 %v12111_v44, %v12111_v44  ;;  %v12120_v23 = vmul.f32 %v12112_v41, %v12112_v41 }
 0x736   :  { %v12113_v55 = vsub.f32 %v12088_v29, %v12107_v33  ;;  %v12114_v12 = vsub.f32 %v12089_v37, %v12107_v33  ;;  %v12128_v30 = vadd.f32 %v12120_v23, %v12119_v2 }
 0x737   :  { %v12103_v1 = vpop.xlane.xlu0 %12102 }
 0x738   :  { %v12108_v42 = vmul.f32 0.00390625, %v12103_v1  ;;  %12129 = vadd.xlane.f32.xlu0 %v12128_v30  ;;  %v12121_v57 = vmul.f32 %v12113_v55, %v12113_v55  ;;  %v12122_v25 = vmul.f32 %v12114_v12, %v12114_v12 }
 0x73a   :  { %v12115_v20 = vsub.f32 %v12090_v10, %v12108_v42  ;;  %v12116_v27 = vsub.f32 %v12091_v31, %v12108_v42  ;;  %v12131_v3 = vadd.f32 %v12122_v25, %v12121_v57 }
 0x73c   :  { %12132 = vadd.xlane.f32.xlu1 %v12131_v3  ;;  %v12123_v46 = vmul.f32 %v12115_v20, %v12115_v20  ;;  %v12124_v14 = vmul.f32 %v12116_v27, %v12116_v27 }
 0x73e   :  { %v12134_v51 = vadd.f32 %v12124_v14, %v12123_v46 }
 0x740   :  { %12135 = vadd.xlane.f32.xlu0 %v12134_v51 }
 0x7bd   :  { %v12127_v39 = vpop.xlane.xlu1 %12126 }
 0x7be   :  { %v12137_v48 = vmul.f32 0.00390625, %v12127_v39 }
 0x7c0   :  { %v12141_v28 = vadd.f32 1e-05, %v12137_v48 }
 0x7c1   :  { %v12130_v56 = vpop.xlane.xlu0 %12129 }
 0x7c2   :  { %13911 = vrsqrt.f32 %v12141_v28  ;;  %v12138_v59 = vmul.f32 0.00390625, %v12130_v56 }
 0x7c4   :  { %v12142_v11 = vadd.f32 1e-05, %v12138_v59 }
 0x7c5   :  { %v12133_v58 = vpop.xlane.xlu1 %12132 }
 0x7c6   :  { %13913 = vrsqrt.f32 %v12142_v11  ;;  %v12139_v47 = vmul.f32 0.00390625, %v12133_v58 }
 0x7c8   :  { %v12143_v9 = vadd.f32 1e-05, %v12139_v47 }
 0x7c9   :  { %v12136_v13 = vpop.xlane.xlu0 %12135 }
 0x7ca   :  { %13915 = vrsqrt.f32 %v12143_v9  ;;  %v12140_v7 = vmul.f32 0.00390625, %v12136_v13 }
 0x7cc   :  { %v12144_v35 = vadd.f32 1e-05, %v12140_v7 }
 0x7ce   :  { %13917 = vrsqrt.f32 %v12144_v35 }
 0x7cf   :  { %v13912_v21 = vpop.eup %13911 }
 0x7d0   :  { %v12149_v26 = vmul.f32 %v13912_v21, %v12109_v50  ;;  %v12150_v45 = vmul.f32 %v13912_v21, %v12110_v18 }
 0x7d2   :  { %vm12157_vm4 = vcmp.ge.f32.partialorder %v12149_v26, 0.0  ;;  %vm12158_vm5 = vcmp.ge.f32.partialorder %v12150_v45, 0.0  ;;  %v12165_v52 = vmul.f32 0.1, %v12149_v26  ;;  %v12166_v24 = vmul.f32 0.1, %v12150_v45 }
 0x7d3   :  { %v13914_v34 = vpop.eup %13913 }
 0x7d4   :  { %v12173_v53 = vsel %vm12157_vm4, %v12149_v26, %v12165_v52  ;;  %v12174_v4 = vsel %vm12158_vm5, %v12150_v45, %v12166_v24  ;;  %v12151_v0 = vmul.f32 %v13914_v34, %v12111_v44  ;;  %v12152_v38 = vmul.f32 %v13914_v34, %v12112_v41 }
 0x7d5   :  { %12181 = vst [vmem:[#allocation2] sm:$0xff] %v12173_v53  ;;  %12182 = vst [vmem:[#allocation2 + $0x8] sm:$0xff] %v12174_v4 }
 0x7d6   :  { %vm12159_vm6 = vcmp.ge.f32.partialorder %v12151_v0, 0.0  ;;  %vm12160_vm7 = vcmp.ge.f32.partialorder %v12152_v38, 0.0  ;;  %v12167_v16 = vmul.f32 0.1, %v12151_v0  ;;  %v12168_v40 = vmul.f32 0.1, %v12152_v38 }
 0x7d7   :  { %v13916_v43 = vpop.eup %13915 }
 0x7d8   :  { %v12175_v22 = vsel %vm12159_vm6, %v12151_v0, %v12167_v16  ;;  %v12176_v29 = vsel %vm12160_vm7, %v12152_v38, %v12168_v40  ;;  %v12153_v37 = vmul.f32 %v13916_v43, %v12113_v55  ;;  %v12154_v60 = vmul.f32 %v13916_v43, %v12114_v12 }
 0x7d9   :  { %12183 = vst [vmem:[#allocation2 + $0x10] sm:$0xff] %v12175_v22  ;;  %12184 = vst [vmem:[#allocation2 + $0x18] sm:$0xff] %v12176_v29 }
 0x7da   :  { %vm12161_vm8 = vcmp.ge.f32.partialorder %v12153_v37, 0.0  ;;  %vm12162_vm9 = vcmp.ge.f32.partialorder %v12154_v60, 0.0  ;;  %v12169_v15 = vmul.f32 0.1, %v12153_v37  ;;  %v12170_v17 = vmul.f32 0.1, %v12154_v60 }
 0x7db   :  { %v13918_v61 = vpop.eup %13917 }
 0x7dc   :  { %v12177_v8 = vsel %vm12161_vm8, %v12153_v37, %v12169_v15  ;;  %v12178_v10 = vsel %vm12162_vm9, %v12154_v60, %v12170_v17  ;;  %v12155_v31 = vmul.f32 %v13918_v61, %v12115_v20  ;;  %v12156_v63 = vmul.f32 %v13918_v61, %v12116_v27 }
 0x7dd   :  { %12185 = vst [vmem:[#allocation2 + $0x20] sm:$0xff] %v12177_v8  ;;  %12186 = vst [vmem:[#allocation2 + $0x28] sm:$0xff] %v12178_v10 }
 0x7de   :  { %vm12163_vm10 = vcmp.ge.f32.partialorder %v12155_v31, 0.0  ;;  %vm12164_vm11 = vcmp.ge.f32.partialorder %v12156_v63, 0.0  ;;  %v12171_v5 = vmul.f32 0.1, %v12155_v31  ;;  %v12172_v62 = vmul.f32 0.1, %v12156_v63 }
 0x7e0   :  { %v12179_v50 = vsel %vm12163_vm10, %v12155_v31, %v12171_v5  ;;  %v12180_v18 = vsel %vm12164_vm11, %v12156_v63, %v12172_v62 }
 0x7e1   :  { %12187 = vst [vmem:[#allocation2 + $0x30] sm:$0xff] %v12179_v50  ;;  %12188 = vst [vmem:[#allocation2 + $0x38] sm:$0xff] %v12180_v18 }
 0x7e2   :  { %14040 = shalt.err (!%p14037_p4)
}
 0x7e3   :  { %s14055_s9 = smov 256   ;;  %s14056_s0 = smov 16  }
 0x7e4   :  { %12200 = dma.vmem_to_hbm [thread:$0]  %s12195_s7, 1024, %s22944_s6, [#allocation3], %s14055_s9, %s14055_s9, %s14056_s0  }
 0x7e5   :  { %14049 = dma.done.wait [#allocation3], 1024  }
 0x7e6   :  { %14050 = vsyncadd [#allocation3], 4294966272 }
 0x7e7   :  { %12204 = vsyncpa [#allocation3], 1 }

</bundles_post_ra>
